<compile_context>
chip_gen: v5e
topology: v5e:2x2
jax: 0.10.0
libtpu: 0.0.40
codegen_flags: <defaults>
</compile_context>

<pallas_src>
import functools

import numpy as np
import jax
import jax.numpy as jnp
from jax.experimental import pallas as pl
from jax.experimental.pallas import tpu as pltpu


# ----------------------------------------------------------------------------
# Pallas kernel: one grid step == WB windows.
# ----------------------------------------------------------------------------
def window_attn_kernel(x_ref, wqkv_ref, bqkv_ref, bias_ref, wproj_ref, bproj_ref, o_ref,
                       *, num_heads, head_dim, wb, n_tok):
    C = num_heads * head_dim
    R = wb * n_tok
    mx = wqkv_ref.dtype                                   # MXU input dtype (bf16)

    # Fused QKV projection for all WB windows: (R, C) @ (C, 3C) on the MXU, f32 accumulate.
    x = x_ref[...].reshape(R, C)                          # merge leading dims (free)
    qkv = jnp.dot(x, wqkv_ref[...], preferred_element_type=jnp.float32)
    qkv = qkv + bqkv_ref[...]                             # (R, 3C) f32; q-scale pre-folded

    out = jnp.zeros((R, C), dtype=jnp.float32)
    wproj = wproj_ref[...]                                # (C, C) bf16, loaded once

    for h in range(num_heads):                            # short unrolled loop (H small)
        lo = h * head_dim
        qh = qkv[:, lo:lo + head_dim].reshape(wb, n_tok, head_dim).astype(mx)
        kh = qkv[:, C + lo:C + lo + head_dim].reshape(wb, n_tok, head_dim).astype(mx)
        vh = qkv[:, 2 * C + lo:2 * C + lo + head_dim].reshape(wb, n_tok, head_dim).astype(mx)

        # Batched scores over the WB windows; contraction on head_dim (no explicit k.T).
        s = jnp.einsum('bqd,bkd->bqk', qh, kh,
                       preferred_element_type=jnp.float32)        # (WB, N, N) f32
        s = s + bias_ref[h]                                       # rpb + shift mask, pre-added

        # Row-wise softmax in f32; reciprocal goes to the EUP slot.
        s = s - jnp.max(s, axis=-1, keepdims=True)
        p = jnp.exp(s)
        p = p * pl.reciprocal(jnp.sum(p, axis=-1, keepdims=True), approx=True)

        oh = jnp.einsum('bqk,bkd->bqd', p.astype(mx), vh,
                        preferred_element_type=jnp.float32)       # (WB, N, hd)

        # Fold the head-concat into the output projection:
        #   concat_h(oh) @ Wproj == sum_h oh @ Wproj[h*hd:(h+1)*hd, :]
        out = out + jnp.dot(oh.reshape(R, head_dim).astype(mx),
                            wproj[lo:lo + head_dim, :],
                            preferred_element_type=jnp.float32)

    out = out + bproj_ref[...]
    o_ref[...] = out.reshape(wb, n_tok, C).astype(o_ref.dtype)


# ----------------------------------------------------------------------------
# Glue: relative position index (same arithmetic as the PyTorch __init__).
# ----------------------------------------------------------------------------
def make_relative_position_index(Wh, Ww):
    coords = np.stack(np.meshgrid(np.arange(Wh), np.arange(Ww), indexing="ij"))  # (2,Wh,Ww)
    coords_flatten = coords.reshape(2, -1)                                        # (2, N)
    rel = coords_flatten[:, :, None] - coords_flatten[:, None, :]                 # (2, N, N)
    rel = rel.transpose(1, 2, 0).astype(np.int64)                                 # (N, N, 2)
    rel[:, :, 0] += Wh - 1
    rel[:, :, 1] += Ww - 1
    rel[:, :, 0] *= 2 * Ww - 1
    return rel.sum(-1)                                                            # (N, N)


def _pick_window_batch(B_, nW, N, target_rows=256, max_rows=2048):
    """Pick WB (windows per grid step): multiple of nW, divides B_, ~>=256 rows per step."""
    reps = B_ // nW
    best = 1
    for d in range(1, reps + 1):
        if reps % d:
            continue
        rows = d * nW * N
        if d == 1 or rows <= max_rows:
            best = d
        if rows >= target_rows:
            break
    return best * nW


def window_attention_pallas(x, params, window_size, num_heads, mask=None,
                            mxu_dtype=jnp.bfloat16):
    B_, N, C = x.shape
    assert N == window_size[0] * window_size[1]
    head_dim = C // num_heads
    scale = head_dim ** (-0.5)

    # relative position bias gather (glue, plain JAX): (H, N, N)
    rel_index = make_relative_position_index(*window_size)
    rpb = params["rpb_table"][rel_index.reshape(-1)]
    rpb = jnp.transpose(rpb.reshape(N, N, num_heads), (2, 0, 1)).astype(jnp.float32)

    if mask is None:
        nW = 1
        mask_arr = jnp.zeros((1, N, N), jnp.float32)
    else:
        nW = mask.shape[0]
        assert B_ % nW == 0
        mask_arr = mask.astype(jnp.float32)

    WB = _pick_window_batch(B_, nW, N)          # multiple of nW, divides B_
    num_blocks = B_ // WB

    # Pre-add rpb + shift mask -> (H, WB, N, N); periodic in nW, so identical for every block.
    combined = rpb[:, None, :, :] + mask_arr[None, :, :, :]        # (H, nW, N, N)
    bias_block = jnp.tile(combined, (1, WB // nW, 1, 1))           # (H, WB, N, N) f32

    # Fold the q scale into the q-third of the qkv weight/bias, then cast weights for the MXU.
    col_scale = jnp.concatenate([jnp.full((C,), scale, jnp.float32),
                                 jnp.ones((2 * C,), jnp.float32)])
    w_qkv = (params["w_qkv"].astype(jnp.float32) * col_scale[None, :]).astype(mxu_dtype)
    b_qkv = params["b_qkv"].astype(jnp.float32) * col_scale[None, :]   # stays f32
    w_proj = params["w_proj"].astype(mxu_dtype)
    b_proj = params["b_proj"].astype(jnp.float32)
    x_in = x.astype(mxu_dtype)                                         # halves x DMA bytes

    kernel = functools.partial(window_attn_kernel, num_heads=num_heads,
                               head_dim=head_dim, wb=WB, n_tok=N)

    out = pl.pallas_call(
        kernel,
        out_shape=jax.ShapeDtypeStruct((B_, N, C), x.dtype),
        grid_spec=pltpu.PrefetchScalarGridSpec(
            num_scalar_prefetch=0,
            grid=(num_blocks,),
            in_specs=[
                pl.BlockSpec((WB, N, C), lambda b: (b, 0, 0)),                 # x (WB windows)
                pl.BlockSpec((C, 3 * C), lambda b: (0, 0)),                    # W_qkv (bf16)
                pl.BlockSpec((1, 3 * C), lambda b: (0, 0)),                    # b_qkv (f32)
                pl.BlockSpec((num_heads, WB, N, N), lambda b: (0, 0, 0, 0)),   # rpb + mask
                pl.BlockSpec((C, C), lambda b: (0, 0)),                        # W_proj (bf16)
                pl.BlockSpec((1, C), lambda b: (0, 0)),                        # b_proj (f32)
            ],
            out_specs=pl.BlockSpec((WB, N, C), lambda b: (b, 0, 0)),
        ),
        # Window-batch axis is embarrassingly parallel -> sharded across TCs on v7x.
        compiler_params=pltpu.CompilerParams(dimension_semantics=("parallel",)),
    )(x_in, w_qkv, b_qkv, bias_block, w_proj, b_proj)
    return out


# ----------------------------------------------------------------------------
# Pure-JAX reference (mirrors the PyTorch forward exactly, f32).
# ----------------------------------------------------------------------------
def window_attention_ref(x, params, window_size, num_heads, mask=None):
    B_, N, C = x.shape
    hd = C // num_heads
    scale = hd ** (-0.5)

    qkv = x @ params["w_qkv"] + params["b_qkv"][0]                    # (B_, N, 3C)
    qkv = qkv.reshape(B_, N, 3, num_heads, hd).transpose(2, 0, 3, 1, 4)
    q, k, v = qkv[0] * scale, qkv[1], qkv[2]                          # (B_, H, N, hd)

    attn = jnp.einsum("bhnd,bhmd->bhnm", q, k)                        # (B_, H, N, N)

    rel_index = make_relative_position_index(*window_size)
    rpb = params["rpb_table"][rel_index.reshape(-1)].reshape(N, N, num_heads)
    rpb = jnp.transpose(rpb, (2, 0, 1))                               # (H, N, N)
    attn = attn + rpb[None]

    if mask is not None:
        nW = mask.shape[0]
        attn = attn.reshape(B_ // nW, nW, num_heads, N, N) + mask[None, :, None]
        attn = attn.reshape(B_, num_heads, N, N)

    attn = jax.nn.softmax(attn, axis=-1)
    out = jnp.einsum("bhnm,bhmd->bhnd", attn, v)
    out = out.transpose(0, 2, 1, 3).reshape(B_, N, C)
    return out @ params["w_proj"] + params["b_proj"][0]


# ----------------------------------------------------------------------------
if __name__ == "__main__":
    # Small but lane-dense shapes: C=128 keeps output stores unmasked (multiple of 128 lanes).
    dim = 128
    window_size = (4, 4)        # N = 16 tokens per window
    num_heads = 4               # head_dim = 32
    B = 8
    nW = 4                      # e.g. an 8x8 feature map split into 4x4 windows
    B_ = B * nW                 # 32 windows -> WB=16 windows (256 rows) per grid step
    N = window_size[0] * window_size[1]

    key = jax.random.PRNGKey(0)
    k_x, k_wq, k_bq, k_wp, k_bp, k_rpb, k_m = jax.random.split(key, 7)

    params = {
        # torch nn.Linear(dim, 3*dim): weight (3C, C); we store W.T -> (C, 3C)
        "w_qkv": jax.random.normal(k_wq, (dim, 3 * dim), jnp.float32) * 0.02,
        "b_qkv": jax.random.normal(k_bq, (1, 3 * dim), jnp.float32) * 0.02,
        # torch nn.Linear(dim, dim): stored as (C, C) = W.T
        "w_proj": jax.random.normal(k_wp, (dim, dim), jnp.float32) * 0.02,
        "b_proj": jax.random.normal(k_bp, (1, dim), jnp.float32) * 0.02,
        # relative_position_bias_table: ((2Wh-1)*(2Ww-1), num_heads)
        "rpb_table": jax.random.normal(
            k_rpb, ((2 * window_size[0] - 1) * (2 * window_size[1] - 1), num_heads),
            jnp.float32) * 0.02,
    }

    x = jax.random.normal(k_x, (B_, N, dim), jnp.float32)

    # Shifted-window style (0 / -100) mask, shape (nW, N, N).
    mask_bits = jax.random.bernoulli(k_m, p=0.8, shape=(nW, N, N))
    mask = jnp.where(mask_bits, 0.0, -100.0).astype(jnp.float32)

    # --- with shift mask ---
    out = window_attention_pallas(x, params, window_size, num_heads, mask=mask)
    out = jax.block_until_ready(out)
    ref = window_attention_ref(x, params, window_size, num_heads, mask=mask)
    np.testing.assert_allclose(np.asarray(out), np.asarray(ref), rtol=2e-2, atol=2e-2)

    # --- without mask (W-MSA path) ---
    out_nm = window_attention_pallas(x, params, window_size, num_heads, mask=None)
    out_nm = jax.block_until_ready(out_nm)
    ref_nm = window_attention_ref(x, params, window_size, num_heads, mask=None)
    np.testing.assert_allclose(np.asarray(out_nm), np.asarray(ref_nm), rtol=2e-2, atol=2e-2)

    # TODO(synk): attn_drop / proj_drop are identity in eval mode (p=0.0 default), not implemented.
    print("KERNEL_OK")
</pallas_src>

<mosaic_0001>
module attributes {stable_mosaic.version = 11 : i64} {
  func.func @window_attn_kernel(%arg0: i32, %arg1: memref<16x16x128xbf16, #tpu.memory_space<vmem>>, %arg2: memref<128x384xbf16, #tpu.memory_space<vmem>>, %arg3: memref<1x384xf32, #tpu.memory_space<vmem>>, %arg4: memref<4x16x16x16xf32, #tpu.memory_space<vmem>>, %arg5: memref<128x128xbf16, #tpu.memory_space<vmem>>, %arg6: memref<1x128xf32, #tpu.memory_space<vmem>>, %arg7: memref<16x16x128xf32, #tpu.memory_space<vmem>>) attributes {dimension_semantics = [#tpu.dimension_semantics<parallel>], iteration_bounds = array<i64: 2>, scalar_prefetch = 0 : i64, scratch_operands = 0 : i64, tpu.core_type = #tpu.core_type<tc>, window_params = [{transform_indices = @transform_0, window_bounds = array<i64: 16, 16, 128>}, {pipeline_mode = #tpu.pipeline_mode<synchronous>, transform_indices = @transform_1, window_bounds = array<i64: 128, 384>}, {pipeline_mode = #tpu.pipeline_mode<synchronous>, transform_indices = @transform_2, window_bounds = array<i64: 1, 384>}, {pipeline_mode = #tpu.pipeline_mode<synchronous>, transform_indices = @transform_3, window_bounds = array<i64: 4, 16, 16, 16>}, {pipeline_mode = #tpu.pipeline_mode<synchronous>, transform_indices = @transform_4, window_bounds = array<i64: 128, 128>}, {pipeline_mode = #tpu.pipeline_mode<synchronous>, transform_indices = @transform_5, window_bounds = array<i64: 1, 128>}, {transform_indices = @transform_6, window_bounds = array<i64: 16, 16, 128>}]} {
    %c0 = arith.constant 0 : index
    %c0_0 = arith.constant 0 : index
    %c0_1 = arith.constant 0 : index
    %0 = vector.load %arg1[%c0, %c0_0, %c0_1] : memref<16x16x128xbf16, #tpu.memory_space<vmem>>, vector<16x16x128xbf16>
    %1 = vector.shape_cast %0 : vector<16x16x128xbf16> to vector<256x128xbf16>
    %c0_2 = arith.constant 0 : index
    %c0_3 = arith.constant 0 : index
    %2 = vector.load %arg2[%c0_2, %c0_3] : memref<128x384xbf16, #tpu.memory_space<vmem>>, vector<128x384xbf16>
    %cst = arith.constant dense<0.000000e+00> : vector<256x384xf32>
    %3 = tpu.matmul %1, %2, %cst {dimension_numbers = #tpu.dot_dimension_numbers<[1], [0], [0], [1], [0, 0, 1, 1], [], []>} : vector<256x128xbf16>, vector<128x384xbf16>, vector<256x384xf32> -> vector<256x384xf32>
    %c0_4 = arith.constant 0 : index
    %c0_5 = arith.constant 0 : index
    %4 = vector.load %arg3[%c0_4, %c0_5] : memref<1x384xf32, #tpu.memory_space<vmem>>, vector<1x384xf32>
    %5 = vector.broadcast %4 : vector<1x384xf32> to vector<256x384xf32>
    %6 = arith.addf %3, %5 : vector<256x384xf32>
    %cst_6 = arith.constant 0.000000e+00 : f32
    %7 = vector.broadcast %cst_6 : f32 to vector<256x128xf32>
    %c0_7 = arith.constant 0 : index
    %c0_8 = arith.constant 0 : index
    %8 = vector.load %arg5[%c0_7, %c0_8] : memref<128x128xbf16, #tpu.memory_space<vmem>>, vector<128x128xbf16>
    %9 = vector.extract_strided_slice %6 {offsets = [0, 0], sizes = [256, 32], strides = [1, 1]} : vector<256x384xf32> to vector<256x32xf32>
    %10 = vector.shape_cast %9 : vector<256x32xf32> to vector<16x16x32xf32>
    %11 = arith.truncf %10 : vector<16x16x32xf32> to vector<16x16x32xbf16>
    %12 = vector.extract_strided_slice %6 {offsets = [0, 128], sizes = [256, 32], strides = [1, 1]} : vector<256x384xf32> to vector<256x32xf32>
    %13 = vector.shape_cast %12 : vector<256x32xf32> to vector<16x16x32xf32>
    %14 = arith.truncf %13 : vector<16x16x32xf32> to vector<16x16x32xbf16>
    %15 = vector.extract_strided_slice %6 {offsets = [0, 256], sizes = [256, 32], strides = [1, 1]} : vector<256x384xf32> to vector<256x32xf32>
    %16 = vector.shape_cast %15 : vector<256x32xf32> to vector<16x16x32xf32>
    %17 = arith.truncf %16 : vector<16x16x32xf32> to vector<16x16x32xbf16>
    "tpu.trace_start"() <{level = 10 : i32, message = "bqd,bkd->bqk"}> : () -> ()
    %cst_9 = arith.constant dense<0.000000e+00> : vector<16x16x16xf32>
    %18 = tpu.matmul %11, %14, %cst_9 {dimension_numbers = #tpu.dot_dimension_numbers<[2], [2], [1], [1], [0, 0, 0, 1, 1, 1], [0], [0]>} : vector<16x16x32xbf16>, vector<16x16x32xbf16>, vector<16x16x16xf32> -> vector<16x16x16xf32>
    "tpu.trace_stop"() : () -> ()
    %c0_10 = arith.constant 0 : index
    %c0_11 = arith.constant 0 : index
    %c0_12 = arith.constant 0 : index
    %c0_13 = arith.constant 0 : index
    %19 = vector.load %arg4[%c0_10, %c0_11, %c0_12, %c0_13] : memref<4x16x16x16xf32, #tpu.memory_space<vmem>>, vector<1x16x16x16xf32>
    %20 = vector.shape_cast %19 : vector<1x16x16x16xf32> to vector<16x16x16xf32>
    %21 = arith.addf %18, %20 : vector<16x16x16xf32>
    %cst_14 = arith.constant dense<0xFF800000> : vector<16x16xf32>
    %22 = vector.multi_reduction <maximumf>, %21, %cst_14 [2] : vector<16x16x16xf32> to vector<16x16xf32>
    %23 = vector.shape_cast %22 : vector<16x16xf32> to vector<16x16x1xf32>
    %24 = vector.broadcast %23 : vector<16x16x1xf32> to vector<16x16x16xf32>
    %25 = arith.subf %21, %24 : vector<16x16x16xf32>
    %26 = math.exp %25 : vector<16x16x16xf32>
    %cst_15 = arith.constant dense<0.000000e+00> : vector<16x16xf32>
    %27 = vector.multi_reduction <add>, %26, %cst_15 [2] : vector<16x16x16xf32> to vector<16x16xf32>
    %28 = vector.shape_cast %27 : vector<16x16xf32> to vector<16x16x1xf32>
    %29 = tpu.reciprocal %28 {approx = true} : vector<16x16x1xf32> -> vector<16x16x1xf32>
    %30 = vector.broadcast %29 : vector<16x16x1xf32> to vector<16x16x16xf32>
    %31 = arith.mulf %26, %30 : vector<16x16x16xf32>
    %32 = arith.truncf %31 : vector<16x16x16xf32> to vector<16x16x16xbf16>
    "tpu.trace_start"() <{level = 10 : i32, message = "bqk,bkd->bqd"}> : () -> ()
    %cst_16 = arith.constant dense<0.000000e+00> : vector<16x16x32xf32>
    %33 = tpu.matmul %32, %17, %cst_16 {dimension_numbers = #tpu.dot_dimension_numbers<[2], [1], [1], [2], [0, 0, 0, 1, 1, 2], [0], [0]>} : vector<16x16x16xbf16>, vector<16x16x32xbf16>, vector<16x16x32xf32> -> vector<16x16x32xf32>
    "tpu.trace_stop"() : () -> ()
    %34 = vector.shape_cast %33 : vector<16x16x32xf32> to vector<256x32xf32>
    %35 = arith.truncf %34 : vector<256x32xf32> to vector<256x32xbf16>
    %36 = vector.extract_strided_slice %8 {offsets = [0, 0], sizes = [32, 128], strides = [1, 1]} : vector<128x128xbf16> to vector<32x128xbf16>
    %cst_17 = arith.constant dense<0.000000e+00> : vector<256x128xf32>
    %37 = tpu.matmul %35, %36, %cst_17 {dimension_numbers = #tpu.dot_dimension_numbers<[1], [0], [0], [1], [0, 0, 1, 1], [], []>} : vector<256x32xbf16>, vector<32x128xbf16>, vector<256x128xf32> -> vector<256x128xf32>
    %38 = arith.addf %7, %37 : vector<256x128xf32>
    %39 = vector.extract_strided_slice %6 {offsets = [0, 32], sizes = [256, 32], strides = [1, 1]} : vector<256x384xf32> to vector<256x32xf32>
    %40 = vector.shape_cast %39 : vector<256x32xf32> to vector<16x16x32xf32>
    %41 = arith.truncf %40 : vector<16x16x32xf32> to vector<16x16x32xbf16>
    %42 = vector.extract_strided_slice %6 {offsets = [0, 160], sizes = [256, 32], strides = [1, 1]} : vector<256x384xf32> to vector<256x32xf32>
    %43 = vector.shape_cast %42 : vector<256x32xf32> to vector<16x16x32xf32>
    %44 = arith.truncf %43 : vector<16x16x32xf32> to vector<16x16x32xbf16>
    %45 = vector.extract_strided_slice %6 {offsets = [0, 288], sizes = [256, 32], strides = [1, 1]} : vector<256x384xf32> to vector<256x32xf32>
    %46 = vector.shape_cast %45 : vector<256x32xf32> to vector<16x16x32xf32>
    %47 = arith.truncf %46 : vector<16x16x32xf32> to vector<16x16x32xbf16>
    "tpu.trace_start"() <{level = 10 : i32, message = "bqd,bkd->bqk"}> : () -> ()
    %cst_18 = arith.constant dense<0.000000e+00> : vector<16x16x16xf32>
    %48 = tpu.matmul %41, %44, %cst_18 {dimension_numbers = #tpu.dot_dimension_numbers<[2], [2], [1], [1], [0, 0, 0, 1, 1, 1], [0], [0]>} : vector<16x16x32xbf16>, vector<16x16x32xbf16>, vector<16x16x16xf32> -> vector<16x16x16xf32>
    "tpu.trace_stop"() : () -> ()
    %c1 = arith.constant 1 : index
    %c0_19 = arith.constant 0 : index
    %c0_20 = arith.constant 0 : index
    %c0_21 = arith.constant 0 : index
    %49 = vector.load %arg4[%c1, %c0_19, %c0_20, %c0_21] : memref<4x16x16x16xf32, #tpu.memory_space<vmem>>, vector<1x16x16x16xf32>
    %50 = vector.shape_cast %49 : vector<1x16x16x16xf32> to vector<16x16x16xf32>
    %51 = arith.addf %48, %50 : vector<16x16x16xf32>
    %cst_22 = arith.constant dense<0xFF800000> : vector<16x16xf32>
    %52 = vector.multi_reduction <maximumf>, %51, %cst_22 [2] : vector<16x16x16xf32> to vector<16x16xf32>
    %53 = vector.shape_cast %52 : vector<16x16xf32> to vector<16x16x1xf32>
    %54 = vector.broadcast %53 : vector<16x16x1xf32> to vector<16x16x16xf32>
    %55 = arith.subf %51, %54 : vector<16x16x16xf32>
    %56 = math.exp %55 : vector<16x16x16xf32>
    %cst_23 = arith.constant dense<0.000000e+00> : vector<16x16xf32>
    %57 = vector.multi_reduction <add>, %56, %cst_23 [2] : vector<16x16x16xf32> to vector<16x16xf32>
    %58 = vector.shape_cast %57 : vector<16x16xf32> to vector<16x16x1xf32>
    %59 = tpu.reciprocal %58 {approx = true} : vector<16x16x1xf32> -> vector<16x16x1xf32>
    %60 = vector.broadcast %59 : vector<16x16x1xf32> to vector<16x16x16xf32>
    %61 = arith.mulf %56, %60 : vector<16x16x16xf32>
    %62 = arith.truncf %61 : vector<16x16x16xf32> to vector<16x16x16xbf16>
    "tpu.trace_start"() <{level = 10 : i32, message = "bqk,bkd->bqd"}> : () -> ()
    %cst_24 = arith.constant dense<0.000000e+00> : vector<16x16x32xf32>
    %63 = tpu.matmul %62, %47, %cst_24 {dimension_numbers = #tpu.dot_dimension_numbers<[2], [1], [1], [2], [0, 0, 0, 1, 1, 2], [0], [0]>} : vector<16x16x16xbf16>, vector<16x16x32xbf16>, vector<16x16x32xf32> -> vector<16x16x32xf32>
    "tpu.trace_stop"() : () -> ()
    %64 = vector.shape_cast %63 : vector<16x16x32xf32> to vector<256x32xf32>
    %65 = arith.truncf %64 : vector<256x32xf32> to vector<256x32xbf16>
    %66 = vector.extract_strided_slice %8 {offsets = [32, 0], sizes = [32, 128], strides = [1, 1]} : vector<128x128xbf16> to vector<32x128xbf16>
    %cst_25 = arith.constant dense<0.000000e+00> : vector<256x128xf32>
    %67 = tpu.matmul %65, %66, %cst_25 {dimension_numbers = #tpu.dot_dimension_numbers<[1], [0], [0], [1], [0, 0, 1, 1], [], []>} : vector<256x32xbf16>, vector<32x128xbf16>, vector<256x128xf32> -> vector<256x128xf32>
    %68 = arith.addf %38, %67 : vector<256x128xf32>
    %69 = vector.extract_strided_slice %6 {offsets = [0, 64], sizes = [256, 32], strides = [1, 1]} : vector<256x384xf32> to vector<256x32xf32>
    %70 = vector.shape_cast %69 : vector<256x32xf32> to vector<16x16x32xf32>
    %71 = arith.truncf %70 : vector<16x16x32xf32> to vector<16x16x32xbf16>
    %72 = vector.extract_strided_slice %6 {offsets = [0, 192], sizes = [256, 32], strides = [1, 1]} : vector<256x384xf32> to vector<256x32xf32>
    %73 = vector.shape_cast %72 : vector<256x32xf32> to vector<16x16x32xf32>
    %74 = arith.truncf %73 : vector<16x16x32xf32> to vector<16x16x32xbf16>
    %75 = vector.extract_strided_slice %6 {offsets = [0, 320], sizes = [256, 32], strides = [1, 1]} : vector<256x384xf32> to vector<256x32xf32>
    %76 = vector.shape_cast %75 : vector<256x32xf32> to vector<16x16x32xf32>
    %77 = arith.truncf %76 : vector<16x16x32xf32> to vector<16x16x32xbf16>
    "tpu.trace_start"() <{level = 10 : i32, message = "bqd,bkd->bqk"}> : () -> ()
    %cst_26 = arith.constant dense<0.000000e+00> : vector<16x16x16xf32>
    %78 = tpu.matmul %71, %74, %cst_26 {dimension_numbers = #tpu.dot_dimension_numbers<[2], [2], [1], [1], [0, 0, 0, 1, 1, 1], [0], [0]>} : vector<16x16x32xbf16>, vector<16x16x32xbf16>, vector<16x16x16xf32> -> vector<16x16x16xf32>
    "tpu.trace_stop"() : () -> ()
    %c2 = arith.constant 2 : index
    %c0_27 = arith.constant 0 : index
    %c0_28 = arith.constant 0 : index
    %c0_29 = arith.constant 0 : index
    %79 = vector.load %arg4[%c2, %c0_27, %c0_28, %c0_29] : memref<4x16x16x16xf32, #tpu.memory_space<vmem>>, vector<1x16x16x16xf32>
    %80 = vector.shape_cast %79 : vector<1x16x16x16xf32> to vector<16x16x16xf32>
    %81 = arith.addf %78, %80 : vector<16x16x16xf32>
    %cst_30 = arith.constant dense<0xFF800000> : vector<16x16xf32>
    %82 = vector.multi_reduction <maximumf>, %81, %cst_30 [2] : vector<16x16x16xf32> to vector<16x16xf32>
    %83 = vector.shape_cast %82 : vector<16x16xf32> to vector<16x16x1xf32>
    %84 = vector.broadcast %83 : vector<16x16x1xf32> to vector<16x16x16xf32>
    %85 = arith.subf %81, %84 : vector<16x16x16xf32>
    %86 = math.exp %85 : vector<16x16x16xf32>
    %cst_31 = arith.constant dense<0.000000e+00> : vector<16x16xf32>
    %87 = vector.multi_reduction <add>, %86, %cst_31 [2] : vector<16x16x16xf32> to vector<16x16xf32>
    %88 = vector.shape_cast %87 : vector<16x16xf32> to vector<16x16x1xf32>
    %89 = tpu.reciprocal %88 {approx = true} : vector<16x16x1xf32> -> vector<16x16x1xf32>
    %90 = vector.broadcast %89 : vector<16x16x1xf32> to vector<16x16x16xf32>
    %91 = arith.mulf %86, %90 : vector<16x16x16xf32>
    %92 = arith.truncf %91 : vector<16x16x16xf32> to vector<16x16x16xbf16>
    "tpu.trace_start"() <{level = 10 : i32, message = "bqk,bkd->bqd"}> : () -> ()
    %cst_32 = arith.constant dense<0.000000e+00> : vector<16x16x32xf32>
    %93 = tpu.matmul %92, %77, %cst_32 {dimension_numbers = #tpu.dot_dimension_numbers<[2], [1], [1], [2], [0, 0, 0, 1, 1, 2], [0], [0]>} : vector<16x16x16xbf16>, vector<16x16x32xbf16>, vector<16x16x32xf32> -> vector<16x16x32xf32>
    "tpu.trace_stop"() : () -> ()
    %94 = vector.shape_cast %93 : vector<16x16x32xf32> to vector<256x32xf32>
    %95 = arith.truncf %94 : vector<256x32xf32> to vector<256x32xbf16>
    %96 = vector.extract_strided_slice %8 {offsets = [64, 0], sizes = [32, 128], strides = [1, 1]} : vector<128x128xbf16> to vector<32x128xbf16>
    %cst_33 = arith.constant dense<0.000000e+00> : vector<256x128xf32>
    %97 = tpu.matmul %95, %96, %cst_33 {dimension_numbers = #tpu.dot_dimension_numbers<[1], [0], [0], [1], [0, 0, 1, 1], [], []>} : vector<256x32xbf16>, vector<32x128xbf16>, vector<256x128xf32> -> vector<256x128xf32>
    %98 = arith.addf %68, %97 : vector<256x128xf32>
    %99 = vector.extract_strided_slice %6 {offsets = [0, 96], sizes = [256, 32], strides = [1, 1]} : vector<256x384xf32> to vector<256x32xf32>
    %100 = vector.shape_cast %99 : vector<256x32xf32> to vector<16x16x32xf32>
    %101 = arith.truncf %100 : vector<16x16x32xf32> to vector<16x16x32xbf16>
    %102 = vector.extract_strided_slice %6 {offsets = [0, 224], sizes = [256, 32], strides = [1, 1]} : vector<256x384xf32> to vector<256x32xf32>
    %103 = vector.shape_cast %102 : vector<256x32xf32> to vector<16x16x32xf32>
    %104 = arith.truncf %103 : vector<16x16x32xf32> to vector<16x16x32xbf16>
    %105 = vector.extract_strided_slice %6 {offsets = [0, 352], sizes = [256, 32], strides = [1, 1]} : vector<256x384xf32> to vector<256x32xf32>
    %106 = vector.shape_cast %105 : vector<256x32xf32> to vector<16x16x32xf32>
    %107 = arith.truncf %106 : vector<16x16x32xf32> to vector<16x16x32xbf16>
    "tpu.trace_start"() <{level = 10 : i32, message = "bqd,bkd->bqk"}> : () -> ()
    %cst_34 = arith.constant dense<0.000000e+00> : vector<16x16x16xf32>
    %108 = tpu.matmul %101, %104, %cst_34 {dimension_numbers = #tpu.dot_dimension_numbers<[2], [2], [1], [1], [0, 0, 0, 1, 1, 1], [0], [0]>} : vector<16x16x32xbf16>, vector<16x16x32xbf16>, vector<16x16x16xf32> -> vector<16x16x16xf32>
    "tpu.trace_stop"() : () -> ()
    %c3 = arith.constant 3 : index
    %c0_35 = arith.constant 0 : index
    %c0_36 = arith.constant 0 : index
    %c0_37 = arith.constant 0 : index
    %109 = vector.load %arg4[%c3, %c0_35, %c0_36, %c0_37] : memref<4x16x16x16xf32, #tpu.memory_space<vmem>>, vector<1x16x16x16xf32>
    %110 = vector.shape_cast %109 : vector<1x16x16x16xf32> to vector<16x16x16xf32>
    %111 = arith.addf %108, %110 : vector<16x16x16xf32>
    %cst_38 = arith.constant dense<0xFF800000> : vector<16x16xf32>
    %112 = vector.multi_reduction <maximumf>, %111, %cst_38 [2] : vector<16x16x16xf32> to vector<16x16xf32>
    %113 = vector.shape_cast %112 : vector<16x16xf32> to vector<16x16x1xf32>
    %114 = vector.broadcast %113 : vector<16x16x1xf32> to vector<16x16x16xf32>
    %115 = arith.subf %111, %114 : vector<16x16x16xf32>
    %116 = math.exp %115 : vector<16x16x16xf32>
    %cst_39 = arith.constant dense<0.000000e+00> : vector<16x16xf32>
    %117 = vector.multi_reduction <add>, %116, %cst_39 [2] : vector<16x16x16xf32> to vector<16x16xf32>
    %118 = vector.shape_cast %117 : vector<16x16xf32> to vector<16x16x1xf32>
    %119 = tpu.reciprocal %118 {approx = true} : vector<16x16x1xf32> -> vector<16x16x1xf32>
    %120 = vector.broadcast %119 : vector<16x16x1xf32> to vector<16x16x16xf32>
    %121 = arith.mulf %116, %120 : vector<16x16x16xf32>
    %122 = arith.truncf %121 : vector<16x16x16xf32> to vector<16x16x16xbf16>
    "tpu.trace_start"() <{level = 10 : i32, message = "bqk,bkd->bqd"}> : () -> ()
    %cst_40 = arith.constant dense<0.000000e+00> : vector<16x16x32xf32>
    %123 = tpu.matmul %122, %107, %cst_40 {dimension_numbers = #tpu.dot_dimension_numbers<[2], [1], [1], [2], [0, 0, 0, 1, 1, 2], [0], [0]>} : vector<16x16x16xbf16>, vector<16x16x32xbf16>, vector<16x16x32xf32> -> vector<16x16x32xf32>
    "tpu.trace_stop"() : () -> ()
    %124 = vector.shape_cast %123 : vector<16x16x32xf32> to vector<256x32xf32>
    %125 = arith.truncf %124 : vector<256x32xf32> to vector<256x32xbf16>
    %126 = vector.extract_strided_slice %8 {offsets = [96, 0], sizes = [32, 128], strides = [1, 1]} : vector<128x128xbf16> to vector<32x128xbf16>
    %cst_41 = arith.constant dense<0.000000e+00> : vector<256x128xf32>
    %127 = tpu.matmul %125, %126, %cst_41 {dimension_numbers = #tpu.dot_dimension_numbers<[1], [0], [0], [1], [0, 0, 1, 1], [], []>} : vector<256x32xbf16>, vector<32x128xbf16>, vector<256x128xf32> -> vector<256x128xf32>
    %128 = arith.addf %98, %127 : vector<256x128xf32>
    %c0_42 = arith.constant 0 : index
    %c0_43 = arith.constant 0 : index
    %129 = vector.load %arg6[%c0_42, %c0_43] : memref<1x128xf32, #tpu.memory_space<vmem>>, vector<1x128xf32>
    %130 = vector.broadcast %129 : vector<1x128xf32> to vector<256x128xf32>
    %131 = arith.addf %128, %130 : vector<256x128xf32>
    %132 = vector.shape_cast %131 : vector<256x128xf32> to vector<16x16x128xf32>
    %c0_44 = arith.constant 0 : index
    %c0_45 = arith.constant 0 : index
    %c0_46 = arith.constant 0 : index
    %133 = vector.load %arg7[%c0_44, %c0_45, %c0_46] : memref<16x16x128xf32, #tpu.memory_space<vmem>>, vector<16x16x128xf32>
    tpu.vector_store %arg7[%c0_44, %c0_45, %c0_46], %132 {strides = array<i32>} : memref<16x16x128xf32, #tpu.memory_space<vmem>>, vector<16x16x128xf32>,
    return
  }
  func.func @transform_0(%arg0: i32) -> (i32, i32, i32) {
    %c0_i32 = arith.constant 0 : i32
    %c0_i32_0 = arith.constant 0 : i32
    %c0_i32_1 = arith.constant 0 : i32
    return %arg0, %c0_i32, %c0_i32_0 : i32, i32, i32
  }
  func.func @transform_1(%arg0: i32) -> (i32, i32) {
    %c0_i32 = arith.constant 0 : i32
    %c0_i32_0 = arith.constant 0 : i32
    %c0_i32_1 = arith.constant 0 : i32
    return %c0_i32, %c0_i32_0 : i32, i32
  }
  func.func @transform_2(%arg0: i32) -> (i32, i32) {
    %c0_i32 = arith.constant 0 : i32
    %c0_i32_0 = arith.constant 0 : i32
    %c0_i32_1 = arith.constant 0 : i32
    return %c0_i32, %c0_i32_0 : i32, i32
  }
  func.func @transform_3(%arg0: i32) -> (i32, i32, i32, i32) {
    %c0_i32 = arith.constant 0 : i32
    %c0_i32_0 = arith.constant 0 : i32
    %c0_i32_1 = arith.constant 0 : i32
    %c0_i32_2 = arith.constant 0 : i32
    %c0_i32_3 = arith.constant 0 : i32
    return %c0_i32, %c0_i32_0, %c0_i32_1, %c0_i32_2 : i32, i32, i32, i32
  }
  func.func @transform_4(%arg0: i32) -> (i32, i32) {
    %c0_i32 = arith.constant 0 : i32
    %c0_i32_0 = arith.constant 0 : i32
    %c0_i32_1 = arith.constant 0 : i32
    return %c0_i32, %c0_i32_0 : i32, i32
  }
  func.func @transform_5(%arg0: i32) -> (i32, i32) {
    %c0_i32 = arith.constant 0 : i32
    %c0_i32_0 = arith.constant 0 : i32
    %c0_i32_1 = arith.constant 0 : i32
    return %c0_i32, %c0_i32_0 : i32, i32
  }
  func.func @transform_6(%arg0: i32) -> (i32, i32, i32) {
    %c0_i32 = arith.constant 0 : i32
    %c0_i32_0 = arith.constant 0 : i32
    %c0_i32_1 = arith.constant 0 : i32
    return %arg0, %c0_i32, %c0_i32_0 : i32, i32, i32
  }
}

</mosaic_0001>

<bundles_post_ra>
// kernel: tpu_custom_call.1
= control target key start
LH: loop header
LB: loop body
LE: loop exit
PB: predicated region body
PF: predicated region fallthrough
CT: control target
= control target key end

     0   :  { %11 = vsyncpa [#allocation3], 0  ;;  %s11570_s0 = inlined_call_operand.hbm [shape: bf16[32,16,128], index: 0, kind: input, shape index: {}]   ;;  %s11571_s1 = inlined_call_operand.hbm [shape: bf16[128,384], index: 1, kind: input, shape index: {}]   ;;  %s11572_s2 = inlined_call_operand.hbm [shape: f32[1,384], index: 2, kind: input, shape index: {}]   ;;  %s11573_s3 = inlined_call_operand.hbm [shape: f32[4,16,16,16], index: 3, kind: input, shape index: {}]   ;;  %s11574_s4 = inlined_call_operand.hbm [shape: bf16[128,128], index: 4, kind: input, shape index: {}]   ;;  %s11575_s5 = inlined_call_operand.vmem [shape: f32[1,128], index: 5, kind: input, shape index: {}]   ;;  %s11576_s6 = inlined_call_operand.hbm [shape: f32[32,16,128], index: 6, kind: output, shape index: {}]  }
   0x1   :  { %13 = vsyncpa [#allocation3 + $0x1], 0 }
   0x2   :  { %14 = vsyncpa [#allocation6], 0 }
   0x3   :  { %15 = vsyncpa [#allocation9], 0 }
   0x4   :  { %16 = vsyncpa [#allocation4], 0 }
   0x5   :  { %18 = vsyncpa [#allocation4 + $0x1], 0  ;;  %s8235_s21 = smov 0   ;;  %s8237_s22 = smov 0  }
   0x6   :  { %s8239_s23 = smov 0   ;;  %s8241_s24 = smov 0  }
   0x7 LB: > { %s8256_s25 = sadd.s32 4294967295, %s8183_s24   ;;  %s6884_s26 = sadd.s32 4294967294, %s8183_s24   ;;  %s8183_s24 = sphi %s8241_s24, %s12151_s24   ;;  %s8179_s23 = sphi %s8239_s23, %s12150_s23   ;;  %s8175_s22 = sphi %s8237_s22, %s12149_s22   ;;  %s8171_s21 = sphi %s8235_s21, %s12148_s21  }
   0x8   : > { %p44_p0 = scmp.ne.s32.totalorder %s8175_s22, %s8171_s21  ;;  %p45_p1 = scmp.eq.s32.totalorder %s8256_s25, 0 }
   0x9   : > { %p173_p2 = scmp.eq.s32.totalorder %s8256_s25, 1  ;;  %p179_p3 = scmp.eq.s32.totalorder %s6884_s26, 1 }
   0xa   : > { %p8265_p4 = por %p45_p1, %p44_p0  ;;  %p6885_p5 = scmp.ge.s32.totalorder %s8183_s24, 1 }
   0xb   : > { %p8270_p6 = por %p179_p3, %p44_p0  ;;  %p186_p7 = scmp.lt.s32.totalorder %s8183_s24, 3 }
   0xc   : > { %s197_s7 = sshll.u32 %s11571_s1, 4  ;;  %s8185_s9 = smov [#allocation5]   ;;  %s198_s7 = int_to_ptr.hbm [resolvable:$true] %s197_s7 }
   0xd   : > { %p8278_p8 = pnand %p6885_p5, %p186_p7  ;;  %s199_s10 = sshll.u32 %s8185_s9, 4  ;;  %s200_s10 = int_to_ptr.vmem [resolvable:$true] %s199_s10 }
   0xe   : > { %s223_s14 = sshll.u32 %s11573_s3, 4  ;;  %s8186_s15 = smov 192   ;;  %s224_s14 = int_to_ptr.hbm [resolvable:$true] %s223_s14 }
   0xf   : > { %p7368_p9 = pneg %p8278_p8  ;;  %s8187_s16 = smov 12  }
  0x10   : > { %s8188_s17 = smov [#allocation8]   ;;  %s8189_s19 = smov 128  }
  0x11   : > { %p8286_p10 = pnand %p7368_p9, %p45_p1  ;;  %s225_s18 = sshll.u32 %s8188_s17, 4  ;;  %s226_s18 = int_to_ptr.vmem [resolvable:$true] %s225_s18 }
  0x12   : > { %s8190_s20 = smov 8   ;;  %s212_s30 = sshll.u32 %s11572_s2, 4  ;;  %s213_s30 = int_to_ptr.hbm [resolvable:$true] %s212_s30 }
  0x13   : > { %7371 = dma.hbm_to_vmem [thread:$0]  (!%p8286_p10), %s198_s7, 3072, %s200_s10, [#allocation6], %s8186_s15, %s8186_s15, %s8187_s16  }
  0x14   : > { %7377 = dma.hbm_to_vmem [thread:$0]  (!%p8286_p10), %s224_s14, 16384, %s226_s18, [#allocation9], %s8189_s19, %s8189_s19, %s8190_s20  }
  0x15   : > { %s8191_s9 = smov [#allocation7]   ;;  %s237_s13 = sshll.u32 %s11574_s4, 4  ;;  %s238_s13 = int_to_ptr.hbm [resolvable:$true] %s237_s13 }
  0x16   : > { %s214_s7 = sshll.u32 %s8191_s9, 4  ;;  %s8192_s14 = smov [#allocation10]   ;;  %s215_s7 = int_to_ptr.vmem [resolvable:$true] %s214_s7 }
  0x17   : > { %7374 = dma.hbm_to_vmem [thread:$0]  (!%p8286_p10), %s213_s30, 48, %s215_s7, [#allocation6]  }
  0x18   : > { %s239_s15 = sshll.u32 %s8192_s14, 4  ;;  %s11577_s16 = smov 64   ;;  %s240_s15 = int_to_ptr.vmem [resolvable:$true] %s239_s15 }
  0x19   : > { %s11578_s17 = smov 4   ;;  %s8312_s18 = sadd.s32 1, %s8183_s24  }
  0x1a   : > { %7380 = dma.hbm_to_vmem [thread:$0]  (!%p8286_p10), %s238_s13, 1024, %s240_s15, [#allocation9], %s11577_s16, %s11577_s16, %s11578_s17  }
  0x1b   : > { %s28_s19 = ssub.s32 %s8183_s24, %s8312_s18  ;;  %s31_s20 = sadd.s32 1, %s8179_s23 }
  0x1c   : > { %p29_p12 = scmp.eq.s32.totalorder %s28_s19, 0  ;;  %p38_p13 = scmp.ne.s32.totalorder %s8179_s23, %s8175_s22 }
  0x1d   : > { %p39_p0 = scmp.eq.s32.totalorder %s8183_s24, 0  ;;  %p7393_p7 = scmp.lt.s32.totalorder %s8183_s24, 2 }
  0x1e   : > { %s8321_s26 = scalar_select %p29_p12, %s8179_s23, %s31_s20  }
  0x1f   : > { %p40_p3 = por %p39_p0, %p38_p13  ;;  %p8325_p5 = por %p173_p2, %p38_p13 }
  0x20   : > { %s256_s11 = sand.u32 1, %s8179_s23   ;;  %s7293_s9 = sshll.u32 %s8183_s24, 7 }
  0x21   : > { %s6891_s30 = sshll.u32 %s256_s11, 7  ;;  %s266_s12 = scalar_lea.hbm %s11570_s0, %s7293_s9 }
  0x22   : > { %s260_s13 = scalar_lea.vmem [#allocation2], %s6891_s30  ;;  %s267_s15 = sshll.u32 %s266_s12, 4  ;;  %s268_s15 = int_to_ptr.hbm [resolvable:$true] %s267_s15 }
  0x23   : > { %s269_s14 = sshll.u32 %s260_s13, 4  ;;  %p8335_p9 = pnand %p7393_p7, %p40_p3  ;;  %s270_s14 = int_to_ptr.vmem [resolvable:$true] %s269_s14 }
  0x24   : > { %s257_s20 = scalar_lea.sflag [#allocation3], %s256_s11  ;;  %s8079_s16 = sshra.s32 %s268_s15, 4  ;;  %s8080_s16 = int_to_ptr.hbm [resolvable:$true] %s8079_s16 }
  0x25   : > { %s8081_s17 = scalar_lea.hbm %s8080_s16, 128  ;;  %p8083_p10 = pneg %p8335_p9 }
  0x26   : > { %p8082_p2 = scmp.ne.s32.totalorder %s8080_s16, %s8081_s17  ;;  %s8086_s7 = scalar_lea.hbm %s11570_s0, 256 }
  0x27   : > { %p8087_p0 = scmp.lt.s32.totalorder %s8080_s16, %s11570_s0  ;;  %p8088_p3 = scmp.lt.s32.totalorder %s8086_s7, %s8081_s17 }
  0x28   : > { %p8084_p12 = pnand %p8083_p10, %p8082_p2 }
  0x29   : > { %p8089_p7 = por %p8088_p3, %p8087_p0 }
  0x2a   : > { %p8085_p13 = pneg %p8084_p12 }
  0x2c   : > { %p8090_p11 = pnand %p8089_p7, %p8085_p13 }
  0x2e   : > { %8093 = shalt.err (!%p8090_p11)
}
  0x2f   : > { %s11665_s11 = smov 4   ;;  %s11666_s13 = smov 64  }
  0x30   : > { %7384 = dma.hbm_to_vmem [thread:$0]  (!%p8335_p9), %s268_s15, 2048, %s270_s14, %s257_s20, %s11666_s13, %s11666_s13, %s11665_s11  }
  0x31   : > { %281 = sbr.rel (%p8278_p8) target bundleno = 3340 (0xd0c), region = 44 }
  0x36   : > { %s8355_s9 = sand.u32 1, %s8175_s22  }
  0x37   : > { %s6896_s16 = sshll.u32 %s8355_s9, 7  ;;  %s284_s17 = scalar_lea.sflag [#allocation3], %s8355_s9 }
  0x38   : > { %s8359_s30 = scalar_lea.vmem [#allocation2], %s6896_s16 }
  0x39   : > { %8154 = dma.done.wait (%p8265_p4), %s284_s17, 2048  }
  0x3a   : > { %8156 = vsyncadd (%p8265_p4), %s284_s17, 4294965248 }
  0x3b   : > { %8158 = dma.done.wait (%p45_p1), [#allocation6], 3120  }
  0x3c   : > { %8160 = vsyncadd (%p45_p1), [#allocation6], 4294964176 }
  0x3d   : > { %8162 = dma.done.wait (%p45_p1), [#allocation9], 17408  }
  0x3e   : > { %8164 = vsyncadd (%p45_p1), [#allocation9], 4294949888  ;;  %v7052_v0 = vld [vmem:[#allocation5 + $0xa8] sm:$0xf]  ;;  %v7332_v1 = vld [vmem:[#allocation5 + $0xb0] sm:$0xf0] }
  0x3f   : > { %v7331_v2 = vld [vmem:[#allocation5 + $0xac] sm:$0xf]  ;;  %v7053_v3 = vor.u32 %v7332_v1, %v7052_v0  ;;  %v7054_v4 = vld [vmem:[#allocation5 + $0xb4] sm:$0xf0]  ;;  %v7060_v5 = vld [vmem:[#allocation5 + $0xb0] sm:$0xf] }
  0x40   : > { %v7333_v6 = vld [vmem:[#allocation5 + $0xb8] sm:$0xf0]  ;;  %v7057_v7 = vor.u32 %v7331_v2, %v7054_v4  ;;  %v7040_v9 = vld [vmem:[#allocation5 + $0x90] sm:$0xf]  ;;  %v7328_v11 = vld [vmem:[#allocation5 + $0x94] sm:$0xf] }
  0x41   : > { %v7061_v8 = vor.u32 %v7333_v6, %v7060_v5  ;;  %v7329_v10 = vld [vmem:[#allocation5 + $0x98] sm:$0xf0]  ;;  %636 = vmatpush.bf16.msra.mxu0 %v7053_v3  ;;  %v7042_v13 = vld [vmem:[#allocation5 + $0x9c] sm:$0xf0]  ;;  %v7048_v14 = vld [vmem:[#allocation5 + $0x98] sm:$0xf] }
  0x42   : > { %v7041_v12 = vor.u32 %v7329_v10, %v7040_v9  ;;  %v7330_v15 = vld [vmem:[#allocation5 + $0xa0] sm:$0xf0]  ;;  %725 = vmatpush.bf16.msra.mxu1 %v7057_v7  ;;  %v7045_v16 = vor.u32 %v7328_v11, %v7042_v13  ;;  %v7028_v18 = vld [vmem:[#allocation5 + $0x78] sm:$0xf]  ;;  %v7325_v20 = vld [vmem:[#allocation5 + $0x7c] sm:$0xf] }
  0x43   : > { %814 = vmatpush.bf16.msra.mxu2 %v7061_v8  ;;  %v7049_v17 = vor.u32 %v7330_v15, %v7048_v14  ;;  %v7326_v19 = vld [vmem:[#allocation5 + $0x80] sm:$0xf0]  ;;  %v7030_v21 = vld [vmem:[#allocation5 + $0x84] sm:$0xf0]  ;;  %v7036_v22 = vld [vmem:[#allocation5 + $0x80] sm:$0xf] }
  0x44   : > { %v7327_v23 = vld [vmem:[#allocation5 + $0x88] sm:$0xf0]  ;;  %v7029_v24 = vor.u32 %v7326_v19, %v7028_v18  ;;  %v7033_v25 = vor.u32 %v7325_v20, %v7030_v21  ;;  %v7016_v27 = vld [vmem:[#allocation5 + $0x60] sm:$0xf]  ;;  %v7322_v29 = vld [vmem:[#allocation5 + $0x64] sm:$0xf] }
  0x45   : > { %637 = vmatpush.bf16.msra.mxu0 %v7041_v12  ;;  %v7037_v26 = vor.u32 %v7327_v23, %v7036_v22  ;;  %v7323_v28 = vld [vmem:[#allocation5 + $0x68] sm:$0xf0]  ;;  %v7018_v30 = vld [vmem:[#allocation5 + $0x6c] sm:$0xf0]  ;;  %v7024_v31 = vld [vmem:[#allocation5 + $0x68] sm:$0xf] }
  0x46   : > { %726 = vmatpush.bf16.msra.mxu1 %v7045_v16  ;;  %v7324_v32 = vld [vmem:[#allocation5 + $0x70] sm:$0xf0]  ;;  %v7017_v33 = vor.u32 %v7323_v28, %v7016_v27  ;;  %v7021_v34 = vor.u32 %v7322_v29, %v7018_v30  ;;  %v7004_v36 = vld [vmem:[#allocation5 + $0x48] sm:$0xf]  ;;  %v7319_v38 = vld [vmem:[#allocation5 + $0x4c] sm:$0xf] }
  0x47   : > { %815 = vmatpush.bf16.msra.mxu2 %v7049_v17  ;;  %v7025_v35 = vor.u32 %v7324_v32, %v7024_v31  ;;  %v7320_v37 = vld [vmem:[#allocation5 + $0x50] sm:$0xf0]  ;;  %v7006_v39 = vld [vmem:[#allocation5 + $0x54] sm:$0xf0]  ;;  %v7012_v40 = vld [vmem:[#allocation5 + $0x50] sm:$0xf] }
  0x48   : > { %v7321_v41 = vld [vmem:[#allocation5 + $0x58] sm:$0xf0]  ;;  %v7005_v42 = vor.u32 %v7320_v37, %v7004_v36  ;;  %v6992_v43 = vld [vmem:[#allocation5 + $0x30] sm:$0xf]  ;;  %v7009_v44 = vor.u32 %v7319_v38, %v7006_v39  ;;  %v7316_v47 = vld [vmem:[#allocation5 + $0x34] sm:$0xf] }
  0x49   : > { %638 = vmatpush.bf16.msra.mxu0 %v7029_v24  ;;  %v7013_v45 = vor.u32 %v7321_v41, %v7012_v40  ;;  %v7317_v46 = vld [vmem:[#allocation5 + $0x38] sm:$0xf0]  ;;  %v6994_v48 = vld [vmem:[#allocation5 + $0x3c] sm:$0xf0]  ;;  %v7000_v49 = vld [vmem:[#allocation5 + $0x38] sm:$0xf] }
  0x4a   : > { %727 = vmatpush.bf16.msra.mxu1 %v7033_v25  ;;  %v7318_v50 = vld [vmem:[#allocation5 + $0x40] sm:$0xf0]  ;;  %v6993_v51 = vor.u32 %v7317_v46, %v6992_v43  ;;  %v6997_v52 = vor.u32 %v7316_v47, %v6994_v48  ;;  %v6980_v54 = vld [vmem:[#allocation5 + $0x18] sm:$0xf]  ;;  %v7313_v56 = vld [vmem:[#allocation5 + $0x1c] sm:$0xf] }
  0x4b   : > { %816 = vmatpush.bf16.msra.mxu2 %v7037_v26  ;;  %v7001_v53 = vor.u32 %v7318_v50, %v7000_v49  ;;  %v7314_v55 = vld [vmem:[#allocation5 + $0x20] sm:$0xf0]  ;;  %v6982_v57 = vld [vmem:[#allocation5 + $0x24] sm:$0xf0]  ;;  %v6988_v58 = vld [vmem:[#allocation5 + $0x20] sm:$0xf] }
  0x4c   : > { %v7315_v59 = vld [vmem:[#allocation5 + $0x28] sm:$0xf0]  ;;  %v6981_v60 = vor.u32 %v7314_v55, %v6980_v54  ;;  %v6985_v61 = vor.u32 %v7313_v56, %v6982_v57  ;;  %v6968_v63 = vld [vmem:[#allocation5] sm:$0xf]  ;;  %v7310_v1 = vld [vmem:[#allocation5 + $0x4] sm:$0xf] }
  0x4d   : > { %639 = vmatpush.bf16.msra.mxu0 %v7017_v33  ;;  %v6989_v62 = vor.u32 %v7315_v59, %v6988_v58  ;;  %v7311_v0 = vld [vmem:[#allocation5 + $0x8] sm:$0xf0]  ;;  %v6970_v2 = vld [vmem:[#allocation5 + $0xc] sm:$0xf0]  ;;  %v6976_v3 = vld [vmem:[#allocation5 + $0x8] sm:$0xf] }
  0x4e   : > { %728 = vmatpush.bf16.msra.mxu1 %v7021_v34  ;;  %v7312_v4 = vld [vmem:[#allocation5 + $0x10] sm:$0xf0]  ;;  %v6969_v5 = vor.u32 %v7311_v0, %v6968_v63  ;;  %v6973_v6 = vor.u32 %v7310_v1, %v6970_v2  ;;  %v7294_v8 = vld [vmem:[%s8359_s30] sm:$0xff]  ;;  %v7295_v9 = vld [vmem:[%s8359_s30 + $0x8] sm:$0xff]  ;;  %vm1057_vm0 = vcmask 261120   ;;  %s8195_s27 = smov 64  }
  0x4f   : > { %817 = vmatpush.bf16.msra.mxu2 %v7025_v35  ;;  %v6977_v7 = vor.u32 %v7312_v4, %v6976_v3  ;;  %v7296_v10 = vld [vmem:[%s8359_s30 + $0x10] sm:$0xff]  ;;  %v7297_v11 = vld [vmem:[%s8359_s30 + $0x18] sm:$0xff]  ;;  %v7298_v12 = vld [vmem:[%s8359_s30 + $0x20] sm:$0xff]  ;;  %s8196_s8 = smov 96   ;;  %vm1528_vm1 = vcmask 130048   ;;  %s8197_s14 = smov 32  }
  0x50   : > { %v7299_v13 = vld [vmem:[%s8359_s30 + $0x28] sm:$0xff]  ;;  %v7300_v14 = vld [vmem:[%s8359_s30 + $0x30] sm:$0xff]  ;;  %v7301_v15 = vld [vmem:[%s8359_s30 + $0x38] sm:$0xff]  ;;  %s6901_s15 = sshll.u32 %s8355_s9, 8  ;;  %s7343_s10 = sshll.u32 %s8256_s25, 8 }
  0x51   : > { %640 = vmatpush.bf16.msra.mxu0 %v7005_v42  ;;  %v404_v16 = vld [vmem:[#allocation7] sm:$0x7]  ;;  %s11421_s7 = scalar_lea.vmem [#allocation11], %s6901_s15  ;;  %s6769_s13 = scalar_lea.hbm %s11576_s6, %s7343_s10 }
  0x52   : > { %729 = vmatpush.bf16.msra.mxu1 %v7009_v44  ;;  %v8381_v17 = vperm.slane %v404_v16, 0  ;;  %v7302_v18 = vld [vmem:[%s8359_s30 + $0x40] sm:$0xff]  ;;  %v8384_v21 = vperm.slane %v404_v16, 1  ;;  %v8388_v24 = vperm.slane %v404_v16, 2  ;;  %s6770_s16 = sshll.u32 %s11421_s7, 4  ;;  %s6772_s17 = sshll.u32 %s6769_s13, 4  ;;  %s6771_s16 = int_to_ptr.vmem [resolvable:$true] %s6770_s16  ;;  %s6773_s17 = int_to_ptr.hbm [resolvable:$true] %s6772_s17 }
  0x53   : > { %818 = vmatpush.bf16.msra.mxu2 %v7013_v45  ;;  %v7303_v45 = vld [vmem:[%s8359_s30 + $0x48] sm:$0xff]  ;;  %s6757_s25 = scalar_lea.sflag [#allocation4], %s8355_s9  ;;  %s8129_s15 = scalar_lea.hbm %s11576_s6, 512 }
  0x55   : > { %641 = vmatpush.bf16.msra.mxu0 %v6993_v51 }
  0x56   : > { %730 = vmatpush.bf16.msra.mxu1 %v6997_v52 }
  0x57   : > { %819 = vmatpush.bf16.msra.mxu2 %v7001_v53 }
  0x59   : > { %642 = vmatpush.bf16.msra.mxu0 %v6981_v60 }
  0x5a   : > { %731 = vmatpush.bf16.msra.mxu1 %v6985_v61 }
  0x5b   : > { %820 = vmatpush.bf16.msra.mxu2 %v6989_v62 }
  0x5d   : > { %643 = vmatpush.bf16.msra.mxu0 %v6969_v5 }
  0x5e   : > { %732 = vmatpush.bf16.msra.mxu1 %v6973_v6 }
  0x5f   : > { %821 = vmatpush.bf16.msra.mxu2 %v6977_v7 }
  0x60   : > { %644 = vmatmul.bf16.vlgmr.msra.gmra.mxu0 %v7294_v8 }
  0x61   : > { %733 = vmatmul.bf16.vlgmr.msra.gmra.mxu1 %v7294_v8 }
  0x62   : > { %822 = vmatmul.bf16.vlgmr.msra.gmra.mxu2 %v7294_v8 }
  0x70   : > { %649 = vmatmul.bf16.gmra.mxu0 %v7295_v9 }
  0x71   : > { %738 = vmatmul.bf16.gmra.mxu1 %v7295_v9 }
  0x72   : > { %827 = vmatmul.bf16.gmra.mxu2 %v7295_v9 }
  0x80   : > { %654 = vmatmul.bf16.gmra.mxu0 %v7296_v10 }
  0x81   : > { %743 = vmatmul.bf16.gmra.mxu1 %v7296_v10 }
  0x82   : > { %832 = vmatmul.bf16.gmra.mxu2 %v7296_v10  ;;  %v7304_v10 = vld [vmem:[%s8359_s30 + $0x50] sm:$0xff] }
  0x90   : > { %659 = vmatmul.bf16.gmra.mxu0 %v7297_v11 }
  0x91   : > { %748 = vmatmul.bf16.gmra.mxu1 %v7297_v11 }
  0x92   : > { %837 = vmatmul.bf16.gmra.mxu2 %v7297_v11 }
  0xa0   : > { %664 = vmatmul.bf16.gmra.mxu0 %v7298_v12 }
  0xa1   : > { %753 = vmatmul.bf16.gmra.mxu1 %v7298_v12 }
  0xa2   : > { %842 = vmatmul.bf16.gmra.mxu2 %v7298_v12 }
  0xb0   : > { %669 = vmatmul.bf16.gmra.mxu0 %v7299_v13 }
  0xb1   : > { %758 = vmatmul.bf16.gmra.mxu1 %v7299_v13 }
  0xb2   : > { %847 = vmatmul.bf16.gmra.mxu2 %v7299_v13 }
  0xc0   : > { %674 = vmatmul.bf16.gmra.mxu0 %v7300_v14 }
  0xc1   : > { %763 = vmatmul.bf16.gmra.mxu1 %v7300_v14 }
  0xc2   : > { %852 = vmatmul.bf16.gmra.mxu2 %v7300_v14 }
  0xd0   : > { %679 = vmatmul.bf16.gmra.mxu0 %v7301_v15 }
  0xd1   : > { %768 = vmatmul.bf16.gmra.mxu1 %v7301_v15 }
  0xd2   : > { %857 = vmatmul.bf16.gmra.mxu2 %v7301_v15 }
  0xdd   : > { %v645_v19 = vpop.f32.mrf.mxu0 }
  0xde   : > { %v734_v20 = vpop.f32.mrf.mxu1  ;;  %v646_v22 = vadd.f32 %v645_v19, %v8381_v17 }
  0xdf   : > { %v735_v23 = vadd.f32 %v734_v20, %v8384_v21 }
  0xe0   : > { %684 = vmatmul.bf16.gmra.mxu0 %v7302_v18  ;;  %v919_v25 = vpack.c.bf16 %v646_v22, %v646_v22 }
  0xe1   : > { %773 = vmatmul.bf16.gmra.mxu1 %v7302_v18  ;;  %v951_v30 = vpack.c.bf16 %v735_v23, %v735_v23 }
  0xe2   : > { %862 = vmatmul.bf16.gmra.mxu2 %v7302_v18  ;;  %v1049_v33 = vunpack.c.l.b16 %v919_v25 }
  0xe3   : > { %v1054_v37 = vunpack.c.l.b16 %v951_v30 }
  0xe5   : > { %v823_v26 = vpop.f32.mrf.mxu2  ;;  %v647_v27 = vpop.f32.mrf.mxu0 }
  0xe6   : > { %v648_v28 = vadd.f32 %v647_v27, %v8381_v17  ;;  %v736_v29 = vpop.f32.mrf.mxu1  ;;  %v824_v32 = vadd.f32 %v823_v26, %v8388_v24 }
  0xe7   : > { %v737_v31 = vadd.f32 %v736_v29, %v8384_v21 }
  0xe8   : > { %v920_v34 = vpack.c.bf16 %v648_v28, %v648_v28  ;;  %v983_v39 = vpack.c.bf16 %v824_v32, %v824_v32 }
  0xe9   : > { %v952_v35 = vpack.c.bf16 %v737_v31, %v737_v31 }
  0xea   : > { %v1050_v36 = vunpack.c.l.b16 %v920_v34  ;;  %v1920_v47 = vunpack.c.l.b16 %v983_v39  ;;  %v7305_v39 = vld [vmem:[%s8359_s30 + $0x58] sm:$0xff] }
  0xeb   : > { %v1055_v38 = vunpack.c.l.b16 %v952_v35 }
  0xec   : > { %v8393_v40 = vpack.c.b16 %v1050_v36, %v1049_v33 }
  0xed   : > { %v825_v41 = vpop.f32.mrf.mxu2  ;;  %v8395_v42 = vpack.c.b16 %v1055_v38, %v1054_v37  ;;  %v650_v43 = vpop.f32.mrf.mxu0 }
  0xee   : > { %11667 = vst [vmem:[#allocation16_spill] sm:$0xff] %v8393_v40  ;;  %v826_v44 = vadd.f32 %v825_v41, %v8388_v24  ;;  %v739_v46 = vpop.f32.mrf.mxu1  ;;  %3925 = vrot.lane.b32.xlu0 %v8393_v40, %s8195_s27  ;;  %v651_v50 = vadd.f32 %v650_v43, %v8381_v17 }
  0xef   : > { %11668 = vst [vmem:[#allocation17_spill] sm:$0xff] %v8395_v42  ;;  %3927 = vrot.lane.b32.xlu2 %v8395_v42, %s8195_s27  ;;  %v1062_v49 = vsel %vm1057_vm0, %v8395_v42, 0  ;;  %v740_v52 = vadd.f32 %v739_v46, %v8384_v21 }
  0xf0   : > { %v984_v48 = vpack.c.bf16 %v826_v44, %v826_v44  ;;  %1071 = vmatpush.bf16.xpose.msrb.mxu0 %v1062_v49  ;;  %v921_v54 = vpack.c.bf16 %v651_v50, %v651_v50 }
  0xf1   : > { %689 = vmatmul.bf16.gmra.mxu0 %v7303_v45  ;;  %778 = vmatmul.bf16.gmra.mxu1 %v7303_v45  ;;  %v953_v59 = vpack.c.bf16 %v740_v52, %v740_v52 }
  0xf2   : > { %v1921_v51 = vunpack.c.l.b16 %v984_v48  ;;  %867 = vmatmul.bf16.gmra.mxu2 %v7303_v45  ;;  %v1080_v62 = vunpack.c.l.b16 %v921_v54 }
  0xf3   : > { %v1085_v2 = vunpack.c.l.b16 %v953_v59 }
  0xf4   : > { %v8407_v53 = vpack.c.b16 %v1921_v51, %v1920_v47 }
  0xf5   : > { %v828_v55 = vpop.f32.mrf.mxu2  ;;  %v652_v56 = vpop.f32.mrf.mxu0 }
  0xf6   : > { %11669 = vst [vmem:[#allocation18_spill] sm:$0xff] %v8407_v53  ;;  %v653_v57 = vadd.f32 %v652_v56, %v8381_v17  ;;  %v741_v58 = vpop.f32.mrf.mxu1  ;;  %2410 = vrot.lane.b32.xlu0 %v8393_v40, %s8196_s8  ;;  %v829_v61 = vadd.f32 %v828_v55, %v8388_v24 }
  0xf7   : > { %v742_v60 = vadd.f32 %v741_v58, %v8384_v21  ;;  %2412 = vrot.lane.b32.xlu2 %v8395_v42, %s8196_s8 }
  0xf8   : > { %v922_v63 = vpack.c.bf16 %v653_v57, %v653_v57  ;;  %v985_v4 = vpack.c.bf16 %v829_v61, %v829_v61 }
  0xf9   : > { %v954_v0 = vpack.c.bf16 %v742_v60, %v742_v60 }
  0xfa   : > { %v1081_v1 = vunpack.c.l.b16 %v922_v63  ;;  %v1948_v12 = vunpack.c.l.b16 %v985_v4 }
  0xfb   : > { %v1086_v3 = vunpack.c.l.b16 %v954_v0 }
  0xfc   : > { %v8416_v5 = vpack.c.b16 %v1081_v1, %v1080_v62 }
  0xfd   : > { %v830_v6 = vpop.f32.mrf.mxu2  ;;  %v8418_v7 = vpack.c.b16 %v1086_v3, %v1085_v2  ;;  %v655_v8 = vpop.f32.mrf.mxu0 }
  0xfe   : > { %11670 = vst [vmem:[#allocation19_spill] sm:$0xff] %v8416_v5  ;;  %v831_v9 = vadd.f32 %v830_v6, %v8388_v24  ;;  %v744_v11 = vpop.f32.mrf.mxu1  ;;  %2434 = vrot.lane.b32.xlu1 %v8416_v5, %s8196_s8  ;;  %v656_v22 = vadd.f32 %v655_v8, %v8381_v17 }
  0xff   : > { %11671 = vst [vmem:[#allocation20_spill] sm:$0xff] %v8418_v7  ;;  %v1092_v14 = vsel %vm1057_vm0, %v8418_v7, 0  ;;  %2436 = vrot.lane.b32.xlu0 %v8418_v7, %s8196_s8  ;;  %v745_v16 = vadd.f32 %v744_v11, %v8384_v21 }
 0x100   : > { %v986_v13 = vpack.c.bf16 %v831_v9, %v831_v9  ;;  %1101 = vmatpush.bf16.xpose.msra.mxu3 %v1092_v14  ;;  %v923_v30 = vpack.c.bf16 %v656_v22, %v656_v22 }
 0x101   : > { %694 = vmatmul.bf16.gmra.mxu0 %v7304_v10  ;;  %783 = vmatmul.bf16.gmra.mxu1 %v7304_v10  ;;  %v955_v26 = vpack.c.bf16 %v745_v16, %v745_v16 }
 0x102   : > { %v1949_v15 = vunpack.c.l.b16 %v986_v13  ;;  %872 = vmatmul.bf16.gmra.mxu2 %v7304_v10  ;;  %v1110_v41 = vunpack.c.l.b16 %v923_v30 }
 0x103   : > { %v1115_v32 = vunpack.c.l.b16 %v955_v26 }
 0x104   : > { %v8429_v18 = vpack.c.b16 %v1949_v15, %v1948_v12  ;;  %v7306_v12 = vld [vmem:[%s8359_s30 + $0x60] sm:$0xff] }
 0x105   : > { %v833_v19 = vpop.f32.mrf.mxu2  ;;  %v657_v20 = vpop.f32.mrf.mxu0 }
 0x106   : > { %11672 = vst [vmem:[#allocation21_spill] sm:$0xff] %v8429_v18  ;;  %v658_v23 = vadd.f32 %v657_v20, %v8381_v17  ;;  %v746_v25 = vpop.f32.mrf.mxu1  ;;  %3951 = vrot.lane.b32.xlu1 %v8418_v7, %s8195_s27  ;;  %v834_v28 = vadd.f32 %v833_v19, %v8388_v24 }
 0x107   : > { %v747_v27 = vadd.f32 %v746_v25, %v8384_v21  ;;  %7063 = vmatmul.msk.bf16.vlgmr.msra.gmra.mxu3 %vm1057_vm0, %v8416_v5 }
 0x108   : > { %v924_v31 = vpack.c.bf16 %v658_v23, %v658_v23  ;;  %v987_v34 = vpack.c.bf16 %v834_v28, %v834_v28 }
 0x109   : > { %v956_v29 = vpack.c.bf16 %v747_v27, %v747_v27 }
 0x10a   : > { %v1111_v43 = vunpack.c.l.b16 %v924_v31  ;;  %v1976_v45 = vunpack.c.l.b16 %v987_v34 }
 0x10b   : > { %v1116_v33 = vunpack.c.l.b16 %v956_v29 }
 0x10c   : > { %v8452_v50 = vpack.c.b16 %v1111_v43, %v1110_v41 }
 0x10d   : > { %v835_v35 = vpop.f32.mrf.mxu2  ;;  %v8439_v36 = vpack.c.b16 %v1116_v33, %v1115_v32  ;;  %v660_v37 = vpop.f32.mrf.mxu0 }
 0x10e   : > { %v836_v38 = vadd.f32 %v835_v35, %v8388_v24  ;;  %v749_v44 = vpop.f32.mrf.mxu1  ;;  %3949 = vrot.lane.b32.xlu1 %v8416_v5, %s8195_s27  ;;  %v661_v48 = vadd.f32 %v660_v37, %v8381_v17  ;;  %11674 = vst [vmem:[#allocation23_spill] sm:$0xff] %v8452_v50 }
 0x10f   : > { %11673 = vst [vmem:[#allocation22_spill] sm:$0xff] %v8439_v36  ;;  %v1122_v47 = vsel %vm1057_vm0, %v8439_v36, 0  ;;  %3975 = vrot.lane.b32.xlu2 %v8439_v36, %s8195_s27  ;;  %2460 = vrot.lane.b32.xlu0 %v8439_v36, %s8196_s8  ;;  %v750_v51 = vadd.f32 %v749_v44, %v8384_v21 }
 0x110   : > { %v988_v46 = vpack.c.bf16 %v836_v38, %v836_v38  ;;  %1131 = vmatpush.bf16.xpose.msrb.mxu3 %v1122_v47  ;;  %v925_v54 = vpack.c.bf16 %v661_v48, %v661_v48 }
 0x111   : > { %699 = vmatmul.bf16.gmra.mxu0 %v7305_v39  ;;  %788 = vmatmul.bf16.gmra.mxu1 %v7305_v39  ;;  %v957_v59 = vpack.c.bf16 %v750_v51, %v750_v51 }
 0x112   : > { %v1977_v49 = vunpack.c.l.b16 %v988_v46  ;;  %877 = vmatmul.bf16.gmra.mxu2 %v7305_v39  ;;  %v1140_v62 = vunpack.c.l.b16 %v925_v54 }
 0x113   : > { %v1145_v2 = vunpack.c.l.b16 %v957_v59 }
 0x114   : > { %v8455_v52 = vpack.c.b16 %v1977_v49, %v1976_v45  ;;  %v7307_v45 = vld [vmem:[%s8359_s30 + $0x68] sm:$0xff] }
 0x115   : > { %v838_v55 = vpop.f32.mrf.mxu2  ;;  %v662_v56 = vpop.f32.mrf.mxu0 }
 0x116   : > { %11675 = vst [vmem:[#allocation24_spill] sm:$0xff] %v8455_v52  ;;  %1990 = vmatpush.bf16.msra.mxu0 %v8455_v52  ;;  %v663_v57 = vadd.f32 %v662_v56, %v8381_v17  ;;  %v751_v58 = vpop.f32.mrf.mxu1  ;;  %2458 = vrot.lane.b32.xlu1 %v8452_v50, %s8196_s8  ;;  %v839_v61 = vadd.f32 %v838_v55, %v8388_v24 }
 0x117   : > { %v752_v60 = vadd.f32 %v751_v58, %v8384_v21  ;;  %7064 = vmatmul.msk.bf16.vlgmr.msrb.gmra.mxu3 %vm1057_vm0, %v8452_v50  ;;  %3233 = vrot.lane.b32.xlu2 %v8455_v52, %s8196_s8 }
 0x118   : > { %v926_v63 = vpack.c.bf16 %v663_v57, %v663_v57  ;;  %v989_v4 = vpack.c.bf16 %v839_v61, %v839_v61 }
 0x119   : > { %v958_v0 = vpack.c.bf16 %v752_v60, %v752_v60 }
 0x11a   : > { %v1141_v1 = vunpack.c.l.b16 %v926_v63  ;;  %v2004_v14 = vunpack.c.l.b16 %v989_v4 }
 0x11b   : > { %v1146_v3 = vunpack.c.l.b16 %v958_v0 }
 0x11c   : > { %v8467_v6 = vpack.c.b16 %v1141_v1, %v1140_v62 }
 0x11d   : > { %v840_v8 = vpop.f32.mrf.mxu2  ;;  %v8469_v9 = vpack.c.b16 %v1146_v3, %v1145_v2  ;;  %v665_v10 = vpop.f32.mrf.mxu0 }
 0x11e   : > { %11676 = vst [vmem:[#allocation25_spill] sm:$0xff] %v8467_v6  ;;  %v841_v11 = vadd.f32 %v840_v8, %v8388_v24  ;;  %v754_v13 = vpop.f32.mrf.mxu1  ;;  %3973 = vrot.lane.b32.xlu1 %v8452_v50, %s8195_s27  ;;  %2482 = vrot.lane.b32.xlu0 %v8467_v6, %s8196_s8  ;;  %v666_v26 = vadd.f32 %v665_v10, %v8381_v17 }
 0x11f   : > { %11677 = vst [vmem:[#allocation26_spill] sm:$0xff] %v8469_v9  ;;  %v1152_v16 = vsel %vm1057_vm0, %v8469_v9, 0  ;;  %3999 = vrot.lane.b32.xlu2 %v8469_v9, %s8195_s27  ;;  %v755_v20 = vadd.f32 %v754_v13, %v8384_v21 }
 0x120   : > { %v990_v15 = vpack.c.bf16 %v841_v11, %v841_v11  ;;  %1161 = vmatpush.bf16.xpose.msra.mxu3 %v1152_v16  ;;  %v927_v33 = vpack.c.bf16 %v666_v26, %v666_v26 }
 0x121   : > { %704 = vmatmul.bf16.gmra.mxu0 %v7306_v12  ;;  %793 = vmatmul.bf16.gmra.mxu1 %v7306_v12  ;;  %v959_v28 = vpack.c.bf16 %v755_v20, %v755_v20 }
 0x122   : > { %v2005_v19 = vunpack.c.l.b16 %v990_v15  ;;  %882 = vmatmul.bf16.gmra.mxu2 %v7306_v12  ;;  %v1170_v46 = vunpack.c.l.b16 %v927_v33 }
 0x123   : > { %v1175_v34 = vunpack.c.l.b16 %v959_v28 }
 0x124   : > { %v8482_v22 = vpack.c.b16 %v2005_v19, %v2004_v14  ;;  %v7308_v19 = vld [vmem:[%s8359_s30 + $0x70] sm:$0xff] }
 0x125   : > { %v843_v23 = vpop.f32.mrf.mxu2  ;;  %v667_v25 = vpop.f32.mrf.mxu0 }
 0x126   : > { %11678 = vst [vmem:[#allocation27_spill] sm:$0xff] %v8482_v22  ;;  %2018 = vmatpush.bf16.msrb.mxu1 %v8482_v22  ;;  %v756_v27 = vpop.f32.mrf.mxu1  ;;  %2484 = vrot.lane.b32.xlu1 %v8469_v9, %s8196_s8  ;;  %v668_v29 = vadd.f32 %v667_v25, %v8381_v17  ;;  %v844_v31 = vadd.f32 %v843_v23, %v8388_v24 }
 0x127   : > { %v757_v30 = vadd.f32 %v756_v27, %v8384_v21  ;;  %7065 = vmatmul.msk.bf16.vlgmr.msra.gmra.mxu3 %vm1057_vm0, %v8467_v6 }
 0x128   : > { %v928_v35 = vpack.c.bf16 %v668_v29, %v668_v29  ;;  %v991_v38 = vpack.c.bf16 %v844_v31, %v844_v31 }
 0x129   : > { %v960_v32 = vpack.c.bf16 %v757_v30, %v757_v30 }
 0x12a   : > { %v1171_v48 = vunpack.c.l.b16 %v928_v35  ;;  %v2032_v49 = vunpack.c.l.b16 %v991_v38 }
 0x12b   : > { %v1176_v37 = vunpack.c.l.b16 %v960_v32 }
 0x12c   : > { %v8502_v57 = vpack.c.b16 %v1171_v48, %v1170_v46 }
 0x12d   : > { %v845_v39 = vpop.f32.mrf.mxu2  ;;  %v8493_v41 = vpack.c.b16 %v1176_v37, %v1175_v34  ;;  %v670_v43 = vpop.f32.mrf.mxu0 }
 0x12e   : > { %v846_v44 = vadd.f32 %v845_v39, %v8388_v24  ;;  %v759_v47 = vpop.f32.mrf.mxu1  ;;  %3997 = vrot.lane.b32.xlu1 %v8467_v6, %s8195_s27  ;;  %v671_v55 = vadd.f32 %v670_v43, %v8381_v17  ;;  %11680 = vst [vmem:[#allocation29_spill] sm:$0xff] %v8502_v57 }
 0x12f   : > { %11679 = vst [vmem:[#allocation28_spill] sm:$0xff] %v8493_v41  ;;  %v1182_v54 = vsel %vm1057_vm0, %v8493_v41, 0  ;;  %v760_v58 = vadd.f32 %v759_v47, %v8384_v21 }
 0x130   : > { %v992_v51 = vpack.c.bf16 %v846_v44, %v846_v44  ;;  %1191 = vmatpush.bf16.xpose.msrb.mxu3 %v1182_v54  ;;  %v929_v60 = vpack.c.bf16 %v671_v55, %v671_v55 }
 0x131   : > { %709 = vmatmul.bf16.gmra.mxu0 %v7307_v45  ;;  %798 = vmatmul.bf16.gmra.mxu1 %v7307_v45  ;;  %v961_v1 = vpack.c.bf16 %v760_v58, %v760_v58 }
 0x132   : > { %v2033_v56 = vunpack.c.l.b16 %v992_v51  ;;  %887 = vmatmul.bf16.gmra.mxu2 %v7307_v45  ;;  %v1200_v3 = vunpack.c.l.b16 %v929_v60  ;;  %v7309_v45 = vld [vmem:[%s8359_s30 + $0x78] sm:$0xff]  ;;  %s8123_s30 = sshra.s32 %s6773_s17, 4  ;;  %s8124_s30 = int_to_ptr.hbm [resolvable:$true] %s8123_s30 }
 0x133   : > { %v1205_v11 = vunpack.c.l.b16 %v961_v1  ;;  %p8130_p11 = scmp.lt.s32.totalorder %s8124_s30, %s11576_s6 }
 0x134   : > { %v8505_v59 = vpack.c.b16 %v2033_v56, %v2032_v49 }
 0x135   : > { %v8507_v61 = vpop.f32.mrf.mxu2  ;;  %v672_v62 = vpop.f32.mrf.mxu0 }
 0x136   : > { %11681 = vst [vmem:[#allocation30_spill] sm:$0xff] %v8505_v59  ;;  %2046 = vmatpush.bf16.msrb.mxu2 %v8505_v59  ;;  %v673_v63 = vadd.f32 %v672_v62, %v8381_v17  ;;  %v761_v0 = vpop.f32.mrf.mxu1  ;;  %3258 = vrot.lane.b32.xlu1 %v8482_v22, %s8196_s8  ;;  %v1027_v59 = vld [vmem:[#allocation8 + $0x60] sm:$0xff] }
 0x137   : > { %v762_v2 = vadd.f32 %v761_v0, %v8384_v21  ;;  %7066 = vmatmul.msk.bf16.vlgmr.msrb.gmra.mxu3 %vm1057_vm0, %v8502_v57 }
 0x138   : > { %v930_v4 = vpack.c.bf16 %v673_v63, %v673_v63 }
 0x139   : > { %v962_v8 = vpack.c.bf16 %v762_v2, %v762_v2 }
 0x13a   : > { %v1201_v10 = vunpack.c.l.b16 %v930_v4 }
 0x13b   : > { %v1206_v12 = vunpack.c.l.b16 %v962_v8 }
 0x13c   : > { %v8516_v13 = vpack.c.b16 %v1201_v10, %v1200_v3 }
 0x13d   : > { %v8518_v14 = vpop.f32.mrf.mxu2  ;;  %v8520_v15 = vpack.c.b16 %v1206_v12, %v1205_v11  ;;  %v675_v16 = vpop.f32.mrf.mxu0 }
 0x13e   : > { %11682 = vst [vmem:[#allocation31_spill] sm:$0xff] %v8516_v13  ;;  %v764_v20 = vpop.f32.mrf.mxu1  ;;  %4023 = vrot.lane.b32.xlu1 %v8493_v41, %s8195_s27  ;;  %2530 = vrot.lane.b32.xlu0 %v8516_v13, %s8196_s8  ;;  %v676_v28 = vadd.f32 %v675_v16, %v8381_v17 }
 0x13f   : > { %11683 = vst [vmem:[#allocation32_spill] sm:$0xff] %v8520_v15  ;;  %v1212_v23 = vsel %vm1057_vm0, %v8520_v15, 0  ;;  %2532 = vrot.lane.b32.xlu2 %v8520_v15, %s8196_s8  ;;  %v765_v25 = vadd.f32 %v764_v20, %v8384_v21 }
 0x140   : > { %1221 = vmatpush.bf16.xpose.msra.mxu3 %v1212_v23  ;;  %v931_v34 = vpack.c.bf16 %v676_v28, %v676_v28 }
 0x141   : > { %714 = vmatmul.bf16.gmra.mxu0 %v7308_v19  ;;  %803 = vmatmul.bf16.gmra.mxu1 %v7308_v19  ;;  %v963_v31 = vpack.c.bf16 %v765_v25, %v765_v25 }
 0x142   : > { %892 = vmatmul.bf16.gmra.mxu2 %v7308_v19  ;;  %v1230_v46 = vunpack.c.l.b16 %v931_v34 }
 0x143   : > { %v1235_v37 = vunpack.c.l.b16 %v963_v31 }
 0x145   : > { %v853_v26 = vpop.f32.mrf.mxu2  ;;  %v677_v27 = vpop.f32.mrf.mxu0 }
 0x146   : > { %v678_v29 = vadd.f32 %v677_v27, %v8381_v17  ;;  %v766_v30 = vpop.f32.mrf.mxu1  ;;  %4021 = vrot.lane.b32.xlu1 %v8502_v57, %s8195_s27  ;;  %4045 = vrot.lane.b32.xlu0 %v8516_v13, %s8195_s27  ;;  %v854_v54 = vadd.f32 %v853_v26, %v8388_v24 }
 0x147   : > { %v767_v32 = vadd.f32 %v766_v30, %v8384_v21  ;;  %7067 = vmatmul.msk.bf16.vlgmr.msra.gmra.mxu3 %vm1057_vm0, %v8516_v13 }
 0x148   : > { %v932_v35 = vpack.c.bf16 %v678_v29, %v678_v29  ;;  %v995_v62 = vpack.c.bf16 %v854_v54, %v854_v54 }
 0x149   : > { %v964_v33 = vpack.c.bf16 %v767_v32, %v767_v32 }
 0x14a   : > { %v1231_v47 = vunpack.c.l.b16 %v932_v35  ;;  %v2088_v11 = vunpack.c.l.b16 %v995_v62 }
 0x14b   : > { %v1236_v38 = vunpack.c.l.b16 %v964_v33 }
 0x14c   : > { %v8550_v51 = vpack.c.b16 %v1231_v47, %v1230_v46 }
 0x14d   : > { %v855_v39 = vpop.f32.mrf.mxu2  ;;  %v8541_v43 = vpack.c.b16 %v1236_v38, %v1235_v37  ;;  %v680_v44 = vpop.f32.mrf.mxu0 }
 0x14e   : > { %v769_v48 = vpop.f32.mrf.mxu1  ;;  %4047 = vrot.lane.b32.xlu1 %v8520_v15, %s8195_s27  ;;  %11685 = vst [vmem:[#allocation34_spill] sm:$0xff] %v8550_v51  ;;  %v856_v56 = vadd.f32 %v855_v39, %v8388_v24  ;;  %v681_v63 = vadd.f32 %v680_v44, %v8381_v17 }
 0x14f   : > { %11684 = vst [vmem:[#allocation33_spill] sm:$0xff] %v8541_v43  ;;  %v1242_v49 = vsel %vm1057_vm0, %v8541_v43, 0  ;;  %2556 = vrot.lane.b32.xlu2 %v8541_v43, %s8196_s8  ;;  %v770_v55 = vadd.f32 %v769_v48, %v8384_v21 }
 0x150   : > { %1251 = vmatpush.bf16.xpose.msrb.mxu3 %v1242_v49  ;;  %v996_v1 = vpack.c.bf16 %v856_v56, %v856_v56  ;;  %v933_v12 = vpack.c.bf16 %v681_v63, %v681_v63 }
 0x151   : > { %808 = vmatmul.bf16.gmra.mxu1 %v7309_v45  ;;  %719 = vmatmul.bf16.gmra.mxu0 %v7309_v45  ;;  %v965_v0 = vpack.c.bf16 %v770_v55, %v770_v55 }
 0x152   : > { %897 = vmatmul.bf16.gmra.mxu2 %v7309_v45  ;;  %v2089_v16 = vunpack.c.l.b16 %v996_v1  ;;  %v1260_v30 = vunpack.c.l.b16 %v933_v12 }
 0x153   : > { %v1265_v19 = vunpack.c.l.b16 %v965_v0 }
 0x154   : > { %v8568_v31 = vpack.c.b16 %v2089_v16, %v2088_v11 }
 0x155   : > { %v858_v58 = vpop.f32.mrf.mxu2  ;;  %v682_v60 = vpop.f32.mrf.mxu0 }
 0x156   : > { %v771_v2 = vpop.f32.mrf.mxu1  ;;  %2554 = vrot.lane.b32.xlu1 %v8550_v51, %s8196_s8  ;;  %v683_v3 = vadd.f32 %v682_v60, %v8381_v17  ;;  %v859_v8 = vadd.f32 %v858_v58, %v8388_v24  ;;  %11687 = vst [vmem:[#allocation36_spill] sm:$0xff] %v8568_v31 }
 0x157   : > { %v772_v4 = vadd.f32 %v771_v2, %v8384_v21  ;;  %7068 = vmatmul.msk.bf16.vlgmr.msrb.gmra.mxu3 %vm1057_vm0, %v8550_v51  ;;  %4069 = vrot.lane.b32.xlu2 %v8550_v51, %s8195_s27 }
 0x158   : > { %v934_v20 = vpack.c.bf16 %v683_v3, %v683_v3  ;;  %v997_v25 = vpack.c.bf16 %v859_v8, %v859_v8 }
 0x159   : > { %v966_v10 = vpack.c.bf16 %v772_v4, %v772_v4 }
 0x15a   : > { %v1261_v33 = vunpack.c.l.b16 %v934_v20  ;;  %v2116_v34 = vunpack.c.l.b16 %v997_v25 }
 0x15b   : > { %v1266_v23 = vunpack.c.l.b16 %v966_v10 }
 0x15c   : > { %v8582_v44 = vpack.c.b16 %v1261_v33, %v1260_v30 }
 0x15d   : > { %v860_v26 = vpop.f32.mrf.mxu2  ;;  %v8565_v27 = vpack.c.b16 %v1266_v23, %v1265_v19  ;;  %v685_v28 = vpop.f32.mrf.mxu0 }
 0x15e   : > { %v861_v29 = vadd.f32 %v860_v26, %v8388_v24  ;;  %v774_v32 = vpop.f32.mrf.mxu1  ;;  %4071 = vrot.lane.b32.xlu1 %v8541_v43, %s8195_s27  ;;  %11688 = vst [vmem:[#allocation37_spill] sm:$0xff] %v8582_v44  ;;  %v686_v48 = vadd.f32 %v685_v28, %v8381_v17 }
 0x15f   : > { %11686 = vst [vmem:[#allocation35_spill] sm:$0xff] %v8565_v27  ;;  %v1272_v37 = vsel %vm1057_vm0, %v8565_v27, 0  ;;  %4095 = vrot.lane.b32.xlu0 %v8565_v27, %s8195_s27  ;;  %2580 = vrot.lane.b32.xlu2 %v8565_v27, %s8196_s8  ;;  %v775_v39 = vadd.f32 %v774_v32, %v8384_v21 }
 0x160   : > { %v998_v35 = vpack.c.bf16 %v861_v29, %v861_v29  ;;  %1281 = vmatpush.bf16.xpose.msra.mxu3 %v1272_v37  ;;  %v935_v62 = vpack.c.bf16 %v686_v48, %v686_v48 }
 0x161   : > { %7062 = vmatmul.msk.bf16.vlgmr.msrb.gmra.mxu0 %vm1057_vm0, %v8393_v40  ;;  %v967_v49 = vpack.c.bf16 %v775_v39, %v775_v39 }
 0x162   : > { %v2117_v38 = vunpack.c.l.b16 %v998_v35  ;;  %2102 = vmatpush.bf16.msrb.mxu0 %v8568_v31  ;;  %v1290_v10 = vunpack.c.l.b16 %v935_v62 }
 0x163   : > { %v1295_v63 = vunpack.c.l.b16 %v967_v49 }
 0x164   : > { %v8584_v45 = vpack.c.b16 %v2117_v38, %v2116_v34 }
 0x165   : > { %v863_v46 = vpop.f32.mrf.mxu2  ;;  %v687_v47 = vpop.f32.mrf.mxu0 }
 0x166   : > { %11689 = vst [vmem:[#allocation38_spill] sm:$0xff] %v8584_v45  ;;  %2130 = vmatpush.bf16.msra.mxu1 %v8584_v45  ;;  %v776_v54 = vpop.f32.mrf.mxu1  ;;  %3333 = vrot.lane.b32.xlu1 %v8568_v31, %s8196_s8  ;;  %v688_v55 = vadd.f32 %v687_v47, %v8381_v17  ;;  %v864_v58 = vadd.f32 %v863_v46, %v8388_v24  ;;  %v1020_v31 = vld [vmem:[#allocation8 + $0x28] sm:$0xff] }
 0x167   : > { %v777_v56 = vadd.f32 %v776_v54, %v8384_v21  ;;  %7069 = vmatmul.msk.bf16.vlgmr.msra.gmra.mxu3 %vm1057_vm0, %v8582_v44  ;;  %2578 = vrot.lane.b32.xlu2 %v8582_v44, %s8196_s8 }
 0x168   : > { %v936_v0 = vpack.c.bf16 %v688_v55, %v688_v55  ;;  %v999_v2 = vpack.c.bf16 %v864_v58, %v864_v58 }
 0x169   : > { %v968_v60 = vpack.c.bf16 %v777_v56, %v777_v56 }
 0x16a   : > { %v1291_v16 = vunpack.c.l.b16 %v936_v0  ;;  %v2144_v19 = vunpack.c.l.b16 %v999_v2 }
 0x16b   : > { %v1296_v1 = vunpack.c.l.b16 %v968_v60 }
 0x16c   : > { %v8610_v29 = vpack.c.b16 %v1291_v16, %v1290_v10 }
 0x16d   : > { %v865_v3 = vpop.f32.mrf.mxu2  ;;  %v8597_v4 = vpack.c.b16 %v1296_v1, %v1295_v63 }
 0x16e   : > { %v866_v8 = vadd.f32 %v865_v3, %v8388_v24  ;;  %v690_v11 = vpop.f32.mrf.mxu0  ;;  %v779_v12 = vpop.f32.mrf.mxu1  ;;  %4093 = vrot.lane.b32.xlu1 %v8582_v44, %s8195_s27  ;;  %11691 = vst [vmem:[#allocation40_spill] sm:$0xff] %v8610_v29 }
 0x16f   : > { %11690 = vst [vmem:[#allocation39_spill] sm:$0xff] %v8597_v4  ;;  %4119 = vrot.lane.b32.xlu0 %v8597_v4, %s8195_s27  ;;  %v1302_v23 = vsel %vm1057_vm0, %v8597_v4, 0  ;;  %3358 = vrot.lane.b32.xlu2 %v8584_v45, %s8196_s8  ;;  %v691_v25 = vadd.f32 %v690_v11, %v8381_v17  ;;  %v780_v26 = vadd.f32 %v779_v12, %v8384_v21 }
 0x170   : > { %v1000_v20 = vpack.c.bf16 %v866_v8, %v866_v8  ;;  %1311 = vmatpush.bf16.xpose.msrb.mxu3 %v1302_v23 }
 0x171   : > { %v937_v32 = vpack.c.bf16 %v691_v25, %v691_v25  ;;  %v969_v33 = vpack.c.bf16 %v780_v26, %v780_v26 }
 0x172   : > { %v2145_v28 = vunpack.c.l.b16 %v1000_v20 }
 0x173   : > { %v1320_v46 = vunpack.c.l.b16 %v937_v32  ;;  %v1325_v47 = vunpack.c.l.b16 %v969_v33 }
 0x174   : > { %v8612_v30 = vpack.c.b16 %v2145_v28, %v2144_v19 }
 0x175   : > { %v8614_v34 = vpop.f32.mrf.mxu2 }
 0x176   : > { %11692 = vst [vmem:[#allocation41_spill] sm:$0xff] %v8612_v30  ;;  %2158 = vmatpush.bf16.msra.mxu2 %v8612_v30  ;;  %v692_v35 = vpop.f32.mrf.mxu0  ;;  %v781_v37 = vpop.f32.mrf.mxu1  ;;  %4117 = vrot.lane.b32.xlu1 %v8610_v29, %s8195_s27 }
 0x177   : > { %11693 = vst [vmem:[#allocation42_spill] sm:$0xff] %v8614_v34  ;;  %v693_v38 = vadd.f32 %v692_v35, %v8381_v17  ;;  %v782_v39 = vadd.f32 %v781_v37, %v8384_v21  ;;  %7070 = vmatmul.msk.bf16.vlgmr.msrb.gmra.mxu3 %vm1057_vm0, %v8610_v29 }
 0x179   : > { %v938_v48 = vpack.c.bf16 %v693_v38, %v693_v38  ;;  %v970_v49 = vpack.c.bf16 %v782_v39, %v782_v39 }
 0x17b   : > { %v1321_v54 = vunpack.c.l.b16 %v938_v48  ;;  %v1326_v55 = vunpack.c.l.b16 %v970_v49 }
 0x17d   : > { %v8623_v56 = vpack.c.b16 %v1321_v54, %v1320_v46  ;;  %v8625_v58 = vpack.c.b16 %v1326_v55, %v1325_v47  ;;  %v8627_v60 = vpop.f32.mrf.mxu2 }
 0x17e   : > { %11696 = vst [vmem:[#allocation45_spill] sm:$0xff] %v8627_v60  ;;  %v695_v62 = vpop.f32.mrf.mxu0  ;;  %v784_v63 = vpop.f32.mrf.mxu1 }
 0x17f   : > { %11694 = vst [vmem:[#allocation43_spill] sm:$0xff] %v8623_v56  ;;  %v1332_v0 = vsel %vm1057_vm0, %v8625_v58, 0  ;;  %2628 = vrot.lane.b32.xlu1 %v8625_v58, %s8196_s8  ;;  %2626 = vrot.lane.b32.xlu2 %v8623_v56, %s8196_s8  ;;  %v785_v1 = vadd.f32 %v784_v63, %v8384_v21  ;;  %v696_v11 = vadd.f32 %v695_v62, %v8381_v17  ;;  %v1017_v62 = vld [vmem:[#allocation8 + $0x10] sm:$0xff] }
 0x180   : > { %11695 = vst [vmem:[#allocation44_spill] sm:$0xff] %v8625_v58  ;;  %1341 = vmatpush.bf16.xpose.msra.mxu3 %v1332_v0 }
 0x181   : > { %v971_v2 = vpack.c.bf16 %v785_v1, %v785_v1  ;;  %v939_v26 = vpack.c.bf16 %v696_v11, %v696_v11 }
 0x183   : > { %v1355_v20 = vunpack.c.l.b16 %v971_v2  ;;  %v1350_v47 = vunpack.c.l.b16 %v939_v26 }
 0x185   : > { %v873_v3 = vpop.f32.mrf.mxu2 }
 0x186   : > { %v697_v8 = vpop.f32.mrf.mxu0  ;;  %v786_v10 = vpop.f32.mrf.mxu1  ;;  %v874_v19 = vadd.f32 %v873_v3, %v8388_v24 }
 0x187   : > { %v698_v12 = vadd.f32 %v697_v8, %v8381_v17  ;;  %v787_v16 = vadd.f32 %v786_v10, %v8384_v21  ;;  %7071 = vmatmul.msk.bf16.vlgmr.msra.gmra.mxu3 %vm1057_vm0, %v8623_v56 }
 0x188   : > { %v1003_v33 = vpack.c.bf16 %v874_v19, %v874_v19 }
 0x189   : > { %v972_v23 = vpack.c.bf16 %v787_v16, %v787_v16  ;;  %v940_v28 = vpack.c.bf16 %v698_v12, %v698_v12 }
 0x18a   : > { %v1103_v25 = vpop.f32.mrf.mxu3  ;;  %v2200_v54 = vunpack.c.l.b16 %v1003_v33 }
 0x18b   : > { %v1356_v32 = vunpack.c.l.b16 %v972_v23  ;;  %v1351_v48 = vunpack.c.l.b16 %v940_v28  ;;  %v8654_v3 = vadd.f32 %v1103_v25, %v1017_v62 }
 0x18d   : > { %v8642_v35 = vpack.c.b16 %v1356_v32, %v1355_v20  ;;  %v875_v37 = vpop.f32.mrf.mxu2  ;;  %v8652_v2 = vpack.c.b16 %v1351_v48, %v1350_v47  ;;  %v1535_v23 = vsel %vm1528_vm1, %v8654_v3, -inf }
 0x18e   : > { %v700_v38 = vpop.f32.mrf.mxu0  ;;  %v789_v39 = vpop.f32.mrf.mxu1  ;;  %v876_v46 = vadd.f32 %v875_v37, %v8388_v24 }
 0x18f   : > { %11697 = vst [vmem:[#allocation46_spill] sm:$0xff] %v8642_v35  ;;  %2652 = vrot.lane.b32.xlu1 %v8642_v35, %s8196_s8  ;;  %v1362_v49 = vsel %vm1057_vm0, %v8642_v35, 0  ;;  %v790_v63 = vadd.f32 %v789_v39, %v8384_v21  ;;  %v701_v16 = vadd.f32 %v700_v38, %v8381_v17 }
 0x190   : > { %v1004_v55 = vpack.c.bf16 %v876_v46, %v876_v46  ;;  %1371 = vmatpush.bf16.xpose.msrb.mxu3 %v1362_v49  ;;  %11698 = vst [vmem:[#allocation47_spill] sm:$0xff] %v8652_v2 }
 0x191   : > { %v973_v10 = vpack.c.bf16 %v790_v63, %v790_v63  ;;  %v941_v32 = vpack.c.bf16 %v701_v16, %v701_v16 }
 0x192   : > { %v2201_v0 = vunpack.c.l.b16 %v1004_v55  ;;  %v8650_v1 = vpop.f32.mrf.mxu3 }
 0x193   : > { %v1385_v25 = vunpack.c.l.b16 %v973_v10  ;;  %v1380_v47 = vunpack.c.l.b16 %v941_v32 }
 0x194   : > { %v8656_v8 = vpack.c.b16 %v2201_v0, %v2200_v54 }
 0x196   : > { %11699 = vst [vmem:[#allocation48_spill] sm:$0xff] %v8656_v8  ;;  %v702_v11 = vpop.f32.mrf.mxu0  ;;  %v791_v12 = vpop.f32.mrf.mxu1 }
 0x197   : > { %v703_v19 = vadd.f32 %v702_v11, %v8381_v17  ;;  %v792_v20 = vadd.f32 %v791_v12, %v8384_v21  ;;  %3433 = vrot.lane.b32.xlu1 %v8656_v8, %s8196_s8  ;;  %7072 = vmatmul.msk.bf16.vlgmr.msrb.gmra.mxu3 %vm1057_vm0, %v8652_v2 }
 0x199   : > { %v974_v26 = vpack.c.bf16 %v792_v20, %v792_v20  ;;  %1536 = vmax.xlane.f32.xlu0 %v1535_v23  ;;  %v942_v33 = vpack.c.bf16 %v703_v19, %v703_v19 }
 0x19a   : > { %v8667_v28 = vpop.f32.mrf.mxu3 }
 0x19b   : > { %v1386_v37 = vunpack.c.l.b16 %v974_v26  ;;  %v1381_v48 = vunpack.c.l.b16 %v942_v33 }
 0x19d   : > { %v8669_v38 = vpack.c.b16 %v1386_v37, %v1385_v25  ;;  %v8676_v62 = vpack.c.b16 %v1381_v48, %v1380_v47 }
 0x19e   : > { %v705_v39 = vpop.f32.mrf.mxu0  ;;  %v794_v46 = vpop.f32.mrf.mxu1 }
 0x19f   : > { %11700 = vst [vmem:[#allocation49_spill] sm:$0xff] %v8669_v38  ;;  %v1392_v49 = vsel %vm1057_vm0, %v8669_v38, 0  ;;  %v795_v54 = vadd.f32 %v794_v46, %v8384_v21  ;;  %v706_v11 = vadd.f32 %v705_v39, %v8381_v17 }
 0x1a0   : > { %1401 = vmatpush.bf16.xpose.msra.mxu3 %v1392_v49  ;;  %11701 = vst [vmem:[#allocation50_spill] sm:$0xff] %v8676_v62 }
 0x1a1   : > { %v975_v63 = vpack.c.bf16 %v795_v54, %v795_v54  ;;  %v943_v25 = vpack.c.bf16 %v706_v11, %v706_v11 }
 0x1a2   : > { %v8674_v55 = vpop.f32.mrf.mxu3 }
 0x1a3   : > { %v1415_v19 = vunpack.c.l.b16 %v975_v63  ;;  %v1410_v46 = vunpack.c.l.b16 %v943_v25  ;;  %v8694_v63 = vpop.permute.xlu1 %2434  ;;  %v1023_v25 = vld [vmem:[#allocation8 + $0x40] sm:$0xff]  ;;  %v8833_v22 = vadd.f32 %v8674_v55, %v1020_v31 }
 0x1a4   : > { %11703 = vst [vmem:[#allocation52_spill] sm:$0xff] %v8694_v63 }
 0x1a6   : > { %v707_v0 = vpop.f32.mrf.mxu0  ;;  %v796_v10 = vpop.f32.mrf.mxu1 }
 0x1a7   : > { %v708_v12 = vadd.f32 %v707_v0, %v8381_v17  ;;  %v797_v16 = vadd.f32 %v796_v10, %v8384_v21  ;;  %7073 = vmatmul.msk.bf16.vlgmr.msra.gmra.mxu3 %vm1057_vm0, %v8676_v62 }
 0x1a9   : > { %v976_v20 = vpack.c.bf16 %v797_v16, %v797_v16  ;;  %v944_v26 = vpack.c.bf16 %v708_v12, %v708_v12 }
 0x1aa   : > { %v8683_v23 = vpop.f32.mrf.mxu3 }
 0x1ab   : > { %v1416_v32 = vunpack.c.l.b16 %v976_v20  ;;  %v1411_v47 = vunpack.c.l.b16 %v944_v26  ;;  %v1018_v26 = vld [vmem:[#allocation8 + $0x18] sm:$0xff] }
 0x1ac   : > { %v8706_v27 = vadd.f32 %v8650_v1, %v1018_v26 }
 0x1ad   : > { %v8685_v33 = vpack.c.b16 %v1416_v32, %v1415_v19  ;;  %2650 = vrot.lane.b32.xlu0 %v8652_v2, %s8196_s8  ;;  %v8696_v0 = vpack.c.b16 %v1411_v47, %v1410_v46 }
 0x1ae   : > { %v710_v37 = vpop.f32.mrf.mxu0  ;;  %v799_v39 = vpop.f32.mrf.mxu1  ;;  %v1538_v1 = vsel %vm1528_vm1, %v8706_v27, -inf }
 0x1af   : > { %11702 = vst [vmem:[#allocation51_spill] sm:$0xff] %v8685_v33  ;;  %v1422_v48 = vsel %vm1057_vm0, %v8685_v33, 0  ;;  %v800_v49 = vadd.f32 %v799_v39, %v8384_v21  ;;  %v711_v16 = vadd.f32 %v710_v37, %v8381_v17  ;;  %v8708_v37 = vpop.permute.xlu1 %3951 }
 0x1b0   : > { %1431 = vmatpush.bf16.xpose.msrb.mxu3 %v1422_v48  ;;  %11704 = vst [vmem:[#allocation53_spill] sm:$0xff] %v8696_v0 }
 0x1b1   : > { %v977_v10 = vpack.c.bf16 %v800_v49, %v800_v49  ;;  %v945_v13 = vpack.c.bf16 %v711_v16, %v711_v16  ;;  %11705 = vst [vmem:[#allocation54_spill] sm:$0xff] %v8708_v37 }
 0x1b2   : > { %v8692_v54 = vpop.f32.mrf.mxu3 }
 0x1b3   : > { %v1445_v32 = vunpack.c.l.b16 %v977_v10  ;;  %v1440_v10 = vunpack.c.l.b16 %v945_v13 }
 0x1b6   : > { %v712_v11 = vpop.f32.mrf.mxu0  ;;  %v801_v12 = vpop.f32.mrf.mxu1 }
 0x1b7   : > { %v713_v19 = vadd.f32 %v712_v11, %v8381_v17  ;;  %v802_v20 = vadd.f32 %v801_v12, %v8384_v21  ;;  %7074 = vmatmul.msk.bf16.vlgmr.msrb.gmra.mxu3 %vm1057_vm0, %v8696_v0  ;;  %v1031_v0 = vld [vmem:[#allocation8 + $0x80] sm:$0xff] }
 0x1b9   : > { %v978_v39 = vpack.c.bf16 %v802_v20, %v802_v20  ;;  %v946_v46 = vpack.c.bf16 %v713_v19, %v713_v19  ;;  %v1024_v19 = vld [vmem:[#allocation8 + $0x48] sm:$0xff] }
 0x1ba   : > { %v1193_v48 = vpop.f32.mrf.mxu3 }
 0x1bb   : > { %v1446_v47 = vunpack.c.l.b16 %v978_v39  ;;  %v8703_v49 = vadd.f32 %v1193_v48, %v1023_v25  ;;  %v1441_v20 = vunpack.c.l.b16 %v946_v46 }
 0x1bd   : > { %v8710_v11 = vpack.c.b16 %v1446_v47, %v1445_v32  ;;  %v1553_v12 = vsel %vm1528_vm1, %v8703_v49, -inf  ;;  %v878_v32 = vpop.f32.mrf.mxu2  ;;  %v8719_v39 = vpack.c.b16 %v1441_v20, %v1440_v10  ;;  %v1025_v10 = vld [vmem:[#allocation8 + $0x50] sm:$0xff] }
 0x1be   : > { %v715_v44 = vpop.f32.mrf.mxu0  ;;  %v804_v15 = vpop.f32.mrf.mxu1  ;;  %1554 = vmax.xlane.f32.xlu2 %v1553_v12 }
 0x1bf   : > { %11706 = vst [vmem:[#allocation55_spill] sm:$0xff] %v8710_v11  ;;  %v1452_v16 = vsel %vm1057_vm0, %v8710_v11, 0  ;;  %v805_v25 = vadd.f32 %v804_v15, %v8384_v21  ;;  %v716_v51 = vadd.f32 %v715_v44, %v8381_v17 }
 0x1c0   : > { %1461 = vmatpush.bf16.xpose.msra.mxu3 %v1452_v16  ;;  %11707 = vst [vmem:[#allocation56_spill] sm:$0xff] %v8719_v39  ;;  %v8725_v16 = vpop.permute.xlu1 %3949 }
 0x1c1   : > { %1539 = vmax.xlane.f32.xlu1 %v1538_v1  ;;  %v979_v47 = vpack.c.bf16 %v805_v25, %v805_v25  ;;  %11708 = vst [vmem:[#allocation57_spill] sm:$0xff] %v8725_v16  ;;  %v1019_v16 = vld [vmem:[#allocation8 + $0x20] sm:$0xff] }
 0x1c2   : > { %v1195_v26 = vpop.f32.mrf.mxu3 }
 0x1c3   : > { %v8721_v48 = vadd.f32 %v1195_v26, %v1024_v19  ;;  %v1475_v20 = vunpack.c.l.b16 %v979_v47  ;;  %v947_v26 = vpack.c.bf16 %v716_v51, %v716_v51 }
 0x1c5   : > { %v1556_v13 = vsel %vm1528_vm1, %v8721_v48, -inf  ;;  %v1470_v6 = vunpack.c.l.b16 %v947_v26 }
 0x1c6   : > { %v717_v46 = vpop.f32.mrf.mxu0  ;;  %v806_v12 = vpop.f32.mrf.mxu1  ;;  %1557 = vmax.xlane.f32.xlu2 %v1556_v13 }
 0x1c7   : > { %v718_v15 = vadd.f32 %v717_v46, %v8381_v17  ;;  %v807_v1 = vadd.f32 %v806_v12, %v8384_v21  ;;  %7075 = vmatmul.msk.bf16.vlgmr.msra.gmra.mxu3 %vm1057_vm0, %v8719_v39  ;;  %v880_v13 = vpop.f32.mrf.mxu2 }
 0x1c8   : > { %v8740_v51 = vpop.permute.xlu1 %2458 }
 0x1c9   : > { %v980_v19 = vpack.c.bf16 %v807_v1, %v807_v1  ;;  %v948_v50 = vpack.c.bf16 %v718_v15, %v718_v15  ;;  %11710 = vst [vmem:[#allocation59_spill] sm:$0xff] %v8740_v51  ;;  %v1021_v51 = vld [vmem:[#allocation8 + $0x30] sm:$0xff] }
 0x1ca   : > { %v1223_v25 = vpop.f32.mrf.mxu3  ;;  %v8846_v31 = vadd.f32 %v8683_v23, %v1021_v51 }
 0x1cb   : > { %v1476_v43 = vunpack.c.l.b16 %v980_v19  ;;  %v8732_v36 = vadd.f32 %v1223_v25, %v1025_v10  ;;  %v1471_v7 = vunpack.c.l.b16 %v948_v50  ;;  %v8748_v10 = vpop.permute.xlu0 %3925 }
 0x1cc   : > { %11712 = vst [vmem:[#allocation61_spill] sm:$0xff] %v8748_v10  ;;  %v1547_v29 = vsel %vm1528_vm1, %v8846_v31, -inf }
 0x1cd   : > { %v8734_v5 = vpack.c.b16 %v1476_v43, %v1475_v20  ;;  %v1559_v44 = vsel %vm1528_vm1, %v8732_v36, -inf  ;;  %v8744_v43 = vadd.f32 %v8667_v28, %v1019_v16  ;;  %v8746_v1 = vpack.c.b16 %v1471_v7, %v1470_v6 }
 0x1ce   : > { %v720_v46 = vpop.f32.mrf.mxu0  ;;  %v809_v12 = vpop.f32.mrf.mxu1  ;;  %1560 = vmax.xlane.f32.xlu2 %v1559_v44 }
 0x1cf   : > { %11709 = vst [vmem:[#allocation58_spill] sm:$0xff] %v8734_v5  ;;  %v1482_v47 = vsel %vm1057_vm0, %v8734_v5, 0  ;;  %v810_v15 = vadd.f32 %v809_v12, %v8384_v21  ;;  %v8750_v20 = vpop.f32.mrf.mxu2  ;;  %v1541_v26 = vsel %vm1528_vm1, %v8744_v43, -inf  ;;  %v721_v44 = vadd.f32 %v720_v46, %v8381_v17 }
 0x1d0   : > { %1491 = vmatpush.bf16.xpose.msrb.mxu3 %v1482_v47  ;;  %11711 = vst [vmem:[#allocation60_spill] sm:$0xff] %v8746_v1  ;;  %v8761_v28 = vpop.permute.xlu1 %3973 }
 0x1d1   : > { %v981_v19 = vpack.c.bf16 %v810_v15, %v810_v15  ;;  %11713 = vst [vmem:[#allocation62_spill] sm:$0xff] %v8761_v28  ;;  %v949_v16 = vpack.c.bf16 %v721_v44, %v721_v44 }
 0x1d3   : > { %v1505_v7 = vunpack.c.l.b16 %v981_v19  ;;  %v8767_v46 = vpop.permute.xlu0 %2410  ;;  %v1500_v19 = vunpack.c.l.b16 %v949_v16 }
 0x1d4   : > { %11715 = vst [vmem:[#allocation64_spill] sm:$0xff] %v8767_v46 }
 0x1d6   : > { %v722_v25 = vpop.f32.mrf.mxu0  ;;  %v811_v50 = vpop.f32.mrf.mxu1 }
 0x1d7   : > { %v723_v47 = vadd.f32 %v722_v25, %v8381_v17  ;;  %v812_v12 = vadd.f32 %v811_v50, %v8384_v21  ;;  %1542 = vmax.xlane.f32.xlu0 %v1541_v26  ;;  %7076 = vmatmul.msk.bf16.vlgmr.msrb.gmra.mxu3 %vm1057_vm0, %v8746_v1  ;;  %v879_v17 = vadd.f32 %v878_v32, %v8388_v24  ;;  %v8769_v25 = vpop.f32.mrf.mxu2 }
 0x1d8   : > { %v881_v21 = vadd.f32 %v880_v13, %v8388_v24  ;;  %v8778_v13 = vpop.permute.xlu1 %2484 }
 0x1d9   : > { %v982_v6 = vpack.c.bf16 %v812_v12, %v812_v12  ;;  %v950_v15 = vpack.c.bf16 %v723_v47, %v723_v47  ;;  %v1005_v12 = vpack.c.bf16 %v879_v17, %v879_v17  ;;  %11717 = vst [vmem:[#allocation66_spill] sm:$0xff] %v8778_v13 }
 0x1da   : > { %2676 = vrot.lane.b32.xlu1 %v8669_v38, %s8196_s8  ;;  %v1006_v44 = vpack.c.bf16 %v881_v21, %v881_v21 }
 0x1db   : > { %v1506_v10 = vunpack.c.l.b16 %v982_v6  ;;  %v1501_v50 = vunpack.c.l.b16 %v950_v15  ;;  %v8791_v15 = vpop.f32.mrf.mxu3 }
 0x1dc   : > { %v2229_v47 = vunpack.c.l.b16 %v1006_v44 }
 0x1dd   : > { %v8763_v42 = vpack.c.b16 %v1506_v10, %v1505_v7  ;;  %v8776_v32 = vpack.c.b16 %v1501_v50, %v1500_v19  ;;  %v2228_v10 = vunpack.c.l.b16 %v1005_v12  ;;  %v8784_v7 = vpop.permute.xlu0 %2436 }
 0x1de   : > { %11718 = vst [vmem:[#allocation67_spill] sm:$0xff] %v8784_v7  ;;  %v1029_v7 = vld [vmem:[#allocation8 + $0x70] sm:$0xff] }
 0x1df   : > { %11714 = vst [vmem:[#allocation63_spill] sm:$0xff] %v8763_v42  ;;  %v1512_v26 = vsel %vm1057_vm0, %v8763_v42, 0  ;;  %v8787_v6 = vpop.f32.mrf.mxu2  ;;  %v8789_v16 = vpack.c.b16 %v2229_v47, %v2228_v10 }
 0x1e0   : > { %1521 = vmatpush.bf16.xpose.msra.mxu3 %v1512_v26  ;;  %11716 = vst [vmem:[#allocation65_spill] sm:$0xff] %v8776_v32  ;;  %v8797_v17 = vpop.permute.xlu1 %3997 }
 0x1e1   : > { %11719 = vst [vmem:[#allocation68_spill] sm:$0xff] %v8787_v6 }
 0x1e2   : > { %2674 = vrot.lane.b32.xlu1 %v8676_v62, %s8196_s8  ;;  %11720 = vst [vmem:[#allocation69_spill] sm:$0xff] %v8789_v16 }
 0x1e3   : > { %11721 = vst [vmem:[#allocation70_spill] sm:$0xff] %v8797_v17  ;;  %v1253_v19 = vpop.f32.mrf.mxu3  ;;  %v1022_v17 = vld [vmem:[#allocation8 + $0x38] sm:$0xff] }
 0x1e4   : > { %v8820_v40 = vadd.f32 %v8692_v54, %v1022_v17 }
 0x1e5   : > { %v8799_v21 = vpop.permute.xlu0 %2460 }
 0x1e6   : > { %2748 = vrot.lane.b32.xlu2 %v8734_v5, %s8196_s8  ;;  %11722 = vst [vmem:[#allocation71_spill] sm:$0xff] %v8799_v21  ;;  %v1550_v45 = vsel %vm1528_vm1, %v8820_v40, -inf }
 0x1e7   : > { %7077 = vmatmul.msk.bf16.vlgmr.msra.gmra.mxu3 %vm1057_vm0, %v8776_v32  ;;  %v8801_v50 = vpop.f32.mrf.mxu2 }
 0x1e8   : > { %1934 = vmatpush.bf16.msrb.mxu3 %v8407_v53  ;;  %11723 = vst [vmem:[#allocation72_spill] sm:$0xff] %v8801_v50  ;;  %v8807_v12 = vpop.permute.xlu1 %3258  ;;  %v1030_v53 = vld [vmem:[#allocation8 + $0x78] sm:$0xff] }
 0x1e9   : > { %11725 = vst [vmem:[#allocation74_spill] sm:$0xff] %v8807_v12 }
 0x1eb   : > { %3458 = vrot.lane.b32.xlu0 %v8789_v16, %s8196_s8  ;;  %v8809_v44 = vpop.f32.mrf.mxu3 }
 0x1ec   : > { %1962 = vmatpush.bf16.msra.mxu3 %v8429_v18 }
 0x1ed   : > { %v8805_v26 = vpop.permute.xlu0 %2482 }
 0x1ee   : > { %2746 = vrot.lane.b32.xlu2 %v8746_v1, %s8196_s8  ;;  %11724 = vst [vmem:[#allocation73_spill] sm:$0xff] %v8805_v26  ;;  %v8828_v26 = vpop.permute.xlu2 %3927 }
 0x1ef   : > { %v8811_v10 = vpop.f32.mrf.mxu2  ;;  %11730 = vst [vmem:[#allocation79_spill] sm:$0xff] %v8828_v26 }
 0x1f0   : > { %v8815_v28 = vpop.permute.xlu1 %4023 }
 0x1f1   : > { %11727 = vst [vmem:[#allocation76_spill] sm:$0xff] %v8815_v28  ;;  %v8830_v28 = vadd.f32 %v1253_v19, %v1027_v59  ;;  %v1015_v59 = vld [vmem:[#allocation8] sm:$0xff]  ;;  %v1073_v19 = vpop.f32.mrf.mxu0 }
 0x1f3   : > { %v8817_v37 = vpop.f32.mrf.mxu3 }
 0x1f5   : > { %v8813_v47 = vpop.permute.xlu0 %2530 }
 0x1f6   : > { %2770 = vrot.lane.b32.xlu2 %v8776_v32, %s8196_s8  ;;  %11726 = vst [vmem:[#allocation75_spill] sm:$0xff] %v8813_v47  ;;  %v8843_v26 = vpop.permute.xlu2 %2412 }
 0x1f7   : > { %v895_v9 = vpop.f32.mrf.mxu2  ;;  %11733 = vst [vmem:[#allocation82_spill] sm:$0xff] %v8843_v26 }
 0x1f8   : > { %v8826_v12 = vpop.permute.xlu1 %4021 }
 0x1f9   : > { %11729 = vst [vmem:[#allocation78_spill] sm:$0xff] %v8826_v12 }
 0x1fb   : > { %v1285_v47 = vpop.f32.mrf.mxu3 }
 0x1fd   : > { %v8822_v30 = vpop.permute.xlu0 %4045 }
 0x1fe   : > { %11728 = vst [vmem:[#allocation77_spill] sm:$0xff] %v8822_v30  ;;  %v1565_v30 = vsel %vm1528_vm1, %v8830_v28, -inf  ;;  %v8858_v23 = vpop.permute.xlu2 %3975 }
 0x1ff   : > { %v898_v54 = vpop.f32.mrf.mxu2  ;;  %11735 = vst [vmem:[#allocation84_spill] sm:$0xff] %v8858_v23 }
 0x200   : > { %v8841_v12 = vpop.permute.xlu1 %4047 }
 0x201   : > { %11732 = vst [vmem:[#allocation81_spill] sm:$0xff] %v8841_v12 }
 0x203   : > { %v1313_v55 = vpop.f32.mrf.mxu3 }
 0x205   : > { %v8835_v17 = vpop.permute.xlu0 %4095 }
 0x206   : > { %11731 = vst [vmem:[#allocation80_spill] sm:$0xff] %v8835_v17  ;;  %v8848_v17 = vadd.f32 %v1073_v19, %v1015_v59 }
 0x208   : > { %v1529_v5 = vsel %vm1528_vm1, %v8848_v17, -inf  ;;  %v8860_v51 = vpop.permute.xlu1 %2554 }
 0x209   : > { %11736 = vst [vmem:[#allocation85_spill] sm:$0xff] %v8860_v51  ;;  %v8871_v51 = vpop.permute.xlu2 %3233 }
 0x20a   : > { %11738 = vst [vmem:[#allocation87_spill] sm:$0xff] %v8871_v51 }
 0x20b   : > { %v8864_v18 = vpop.f32.mrf.mxu3 }
 0x20c   : > { %1551 = vmax.xlane.f32.xlu1 %v1550_v45  ;;  %v1544_v45 = vsel %vm1528_vm1, %v8833_v22, -inf }
 0x20d   : > { %v8850_v63 = vpop.permute.xlu0 %4119 }
 0x20e   : > { %11734 = vst [vmem:[#allocation83_spill] sm:$0xff] %v8850_v63  ;;  %v8862_v63 = vadd.f32 %v1285_v47, %v1030_v53 }
 0x210   : > { %v1574_v21 = vsel %vm1528_vm1, %v8862_v63, -inf  ;;  %v8875_v53 = vpop.permute.xlu1 %4071 }
 0x211   : > { %11739 = vst [vmem:[#allocation88_spill] sm:$0xff] %v8875_v53 }
 0x213   : > { %v8877_v47 = vpop.f32.mrf.mxu3 }
 0x214   : > { %1566 = vmax.xlane.f32.xlu1 %v1565_v30  ;;  %v900_v30 = vpop.f32.mrf.mxu2 }
 0x215   : > { %1545 = vmax.xlane.f32.xlu0 %v1544_v45  ;;  %v899_v45 = vadd.f32 %v898_v54, %v8388_v24  ;;  %v901_v12 = vadd.f32 %v900_v30, %v8388_v24  ;;  %v1537_v13 = vpop.xlane.xlu0 %1536 }
 0x217   : > { %v1013_v59 = vpack.c.bf16 %v899_v45, %v899_v45  ;;  %v1014_v19 = vpack.c.bf16 %v901_v12, %v901_v12  ;;  %v8873_v12 = vadd.f32 %v1313_v55, %v1031_v0  ;;  %v894_v0 = vadd.f32 %v8811_v10, %v8388_v24  ;;  %v8892_v45 = vpop.permute.xlu2 %3999 }
 0x218   : > { %v896_v55 = vadd.f32 %v895_v9, %v8388_v24  ;;  %11742 = vst [vmem:[#allocation91_spill] sm:$0xff] %v8892_v45 }
 0x219   : > { %v2340_v54 = vunpack.c.l.b16 %v1013_v59  ;;  %v2341_v30 = vunpack.c.l.b16 %v1014_v19  ;;  %v1011_v19 = vpack.c.bf16 %v894_v0, %v894_v0  ;;  %v1035_v0 = vld [vmem:[#allocation8 + $0xa0] sm:$0xff] }
 0x21b   : > { %v8869_v23 = vpack.c.b16 %v2341_v30, %v2340_v54  ;;  %v1034_v54 = vld [vmem:[#allocation8 + $0x98] sm:$0xff]  ;;  %v1345_v30 = vpop.f32.mrf.mxu3  ;;  %v2312_v10 = vunpack.c.l.b16 %v1011_v19 }
 0x21d   : > { %1548 = vmax.xlane.f32.xlu0 %v1547_v29  ;;  %v1627_v29 = vsub.f32 %v8654_v3, %v1537_v13  ;;  %11737 = vst [vmem:[#allocation86_spill] sm:$0xff] %v8869_v23  ;;  %v1577_v3 = vsel %vm1528_vm1, %v8873_v12, -inf }
 0x21f   : > { %1530 = vmax.xlane.f32.xlu2 %v1529_v5  ;;  %v1661_v5 = vmul.f32 1.442695, %v1627_v29  ;;  %v1012_v29 = vpack.c.bf16 %v896_v55, %v896_v55  ;;  %v8902_v9 = vpop.permute.xlu2 %2532 }
 0x220   : > { %11744 = vst [vmem:[#allocation93_spill] sm:$0xff] %v8902_v9  ;;  %v1028_v9 = vld [vmem:[#allocation8 + $0x68] sm:$0xff] }
 0x221   : > { %7447 = vpow2.f32 %v1661_v5  ;;  %v8898_v5 = vadd.f32 %v1345_v30, %v1034_v54  ;;  %v2313_v53 = vunpack.c.l.b16 %v1012_v29 }
 0x223   : > { %v1586_v45 = vsel %vm1528_vm1, %v8898_v5, -inf  ;;  %v1373_v55 = vpop.f32.mrf.mxu3 }
 0x224   : > { %v8912_v54 = vadd.f32 %v1373_v55, %v1035_v0  ;;  %v8926_v0 = vadd.f32 %v8809_v44, %v1028_v9 }
 0x226   : > { %v1589_v29 = vsel %vm1528_vm1, %v8912_v54, -inf }
 0x227   : > { %1575 = vmax.xlane.f32.xlu2 %v1574_v21  ;;  %v8885_v13 = vpop.eup %7447  ;;  %v8887_v21 = vpop.permute.xlu1 %3333 }
 0x228   : > { %11740 = vst [vmem:[#allocation89_spill] sm:$0xff] %v8885_v13  ;;  %v1727_v59 = vsel %vm1528_vm1, %v8885_v13, 0.0  ;;  %v8916_v19 = vpop.permute.xlu2 %2556 }
 0x229   : > { %11741 = vst [vmem:[#allocation90_spill] sm:$0xff] %v8887_v21  ;;  %v8906_v21 = vpack.c.b16 %v2313_v53, %v2312_v10 }
 0x22a   : > { %11748 = vst [vmem:[#allocation97_spill] sm:$0xff] %v8916_v19 }
 0x22b   : > { %11745 = vst [vmem:[#allocation94_spill] sm:$0xff] %v8906_v21 }
 0x22d   : > { %3558 = vrot.lane.b32.xlu1 %v8869_v23, %s8196_s8 }
 0x22f   : > { %1578 = vmax.xlane.f32.xlu2 %v1577_v3  ;;  %v8900_v3 = vpop.permute.xlu1 %4093 }
 0x230   : > { %11743 = vst [vmem:[#allocation92_spill] sm:$0xff] %v8900_v3  ;;  %v8923_v51 = vpop.permute.xlu2 %4069 }
 0x231   : > { %2724 = vrot.lane.b32.xlu0 %v8710_v11, %s8196_s8  ;;  %11750 = vst [vmem:[#allocation99_spill] sm:$0xff] %v8923_v51 }
 0x237   : > { %1728 = vadd.xlane.f32.xlu2 %v1727_v59  ;;  %v8910_v59 = vpop.permute.xlu0 %2650  ;;  %v8914_v30 = vpop.permute.xlu1 %4117 }
 0x238   : > { %11746 = vst [vmem:[#allocation95_spill] sm:$0xff] %v8910_v59  ;;  %v1375_v59 = vpop.f32.mrf.mxu3 }
 0x239   : > { %2722 = vrot.lane.b32.xlu0 %v8719_v39, %s8196_s8  ;;  %11747 = vst [vmem:[#allocation96_spill] sm:$0xff] %v8914_v30 }
 0x23f   : > { %1587 = vmax.xlane.f32.xlu2 %v1586_v45  ;;  %v8920_v10 = vpop.permute.xlu1 %2628 }
 0x240   : > { %11749 = vst [vmem:[#allocation98_spill] sm:$0xff] %v8920_v10  ;;  %v1403_v19 = vpop.f32.mrf.mxu3 }
 0x241   : > { %3533 = vrot.lane.b32.xlu0 %v8906_v21, %s8196_s8 }
 0x247   : > { %1590 = vmax.xlane.f32.xlu2 %v1589_v29  ;;  %v8928_v55 = vpop.permute.xlu1 %2652  ;;  %v1568_v29 = vsel %vm1528_vm1, %v8926_v0, -inf }
 0x248   : > { %11751 = vst [vmem:[#allocation100_spill] sm:$0xff] %v8928_v55  ;;  %v1037_v55 = vld [vmem:[#allocation8 + $0xb0] sm:$0xff] }
 0x24a   : > { %v1543_v53 = vpop.xlane.xlu0 %1542 }
 0x24b   : > { %v1629_v45 = vsub.f32 %v8744_v43, %v1543_v53  ;;  %v1016_v43 = vld [vmem:[#allocation8 + $0x8] sm:$0xff]  ;;  %v1075_v53 = vpop.f32.mrf.mxu0 }
 0x24c   : > { %v8938_v44 = vadd.f32 %v1075_v53, %v1016_v43  ;;  %v1026_v43 = vld [vmem:[#allocation8 + $0x58] sm:$0xff] }
 0x24d   : > { %v1665_v3 = vmul.f32 1.442695, %v1629_v45  ;;  %v1036_v45 = vld [vmem:[#allocation8 + $0xa8] sm:$0xff] }
 0x24e   : > { %v8940_v9 = vadd.f32 %v1375_v59, %v1036_v45  ;;  %v1532_v39 = vsel %vm1528_vm1, %v8938_v44, -inf  ;;  %v8953_v59 = vadd.f32 %v8817_v37, %v1029_v7 }
 0x24f   : > { %7449 = vpow2.f32 %v1665_v3  ;;  %v8936_v3 = vpop.permute.xlu2 %2580  ;;  %v8942_v51 = vpop.permute.xlu1 %3433 }
 0x250   : > { %11752 = vst [vmem:[#allocation101_spill] sm:$0xff] %v8936_v3  ;;  %v1592_v11 = vsel %vm1528_vm1, %v8940_v9, -inf  ;;  %v1571_v3 = vsel %vm1528_vm1, %v8953_v59, -inf }
 0x251   : > { %11753 = vst [vmem:[#allocation102_spill] sm:$0xff] %v8942_v51  ;;  %v8958_v51 = vadd.f32 %v8791_v15, %v1026_v43 }
 0x253   : > { %v1562_v37 = vsel %vm1528_vm1, %v8958_v51, -inf }
 0x255   : > { %v8930_v30 = vpop.eup %7449 }
 0x256   : > { %v1733_v10 = vsel %vm1528_vm1, %v8930_v30, 0.0 }
 0x257   : > { %1569 = vmax.xlane.f32.xlu1 %v1568_v29  ;;  %1734 = vadd.xlane.f32.xlu2 %v1733_v10  ;;  %v8948_v10 = vpop.permute.xlu2 %2578  ;;  %v8950_v29 = vadd.f32 %v1403_v19, %v1037_v55  ;;  %v1540_v45 = vpop.xlane.xlu1 %1539  ;;  %v1033_v55 = vld [vmem:[#allocation8 + $0x90] sm:$0xff] }
 0x258   : > { %11754 = vst [vmem:[#allocation103_spill] sm:$0xff] %v8948_v10  ;;  %v1405_v10 = vpop.f32.mrf.mxu3 }
 0x259   : > { %v1595_v53 = vsel %vm1528_vm1, %v8950_v29, -inf }
 0x25f   : > { %1533 = vmax.xlane.f32.xlu1 %v1532_v39  ;;  %1593 = vmax.xlane.f32.xlu2 %v1592_v11  ;;  %v1032_v39 = vld [vmem:[#allocation8 + $0x88] sm:$0xff]  ;;  %v8962_v11 = vpop.permute.xlu2 %3358  ;;  %v8969_v7 = vpop.permute.xlu1 %2676 }
 0x260   : > { %11755 = vst [vmem:[#allocation104_spill] sm:$0xff] %v8962_v11  ;;  %v8965_v19 = vadd.f32 %v8864_v18, %v1032_v39  ;;  %v8984_v11 = vpop.permute.xlu0 %3458 }
 0x261   : > { %11756 = vst [vmem:[#allocation105_spill] sm:$0xff] %v8969_v7 }
 0x262   : > { %v1580_v15 = vsel %vm1528_vm1, %v8965_v19, -inf  ;;  %11759 = vst [vmem:[#allocation108_spill] sm:$0xff] %v8984_v11 }
 0x267   : > { %1572 = vmax.xlane.f32.xlu1 %v1571_v3  ;;  %1596 = vmax.xlane.f32.xlu2 %v1595_v53  ;;  %v8973_v43 = vpop.permute.xlu2 %2626  ;;  %v8976_v3 = vadd.f32 %v8877_v47, %v1033_v55  ;;  %v8980_v53 = vpop.permute.xlu1 %2674 }
 0x268   : > { %11757 = vst [vmem:[#allocation106_spill] sm:$0xff] %v8973_v43 }
 0x269   : > { %v1583_v18 = vsel %vm1528_vm1, %v8976_v3, -inf  ;;  %11758 = vst [vmem:[#allocation107_spill] sm:$0xff] %v8980_v53 }
 0x26b   : > { %1563 = vmax.xlane.f32.xlu0 %v1562_v37 }
 0x26f   : > { %1581 = vmax.xlane.f32.xlu1 %v1580_v15  ;;  %v1555_v39 = vpop.xlane.xlu2 %1554 }
 0x270   : > { %v1633_v7 = vsub.f32 %v8703_v49, %v1555_v39 }
 0x272   : > { %v1673_v43 = vmul.f32 1.442695, %v1633_v7  ;;  %v1040_v7 = vld [vmem:[#allocation8 + $0xc8] sm:$0xff] }
 0x277   : > { %1584 = vmax.xlane.f32.xlu1 %v1583_v18  ;;  %v1558_v55 = vpop.xlane.xlu2 %1557  ;;  %v1433_v18 = vpop.f32.mrf.mxu3 }
 0x278   : > { %v1634_v6 = vsub.f32 %v8721_v48, %v1558_v55 }
 0x27f   : > { %v1552_v37 = vpop.xlane.xlu1 %1551  ;;  %2772 = vrot.lane.b32.xlu0 %v8763_v42, %s8196_s8  ;;  %v1561_v1 = vpop.xlane.xlu2 %1560 }
 0x280   : > { %v1632_v15 = vsub.f32 %v8820_v40, %v1552_v37 }
 0x282   : > { %v1671_v47 = vmul.f32 1.442695, %v1632_v15  ;;  %v1435_v15 = vpop.f32.mrf.mxu3 }
 0x283   : > { %v9000_v62 = vadd.f32 %v1435_v15, %v1040_v7 }
 0x284   : > { %7451 = vpow2.f32 %v1671_v47  ;;  %v1628_v47 = vsub.f32 %v8706_v27, %v1540_v45 }
 0x285   : > { %7453 = vpow2.f32 %v1673_v43 }
 0x286   : > { %v1663_v50 = vmul.f32 1.442695, %v1628_v47  ;;  %v1041_v47 = vld [vmem:[#allocation8 + $0xd0] sm:$0xff] }
 0x287   : > { %v8997_v43 = vpop.permute.xlu2 %2748 }
 0x288   : > { %v1546_v46 = vpop.xlane.xlu0 %1545  ;;  %11760 = vst [vmem:[#allocation109_spill] sm:$0xff] %v8997_v43 }
 0x289   : > { %v1630_v27 = vsub.f32 %v8833_v22, %v1546_v46  ;;  %v1635_v22 = vsub.f32 %v8732_v36, %v1561_v1 }
 0x28a   : > { %v8988_v32 = vpop.eup %7451 }
 0x28b   : > { %v1742_v53 = vsel %vm1528_vm1, %v8988_v32, 0.0  ;;  %v8992_v11 = vpop.eup %7453  ;;  %v1667_v7 = vmul.f32 1.442695, %v1630_v27  ;;  %v1038_v27 = vld [vmem:[#allocation8 + $0xb8] sm:$0xff] }
 0x28c   : > { %1743 = vadd.xlane.f32.xlu2 %v1742_v53  ;;  %v1745_v39 = vsel %vm1528_vm1, %v8992_v11, 0.0  ;;  %v9035_v36 = vadd.f32 %v1405_v10, %v1038_v27  ;;  %v1042_v10 = vld [vmem:[#allocation8 + $0xd8] sm:$0xff] }
 0x28f   : > { %v9010_v45 = vpop.permute.xlu2 %2746 }
 0x290   : > { %v1549_v40 = vpop.xlane.xlu0 %1548  ;;  %11761 = vst [vmem:[#allocation110_spill] sm:$0xff] %v9010_v45 }
 0x291   : > { %v1631_v37 = vsub.f32 %v8846_v31, %v1549_v40  ;;  %v1604_v31 = vsel %vm1528_vm1, %v9000_v62, -inf }
 0x293   : > { %v1669_v49 = vmul.f32 1.442695, %v1631_v37  ;;  %v1039_v37 = vld [vmem:[#allocation8 + $0xc0] sm:$0xff] }
 0x294   : > { %1746 = vadd.xlane.f32.xlu2 %v1745_v39  ;;  %v9012_v39 = vadd.f32 %v1433_v18, %v1039_v37 }
 0x295   : > { %7455 = vpow2.f32 %v1669_v49  ;;  %v1675_v49 = vmul.f32 1.442695, %v1634_v6 }
 0x296   : > { %7457 = vpow2.f32 %v1663_v50  ;;  %v1601_v48 = vsel %vm1528_vm1, %v9012_v39, -inf }
 0x297   : > { %7459 = vpow2.f32 %v1675_v49  ;;  %v9018_v15 = vpop.permute.xlu2 %2770 }
 0x298   : > { %7461 = vpow2.f32 %v1667_v7  ;;  %11762 = vst [vmem:[#allocation111_spill] sm:$0xff] %v9018_v15 }
 0x29b   : > { %v9002_v53 = vpop.eup %7455 }
 0x29c   : > { %1605 = vmax.xlane.f32.xlu2 %v1604_v31  ;;  %v1739_v40 = vsel %vm1528_vm1, %v9002_v53, 0.0  ;;  %v9016_v55 = vpop.eup %7457  ;;  %v1463_v31 = vpop.f32.mrf.mxu3 }
 0x29d   : > { %1740 = vadd.xlane.f32.xlu1 %v1739_v40  ;;  %v1730_v6 = vsel %vm1528_vm1, %v9016_v55, 0.0  ;;  %v9022_v50 = vpop.eup %7459  ;;  %v1677_v40 = vmul.f32 1.442695, %v1635_v22  ;;  %v9029_v37 = vadd.f32 %v1463_v31, %v1041_v47  ;;  %v1598_v22 = vsel %vm1528_vm1, %v9035_v36, -inf }
 0x29e   : > { %v1748_v46 = vsel %vm1528_vm1, %v9022_v50, 0.0  ;;  %v9027_v18 = vpop.eup %7461 }
 0x29f   : > { %v1736_v49 = vsel %vm1528_vm1, %v9027_v18, 0.0  ;;  %v9033_v7 = vpop.xlane.xlu2 %1530  ;;  %7463 = vpow2.f32 %v1677_v40  ;;  %v1607_v1 = vsel %vm1528_vm1, %v9029_v37, -inf }
 0x2a3   : > { %v9050_v15 = vpop.permute.xlu0 %2724 }
 0x2a4   : > { %11765 = vst [vmem:[#allocation114_spill] sm:$0xff] %v9050_v15  ;;  %v1044_v15 = vld [vmem:[#allocation8 + $0xe8] sm:$0xff] }
 0x2a5   : > { %1602 = vmax.xlane.f32.xlu1 %v1601_v48  ;;  %v1465_v48 = vpop.f32.mrf.mxu3 }
 0x2a6   : > { %v9046_v27 = vadd.f32 %v1465_v48, %v1042_v10 }
 0x2a7   : > { %v1576_v31 = vpop.xlane.xlu2 %1575 }
 0x2a8   : > { %11764 = vst [vmem:[#allocation113_spill] sm:$0xff] %v9046_v27 }
 0x2a9   : > { %1731 = vadd.xlane.f32.xlu0 %v1730_v6  ;;  %v1567_v6 = vpop.xlane.xlu1 %1566 }
 0x2aa   : > { %v1637_v47 = vsub.f32 %v8830_v28, %v1567_v6 }
 0x2ad   : > { %1749 = vadd.xlane.f32.xlu1 %v1748_v46  ;;  %v9041_v46 = vpop.eup %7463 }
 0x2ae   : > { %11763 = vst [vmem:[#allocation112_spill] sm:$0xff] %v9041_v46  ;;  %v1751_v40 = vsel %vm1528_vm1, %v9041_v46, 0.0 }
 0x2af   : > { %v9056_v28 = vpop.xlane.xlu2 %1578 }
 0x2b1   : > { %1737 = vadd.xlane.f32.xlu0 %v1736_v49  ;;  %v1681_v49 = vmul.f32 1.442695, %v1637_v47  ;;  %v9052_v45 = vpop.permute.xlu1 %3558  ;;  %v9061_v47 = vpop.permute.xlu0 %2722 }
 0x2b2   : > { %11766 = vst [vmem:[#allocation115_spill] sm:$0xff] %v9052_v45 }
 0x2b3   : > { %7465 = vpow2.f32 %v1681_v49  ;;  %11767 = vst [vmem:[#allocation116_spill] sm:$0xff] %v9061_v47 }
 0x2b5   : > { %1608 = vmax.xlane.f32.xlu1 %v1607_v1  ;;  %v9048_v1 = vpop.f32.mrf.mxu3 }
 0x2b7   : > { %v9065_v49 = vpop.xlane.xlu2 %1728 }
 0x2b9   : > { %1599 = vmax.xlane.f32.xlu0 %v1598_v22  ;;  %v1610_v22 = vsel %vm1528_vm1, %v9046_v27, -inf  ;;  %v9058_v6 = vpop.eup %7465  ;;  %v9074_v13 = vpop.permute.xlu0 %3533 }
 0x2ba   : > { %v1757_v10 = vsel %vm1528_vm1, %v9058_v6, 0.0  ;;  %11768 = vst [vmem:[#allocation117_spill] sm:$0xff] %v9074_v13  ;;  %v1046_v13 = vld [vmem:[#allocation8 + $0xf8] sm:$0xff] }
 0x2bd   : > { %1752 = vadd.xlane.f32.xlu1 %v1751_v40  ;;  %v1495_v40 = vpop.f32.mrf.mxu3 }
 0x2c5   : > { %1611 = vmax.xlane.f32.xlu1 %v1610_v22  ;;  %v9067_v22 = vadd.f32 %v1495_v40, %v1044_v15  ;;  %v1523_v47 = vpop.f32.mrf.mxu3  ;;  %v9080_v40 = vpop.xlane.xlu2 %1587 }
 0x2c7   : > { %v1616_v23 = vsel %vm1528_vm1, %v9067_v22, -inf }
 0x2ca   : > { %v1570_v43 = vpop.xlane.xlu1 %1569 }
 0x2cb   : > { %v1638_v48 = vsub.f32 %v8926_v0, %v1570_v43  ;;  %v1045_v43 = vld [vmem:[#allocation8 + $0xf0] sm:$0xff] }
 0x2cc   : > { %v9078_v15 = vadd.f32 %v1523_v47, %v1045_v43 }
 0x2cd   : > { %v1683_v45 = vmul.f32 1.442695, %v1638_v48  ;;  %1758 = vadd.xlane.f32.xlu1 %v1757_v10 }
 0x2ce   : > { %11769 = vst [vmem:[#allocation118_spill] sm:$0xff] %v9078_v15 }
 0x2cf   : > { %7467 = vpow2.f32 %v1683_v45 }
 0x2d2   : > { %v1534_v46 = vpop.xlane.xlu1 %1533 }
 0x2d3   : > { %v1626_v26 = vsub.f32 %v8938_v44, %v1534_v46  ;;  %v1619_v46 = vsel %vm1528_vm1, %v9078_v15, -inf  ;;  %v9092_v15 = vpop.xlane.xlu2 %1590 }
 0x2d5   : > { %v9072_v0 = vpop.eup %7467  ;;  %v1659_v27 = vmul.f32 1.442695, %v1626_v26  ;;  %1617 = vmax.xlane.f32.xlu1 %v1616_v23  ;;  %v1640_v26 = vsub.f32 %v8862_v63, %v1576_v31 }
 0x2d6   : > { %v1760_v45 = vsel %vm1528_vm1, %v9072_v0, 0.0 }
 0x2d7   : > { %7469 = vpow2.f32 %v1659_v27  ;;  %1761 = vadd.xlane.f32.xlu2 %v1760_v45  ;;  %v1525_v27 = vpop.f32.mrf.mxu3  ;;  %v1687_v43 = vmul.f32 1.442695, %v1640_v26 }
 0x2d8   : > { %v9090_v60 = vadd.f32 %v1525_v27, %v1046_v13 }
 0x2da   : > { %v1573_v44 = vpop.xlane.xlu1 %1572  ;;  %11770 = vst [vmem:[#allocation119_spill] sm:$0xff] %v9090_v60  ;;  %v1622_v31 = vsel %vm1528_vm1, %v9090_v60, -inf }
 0x2db   : > { %v1735_v27 = vpop.xlane.xlu2 %1734 }
 0x2dd   : > { %v9084_v48 = vpop.eup %7469  ;;  %1620 = vmax.xlane.f32.xlu1 %v1619_v46 }
 0x2de   : > { %v1564_v23 = vpop.xlane.xlu0 %1563  ;;  %v1724_v10 = vsel %vm1528_vm1, %v9084_v48, 0.0 }
 0x2df   : > { %v1636_v47 = vsub.f32 %v8958_v51, %v1564_v23  ;;  %1725 = vadd.xlane.f32.xlu2 %v1724_v10  ;;  %v1625_v51 = vsub.f32 %v8848_v17, %v9033_v7  ;;  %v1043_v10 = vld [vmem:[#allocation8 + $0xe0] sm:$0xff]  ;;  %v1639_v17 = vsub.f32 %v8953_v59, %v1573_v44  ;;  %v1641_v59 = vsub.f32 %v8873_v12, %v9056_v28 }
 0x2e1   : > { %v1679_v45 = vmul.f32 1.442695, %v1636_v47  ;;  %v1657_v47 = vmul.f32 1.442695, %v1625_v51  ;;  %v1689_v51 = vmul.f32 1.442695, %v1641_v59 }
 0x2e2   : > { %v1582_v34 = vpop.xlane.xlu1 %1581 }
 0x2e3   : > { %7471 = vpow2.f32 %v1679_v45  ;;  %v1642_v63 = vsub.f32 %v8965_v19, %v1582_v34  ;;  %v9106_v34 = vadd.f32 %v9048_v1, %v1043_v10  ;;  %v1685_v45 = vmul.f32 1.442695, %v1639_v17 }
 0x2e4   : > { %7473 = vpow2.f32 %v1687_v43 }
 0x2e5   : > { %v1691_v26 = vmul.f32 1.442695, %v1642_v63  ;;  %v1613_v7 = vsel %vm1528_vm1, %v9106_v34, -inf  ;;  %v9115_v63 = vpop.xlane.xlu2 %1593 }
 0x2e7   : > { %1623 = vmax.xlane.f32.xlu2 %v1622_v31  ;;  %7475 = vpow2.f32 %v1691_v26 }
 0x2e8   : > { %7477 = vpow2.f32 %v1657_v47 }
 0x2e9   : > { %v9097_v46 = vpop.eup %7471  ;;  %7479 = vpow2.f32 %v1685_v45 }
 0x2ea   : > { %11771 = vst [vmem:[#allocation120_spill] sm:$0xff] %v9097_v46  ;;  %v1754_v13 = vsel %vm1528_vm1, %v9097_v46, 0.0  ;;  %v9103_v23 = vpop.eup %7473  ;;  %7481 = vpow2.f32 %v1689_v51 }
 0x2eb   : > { %1755 = vadd.xlane.f32.xlu0 %v1754_v13  ;;  %v1766_v19 = vsel %vm1528_vm1, %v9103_v23, 0.0 }
 0x2ed   : > { %v9113_v43 = vpop.eup %7475  ;;  %v1597_v13 = vpop.xlane.xlu2 %1596 }
 0x2ee   : > { %v1772_v1 = vsel %vm1528_vm1, %v9113_v43, 0.0  ;;  %v9121_v31 = vpop.eup %7477  ;;  %v1647_v51 = vsub.f32 %v8950_v29, %v1597_v13 }
 0x2ef   : > { %1767 = vadd.xlane.f32.xlu2 %v1766_v19  ;;  %v1721_v44 = vsel %vm1528_vm1, %v9121_v31, 0.0  ;;  %v9127_v26 = vpop.eup %7479  ;;  %v1585_v19 = vpop.xlane.xlu1 %1584 }
 0x2f0   : > { %v1763_v10 = vsel %vm1528_vm1, %v9127_v26, 0.0  ;;  %v9131_v47 = vpop.eup %7481  ;;  %v1643_v28 = vsub.f32 %v8976_v3, %v1585_v19  ;;  %v1701_v19 = vmul.f32 1.442695, %v1647_v51 }
 0x2f1   : > { %v1769_v12 = vsel %vm1528_vm1, %v9131_v47, 0.0  ;;  %v9138_v59 = vpop.permute.xlu0 %2772 }
 0x2f3   : > { %1614 = vmax.xlane.f32.xlu0 %v1613_v7 }
 0x2f6   : > { %4143 = vrot.lane.b32.xlu1 %v8625_v58, %s8195_s27 }
 0x2f7   : > { %1773 = vadd.xlane.f32.xlu2 %v1772_v1  ;;  %v1693_v1 = vmul.f32 1.442695, %v1643_v28 }
 0x2fb   : > { %1722 = vadd.xlane.f32.xlu0 %v1721_v44 }
 0x2ff   : > { %v1744_v17 = vpop.xlane.xlu2 %1743 }
 0x300   : > { %7483 = vrcp.f32 %v1744_v17 }
 0x303   : > { %1764 = vadd.xlane.f32.xlu0 %v1763_v10 }
 0x306   : > { %v7484_v45 = vpop.eup %7483 }
 0x307   : > { %v1856_v44 = vmul.f32 %v7484_v45, %v8988_v32  ;;  %v1747_v17 = vpop.xlane.xlu2 %1746 }
 0x309   : > { %v1888_v58 = vpack.c.bf16 %v1856_v44, %v1856_v44 }
 0x30b   : > { %1770 = vadd.xlane.f32.xlu0 %v1769_v12 }
 0x30f   : > { %4167 = vrot.lane.b32.xlu2 %v8642_v35, %s8195_s27 }
 0x310   : > { %v1741_v7 = vpop.xlane.xlu1 %1740 }
 0x311   : > { %7485 = vrcp.f32 %v1741_v7  ;;  %v2000_v7 = vunpack.c.l.b16 %v1888_v58 }
 0x312   : > { %7487 = vpow2.f32 %v1693_v1 }
 0x313   : > { %7489 = vrcp.f32 %v1747_v17  ;;  %v1645_v17 = vsub.f32 %v8912_v54, %v9092_v15 }
 0x314   : > { %7491 = vpow2.f32 %v1701_v19 }
 0x315   : > { %7493 = vrcp.f32 %v1735_v27  ;;  %v1606_v27 = vpop.xlane.xlu2 %1605 }
 0x317   : > { %v7486_v10 = vpop.eup %7485 }
 0x318   : > { %v1855_v12 = vmul.f32 %v7486_v10, %v9002_v53  ;;  %v1603_v3 = vpop.xlane.xlu1 %1602  ;;  %v9143_v35 = vpop.eup %7487 }
 0x319   : > { %v1649_v29 = vsub.f32 %v9012_v39, %v1603_v3  ;;  %v1775_v53 = vsel %vm1528_vm1, %v9143_v35, 0.0  ;;  %v7490_v45 = vpop.eup %7489  ;;  %v886_v39 = vadd.f32 %v8769_v25, %v8388_v24 }
 0x31a   : > { %v1887_v60 = vpack.c.bf16 %v1855_v12, %v1855_v12  ;;  %v9158_v1 = vpop.eup %7491  ;;  %v1857_v44 = vmul.f32 %v7490_v45, %v8992_v11  ;;  %v1650_v12 = vsub.f32 %v9000_v62, %v1606_v27 }
 0x31b   : > { %v1705_v58 = vmul.f32 1.442695, %v1649_v29  ;;  %v7494_v10 = vpop.eup %7493  ;;  %v1787_v25 = vsel %vm1528_vm1, %v9158_v1, 0.0  ;;  %v1697_v29 = vmul.f32 1.442695, %v1645_v17 }
 0x31c   : > { %v1999_v28 = vunpack.c.l.b16 %v1887_v60  ;;  %v9145_v46 = vpop.xlane.xlu0 %1731  ;;  %v884_v60 = vadd.f32 %v8750_v20, %v8388_v24  ;;  %v1008_v20 = vpack.c.bf16 %v886_v39, %v886_v39 }
 0x31e   : > { %v2001_v32 = vpack.c.b16 %v2000_v7, %v1999_v28  ;;  %v1007_v19 = vpack.c.bf16 %v884_v60, %v884_v60  ;;  %v1853_v7 = vmul.f32 %v7494_v10, %v8930_v30  ;;  %v1889_v28 = vpack.c.bf16 %v1857_v44, %v1857_v44 }
 0x31f   : > { %4141 = vrot.lane.b32.xlu0 %v8623_v56, %s8195_s27  ;;  %v2257_v62 = vunpack.c.l.b16 %v1008_v20 }
 0x320   : > { %1776 = vadd.xlane.f32.xlu1 %v1775_v53  ;;  %v1750_v13 = vpop.xlane.xlu1 %1749  ;;  %7081 = vmatmul.msk.bf16.vlgmr.msrb.gmra.mxu1 %vm1528_vm1, %v2001_v32  ;;  %v1707_v53 = vmul.f32 1.442695, %v1650_v12  ;;  %v2027_v60 = vunpack.c.l.b16 %v1889_v28 }
 0x321   : > { %7495 = vrcp.f32 %v1750_v13  ;;  %2242 = vmatpush.bf16.msrb.mxu1 %v8789_v16  ;;  %v2256_v13 = vunpack.c.l.b16 %v1007_v19 }
 0x324   : > { %v1738_v51 = vpop.xlane.xlu0 %1737 }
 0x325   : > { %7497 = vrcp.f32 %v1738_v51  ;;  %v9172_v51 = vpack.c.b16 %v2257_v62, %v2256_v13 }
 0x326   : > { %7499 = vpow2.f32 %v1705_v58  ;;  %v1885_v58 = vpack.c.bf16 %v1853_v7, %v1853_v7 }
 0x327   : > { %v7496_v3 = vpop.eup %7495  ;;  %7501 = vpow2.f32 %v1697_v29  ;;  %11772 = vst [vmem:[#allocation121_spill] sm:$0xff] %v9172_v51 }
 0x328   : > { %v1858_v11 = vmul.f32 %v7496_v3, %v9022_v50  ;;  %v1609_v32 = vpop.xlane.xlu1 %1608  ;;  %1788 = vadd.xlane.f32.xlu1 %v1787_v25  ;;  %7503 = vpow2.f32 %v1707_v53  ;;  %v1971_v17 = vunpack.c.l.b16 %v1885_v58  ;;  %v1646_v53 = vsub.f32 %v8940_v9, %v9115_v63 }
 0x329   : > { %v1651_v50 = vsub.f32 %v9029_v37, %v1609_v32  ;;  %v1644_v37 = vsub.f32 %v8898_v5, %v9080_v40 }
 0x32a   : > { %v1890_v54 = vpack.c.bf16 %v1858_v11, %v1858_v11 }
 0x32b   : > { %v7498_v15 = vpop.eup %7497  ;;  %v1709_v19 = vmul.f32 1.442695, %v1651_v50  ;;  %v1695_v32 = vmul.f32 1.442695, %v1644_v37 }
 0x32c   : > { %v9168_v45 = vpop.eup %7499  ;;  %v2028_v39 = vunpack.c.l.b16 %v1890_v54  ;;  %v1854_v27 = vmul.f32 %v7498_v15, %v9027_v18  ;;  %v1699_v54 = vmul.f32 1.442695, %v1646_v53  ;;  %v1600_v15 = vpop.xlane.xlu0 %1599 }
 0x32d   : > { %v1793_v10 = vsel %vm1528_vm1, %v9168_v45, 0.0  ;;  %v9180_v20 = vpop.eup %7501  ;;  %7505 = vpow2.f32 %v1709_v19  ;;  %v1648_v62 = vsub.f32 %v9035_v36, %v1600_v15 }
 0x32e   : > { %v2029_v30 = vpack.c.b16 %v2028_v39, %v2027_v60  ;;  %v1886_v44 = vpack.c.bf16 %v1854_v27, %v1854_v27  ;;  %v9182_v25 = vpop.eup %7503  ;;  %v1781_v7 = vsel %vm1528_vm1, %v9180_v20, 0.0  ;;  %7507 = vpow2.f32 %v1695_v32 }
 0x32f   : > { %v1796_v28 = vsel %vm1528_vm1, %v9182_v25, 0.0  ;;  %v1703_v9 = vmul.f32 1.442695, %v1648_v62 }
 0x330   : > { %v1972_v12 = vunpack.c.l.b16 %v1886_v44  ;;  %v9176_v3 = vpop.xlane.xlu1 %1752  ;;  %1794 = vadd.xlane.f32.xlu1 %v1793_v10  ;;  %7082 = vmatmul.msk.bf16.vlgmr.msrb.gmra.mxu2 %vm1528_vm1, %v2029_v30 }
 0x331   : > { %2270 = vmatpush.bf16.msrb.mxu2 %v9172_v51 }
 0x332   : > { %v1973_v18 = vpack.c.b16 %v1972_v12, %v1971_v17 }
 0x333   : > { %v9194_v29 = vpop.eup %7505 }
 0x334   : > { %7080 = vmatmul.msk.bf16.vlgmr.msra.gmra.mxu0 %vm1528_vm1, %v1973_v18  ;;  %v1799_v5 = vsel %vm1528_vm1, %v9194_v29, 0.0  ;;  %v9200_v13 = vpop.eup %7507 }
 0x335   : > { %2214 = vmatpush.bf16.msra.mxu0 %v8656_v8  ;;  %v1778_v58 = vsel %vm1528_vm1, %v9200_v13, 0.0 }
 0x338   : > { %v9192_v11 = vpop.xlane.xlu1 %1611  ;;  %1782 = vadd.xlane.f32.xlu2 %v1781_v7  ;;  %1797 = vadd.xlane.f32.xlu1 %v1796_v28 }
 0x340   : > { %1800 = vadd.xlane.f32.xlu1 %v1799_v5  ;;  %v1759_v40 = vpop.xlane.xlu1 %1758 }
 0x341   : > { %7509 = vrcp.f32 %v1759_v40  ;;  %v849_v40 = vadd.f32 %v8507_v61, %v8388_v24 }
 0x342   : > { %7511 = vpow2.f32 %v1699_v54  ;;  %v851_v54 = vadd.f32 %v8518_v14, %v8388_v24 }
 0x347   : > { %v7510_v39 = vpop.eup %7509 }
 0x348   : > { %v9205_v63 = vpop.eup %7511  ;;  %v1861_v27 = vmul.f32 %v7510_v39, %v9058_v6  ;;  %v1618_v39 = vpop.xlane.xlu1 %1617 }
 0x349   : > { %1779 = vadd.xlane.f32.xlu0 %v1778_v58  ;;  %v1784_v30 = vsel %vm1528_vm1, %v9205_v63, 0.0  ;;  %v993_v58 = vpack.c.bf16 %v849_v40, %v849_v40 }
 0x34a   : > { %v1762_v60 = vpop.xlane.xlu2 %1761  ;;  %v1893_v44 = vpack.c.bf16 %v1861_v27, %v1861_v27 }
 0x34b   : > { %7513 = vrcp.f32 %v1762_v60  ;;  %v994_v60 = vpack.c.bf16 %v851_v54, %v851_v54  ;;  %v2060_v14 = vunpack.c.l.b16 %v993_v58  ;;  %v11774_v54 = vld [vmem:[#allocation42_spill] sm:$0xff] }
 0x34c   : > { %7515 = vpow2.f32 %v1703_v9  ;;  %v2083_v12 = vunpack.c.l.b16 %v1893_v44 }
 0x350   : > { %2508 = vrot.lane.b32.xlu2 %v8493_v41, %s8196_s8 }
 0x351   : > { %v7514_v36 = vpop.eup %7513  ;;  %1785 = vadd.xlane.f32.xlu0 %v1784_v30 }
 0x352   : > { %v1862_v50 = vmul.f32 %v7514_v36, %v9072_v0  ;;  %v9213_v17 = vpop.eup %7515  ;;  %v1726_v37 = vpop.xlane.xlu2 %1725 }
 0x353   : > { %v1790_v6 = vsel %vm1528_vm1, %v9213_v17, 0.0  ;;  %7517 = vrcp.f32 %v1726_v37 }
 0x354   : > { %v1894_v10 = vpack.c.bf16 %v1862_v50, %v1862_v50  ;;  %v2061_v50 = vunpack.c.l.b16 %v994_v60  ;;  %v11776_v60 = vld [vmem:[#allocation89_spill] sm:$0xff] }
 0x356   : > { %v2084_v18 = vunpack.c.l.b16 %v1894_v10 }
 0x358   : > { %v2085_v19 = vpack.c.b16 %v2084_v18, %v2083_v12  ;;  %4191 = vrot.lane.b32.xlu2 %v8669_v38, %s8195_s27 }
 0x359   : > { %1791 = vadd.xlane.f32.xlu0 %v1790_v6  ;;  %4165 = vrot.lane.b32.xlu1 %v8652_v2, %s8195_s27  ;;  %v7518_v5 = vpop.eup %7517  ;;  %v9249_v6 = vpack.c.b16 %v2061_v50, %v2060_v14  ;;  %v11777_v50 = vld [vmem:[#allocation113_spill] sm:$0xff] }
 0x35a   : > { %7084 = vmatmul.msk.bf16.vlgmr.msrb.gmra.mxu0 %vm1528_vm1, %v2085_v19  ;;  %v9229_v7 = vpop.xlane.xlu2 %1623  ;;  %v1850_v15 = vmul.f32 %v7518_v5, %v9084_v48  ;;  %v1654_v48 = vsub.f32 %v9067_v22, %v1618_v39 }
 0x35b   : > { %2326 = vmatpush.bf16.msrb.mxu0 %v8906_v21  ;;  %11773 = vst [vmem:[#allocation122_spill] sm:$0xff] %v9249_v6 }
 0x35c   : > { %v1882_v9 = vpack.c.bf16 %v1850_v15, %v1850_v15  ;;  %v869_v15 = vadd.f32 %v11774_v54, %v8388_v24 }
 0x35e   : > { %v9223_v0 = vpop.xlane.xlu0 %1755  ;;  %v1916_v10 = vunpack.c.l.b16 %v1882_v9  ;;  %v1001_v14 = vpack.c.bf16 %v869_v15, %v869_v15 }
 0x360   : > { %4287 = vrot.lane.b32.xlu2 %v8763_v42, %s8195_s27 }
 0x361   : > { %2506 = vrot.lane.b32.xlu1 %v8502_v57, %s8196_s8 }
 0x362   : > { %v1768_v32 = vpop.xlane.xlu2 %1767 }
 0x366   : > { %v9231_v28 = vpop.xlane.xlu0 %1614 }
 0x367   : > { %v1653_v15 = vsub.f32 %v9106_v34, %v9231_v28  ;;  %v11785_v28 = vld [vmem:[#allocation112_spill] sm:$0xff] }
 0x368   : > { %2604 = vrot.lane.b32.xlu2 %v8597_v4, %s8196_s8 }
 0x369   : > { %v1713_v34 = vmul.f32 1.442695, %v1653_v15  ;;  %v11789_v15 = vld [vmem:[#allocation50_spill] sm:$0xff] }
 0x36a   : > { %v1774_v27 = vpop.xlane.xlu2 %1773 }
 0x36d   : > { %4215 = vrot.lane.b32.xlu0 %v8685_v33, %s8195_s27 }
 0x36e   : > { %v1723_v53 = vpop.xlane.xlu0 %1722 }
 0x36f   : > { %7519 = vrcp.f32 %v1723_v53 }
 0x370   : > { %4748 = vrot.lane.b32.xlu2 %v8455_v52, %s8195_s27  ;;  %7521 = vrcp.f32 %v1768_v32  ;;  %v11844_v52 = vld [vmem:[#allocation74_spill] sm:$0xff] }
 0x371   : > { %7523 = vrcp.f32 %v9145_v46 }
 0x375   : > { %v7520_v62 = vpop.eup %7519 }
 0x376   : > { %v1849_v30 = vmul.f32 %v7520_v62, %v9121_v31  ;;  %v1765_v36 = vpop.xlane.xlu0 %1764  ;;  %v7522_v44 = vpop.eup %7521  ;;  %v1715_v31 = vmul.f32 1.442695, %v1654_v48  ;;  %v11775_v62 = vld [vmem:[#allocation45_spill] sm:$0xff]  ;;  %v1652_v48 = vsub.f32 %v11777_v50, %v9192_v11 }
 0x377   : > { %7525 = vrcp.f32 %v1765_v36  ;;  %v1864_v12 = vmul.f32 %v7522_v44, %v9103_v23  ;;  %v7524_v46 = vpop.eup %7523  ;;  %v871_v58 = vadd.f32 %v11775_v62, %v8388_v24 }
 0x378   : > { %7527 = vrcp.f32 %v9065_v49  ;;  %v1881_v61 = vpack.c.bf16 %v1849_v30, %v1849_v30  ;;  %v1852_v22 = vmul.f32 %v7524_v46, %v9016_v55  ;;  %v1621_v30 = vpop.xlane.xlu1 %1620 }
 0x379   : > { %7529 = vrcp.f32 %v1774_v27  ;;  %v1896_v53 = vpack.c.bf16 %v1864_v12, %v1864_v12  ;;  %v1002_v55 = vpack.c.bf16 %v871_v58, %v871_v58 }
 0x37a   : > { %v1915_v18 = vunpack.c.l.b16 %v1881_v61  ;;  %v1884_v36 = vpack.c.bf16 %v1852_v22, %v1852_v22 }
 0x37c   : > { %v1917_v19 = vpack.c.b16 %v1916_v10, %v1915_v18 }
 0x37d   : > { %v7526_v37 = vpop.eup %7525 }
 0x37e   : > { %v7528_v32 = vpop.eup %7527  ;;  %v1863_v49 = vmul.f32 %v7526_v37, %v9127_v26  ;;  %v1771_v5 = vpop.xlane.xlu0 %1770  ;;  %7078 = vmatmul.msk.bf16.vlgmr.msrb.gmra.mxu3 %vm1528_vm1, %v1917_v19  ;;  %v2112_v26 = vunpack.c.l.b16 %v1896_v53  ;;  %v1944_v19 = vunpack.c.l.b16 %v1884_v36  ;;  %v1711_v53 = vmul.f32 1.442695, %v1652_v48 }
 0x37f   : > { %v7530_v40 = vpop.eup %7529  ;;  %7531 = vrcp.f32 %v1771_v5  ;;  %2074 = vmatpush.bf16.msrb.mxu3 %v9249_v6  ;;  %v1851_v39 = vmul.f32 %v7528_v32, %v11776_v60  ;;  %v2173_v32 = vunpack.c.l.b16 %v1002_v55  ;;  %v11782_v60 = vld [vmem:[#allocation120_spill] sm:$0xff] }
 0x380   : > { %v1895_v23 = vpack.c.bf16 %v1863_v49, %v1863_v49  ;;  %7533 = vpow2.f32 %v1715_v31  ;;  %v1866_v9 = vmul.f32 %v7530_v40, %v9113_v43  ;;  %v11778_v43 = vld [vmem:[#allocation86_spill] sm:$0xff]  ;;  %v2172_v31 = vunpack.c.l.b16 %v1001_v14  ;;  %v9272_v40 = vpop.permute.xlu1 %4143 }
 0x381   : > { %v1883_v10 = vpack.c.bf16 %v1851_v39, %v1851_v39  ;;  %7535 = vrcp.f32 %v9223_v0  ;;  %11779 = vst [vmem:[#allocation42_spill] sm:$0xff] %v9272_v40  ;;  %v2409_v40 = vld [vmem:[#allocation8 + $0x1f8] sm:$0xff] }
 0x382   : > { %v2111_v27 = vunpack.c.l.b16 %v1895_v23  ;;  %v1898_v12 = vpack.c.bf16 %v1866_v9, %v1866_v9  ;;  %7537 = vrcp.f32 %v9176_v3  ;;  %v9274_v54 = vpack.c.b16 %v2173_v32, %v2172_v31  ;;  %v11781_v3 = vld [vmem:[#allocation82_spill] sm:$0xff] }
 0x383   : > { %v1943_v11 = vunpack.c.l.b16 %v1883_v10  ;;  %7539 = vpow2.f32 %v1711_v53  ;;  %v2418_v62 = vsel %vm1057_vm0, %v11781_v3, 0  ;;  %v11786_v10 = vld [vmem:[#allocation118_spill] sm:$0xff] }
 0x384   : > { %v2113_v44 = vpack.c.b16 %v2112_v26, %v2111_v27  ;;  %v2140_v49 = vunpack.c.l.b16 %v1898_v12  ;;  %11780 = vst [vmem:[#allocation45_spill] sm:$0xff] %v9274_v54  ;;  %v11783_v26 = vld [vmem:[#allocation68_spill] sm:$0xff]  ;;  %v1655_v12 = vsub.f32 %v11786_v10, %v1621_v30  ;;  %7541 = vpow2.f32 %v1713_v34 }
 0x385   : > { %v7532_v61 = vpop.eup %7531  ;;  %v1945_v22 = vpack.c.b16 %v1944_v19, %v1943_v11  ;;  %v889_v9 = vadd.f32 %v11783_v26, %v8388_v24  ;;  %v11784_v27 = vld [vmem:[#allocation72_spill] sm:$0xff] }
 0x386   : > { %v1865_v18 = vmul.f32 %v7532_v61, %v9131_v47  ;;  %7085 = vmatmul.msk.bf16.vlgmr.msra.gmra.mxu1 %vm1528_vm1, %v2113_v44  ;;  %v9265_v46 = vpop.eup %7533  ;;  %v891_v36 = vadd.f32 %v11784_v27, %v8388_v24  ;;  %v1717_v32 = vmul.f32 1.442695, %v1655_v12  ;;  %v11791_v10 = vld [vmem:[#allocation60_spill] sm:$0xff] }
 0x387   : > { %2354 = vmatpush.bf16.msra.mxu1 %v11778_v43  ;;  %v1808_v47 = vsel %vm1528_vm1, %v9265_v46, 0.0  ;;  %v7536_v23 = vpop.eup %7535  ;;  %v1009_v50 = vpack.c.bf16 %v889_v9, %v889_v9 }
 0x388   : > { %v1897_v37 = vpack.c.bf16 %v1865_v18, %v1865_v18  ;;  %v7538_v58 = vpop.eup %7537  ;;  %v1860_v39 = vmul.f32 %v7536_v23, %v11782_v60  ;;  %v1010_v48 = vpack.c.bf16 %v891_v36, %v891_v36  ;;  %7543 = vpow2.f32 %v1717_v32 }
 0x389   : > { %v1859_v44 = vmul.f32 %v7538_v58, %v11785_v28  ;;  %v9289_v61 = vpop.eup %7539  ;;  %v2284_v31 = vunpack.c.l.b16 %v1009_v50 }
 0x38a   : > { %v2139_v5 = vunpack.c.l.b16 %v1897_v37  ;;  %v1892_v55 = vpack.c.bf16 %v1860_v39, %v1860_v39  ;;  %v1802_v19 = vsel %vm1528_vm1, %v9289_v61, 0.0  ;;  %v2285_v24 = vunpack.c.l.b16 %v1010_v48  ;;  %v9294_v11 = vpop.eup %7541 }
 0x38b   : > { %1809 = vadd.xlane.f32.xlu1 %v1808_v47  ;;  %v1891_v18 = vpack.c.bf16 %v1859_v44, %v1859_v44  ;;  %v1805_v30 = vsel %vm1528_vm1, %v9294_v11, 0.0 }
 0x38c   : > { %v2141_v0 = vpack.c.b16 %v2140_v49, %v2139_v5  ;;  %v2056_v37 = vunpack.c.l.b16 %v1892_v55  ;;  %v9296_v47 = vpack.c.b16 %v2285_v24, %v2284_v31  ;;  %v11794_v24 = vld [vmem:[#allocation65_spill] sm:$0xff] }
 0x38d   : > { %v2055_v53 = vunpack.c.l.b16 %v1891_v18 }
 0x38e   : > { %7079 = vmatmul.msk.bf16.vlgmr.msra.gmra.mxu3 %vm1528_vm1, %v1945_v22  ;;  %7086 = vmatmul.msk.bf16.vlgmr.msra.gmra.mxu2 %vm1528_vm1, %v2141_v0  ;;  %11787 = vst [vmem:[#allocation89_spill] sm:$0xff] %v9296_v47  ;;  %v9302_v22 = vpop.eup %7543  ;;  %v9304_v0 = vpop.permute.xlu2 %4167 }
 0x38f   : > { %2186 = vmatpush.bf16.msra.mxu3 %v9274_v54  ;;  %2427 = vmatpush.bf16.xpose.msra.mxu2 %v2418_v62  ;;  %v2057_v5 = vpack.c.b16 %v2056_v37, %v2055_v53  ;;  %11788 = vst [vmem:[#allocation113_spill] sm:$0xff] %v9304_v0  ;;  %v1811_v3 = vsel %vm1528_vm1, %v9302_v22, 0.0 }
 0x391   : > { %v9312_v36 = vpop.permute.xlu0 %4141 }
 0x392   : > { %11790 = vst [vmem:[#allocation82_spill] sm:$0xff] %v9312_v36  ;;  %v2391_v36 = vld [vmem:[#allocation8 + $0x168] sm:$0xff] }
 0x393   : > { %v1777_v14 = vpop.xlane.xlu1 %1776 }
 0x397   : > { %1803 = vadd.xlane.f32.xlu0 %v1802_v19 }
 0x39b   : > { %v1789_v49 = vpop.xlane.xlu1 %1788 }
 0x39e   : > { %7083 = vmatmul.msk.bf16.vlgmr.msrb.gmra.mxu3 %vm1528_vm1, %v2057_v5 }
 0x39f   : > { %2298 = vmatpush.bf16.msrb.mxu3 %v9296_v47  ;;  %1806 = vadd.xlane.f32.xlu0 %v1805_v30 }
 0x3a3   : > { %v1795_v23 = vpop.xlane.xlu1 %1794 }
 0x3a4   : > { %4189 = vrot.lane.b32.xlu1 %v11789_v15, %s8195_s27  ;;  %7545 = vrcp.f32 %v1795_v23 }
 0x3a7   : > { %1812 = vadd.xlane.f32.xlu0 %v1811_v3 }
 0x3aa   : > { %v7546_v60 = vpop.eup %7545 }
 0x3ab   : > { %v1798_v62 = vpop.xlane.xlu1 %1797  ;;  %v1783_v58 = vpop.xlane.xlu2 %1782  ;;  %v1873_v39 = vmul.f32 %v7546_v60, %v9168_v45  ;;  %v11792_v45 = vld [vmem:[#allocation119_spill] sm:$0xff] }
 0x3ac   : > { %7547 = vrcp.f32 %v1798_v62  ;;  %v1656_v12 = vsub.f32 %v11792_v45, %v9229_v7 }
 0x3ad   : > { %v1905_v9 = vpack.c.bf16 %v1873_v39, %v1873_v39  ;;  %7549 = vrcp.f32 %v1777_v14 }
 0x3ae   : > { %v1719_v14 = vmul.f32 1.442695, %v1656_v12 }
 0x3af   : > { %v2251_v44 = vunpack.c.l.b16 %v1905_v9  ;;  %v11797_v9 = vld [vmem:[#allocation67_spill] sm:$0xff] }
 0x3b2   : > { %v7548_v26 = vpop.eup %7547 }
 0x3b3   : > { %v1874_v27 = vmul.f32 %v7548_v26, %v9182_v25  ;;  %v2509_v34 = vpop.permute.xlu2 %2508  ;;  %v7550_v19 = vpop.eup %7549 }
 0x3b4   : > { %v2514_v48 = vsel %vm1057_vm0, %v2509_v34, 0  ;;  %v1867_v37 = vmul.f32 %v7550_v19, %v9143_v35 }
 0x3b5   : > { %v1906_v28 = vpack.c.bf16 %v1874_v27, %v1874_v27  ;;  %v2442_v27 = vsel %vm1057_vm0, %v11797_v9, 0  ;;  %v11805_v9 = vld [vmem:[#allocation58_spill] sm:$0xff] }
 0x3b6   : > { %v1899_v32 = vpack.c.bf16 %v1867_v37, %v1867_v37  ;;  %v11799_v37 = vld [vmem:[#allocation53_spill] sm:$0xff] }
 0x3b7   : > { %v2252_v55 = vunpack.c.l.b16 %v1906_v28 }
 0x3b8   : > { %v2167_v3 = vunpack.c.l.b16 %v1899_v32 }
 0x3b9   : > { %v2253_v50 = vpack.c.b16 %v2252_v55, %v2251_v44 }
 0x3bb   : > { %4261 = vrot.lane.b32.xlu0 %v11791_v10, %s8195_s27  ;;  %7090 = vmatmul.msk.bf16.vlgmr.msrb.gmra.mxu2 %vm1528_vm1, %v2253_v50  ;;  %v9320_v25 = vpop.permute.xlu2 %4191  ;;  %v2380_v10 = vld [vmem:[#allocation8 + $0x110] sm:$0xff] }
 0x3bc   : > { %2523 = vmatpush.bf16.xpose.msrb.mxu2 %v2514_v48  ;;  %11793 = vst [vmem:[#allocation120_spill] sm:$0xff] %v9320_v25  ;;  %v1780_v18 = vpop.xlane.xlu0 %1779 }
 0x3bd   : > { %7551 = vrcp.f32 %v1780_v18 }
 0x3be   : > { %7553 = vrcp.f32 %v1783_v58  ;;  %v1801_v58 = vpop.xlane.xlu1 %1800 }
 0x3bf   : > { %7555 = vpow2.f32 %v1719_v14 }
 0x3c3   : > { %v7552_v31 = vpop.eup %7551  ;;  %4285 = vrot.lane.b32.xlu0 %v11794_v24, %s8195_s27  ;;  %v9326_v5 = vpop.permute.xlu2 %4287 }
 0x3c4   : > { %v1868_v53 = vmul.f32 %v7552_v31, %v9200_v13  ;;  %11795 = vst [vmem:[#allocation68_spill] sm:$0xff] %v9326_v5  ;;  %v1786_v7 = vpop.xlane.xlu0 %1785  ;;  %v7554_v30 = vpop.eup %7553  ;;  %v11796_v13 = vld [vmem:[#allocation64_spill] sm:$0xff]  ;;  %v11800_v31 = vld [vmem:[#allocation71_spill] sm:$0xff] }
 0x3c5   : > { %7557 = vrcp.f32 %v1786_v7  ;;  %v1869_v62 = vmul.f32 %v7554_v30, %v9180_v20  ;;  %v9329_v60 = vpop.eup %7555  ;;  %v2466_v32 = vsel %vm1057_vm0, %v11800_v31, 0  ;;  %v11808_v31 = vld [vmem:[#allocation40_spill] sm:$0xff]  ;;  %v9511_v24 = vpop.f32.mrf.mxu1 }
 0x3c6   : > { %v1900_v23 = vpack.c.bf16 %v1868_v53, %v1868_v53  ;;  %7559 = vrcp.f32 %v1789_v49  ;;  %v1814_v50 = vsel %vm1528_vm1, %v9329_v60, 0.0 }
 0x3c7   : > { %v1901_v34 = vpack.c.bf16 %v1869_v62, %v1869_v62 }
 0x3c8   : > { %v2168_v35 = vunpack.c.l.b16 %v1900_v23 }
 0x3c9   : > { %v2195_v12 = vunpack.c.l.b16 %v1901_v34  ;;  %v11807_v34 = vld [vmem:[#allocation56_spill] sm:$0xff] }
 0x3ca   : > { %v2169_v39 = vpack.c.b16 %v2168_v35, %v2167_v3  ;;  %v11801_v35 = vld [vmem:[#allocation21_spill] sm:$0xff] }
 0x3cb   : > { %v7558_v26 = vpop.eup %7557  ;;  %3408 = vrot.lane.b32.xlu0 %v9274_v54, %s8196_s8  ;;  %7094 = vmatmul.msk.bf16.vlgmr.msra.gmra.mxu2 %vm1057_vm0, %v11796_v13  ;;  %v2605_v28 = vpop.permute.xlu2 %2604  ;;  %v11804_v13 = vld [vmem:[#allocation55_spill] sm:$0xff] }
 0x3cc   : > { %v1870_v49 = vmul.f32 %v7558_v26, %v9205_v63  ;;  %v1792_v20 = vpop.xlane.xlu0 %1791  ;;  %7087 = vmatmul.msk.bf16.vlgmr.msra.gmra.mxu3 %vm1528_vm1, %v2169_v39  ;;  %v7560_v44 = vpop.eup %7559  ;;  %v2610_v55 = vsel %vm1057_vm0, %v2605_v28, 0  ;;  %v11802_v39 = vld [vmem:[#allocation66_spill] sm:$0xff] }
 0x3cd   : > { %7561 = vrcp.f32 %v1792_v20  ;;  %2451 = vmatpush.bf16.xpose.msra.mxu3 %v2442_v27  ;;  %2619 = vmatpush.bf16.xpose.msra.mxu2 %v2610_v55  ;;  %v1871_v45 = vmul.f32 %v7560_v44, %v9158_v1  ;;  %v9343_v63 = vpop.permute.xlu1 %4165  ;;  %v2490_v26 = vsel %vm1057_vm0, %v11802_v39, 0  ;;  %v11810_v39 = vld [vmem:[#allocation97_spill] sm:$0xff]  ;;  %v9518_v56 = vpop.f32.mrf.mxu1 }
 0x3ce   : > { %v1902_v48 = vpack.c.bf16 %v1870_v49, %v1870_v49  ;;  %1815 = vadd.xlane.f32.xlu1 %v1814_v50  ;;  %11798 = vst [vmem:[#allocation72_spill] sm:$0xff] %v9343_v63  ;;  %7563 = vrcp.f32 %v1801_v58 }
 0x3cf   : > { %v1903_v53 = vpack.c.bf16 %v1871_v45, %v1871_v45 }
 0x3d0   : > { %v2196_v18 = vunpack.c.l.b16 %v1902_v48 }
 0x3d1   : > { %v2223_v1 = vunpack.c.l.b16 %v1903_v53  ;;  %v11809_v53 = vld [vmem:[#allocation93_spill] sm:$0xff] }
 0x3d2   : > { %v2197_v19 = vpack.c.b16 %v2196_v18, %v2195_v12 }
 0x3d3   : > { %v7562_v14 = vpop.eup %7561  ;;  %2698 = vrot.lane.b32.xlu0 %v11799_v37, %s8196_s8 }
 0x3d4   : > { %v1872_v7 = vmul.f32 %v7562_v14, %v9213_v17  ;;  %7088 = vmatmul.msk.bf16.vlgmr.msra.gmra.mxu0 %vm1528_vm1, %v2197_v19  ;;  %v11803_v17 = vld [vmem:[#allocation18_spill] sm:$0xff]  ;;  %v7564_v20 = vpop.eup %7563 }
 0x3d5   : > { %2475 = vmatpush.bf16.xpose.msra.mxu0 %v2466_v32  ;;  %v2507_v62 = vpop.permute.xlu1 %2506  ;;  %v1875_v44 = vmul.f32 %v7564_v20, %v9194_v29  ;;  %v11812_v20 = vld [vmem:[#allocation52_spill] sm:$0xff] }
 0x3d6   : > { %v1904_v30 = vpack.c.bf16 %v1872_v7, %v1872_v7  ;;  %v2538_v7 = vsel %vm1057_vm0, %v11809_v53, 0 }
 0x3d7   : > { %v1907_v50 = vpack.c.bf16 %v1875_v44, %v1875_v44 }
 0x3d8   : > { %v2224_v23 = vunpack.c.l.b16 %v1904_v30  ;;  %v9380_v30 = vpop.f32.mrf.mxu2 }
 0x3d9   : > { %v2279_v18 = vunpack.c.l.b16 %v1907_v50 }
 0x3da   : > { %v2225_v3 = vpack.c.b16 %v2224_v23, %v2223_v1 }
 0x3db   : > { %4723 = vrot.lane.b32.xlu0 %v11801_v35, %s8195_s27  ;;  %7098 = vmatmul.msk.bf16.vlgmr.msrb.gmra.mxu2 %vm1057_vm0, %v2507_v62 }
 0x3dc   : > { %7089 = vmatmul.msk.bf16.vlgmr.msrb.gmra.mxu1 %vm1528_vm1, %v2225_v3 }
 0x3dd   : > { %2499 = vmatpush.bf16.xpose.msrb.mxu1 %v2490_v26  ;;  %v2562_v26 = vsel %vm1057_vm0, %v11810_v39, 0 }
 0x3df   : > { %v9367_v27 = vpop.permute.xlu0 %4215 }
 0x3e0   : > { %11806 = vst [vmem:[#allocation112_spill] sm:$0xff] %v9367_v27  ;;  %v2383_v27 = vld [vmem:[#allocation8 + $0x128] sm:$0xff] }
 0x3e3   : > { %3183 = vrot.lane.b32.xlu0 %v11803_v17, %s8196_s8 }
 0x3e7   : > { %3208 = vrot.lane.b32.xlu1 %v11801_v35, %s8196_s8 }
 0x3ef   : > { %4213 = vrot.lane.b32.xlu1 %v11799_v37, %s8195_s27 }
 0x3f7   : > { %4239 = vrot.lane.b32.xlu1 %v11804_v13, %s8195_s27 }
 0x3fe   : > { %v1810_v49 = vpop.xlane.xlu1 %1809 }
 0x3ff   : > { %4263 = vrot.lane.b32.xlu1 %v11805_v9, %s8195_s27 }
 0x407   : > { %4237 = vrot.lane.b32.xlu1 %v11807_v34, %s8195_s27 }
 0x40a   : > { %v1804_v28 = vpop.xlane.xlu0 %1803 }
 0x40b   : > { %7565 = vrcp.f32 %v1804_v28 }
 0x40c   : > { %7567 = vrcp.f32 %v1810_v49  ;;  %v9389_v49 = vpop.f32.mrf.mxu2 }
 0x40f   : > { %3308 = vrot.lane.b32.xlu1 %v9249_v6, %s8196_s8 }
 0x411   : > { %v7566_v55 = vpop.eup %7565 }
 0x412   : > { %v1876_v48 = vmul.f32 %v7566_v55, %v9289_v61  ;;  %v1807_v45 = vpop.xlane.xlu0 %1806  ;;  %v7568_v12 = vpop.eup %7567  ;;  %v11814_v55 = vld [vmem:[#allocation100_spill] sm:$0xff] }
 0x413   : > { %7569 = vrcp.f32 %v1807_v45  ;;  %v1878_v19 = vmul.f32 %v7568_v12, %v9265_v46  ;;  %v2658_v50 = vsel %vm1057_vm0, %v11814_v55, 0  ;;  %v11817_v12 = vld [vmem:[#allocation27_spill] sm:$0xff] }
 0x414   : > { %v1908_v58 = vpack.c.bf16 %v1876_v48, %v1876_v48  ;;  %v9397_v44 = vpop.f32.mrf.mxu2  ;;  %v11815_v48 = vld [vmem:[#allocation59_spill] sm:$0xff] }
 0x415   : > { %v1910_v1 = vpack.c.bf16 %v1878_v19, %v1878_v19  ;;  %11813 = vst [vmem:[#allocation118_spill] sm:$0xff] %v9397_v44  ;;  %v11819_v19 = vld [vmem:[#allocation114_spill] sm:$0xff] }
 0x416   : > { %v2280_v14 = vunpack.c.l.b16 %v1908_v58  ;;  %v9409_v58 = vpop.permute.xlu1 %4189 }
 0x417   : > { %2602 = vrot.lane.b32.xlu1 %v11808_v31, %s8196_s8  ;;  %v2308_v3 = vunpack.c.l.b16 %v1910_v1  ;;  %11818 = vst [vmem:[#allocation64_spill] sm:$0xff] %v9409_v58  ;;  %v11822_v1 = vld [vmem:[#allocation109_spill] sm:$0xff]  ;;  %v9525_v31 = vpop.f32.mrf.mxu1 }
 0x418   : > { %v2281_v32 = vpack.c.b16 %v2280_v14, %v2279_v18  ;;  %v2730_v14 = vsel %vm1057_vm0, %v11819_v19, 0 }
 0x419   : > { %v7570_v29 = vpop.eup %7569 }
 0x41a   : > { %v1877_v61 = vmul.f32 %v7570_v29, %v9294_v11  ;;  %7091 = vmatmul.msk.bf16.vlgmr.msrb.gmra.mxu3 %vm1528_vm1, %v2281_v32  ;;  %v11811_v11 = vld [vmem:[#allocation98_spill] sm:$0xff]  ;;  %v1813_v18 = vpop.xlane.xlu0 %1812  ;;  %v11820_v32 = vld [vmem:[#allocation75_spill] sm:$0xff] }
 0x41b   : > { %2547 = vmatpush.bf16.xpose.msrb.mxu3 %v2538_v7  ;;  %v2634_v28 = vsel %vm1057_vm0, %v11811_v11, 0  ;;  %7571 = vrcp.f32 %v1813_v18  ;;  %v11825_v11 = vld [vmem:[#allocation106_spill] sm:$0xff]  ;;  %v11826_v18 = vld [vmem:[#allocation101_spill] sm:$0xff] }
 0x41c   : > { %v1909_v23 = vpack.c.bf16 %v1877_v61, %v1877_v61  ;;  %v9405_v45 = vpop.f32.mrf.mxu2  ;;  %v2754_v61 = vsel %vm1057_vm0, %v11822_v1, 0  ;;  %v2586_v19 = vsel %vm1057_vm0, %v11826_v18, 0  ;;  %v2378_v1 = vld [vmem:[#allocation8 + $0x100] sm:$0xff] }
 0x41d   : > { %11816 = vst [vmem:[#allocation119_spill] sm:$0xff] %v9405_v45  ;;  %v2400_v45 = vld [vmem:[#allocation8 + $0x1b0] sm:$0xff] }
 0x41e   : > { %v2307_v46 = vunpack.c.l.b16 %v1909_v23  ;;  %v11823_v23 = vld [vmem:[#allocation85_spill] sm:$0xff] }
 0x41f   : > { %3508 = vrot.lane.b32.xlu1 %v9296_v47, %s8196_s8 }
 0x420   : > { %v2309_v62 = vpack.c.b16 %v2308_v3, %v2307_v46 }
 0x421   : > { %v7572_v7 = vpop.eup %7571 }
 0x422   : > { %7092 = vmatmul.msk.bf16.vlgmr.msrb.gmra.mxu0 %vm1528_vm1, %v2309_v62  ;;  %v1879_v3 = vmul.f32 %v7572_v7, %v9302_v22  ;;  %v11827_v22 = vld [vmem:[#allocation95_spill] sm:$0xff] }
 0x423   : > { %2571 = vmatpush.bf16.xpose.msrb.mxu0 %v2562_v26  ;;  %11852 = vst [vmem:[#allocation95_spill] sm:$0xff] %v9511_v24 }
 0x424   : > { %v1911_v39 = vpack.c.bf16 %v1879_v3, %v1879_v3  ;;  %v11829_v3 = vld [vmem:[#allocation116_spill] sm:$0xff] }
 0x427   : > { %2700 = vrot.lane.b32.xlu1 %v8685_v33, %s8196_s8 }
 0x42a   : > { %7095 = vmatmul.msk.bf16.vlgmr.msra.gmra.mxu3 %vm1057_vm0, %v11812_v20  ;;  %v2335_v20 = vunpack.c.l.b16 %v1911_v39 }
 0x42b   : > { %2643 = vmatpush.bf16.xpose.msra.mxu3 %v2634_v28 }
 0x42f   : > { %4698 = vrot.lane.b32.xlu1 %v11803_v17, %s8195_s27 }
 0x432   : > { %7096 = vmatmul.msk.bf16.vlgmr.msra.gmra.mxu0 %vm1057_vm0, %v11815_v48 }
 0x433   : > { %2667 = vmatpush.bf16.xpose.msra.mxu0 %v2658_v50 }
 0x437   : > { %4773 = vrot.lane.b32.xlu1 %v11817_v12, %s8195_s27 }
 0x43a   : > { %7099 = vmatmul.msk.bf16.vlgmr.msrb.gmra.mxu3 %vm1057_vm0, %v11820_v32  ;;  %v2379_v32 = vld [vmem:[#allocation8 + $0x108] sm:$0xff] }
 0x43b   : > { %2739 = vmatpush.bf16.xpose.msrb.mxu3 %v2730_v14  ;;  %v9429_v14 = vpop.f32.mrf.mxu3 }
 0x43e   : > { %v9415_v29 = vpop.f32.mrf.mxu2 }
 0x43f   : > { %11821 = vst [vmem:[#allocation67_spill] sm:$0xff] %v9415_v29 }
 0x441   : > { %v1816_v53 = vpop.xlane.xlu1 %1815 }
 0x442   : > { %7573 = vrcp.f32 %v1816_v53  ;;  %7100 = vmatmul.msk.bf16.vlgmr.msrb.gmra.mxu0 %vm1057_vm0, %v11823_v23 }
 0x443   : > { %2763 = vmatpush.bf16.xpose.msrb.mxu0 %v2754_v61 }
 0x446   : > { %v9422_v46 = vpop.f32.mrf.mxu2 }
 0x447   : > { %11824 = vst [vmem:[#allocation71_spill] sm:$0xff] %v9422_v46 }
 0x448   : > { %v7574_v62 = vpop.eup %7573 }
 0x449   : > { %v1880_v26 = vmul.f32 %v7574_v62, %v9329_v60  ;;  %v11828_v60 = vld [vmem:[#allocation87_spill] sm:$0xff]  ;;  %v9441_v62 = vpop.f32.mrf.mxu3 }
 0x44a   : > { %7103 = vmatmul.msk.bf16.vlgmr.msra.gmra.mxu3 %vm1057_vm0, %v11825_v11 }
 0x44b   : > { %v1912_v28 = vpack.c.bf16 %v1880_v26, %v1880_v26  ;;  %v2386_v26 = vld [vmem:[#allocation8 + $0x140] sm:$0xff] }
 0x44d   : > { %v2336_v55 = vunpack.c.l.b16 %v1912_v28 }
 0x44e   : > { %v2429_v50 = vpop.f32.mrf.mxu2 }
 0x44f   : > { %v2337_v48 = vpack.c.b16 %v2336_v55, %v2335_v20  ;;  %v9443_v39 = vadd.f32 %v2429_v50, %v2378_v1  ;;  %v11830_v55 = vld [vmem:[#allocation105_spill] sm:$0xff]  ;;  %v9464_v1 = vpop.permute.xlu0 %4261 }
 0x450   : > { %11836 = vst [vmem:[#allocation97_spill] sm:$0xff] %v9464_v1  ;;  %v2381_v1 = vld [vmem:[#allocation8 + $0x118] sm:$0xff] }
 0x451   : > { %7093 = vmatmul.msk.bf16.vlgmr.msra.gmra.mxu1 %vm1528_vm1, %v2337_v48  ;;  %v2794_v20 = vsel %vm1528_vm1, %v9443_v39, -inf  ;;  %v2682_v48 = vsel %vm1057_vm0, %v11830_v55, 0  ;;  %11855 = vst [vmem:[#allocation105_spill] sm:$0xff] %v9518_v56 }
 0x452   : > { %2595 = vmatpush.bf16.xpose.msra.mxu1 %v2586_v19  ;;  %7104 = vmatmul.msk.bf16.vlgmr.msra.gmra.mxu0 %vm1057_vm0, %v11827_v22  ;;  %v11832_v19 = vld [vmem:[#allocation73_spill] sm:$0xff]  ;;  %v11833_v22 = vld [vmem:[#allocation110_spill] sm:$0xff] }
 0x453   : > { %3246 = vmatpush.bf16.msra.mxu0 %v11828_v60  ;;  %v11834_v60 = vld [vmem:[#allocation90_spill] sm:$0xff] }
 0x454   : > { %11858 = vst [vmem:[#allocation90_spill] sm:$0xff] %v9525_v31 }
 0x456   : > { %v2431_v53 = vpop.f32.mrf.mxu2 }
 0x457   : > { %v9435_v7 = vadd.f32 %v2431_v53, %v2379_v32  ;;  %v9460_v32 = vpop.f32.mrf.mxu3  ;;  %v9462_v53 = vpop.f32.mrf.mxu0 }
 0x458   : > { %11835 = vst [vmem:[#allocation93_spill] sm:$0xff] %v9462_v53  ;;  %v9478_v55 = vpop.permute.xlu0 %4285 }
 0x459   : > { %v3209_v61 = vpop.permute.xlu1 %3208  ;;  %v2797_v23 = vsel %vm1528_vm1, %v9435_v7, -inf  ;;  %11841 = vst [vmem:[#allocation59_spill] sm:$0xff] %v9478_v55  ;;  %v2390_v55 = vld [vmem:[#allocation8 + $0x160] sm:$0xff] }
 0x45a   : > { %7107 = vmatmul.msk.bf16.vlgmr.msrb.gmra.mxu3 %vm1057_vm0, %v11829_v3  ;;  %2798 = vmax.xlane.f32.xlu2 %v2797_v23  ;;  %v2778_v3 = vsel %vm1057_vm0, %v9138_v59, 0  ;;  %v11843_v59 = vld [vmem:[#allocation107_spill] sm:$0xff] }
 0x45b   : > { %3221 = vmatpush.bf16.msra.mxu3 %v3209_v61 }
 0x45e   : > { %v2525_v11 = vpop.f32.mrf.mxu2 }
 0x45f   : > { %v9445_v28 = vadd.f32 %v2525_v11, %v2386_v26  ;;  %v9468_v23 = vpop.f32.mrf.mxu3  ;;  %v11839_v11 = vld [vmem:[#allocation103_spill] sm:$0xff] }
 0x461   : > { %v9451_v18 = vpop.permute.xlu1 %4213  ;;  %7097 = vmatmul.msk.bf16.vlgmr.msrb.gmra.mxu1 %vm1057_vm0, %v11832_v19  ;;  %2795 = vmax.xlane.f32.xlu1 %v2794_v20  ;;  %v2818_v50 = vsel %vm1528_vm1, %v9445_v28, -inf  ;;  %v9476_v20 = vpop.f32.mrf.mxu0 }
 0x462   : > { %11831 = vst [vmem:[#allocation66_spill] sm:$0xff] %v9451_v18  ;;  %2691 = vmatpush.bf16.xpose.msrb.mxu1 %v2682_v48  ;;  %7108 = vmatmul.msk.bf16.vlgmr.msrb.gmra.mxu0 %vm1057_vm0, %v11833_v22  ;;  %v9486_v22 = vpop.permute.xlu0 %3408  ;;  %v9535_v18 = vpop.f32.mrf.mxu1 }
 0x463   : > { %3346 = vmatpush.bf16.msrb.mxu0 %v11834_v60  ;;  %2819 = vmax.xlane.f32.xlu0 %v2818_v50  ;;  %11840 = vst [vmem:[#allocation100_spill] sm:$0xff] %v9476_v20 }
 0x464   : > { %11859 = vst [vmem:[#allocation103_spill] sm:$0xff] %v9535_v18 }
 0x467   : > { %v9480_v48 = vpop.f32.mrf.mxu3 }
 0x469   : > { %v9466_v61 = vpop.permute.xlu1 %4239  ;;  %v9484_v50 = vpop.f32.mrf.mxu0 }
 0x46a   : > { %11837 = vst [vmem:[#allocation98_spill] sm:$0xff] %v9466_v61  ;;  %v2699_v12 = vpop.permute.xlu0 %2698  ;;  %v2397_v61 = vld [vmem:[#allocation8 + $0x198] sm:$0xff] }
 0x471   : > { %v9472_v26 = vpop.permute.xlu1 %4263  ;;  %7101 = vmatmul.msk.bf16.vlgmr.msra.gmra.mxu1 %vm1057_vm0, %v11839_v11  ;;  %v9493_v11 = vpop.f32.mrf.mxu0 }
 0x472   : > { %11838 = vst [vmem:[#allocation52_spill] sm:$0xff] %v9472_v26  ;;  %2787 = vmatpush.bf16.xpose.msra.mxu1 %v2778_v3  ;;  %v9491_v3 = vpop.f32.mrf.mxu3  ;;  %v9500_v34 = vpop.permute.xlu0 %4723 }
 0x473   : > { %11847 = vst [vmem:[#allocation85_spill] sm:$0xff] %v9500_v34  ;;  %v9541_v26 = vpop.f32.mrf.mxu1 }
 0x474   : > { %11860 = vst [vmem:[#allocation107_spill] sm:$0xff] %v9541_v26 }
 0x479   : > { %v9482_v19 = vpop.permute.xlu1 %4237  ;;  %v9498_v42 = vpop.f32.mrf.mxu0 }
 0x47a   : > { %11842 = vst [vmem:[#allocation114_spill] sm:$0xff] %v9482_v19  ;;  %v9496_v35 = vpop.f32.mrf.mxu3  ;;  %v3184_v4 = vpop.permute.xlu0 %3183 }
 0x47b   : > { %11845 = vst [vmem:[#allocation75_spill] sm:$0xff] %v9496_v35 }
 0x47c   : > { %11846 = vst [vmem:[#allocation109_spill] sm:$0xff] %v9498_v42 }
 0x481   : > { %v3309_v60 = vpop.permute.xlu1 %3308  ;;  %7105 = vmatmul.msk.bf16.vlgmr.msrb.gmra.mxu1 %vm1057_vm0, %v11843_v59  ;;  %v11848_v59 = vld [vmem:[#allocation111_spill] sm:$0xff]  ;;  %v9509_v2 = vpop.f32.mrf.mxu0 }
 0x482   : > { %3271 = vmatpush.bf16.msrb.mxu1 %v11844_v52  ;;  %3321 = vmatpush.bf16.msrb.mxu3 %v3309_v60  ;;  %v11849_v52 = vld [vmem:[#allocation104_spill] sm:$0xff]  ;;  %v9507_v60 = vpop.f32.mrf.mxu3  ;;  %11851 = vst [vmem:[#allocation101_spill] sm:$0xff] %v9509_v2  ;;  %v2407_v2 = vld [vmem:[#allocation8 + $0x1e8] sm:$0xff] }
 0x483   : > { %11850 = vst [vmem:[#allocation106_spill] sm:$0xff] %v9507_v60 }
 0x489   : > { %v2603_v17 = vpop.permute.xlu1 %2602 }
 0x48a   : > { %7102 = vmatmul.msk.bf16.vlgmr.msra.gmra.mxu2 %vm1057_vm0, %v2603_v17 }
 0x491   : > { %v9502_v33 = vpop.permute.xlu1 %3508  ;;  %7109 = vmatmul.msk.bf16.vlgmr.msra.gmra.mxu1 %vm1057_vm0, %v11848_v59 }
 0x492   : > { %3371 = vmatpush.bf16.msra.mxu1 %v11849_v52 }
 0x499   : > { %v2701_v17 = vpop.permute.xlu1 %2700 }
 0x49a   : > { %v2706_v9 = vsel %vm1057_vm0, %v2701_v17, 0  ;;  %v2382_v17 = vld [vmem:[#allocation8 + $0x120] sm:$0xff] }
 0x49b   : > { %2715 = vmatpush.bf16.xpose.msrb.mxu2 %v2706_v9 }
 0x49d   : > { %v9514_v37 = vpop.f32.mrf.mxu3 }
 0x49e   : > { %11853 = vst [vmem:[#allocation87_spill] sm:$0xff] %v9514_v37 }
 0x49f   : > { %v9516_v38 = vpop.f32.mrf.mxu0 }
 0x4a0   : > { %11854 = vst [vmem:[#allocation116_spill] sm:$0xff] %v9516_v38 }
 0x4a1   : > { %v9609_v25 = vpop.permute.xlu1 %4698 }
 0x4a2   : > { %7106 = vmatmul.msk.bf16.vlgmr.msrb.gmra.mxu2 %vm1057_vm0, %v2699_v12  ;;  %11864 = vst [vmem:[#allocation123_spill] sm:$0xff] %v9609_v25  ;;  %v9629_v25 = vpop.permute.xlu2 %4748 }
 0x4a3   : > { %3196 = vmatpush.bf16.msra.mxu2 %v3184_v4  ;;  %11866 = vst [vmem:[#allocation125_spill] sm:$0xff] %v9629_v25 }
 0x4a5   : > { %v9521_v59 = vpop.f32.mrf.mxu3 }
 0x4a6   : > { %11856 = vst [vmem:[#allocation73_spill] sm:$0xff] %v9521_v59 }
 0x4a7   : > { %v9523_v52 = vpop.f32.mrf.mxu0 }
 0x4a8   : > { %11857 = vst [vmem:[#allocation110_spill] sm:$0xff] %v9523_v52 }
 0x4a9   : > { %v9619_v44 = vpop.permute.xlu1 %4773 }
 0x4aa   : > { %11865 = vst [vmem:[#allocation124_spill] sm:$0xff] %v9619_v44 }
 0x4ad   : > { %v2453_v13 = vpop.f32.mrf.mxu3 }
 0x4ae   : > { %v9527_v15 = vadd.f32 %v2453_v13, %v2380_v10  ;;  %v2387_v13 = vld [vmem:[#allocation8 + $0x148] sm:$0xff] }
 0x4af   : > { %v2477_v4 = vpop.f32.mrf.mxu0 }
 0x4b0   : > { %v9529_v9 = vadd.f32 %v2477_v4, %v2382_v17  ;;  %v2800_v57 = vsel %vm1528_vm1, %v9527_v15, -inf  ;;  %v2527_v17 = vpop.f32.mrf.mxu2  ;;  %v2388_v4 = vld [vmem:[#allocation8 + $0x150] sm:$0xff] }
 0x4b1   : > { %2801 = vmax.xlane.f32.xlu2 %v2800_v57  ;;  %v9543_v57 = vadd.f32 %v2527_v17, %v2387_v13  ;;  %v9555_v17 = vpop.f32.mrf.mxu1 }
 0x4b2   : > { %v2806_v12 = vsel %vm1528_vm1, %v9529_v9, -inf  ;;  %11861 = vst [vmem:[#allocation74_spill] sm:$0xff] %v9555_v17  ;;  %v2384_v17 = vld [vmem:[#allocation8 + $0x130] sm:$0xff] }
 0x4b3   : > { %2807 = vmax.xlane.f32.xlu1 %v2806_v12 }
 0x4b5   : > { %v2455_v52 = vpop.f32.mrf.mxu3 }
 0x4b6   : > { %v9537_v38 = vadd.f32 %v2455_v52, %v2381_v1  ;;  %v2821_v52 = vsel %vm1528_vm1, %v9543_v57, -inf }
 0x4b7   : > { %v2479_v63 = vpop.f32.mrf.mxu0 }
 0x4b8   : > { %v2803_v10 = vsel %vm1528_vm1, %v9537_v38, -inf  ;;  %v9553_v29 = vadd.f32 %v2479_v63, %v2383_v27  ;;  %v2398_v27 = vld [vmem:[#allocation8 + $0x1a0] sm:$0xff] }
 0x4b9   : > { %2804 = vmax.xlane.f32.xlu0 %v2803_v10  ;;  %v2389_v10 = vld [vmem:[#allocation8 + $0x158] sm:$0xff] }
 0x4bd   : > { %v2549_v59 = vpop.f32.mrf.mxu3 }
 0x4be   : > { %v9545_v12 = vadd.f32 %v2549_v59, %v2388_v4 }
 0x4bf   : > { %v2573_v37 = vpop.f32.mrf.mxu0 }
 0x4c0   : > { %v2824_v1 = vsel %vm1528_vm1, %v9545_v12, -inf  ;;  %v9551_v46 = vadd.f32 %v2573_v37, %v2390_v55  ;;  %v2809_v37 = vsel %vm1528_vm1, %v9553_v29, -inf }
 0x4c1   : > { %2825 = vmax.xlane.f32.xlu1 %v2824_v1  ;;  %2822 = vmax.xlane.f32.xlu0 %v2821_v52 }
 0x4c2   : > { %v2830_v19 = vsel %vm1528_vm1, %v9551_v46, -inf }
 0x4c5   : > { %v2551_v13 = vpop.f32.mrf.mxu3 }
 0x4c6   : > { %v9557_v59 = vadd.f32 %v2551_v13, %v2389_v10 }
 0x4c7   : > { %v2575_v4 = vpop.f32.mrf.mxu0 }
 0x4c8   : > { %v2827_v34 = vsel %vm1528_vm1, %v9557_v59, -inf }
 0x4c9   : > { %2828 = vmax.xlane.f32.xlu2 %v2827_v34  ;;  %2831 = vmax.xlane.f32.xlu1 %v2830_v19  ;;  %v2404_v19 = vld [vmem:[#allocation8 + $0x1d0] sm:$0xff] }
 0x4ca   : > { %2810 = vmax.xlane.f32.xlu0 %v2809_v37 }
 0x4cd   : > { %v2645_v63 = vpop.f32.mrf.mxu3  ;;  %v2799_v56 = vpop.xlane.xlu2 %2798 }
 0x4ce   : > { %v9565_v55 = vpop.f32.mrf.mxu1  ;;  %v2891_v25 = vsub.f32 %v9435_v7, %v2799_v56 }
 0x4cf   : > { %11862 = vst [vmem:[#allocation111_spill] sm:$0xff] %v9565_v55  ;;  %v2669_v1 = vpop.f32.mrf.mxu0 }
 0x4d0   : > { %v9567_v52 = vadd.f32 %v2669_v1, %v2398_v27 }
 0x4d2   : > { %v2854_v10 = vsel %vm1528_vm1, %v9567_v52, -inf }
 0x4d3   : > { %2855 = vmax.xlane.f32.xlu1 %v2854_v10  ;;  %v2396_v10 = vld [vmem:[#allocation8 + $0x190] sm:$0xff] }
 0x4d4   : > { %v9581_v41 = vadd.f32 %v2645_v63, %v2396_v10 }
 0x4d5   : > { %v2647_v13 = vpop.f32.mrf.mxu3 }
 0x4d6   : > { %v9571_v0 = vpop.f32.mrf.mxu1 }
 0x4d7   : > { %11863 = vst [vmem:[#allocation104_spill] sm:$0xff] %v9571_v0  ;;  %v2671_v34 = vpop.f32.mrf.mxu0  ;;  %v2385_v0 = vld [vmem:[#allocation8 + $0x138] sm:$0xff] }
 0x4dd   : > { %v2741_v26 = vpop.f32.mrf.mxu3 }
 0x4de   : > { %v9573_v58 = vadd.f32 %v2741_v26, %v2404_v19  ;;  %v2501_v37 = vpop.f32.mrf.mxu1 }
 0x4df   : > { %v9575_v5 = vadd.f32 %v2501_v37, %v2384_v17  ;;  %v2765_v55 = vpop.f32.mrf.mxu0  ;;  %v2848_v37 = vsel %vm1528_vm1, %v9581_v41, -inf }
 0x4e0   : > { %v2872_v27 = vsel %vm1528_vm1, %v9573_v58, -inf }
 0x4e1   : > { %2873 = vmax.xlane.f32.xlu1 %v2872_v27  ;;  %v2812_v1 = vsel %vm1528_vm1, %v9575_v5, -inf }
 0x4e2   : > { %2813 = vmax.xlane.f32.xlu2 %v2812_v1  ;;  %v9593_v1 = vadd.f32 %v2575_v4, %v2391_v36  ;;  %v2399_v4 = vld [vmem:[#allocation8 + $0x1a8] sm:$0xff] }
 0x4e6   : > { %v2503_v42 = vpop.f32.mrf.mxu1 }
 0x4e7   : > { %v9583_v26 = vadd.f32 %v2503_v42, %v2385_v0  ;;  %v2767_v19 = vpop.f32.mrf.mxu0  ;;  %v9595_v42 = vadd.f32 %v2647_v13, %v2397_v61  ;;  %v2833_v0 = vsel %vm1528_vm1, %v9593_v1, -inf  ;;  %v2405_v13 = vld [vmem:[#allocation8 + $0x1d8] sm:$0xff] }
 0x4e8   : > { %v9585_v17 = vadd.f32 %v2767_v19, %v2407_v2  ;;  %v2392_v19 = vld [vmem:[#allocation8 + $0x170] sm:$0xff] }
 0x4e9   : > { %v2815_v27 = vsel %vm1528_vm1, %v9583_v26, -inf  ;;  %v2851_v10 = vsel %vm1528_vm1, %v9595_v42, -inf }
 0x4ea   : > { %2849 = vmax.xlane.f32.xlu2 %v2848_v37  ;;  %2816 = vmax.xlane.f32.xlu0 %v2815_v27  ;;  %v2881_v63 = vsel %vm1528_vm1, %v9585_v17, -inf  ;;  %v2393_v37 = vld [vmem:[#allocation8 + $0x178] sm:$0xff] }
 0x4eb   : > { %2882 = vmax.xlane.f32.xlu1 %v2881_v63  ;;  %v2743_v63 = vpop.f32.mrf.mxu3 }
 0x4ee   : > { %v2597_v2 = vpop.f32.mrf.mxu1 }
 0x4ef   : > { %v9601_v27 = vadd.f32 %v2597_v2, %v2392_v19  ;;  %v9613_v2 = vadd.f32 %v2743_v63, %v2405_v13  ;;  %v2401_v63 = vld [vmem:[#allocation8 + $0x1b8] sm:$0xff] }
 0x4f1   : > { %v2836_v36 = vsel %vm1528_vm1, %v9601_v27, -inf  ;;  %v2875_v19 = vsel %vm1528_vm1, %v9613_v2, -inf }
 0x4f2   : > { %2834 = vmax.xlane.f32.xlu2 %v2833_v0  ;;  %2852 = vmax.xlane.f32.xlu0 %v2851_v10  ;;  %v9611_v0 = vadd.f32 %v2671_v34, %v2399_v4 }
 0x4f6   : > { %v2599_v60 = vpop.f32.mrf.mxu1 }
 0x4f7   : > { %v9603_v35 = vadd.f32 %v2599_v60, %v2393_v37  ;;  %v2857_v60 = vsel %vm1528_vm1, %v9611_v0, -inf  ;;  %v2406_v37 = vld [vmem:[#allocation8 + $0x1e0] sm:$0xff] }
 0x4f9   : > { %v2839_v61 = vsel %vm1528_vm1, %v9603_v35, -inf }
 0x4fa   : > { %2837 = vmax.xlane.f32.xlu2 %v2836_v36  ;;  %2840 = vmax.xlane.f32.xlu0 %v2839_v61  ;;  %v9621_v36 = vadd.f32 %v2765_v55, %v2406_v37 }
 0x4fc   : > { %v2878_v13 = vsel %vm1528_vm1, %v9621_v36, -inf }
 0x4fe   : > { %v2693_v10 = vpop.f32.mrf.mxu1 }
 0x4ff   : > { %v9623_v61 = vadd.f32 %v2693_v10, %v2400_v45  ;;  %v2408_v10 = vld [vmem:[#allocation8 + $0x1f0] sm:$0xff] }
 0x501   : > { %v2860_v4 = vsel %vm1528_vm1, %v9623_v61, -inf }
 0x502   : > { %2858 = vmax.xlane.f32.xlu2 %v2857_v60  ;;  %2876 = vmax.xlane.f32.xlu0 %v2875_v19  ;;  %v2796_v60 = vpop.xlane.xlu1 %2795 }
 0x503   : > { %v2890_v55 = vsub.f32 %v9443_v39, %v2796_v60 }
 0x505   : > { %v2922_v37 = vmul.f32 1.442695, %v2890_v55 }
 0x506   : > { %v2695_v34 = vpop.f32.mrf.mxu1 }
 0x507   : > { %v9631_v19 = vadd.f32 %v2695_v34, %v2401_v63  ;;  %7575 = vpow2.f32 %v2922_v37  ;;  %v2924_v63 = vmul.f32 1.442695, %v2891_v25 }
 0x509   : > { %v2863_v45 = vsel %vm1528_vm1, %v9631_v19, -inf  ;;  %7577 = vpow2.f32 %v2924_v63 }
 0x50a   : > { %2861 = vmax.xlane.f32.xlu2 %v2860_v4  ;;  %2879 = vmax.xlane.f32.xlu0 %v2878_v13 }
 0x50d   : > { %v9645_v60 = vpop.eup %7575 }
 0x50e   : > { %v2789_v44 = vpop.f32.mrf.mxu1 }
 0x50f   : > { %v9636_v24 = vadd.f32 %v2789_v44, %v2408_v10  ;;  %v2986_v44 = vsel %vm1528_vm1, %v9645_v60, 0.0  ;;  %v9652_v55 = vpop.eup %7577 }
 0x510   : > { %v2989_v25 = vsel %vm1528_vm1, %v9652_v55, 0.0 }
 0x511   : > { %v2884_v34 = vsel %vm1528_vm1, %v9636_v24, -inf }
 0x512   : > { %2864 = vmax.xlane.f32.xlu2 %v2863_v45 }
 0x516   : > { %v2791_v4 = vpop.f32.mrf.mxu1 }
 0x517   : > { %v9638_v13 = vadd.f32 %v2791_v4, %v2409_v40  ;;  %v9649_v40 = vpop.xlane.xlu0 %2819 }
 0x519   : > { %v2887_v39 = vsel %vm1528_vm1, %v9638_v13, -inf }
 0x51a   : > { %2885 = vmax.xlane.f32.xlu2 %v2884_v34  ;;  %2888 = vmax.xlane.f32.xlu1 %v2887_v39 }
 0x522   : > { %2987 = vadd.xlane.f32.xlu2 %v2986_v44 }
 0x524   : > { %v2802_v56 = vpop.xlane.xlu2 %2801 }
 0x525   : > { %v2892_v7 = vsub.f32 %v9527_v15, %v2802_v56 }
 0x526   : > { %v2808_v45 = vpop.xlane.xlu1 %2807 }
 0x527   : > { %v2926_v10 = vmul.f32 1.442695, %v2892_v7  ;;  %v2894_v37 = vsub.f32 %v9529_v9, %v2808_v45 }
 0x529   : > { %7579 = vpow2.f32 %v2926_v10  ;;  %v2930_v4 = vmul.f32 1.442695, %v2894_v37 }
 0x52a   : > { %2990 = vadd.xlane.f32.xlu2 %v2989_v25 }
 0x52b   : > { %7581 = vpow2.f32 %v2930_v4 }
 0x52c   : > { %v2805_v34 = vpop.xlane.xlu0 %2804 }
 0x52d   : > { %v2893_v39 = vsub.f32 %v9537_v38, %v2805_v34 }
 0x52f   : > { %v9658_v63 = vpop.eup %7579  ;;  %v2928_v44 = vmul.f32 1.442695, %v2893_v39 }
 0x530   : > { %v2992_v15 = vsel %vm1528_vm1, %v9658_v63, 0.0 }
 0x531   : > { %7583 = vpow2.f32 %v2928_v44  ;;  %v9665_v45 = vpop.eup %7581 }
 0x532   : > { %2993 = vadd.xlane.f32.xlu2 %v2992_v15  ;;  %v2998_v25 = vsel %vm1528_vm1, %v9665_v45, 0.0 }
 0x534   : > { %v2826_v56 = vpop.xlane.xlu1 %2825  ;;  %v9662_v9 = vpop.xlane.xlu0 %2822 }
 0x535   : > { %v2900_v7 = vsub.f32 %v9545_v12, %v2826_v56 }
 0x537   : > { %v9667_v10 = vpop.eup %7583  ;;  %v2942_v37 = vmul.f32 1.442695, %v2900_v7 }
 0x538   : > { %v2995_v38 = vsel %vm1528_vm1, %v9667_v10, 0.0 }
 0x539   : > { %7585 = vpow2.f32 %v2942_v37  ;;  %2996 = vadd.xlane.f32.xlu0 %v2995_v38 }
 0x53a   : > { %2999 = vadd.xlane.f32.xlu2 %v2998_v25 }
 0x53c   : > { %v2829_v34 = vpop.xlane.xlu2 %2828  ;;  %v2832_v37 = vpop.xlane.xlu1 %2831 }
 0x53d   : > { %v2811_v4 = vpop.xlane.xlu0 %2810  ;;  %v2901_v15 = vsub.f32 %v9557_v59, %v2829_v34  ;;  %v2902_v25 = vsub.f32 %v9551_v46, %v2832_v37 }
 0x53e   : > { %v2895_v39 = vsub.f32 %v9553_v29, %v2811_v4 }
 0x53f   : > { %v9674_v44 = vpop.eup %7585  ;;  %v2944_v7 = vmul.f32 1.442695, %v2901_v15  ;;  %v2946_v4 = vmul.f32 1.442695, %v2902_v25 }
 0x540   : > { %v2932_v12 = vmul.f32 1.442695, %v2895_v39  ;;  %v3016_v56 = vsel %vm1528_vm1, %v9674_v44, 0.0 }
 0x542   : > { %7587 = vpow2.f32 %v2932_v12  ;;  %3017 = vadd.xlane.f32.xlu2 %v3016_v56 }
 0x543   : > { %7589 = vpow2.f32 %v2944_v7 }
 0x544   : > { %7591 = vpow2.f32 %v2946_v4 }
 0x546   : > { %v2856_v39 = vpop.xlane.xlu1 %2855 }
 0x548   : > { %v9679_v38 = vpop.eup %7587 }
 0x549   : > { %v3001_v29 = vsel %vm1528_vm1, %v9679_v38, 0.0  ;;  %v9684_v18 = vpop.eup %7589 }
 0x54a   : > { %3002 = vadd.xlane.f32.xlu0 %v3001_v29  ;;  %v3019_v59 = vsel %vm1528_vm1, %v9684_v18, 0.0  ;;  %v9688_v15 = vpop.eup %7591 }
 0x54b   : > { %v3022_v37 = vsel %vm1528_vm1, %v9688_v15, 0.0 }
 0x552   : > { %3020 = vadd.xlane.f32.xlu0 %v3019_v59 }
 0x554   : > { %v2874_v34 = vpop.xlane.xlu1 %2873 }
 0x555   : > { %v2814_v12 = vpop.xlane.xlu2 %2813  ;;  %v2916_v56 = vsub.f32 %v9573_v58, %v2874_v34 }
 0x556   : > { %v2896_v46 = vsub.f32 %v9575_v5, %v2814_v12 }
 0x557   : > { %v2974_v25 = vmul.f32 1.442695, %v2916_v56 }
 0x558   : > { %v2934_v7 = vmul.f32 1.442695, %v2896_v46 }
 0x55a   : > { %7593 = vpow2.f32 %v2934_v7  ;;  %3023 = vadd.xlane.f32.xlu0 %v3022_v37 }
 0x55b   : > { %7595 = vpow2.f32 %v2974_v25 }
 0x55d   : > { %v2817_v29 = vpop.xlane.xlu0 %2816  ;;  %v2850_v4 = vpop.xlane.xlu2 %2849 }
 0x55e   : > { %v2908_v31 = vsub.f32 %v9581_v41, %v2850_v4  ;;  %v2897_v53 = vsub.f32 %v9583_v26, %v2817_v29  ;;  %v2910_v41 = vsub.f32 %v9567_v52, %v2856_v39  ;;  %v2883_v25 = vpop.xlane.xlu1 %2882 }
 0x55f   : > { %v2919_v39 = vsub.f32 %v9585_v17, %v2883_v25 }
 0x560   : > { %v9695_v59 = vpop.eup %7593  ;;  %v2958_v20 = vmul.f32 1.442695, %v2908_v31  ;;  %v2936_v58 = vmul.f32 1.442695, %v2897_v53 }
 0x561   : > { %v3004_v5 = vsel %vm1528_vm1, %v9695_v59, 0.0  ;;  %v9700_v12 = vpop.eup %7595 }
 0x562   : > { %3005 = vadd.xlane.f32.xlu0 %v3004_v5  ;;  %7597 = vpow2.f32 %v2958_v20  ;;  %v3064_v26 = vsel %vm1528_vm1, %v9700_v12, 0.0  ;;  %v2962_v20 = vmul.f32 1.442695, %v2910_v41 }
 0x563   : > { %7599 = vpow2.f32 %v2936_v58 }
 0x565   : > { %v2835_v34 = vpop.xlane.xlu2 %2834  ;;  %v2853_v46 = vpop.xlane.xlu0 %2852 }
 0x566   : > { %v2903_v56 = vsub.f32 %v9593_v1, %v2835_v34  ;;  %v2909_v31 = vsub.f32 %v9595_v42, %v2853_v46  ;;  %v2980_v34 = vmul.f32 1.442695, %v2919_v39 }
 0x568   : > { %v2948_v7 = vmul.f32 1.442695, %v2903_v56  ;;  %v9704_v37 = vpop.eup %7597  ;;  %v2960_v1 = vmul.f32 1.442695, %v2909_v31 }
 0x569   : > { %v3040_v53 = vsel %vm1528_vm1, %v9704_v37, 0.0  ;;  %v9711_v52 = vpop.eup %7599 }
 0x56a   : > { %3065 = vadd.xlane.f32.xlu0 %v3064_v26  ;;  %7601 = vpow2.f32 %v2948_v7  ;;  %3041 = vadd.xlane.f32.xlu2 %v3040_v53  ;;  %v3007_v5 = vsel %vm1528_vm1, %v9711_v52, 0.0 }
 0x56b   : > { %7603 = vpow2.f32 %v2962_v20 }
 0x56c   : > { %7605 = vpow2.f32 %v2960_v1 }
 0x56d   : > { %v2838_v29 = vpop.xlane.xlu2 %2837  ;;  %7607 = vpow2.f32 %v2980_v34 }
 0x56e   : > { %v2904_v42 = vsub.f32 %v9601_v27, %v2838_v29  ;;  %v2841_v27 = vpop.xlane.xlu0 %2840 }
 0x570   : > { %v9714_v4 = vpop.eup %7601  ;;  %v2950_v46 = vmul.f32 1.442695, %v2904_v42 }
 0x571   : > { %v3025_v58 = vsel %vm1528_vm1, %v9714_v4, 0.0  ;;  %v9721_v41 = vpop.eup %7603 }
 0x572   : > { %3008 = vadd.xlane.f32.xlu2 %v3007_v5  ;;  %3026 = vadd.xlane.f32.xlu1 %v3025_v58  ;;  %v9723_v7 = vpop.eup %7605  ;;  %7609 = vpow2.f32 %v2950_v46  ;;  %v3046_v31 = vsel %vm1528_vm1, %v9721_v41, 0.0 }
 0x573   : > { %v3043_v26 = vsel %vm1528_vm1, %v9723_v7, 0.0  ;;  %v9730_v25 = vpop.eup %7607 }
 0x574   : > { %v3073_v42 = vsel %vm1528_vm1, %v9730_v25, 0.0 }
 0x575   : > { %v2859_v56 = vpop.xlane.xlu2 %2858 }
 0x576   : > { %v2911_v17 = vsub.f32 %v9611_v0, %v2859_v56  ;;  %v2905_v0 = vsub.f32 %v9603_v35, %v2841_v27  ;;  %v2877_v58 = vpop.xlane.xlu0 %2876 }
 0x577   : > { %v2917_v35 = vsub.f32 %v9613_v2, %v2877_v58 }
 0x578   : > { %v2964_v53 = vmul.f32 1.442695, %v2911_v17  ;;  %v9733_v29 = vpop.eup %7609  ;;  %v2952_v34 = vmul.f32 1.442695, %v2905_v0 }
 0x579   : > { %v3028_v5 = vsel %vm1528_vm1, %v9733_v29, 0.0 }
 0x57a   : > { %3047 = vadd.xlane.f32.xlu2 %v3046_v31  ;;  %3044 = vadd.xlane.f32.xlu1 %v3043_v26  ;;  %7611 = vpow2.f32 %v2964_v53  ;;  %v2976_v53 = vmul.f32 1.442695, %v2917_v35 }
 0x57d   : > { %v2862_v20 = vpop.xlane.xlu2 %2861 }
 0x57e   : > { %v2912_v1 = vsub.f32 %v9623_v61, %v2862_v20 }
 0x580   : > { %v2966_v39 = vmul.f32 1.442695, %v2912_v1  ;;  %v9741_v56 = vpop.eup %7611  ;;  %v2880_v1 = vpop.xlane.xlu0 %2879 }
 0x581   : > { %v3049_v27 = vsel %vm1528_vm1, %v9741_v56, 0.0 }
 0x582   : > { %7613 = vpow2.f32 %v2966_v39  ;;  %3074 = vadd.xlane.f32.xlu1 %v3073_v42  ;;  %3029 = vadd.xlane.f32.xlu2 %v3028_v5 }
 0x583   : > { %7615 = vpow2.f32 %v2952_v34  ;;  %v2918_v34 = vsub.f32 %v9621_v36, %v2880_v1 }
 0x585   : > { %v2865_v46 = vpop.xlane.xlu2 %2864 }
 0x586   : > { %v2913_v61 = vsub.f32 %v9631_v19, %v2865_v46 }
 0x588   : > { %v2968_v17 = vmul.f32 1.442695, %v2913_v61  ;;  %v9743_v31 = vpop.eup %7613 }
 0x589   : > { %v3052_v26 = vsel %vm1528_vm1, %v9743_v31, 0.0  ;;  %v9752_v42 = vpop.eup %7615 }
 0x58a   : > { %7617 = vpow2.f32 %v2968_v17  ;;  %3050 = vadd.xlane.f32.xlu2 %v3049_v27  ;;  %3053 = vadd.xlane.f32.xlu0 %v3052_v26  ;;  %v3031_v61 = vsel %vm1528_vm1, %v9752_v42, 0.0 }
 0x58b   : > { %7619 = vpow2.f32 %v2976_v53 }
 0x58d   : > { %v2889_v20 = vpop.xlane.xlu1 %2888  ;;  %v2886_v19 = vpop.xlane.xlu2 %2885 }
 0x58e   : > { %v2921_v39 = vsub.f32 %v9638_v13, %v2889_v20  ;;  %v2920_v0 = vsub.f32 %v9636_v24, %v2886_v19  ;;  %v2978_v24 = vmul.f32 1.442695, %v2918_v34 }
 0x590   : > { %v9754_v2 = vpop.eup %7617  ;;  %v2984_v5 = vmul.f32 1.442695, %v2921_v39  ;;  %v2982_v58 = vmul.f32 1.442695, %v2920_v0 }
 0x591   : > { %v3055_v46 = vsel %vm1528_vm1, %v9754_v2, 0.0  ;;  %v9761_v17 = vpop.eup %7619 }
 0x592   : > { %7621 = vpow2.f32 %v2984_v5  ;;  %3032 = vadd.xlane.f32.xlu2 %v3031_v61  ;;  %3056 = vadd.xlane.f32.xlu0 %v3055_v46  ;;  %v3067_v26 = vsel %vm1528_vm1, %v9761_v17, 0.0 }
 0x593   : > { %7623 = vpow2.f32 %v2982_v58 }
 0x595   : > { %v2988_v13 = vpop.xlane.xlu2 %2987 }
 0x596   : > { %7625 = vrcp.f32 %v2988_v13 }
 0x597   : > { %7627 = vpow2.f32 %v2978_v24 }
 0x598   : > { %v9763_v35 = vpop.eup %7621 }
 0x599   : > { %v9765_v27 = vpop.eup %7623  ;;  %v3079_v36 = vsel %vm1528_vm1, %v9763_v35, 0.0 }
 0x59a   : > { %v3076_v53 = vsel %vm1528_vm1, %v9765_v27, 0.0  ;;  %3068 = vadd.xlane.f32.xlu2 %v3067_v26  ;;  %3080 = vadd.xlane.f32.xlu0 %v3079_v36 }
 0x59b   : > { %3077 = vadd.xlane.f32.xlu1 %v3076_v53 }
 0x59c   : > { %v7626_v19 = vpop.eup %7625 }
 0x59d   : > { %v2991_v20 = vpop.xlane.xlu2 %2990  ;;  %v9773_v1 = vpop.eup %7627  ;;  %v3114_v39 = vmul.f32 %v7626_v19, %v9645_v60  ;;  %v11867_v60 = vld [vmem:[#allocation36_spill] sm:$0xff] }
 0x59e   : > { %7629 = vrcp.f32 %v2991_v20  ;;  %v3070_v0 = vsel %vm1528_vm1, %v9773_v1, 0.0 }
 0x59f   : > { %v3146_v58 = vpack.c.bf16 %v3114_v39, %v3114_v39 }
 0x5a1   : > { %v3180_v24 = vunpack.c.l.b16 %v3146_v58 }
 0x5a2   : > { %3071 = vadd.xlane.f32.xlu2 %v3070_v0 }
 0x5a4   : > { %v7630_v5 = vpop.eup %7629 }
 0x5a5   : > { %v3115_v34 = vmul.f32 %v7630_v5, %v9652_v55  ;;  %v2994_v46 = vpop.xlane.xlu2 %2993 }
 0x5a6   : > { %7631 = vrcp.f32 %v2994_v46 }
 0x5a7   : > { %v3147_v61 = vpack.c.bf16 %v3115_v34, %v3115_v34 }
 0x5a9   : > { %v3181_v13 = vunpack.c.l.b16 %v3147_v61  ;;  %v11868_v61 = vld [vmem:[#allocation30_spill] sm:$0xff] }
 0x5ab   : > { %v3182_v36 = vpack.c.b16 %v3181_v13, %v3180_v24 }
 0x5ac   : > { %v2997_v26 = vpop.xlane.xlu0 %2996  ;;  %v7632_v53 = vpop.eup %7631 }
 0x5ad   : > { %7633 = vrcp.f32 %v2997_v26  ;;  %7110 = vmatmul.msk.bf16.vlgmr.msra.gmra.mxu2 %vm1528_vm1, %v3182_v36  ;;  %v3116_v20 = vmul.f32 %v7632_v53, %v9658_v63  ;;  %v3000_v39 = vpop.xlane.xlu2 %2999  ;;  %v11869_v36 = vld [vmem:[#allocation38_spill] sm:$0xff] }
 0x5ae   : > { %4848 = vrot.lane.b32.xlu0 %v11867_v60, %s8195_s27  ;;  %7635 = vrcp.f32 %v3000_v39 }
 0x5af   : > { %v3148_v0 = vpack.c.bf16 %v3116_v20, %v3116_v20 }
 0x5b1   : > { %v3205_v58 = vunpack.c.l.b16 %v3148_v0  ;;  %v2621_v0 = vpop.f32.mrf.mxu2 }
 0x5b3   : > { %v7634_v19 = vpop.eup %7633 }
 0x5b4   : > { %v3117_v55 = vmul.f32 %v7634_v19, %v9667_v10  ;;  %4823 = vrot.lane.b32.xlu1 %v9249_v6, %s8195_s27  ;;  %v7636_v13 = vpop.eup %7635  ;;  %v11973_v6 = vld [vmem:[#allocation97_spill] sm:$0xff] }
 0x5b5   : > { %v3018_v24 = vpop.xlane.xlu2 %3017  ;;  %v3118_v10 = vmul.f32 %v7636_v13, %v9665_v45  ;;  %v2898_v13 = vsub.f32 %v9445_v28, %v9649_v40 }
 0x5b6   : > { %v3149_v5 = vpack.c.bf16 %v3117_v55, %v3117_v55 }
 0x5b7   : > { %v3150_v53 = vpack.c.bf16 %v3118_v10, %v3118_v10 }
 0x5b8   : > { %v3206_v34 = vunpack.c.l.b16 %v3149_v5 }
 0x5b9   : > { %v3230_v5 = vunpack.c.l.b16 %v3150_v53  ;;  %v2623_v53 = vpop.f32.mrf.mxu2 }
 0x5ba   : > { %v3207_v46 = vpack.c.b16 %v3206_v34, %v3205_v58  ;;  %4798 = vrot.lane.b32.xlu2 %v11868_v61, %s8195_s27 }
 0x5bc   : > { %7111 = vmatmul.msk.bf16.vlgmr.msra.gmra.mxu3 %vm1528_vm1, %v3207_v46  ;;  %v11870_v46 = vld [vmem:[#allocation41_spill] sm:$0xff] }
 0x5bd   : > { %v3003_v63 = vpop.xlane.xlu0 %3002  ;;  %3421 = vmatpush.bf16.msra.mxu3 %v9486_v22 }
 0x5be   : > { %7637 = vrcp.f32 %v3003_v63 }
 0x5bf   : > { %7639 = vrcp.f32 %v3018_v24 }
 0x5c2   : > { %4873 = vrot.lane.b32.xlu2 %v11869_v36, %s8195_s27 }
 0x5c4   : > { %v7638_v26 = vpop.eup %7637 }
 0x5c5   : > { %v3119_v20 = vmul.f32 %v7638_v26, %v9679_v38  ;;  %v3021_v19 = vpop.xlane.xlu0 %3020  ;;  %v7640_v39 = vpop.eup %7639  ;;  %v11871_v38 = vld [vmem:[#allocation102_spill] sm:$0xff]  ;;  %v2395_v26 = vld [vmem:[#allocation8 + $0x188] sm:$0xff] }
 0x5c6   : > { %7641 = vrcp.f32 %v3021_v19  ;;  %v3124_v22 = vmul.f32 %v7640_v39, %v9674_v44  ;;  %v2938_v19 = vmul.f32 1.442695, %v2898_v13 }
 0x5c7   : > { %v3151_v55 = vpack.c.bf16 %v3119_v20, %v3119_v20 }
 0x5c8   : > { %v3156_v24 = vpack.c.bf16 %v3124_v22, %v3124_v22  ;;  %7643 = vpow2.f32 %v2938_v19 }
 0x5c9   : > { %v3231_v58 = vunpack.c.l.b16 %v3151_v55  ;;  %v9802_v55 = vadd.f32 %v2623_v53, %v2395_v26  ;;  %v2402_v26 = vld [vmem:[#allocation8 + $0x1c0] sm:$0xff]  ;;  %v2717_v53 = vpop.f32.mrf.mxu2 }
 0x5ca   : > { %4898 = vrot.lane.b32.xlu2 %v11870_v46, %s8195_s27  ;;  %v3305_v44 = vunpack.c.l.b16 %v3156_v24 }
 0x5cb   : > { %v3232_v34 = vpack.c.b16 %v3231_v58, %v3230_v5  ;;  %v2845_v22 = vsel %vm1528_vm1, %v9802_v55, -inf }
 0x5cc   : > { %v7642_v45 = vpop.eup %7641 }
 0x5cd   : > { %v3125_v63 = vmul.f32 %v7642_v45, %v9684_v18  ;;  %7112 = vmatmul.msk.bf16.vlgmr.msra.gmra.mxu0 %vm1528_vm1, %v3232_v34  ;;  %v3024_v5 = vpop.xlane.xlu0 %3023  ;;  %v2394_v18 = vld [vmem:[#allocation8 + $0x180] sm:$0xff] }
 0x5ce   : > { %3446 = vmatpush.bf16.msra.mxu0 %v11871_v38  ;;  %v9808_v28 = vadd.f32 %v2621_v0, %v2394_v18  ;;  %v9810_v40 = vpop.eup %7643  ;;  %7645 = vrcp.f32 %v3024_v5 }
 0x5cf   : > { %v3157_v10 = vpack.c.bf16 %v3125_v63, %v3125_v63  ;;  %v3010_v24 = vsel %vm1528_vm1, %v9810_v40, 0.0 }
 0x5d0   : > { %v2842_v58 = vsel %vm1528_vm1, %v9808_v28, -inf }
 0x5d1   : > { %v3306_v20 = vunpack.c.l.b16 %v3157_v10 }
 0x5d3   : > { %v3307_v39 = vpack.c.b16 %v3306_v20, %v3305_v44 }
 0x5d4   : > { %v7646_v38 = vpop.eup %7645 }
 0x5d5   : > { %7115 = vmatmul.msk.bf16.vlgmr.msrb.gmra.mxu3 %vm1528_vm1, %v3307_v39  ;;  %v3006_v45 = vpop.xlane.xlu0 %3005  ;;  %v3126_v13 = vmul.f32 %v7646_v38, %v9688_v15 }
 0x5d6   : > { %3521 = vmatpush.bf16.msrb.mxu3 %v9502_v33  ;;  %7647 = vrcp.f32 %v3006_v45 }
 0x5d7   : > { %v3158_v19 = vpack.c.bf16 %v3126_v13, %v3126_v13 }
 0x5d8   : > { %2846 = vmax.xlane.f32.xlu0 %v2845_v22 }
 0x5dc   : > { %v7648_v0 = vpop.eup %7647 }
 0x5dd   : > { %v3042_v34 = vpop.xlane.xlu2 %3041  ;;  %v3120_v10 = vmul.f32 %v7648_v0, %v9695_v59 }
 0x5de   : > { %2843 = vmax.xlane.f32.xlu1 %v2842_v58  ;;  %v9819_v58 = vadd.f32 %v2717_v53, %v2402_v26 }
 0x5df   : > { %v3152_v45 = vpack.c.bf16 %v3120_v10, %v3120_v10 }
 0x5e0   : > { %3011 = vadd.xlane.f32.xlu0 %v3010_v24 }
 0x5e1   : > { %v3255_v38 = vunpack.c.l.b16 %v3152_v45 }
 0x5e5   : > { %v3027_v33 = vpop.xlane.xlu1 %3026  ;;  %v3009_v63 = vpop.xlane.xlu2 %3008 }
 0x5e6   : > { %7649 = vrcp.f32 %v3027_v33  ;;  %v3330_v33 = vunpack.c.l.b16 %v3158_v19  ;;  %v11873_v19 = vld [vmem:[#allocation108_spill] sm:$0xff] }
 0x5e7   : > { %7651 = vrcp.f32 %v3009_v63 }
 0x5e8   : > { %7653 = vrcp.f32 %v3042_v34 }
 0x5ec   : > { %v7650_v44 = vpop.eup %7649 }
 0x5ed   : > { %v7652_v20 = vpop.eup %7651  ;;  %v3127_v39 = vmul.f32 %v7650_v44, %v9714_v4  ;;  %v3045_v5 = vpop.xlane.xlu1 %3044  ;;  %v2866_v4 = vsel %vm1528_vm1, %v9819_v58, -inf }
 0x5ee   : > { %v3048_v18 = vpop.xlane.xlu2 %3047  ;;  %v7654_v22 = vpop.eup %7653  ;;  %v3121_v24 = vmul.f32 %v7652_v20, %v9711_v52  ;;  %7655 = vrcp.f32 %v3045_v5 }
 0x5ef   : > { %v3159_v34 = vpack.c.bf16 %v3127_v39, %v3127_v39  ;;  %v3132_v59 = vmul.f32 %v7654_v22, %v9704_v37  ;;  %v11872_v37 = vld [vmem:[#allocation117_spill] sm:$0xff]  ;;  %7657 = vrcp.f32 %v3048_v18  ;;  %v3066_v22 = vpop.xlane.xlu0 %3065 }
 0x5f0   : > { %v3153_v15 = vpack.c.bf16 %v3121_v24, %v3121_v24 }
 0x5f1   : > { %v3331_v63 = vunpack.c.l.b16 %v3159_v34  ;;  %v3164_v52 = vpack.c.bf16 %v3132_v59, %v3132_v59  ;;  %v7335_v34 = vld [vmem:[#allocation10 + $0x8] sm:$0xff]  ;;  %v7334_v59 = vld [vmem:[#allocation10] sm:$0xff] }
 0x5f2   : > { %v3256_v0 = vunpack.c.l.b16 %v3153_v15 }
 0x5f3   : > { %v3332_v13 = vpack.c.b16 %v3331_v63, %v3330_v33  ;;  %2867 = vmax.xlane.f32.xlu2 %v2866_v4  ;;  %v3405_v39 = vunpack.c.l.b16 %v3164_v52 }
 0x5f4   : > { %v7656_v44 = vpop.eup %7655  ;;  %v3257_v26 = vpack.c.b16 %v3256_v0, %v3255_v38  ;;  %4948 = vrot.lane.b32.xlu0 %v8656_v8, %s8195_s27 }
 0x5f5   : > { %v3133_v10 = vmul.f32 %v7656_v44, %v9723_v7  ;;  %7116 = vmatmul.msk.bf16.vlgmr.msrb.gmra.mxu0 %vm1528_vm1, %v3332_v13  ;;  %v7658_v24 = vpop.eup %7657 }
 0x5f6   : > { %v3030_v53 = vpop.xlane.xlu2 %3029  ;;  %7113 = vmatmul.msk.bf16.vlgmr.msrb.gmra.mxu1 %vm1528_vm1, %v3257_v26  ;;  %3546 = vmatpush.bf16.msrb.mxu0 %v11872_v37  ;;  %v3134_v15 = vmul.f32 %v7658_v24, %v9721_v41 }
 0x5f7   : > { %v3165_v20 = vpack.c.bf16 %v3133_v10, %v3133_v10  ;;  %3471 = vmatpush.bf16.msrb.mxu1 %v11873_v19  ;;  %4923 = vrot.lane.b32.xlu1 %v9274_v54, %s8195_s27  ;;  %v3075_v10 = vpop.xlane.xlu1 %3074 }
 0x5f8   : > { %v3166_v0 = vpack.c.bf16 %v3134_v15, %v3134_v15 }
 0x5f9   : > { %v3406_v5 = vunpack.c.l.b16 %v3165_v20 }
 0x5fa   : > { %v3430_v44 = vunpack.c.l.b16 %v3166_v0 }
 0x5fb   : > { %v3407_v45 = vpack.c.b16 %v3406_v5, %v3405_v39  ;;  %v2899_v39 = vsub.f32 %v9543_v57, %v9662_v9  ;;  %v2403_v9 = vld [vmem:[#allocation8 + $0x1c8] sm:$0xff] }
 0x5fd   : > { %7119 = vmatmul.msk.bf16.vlgmr.msra.gmra.mxu3 %vm1528_vm1, %v3407_v45  ;;  %v3054_v33 = vpop.xlane.xlu0 %3053 }
 0x5fe   : > { %v3051_v7 = vpop.xlane.xlu2 %3050  ;;  %7344 = vmatpush.bf16.msra.mxu3 %v7335_v34 }
 0x5ff   : > { %7659 = vrcp.f32 %v3051_v7  ;;  %v2940_v7 = vmul.f32 1.442695, %v2899_v39 }
 0x600   : > { %7661 = vrcp.f32 %v3030_v53 }
 0x602   : > { %7345 = vmatpush.bf16.msra.mxu3 %v7334_v59 }
 0x605   : > { %v7660_v63 = vpop.eup %7659  ;;  %v3057_v53 = vpop.xlane.xlu0 %3056 }
 0x606   : > { %v3033_v38 = vpop.xlane.xlu2 %3032  ;;  %v3135_v4 = vmul.f32 %v7660_v63, %v9741_v56  ;;  %v7662_v18 = vpop.eup %7661 }
 0x607   : > { %7663 = vrcp.f32 %v3033_v38  ;;  %v3128_v26 = vmul.f32 %v7662_v18, %v9733_v29 }
 0x608   : > { %v3167_v13 = vpack.c.bf16 %v3135_v4, %v3135_v4  ;;  %7665 = vrcp.f32 %v3066_v22 }
 0x609   : > { %7667 = vrcp.f32 %v3075_v10  ;;  %v3160_v19 = vpack.c.bf16 %v3128_v26, %v3128_v26 }
 0x60a   : > { %v3431_v52 = vunpack.c.l.b16 %v3167_v13  ;;  %7669 = vrcp.f32 %v3057_v53  ;;  %v11875_v53 = vld [vmem:[#allocation16_spill] sm:$0xff] }
 0x60b   : > { %4973 = vrot.lane.b32.xlu2 %v8789_v16, %s8195_s27  ;;  %v3355_v22 = vunpack.c.l.b16 %v3160_v19  ;;  %v11960_v16 = vld [vmem:[#allocation72_spill] sm:$0xff] }
 0x60c   : > { %v3432_v41 = vpack.c.b16 %v3431_v52, %v3430_v44 }
 0x60d   : > { %v7664_v37 = vpop.eup %7663  ;;  %v3081_v10 = vpop.xlane.xlu0 %3080 }
 0x60e   : > { %v3069_v20 = vpop.xlane.xlu2 %3068  ;;  %v3129_v56 = vmul.f32 %v7664_v37, %v9752_v42  ;;  %7120 = vmatmul.msk.bf16.vlgmr.msra.gmra.mxu0 %vm1528_vm1, %v3432_v41  ;;  %v7666_v29 = vpop.eup %7665 }
 0x60f   : > { %3809 = vmatpush.bf16.msra.mxu0 %v7335_v34  ;;  %7671 = vrcp.f32 %v3069_v20  ;;  %v3140_v24 = vmul.f32 %v7666_v29, %v9700_v12  ;;  %v7668_v42 = vpop.eup %7667  ;;  %v2719_v34 = vpop.f32.mrf.mxu2  ;;  %v11874_v12 = vld [vmem:[#allocation115_spill] sm:$0xff] }
 0x610   : > { %v3161_v5 = vpack.c.bf16 %v3129_v56, %v3129_v56  ;;  %7673 = vrcp.f32 %v3054_v33  ;;  %v7670_v63 = vpop.eup %7669  ;;  %v3143_v13 = vmul.f32 %v7668_v42, %v9730_v25  ;;  %v3078_v20 = vpop.xlane.xlu1 %3077 }
 0x611   : > { %v3172_v0 = vpack.c.bf16 %v3140_v24, %v3140_v24  ;;  %v3137_v18 = vmul.f32 %v7670_v63, %v9754_v2 }
 0x612   : > { %v3356_v45 = vunpack.c.l.b16 %v3161_v5  ;;  %v3175_v2 = vpack.c.bf16 %v3143_v13, %v3143_v13  ;;  %v2365_v13 = vpack.c.bf16 %v9389_v49, %v9380_v30  ;;  %v11882_v30 = vld [vmem:[#allocation20_spill] sm:$0xff]  ;;  %v2366_v49 = vpack.c.bf16 %v9491_v3, %v9480_v48  ;;  %v11886_v3 = vld [vmem:[#allocation19_spill] sm:$0xff] }
 0x613   : > { %5023 = vrot.lane.b32.xlu2 %v9296_v47, %s8195_s27  ;;  %3810 = vmatpush.bf16.msra.mxu0 %v7334_v59  ;;  %v9851_v59 = vadd.f32 %v2719_v34, %v2403_v9  ;;  %v3505_v52 = vunpack.c.l.b16 %v3172_v0  ;;  %v11878_v34 = vld [vmem:[#allocation54_spill] sm:$0xff] }
 0x614   : > { %v3357_v15 = vpack.c.b16 %v3356_v45, %v3355_v22  ;;  %v3531_v45 = vunpack.c.l.b16 %v3175_v2  ;;  %v11885_v2 = vld [vmem:[#allocation57_spill] sm:$0xff] }
 0x615   : > { %v7672_v57 = vpop.eup %7671  ;;  %v2869_v25 = vsel %vm1528_vm1, %v9851_v59, -inf }
 0x616   : > { %v3072_v38 = vpop.xlane.xlu2 %3071  ;;  %7117 = vmatmul.msk.bf16.vlgmr.msra.gmra.mxu1 %vm1528_vm1, %v3357_v15  ;;  %v7674_v33 = vpop.eup %7673  ;;  %v3141_v4 = vmul.f32 %v7672_v57, %v9761_v17  ;;  %v3169_v17 = vpack.c.bf16 %v3137_v18, %v3137_v18  ;;  %v11877_v57 = vld [vmem:[#allocation79_spill] sm:$0xff] }
 0x617   : > { %7675 = vrcp.f32 %v3072_v38  ;;  %3571 = vmatpush.bf16.msra.mxu1 %v11874_v12  ;;  %v3136_v26 = vmul.f32 %v7674_v33, %v9743_v31  ;;  %v3933_v9 = vsel %vm1057_vm0, %v11877_v57, 0  ;;  %v3957_v33 = vsel %vm1057_vm0, %v11878_v34, 0  ;;  %v11894_v57 = vld [vmem:[#allocation95_spill] sm:$0xff] }
 0x618   : > { %7677 = vpow2.f32 %v2940_v7  ;;  %v3173_v44 = vpack.c.bf16 %v3141_v4, %v3141_v4  ;;  %v3456_v5 = vunpack.c.l.b16 %v3169_v17  ;;  %v11884_v17 = vld [vmem:[#allocation81_spill] sm:$0xff] }
 0x619   : > { %v3168_v31 = vpack.c.bf16 %v3136_v26, %v3136_v26  ;;  %7679 = vrcp.f32 %v3081_v10 }
 0x61a   : > { %v3506_v41 = vunpack.c.l.b16 %v3173_v44  ;;  %7681 = vrcp.f32 %v3078_v20  ;;  %v4053_v20 = vsel %vm1057_vm0, %v11884_v17, 0 }
 0x61b   : > { %5323 = vrot.lane.b32.xlu2 %v11875_v53, %s8197_s14  ;;  %v3455_v24 = vunpack.c.l.b16 %v3168_v31  ;;  %v11881_v53 = vld [vmem:[#allocation91_spill] sm:$0xff]  ;;  %v11889_v31 = vld [vmem:[#allocation100_spill] sm:$0xff] }
 0x61c   : > { %v3507_v56 = vpack.c.b16 %v3506_v41, %v3505_v52  ;;  %v11879_v52 = vld [vmem:[#allocation17_spill] sm:$0xff] }
 0x61d   : > { %v7676_v37 = vpop.eup %7675  ;;  %v3457_v63 = vpack.c.b16 %v3456_v5, %v3455_v24  ;;  %v11893_v24 = vld [vmem:[#allocation103_spill] sm:$0xff] }
 0x61e   : > { %v9857_v19 = vpop.eup %7677  ;;  %v3142_v39 = vmul.f32 %v7676_v37, %v9773_v1  ;;  %2870 = vmax.xlane.f32.xlu0 %v2869_v25  ;;  %7123 = vmatmul.msk.bf16.vlgmr.msrb.gmra.mxu3 %vm1528_vm1, %v3507_v56  ;;  %v11876_v1 = vld [vmem:[#allocation26_spill] sm:$0xff]  ;;  %v4005_v37 = vsel %vm1057_vm0, %v11881_v53, 0  ;;  %v11888_v25 = vld [vmem:[#allocation93_spill] sm:$0xff] }
 0x61f   : > { %v3013_v22 = vsel %vm1528_vm1, %v9857_v19, 0.0  ;;  %v7680_v15 = vpop.eup %7679 }
 0x620   : > { %v3174_v29 = vpack.c.bf16 %v3142_v39, %v3142_v39  ;;  %v7682_v38 = vpop.eup %7681  ;;  %v3145_v0 = vmul.f32 %v7680_v15, %v9763_v35  ;;  %v2361_v35 = vpack.c.bf16 %v9441_v62, %v9429_v14  ;;  %v11883_v14 = vld [vmem:[#allocation25_spill] sm:$0xff]  ;;  %v2362_v62 = vpack.c.bf16 %v9468_v23, %v9460_v32  ;;  %v11887_v39 = vld [vmem:[#allocation22_spill] sm:$0xff]  ;;  %v9937_v15 = vpop.permute.xlu2 %4798 }
 0x621   : > { %3014 = vadd.xlane.f32.xlu1 %v3013_v22  ;;  %v3144_v4 = vmul.f32 %v7682_v38, %v9765_v27  ;;  %v11880_v27 = vld [vmem:[#allocation84_spill] sm:$0xff]  ;;  %v2367_v32 = vpack.c.bf16 %v9493_v11, %v9484_v50  ;;  %v9927_v50 = vpop.permute.xlu0 %4848 }
 0x622   : > { %v3530_v7 = vunpack.c.l.b16 %v3174_v29  ;;  %v3177_v12 = vpack.c.bf16 %v3145_v0, %v3145_v0  ;;  %v3981_v41 = vsel %vm1057_vm0, %v11880_v27, 0  ;;  %v2363_v29 = vpack.c.bf16 %v11889_v31, %v11888_v25  ;;  %v11890_v22 = vld [vmem:[#allocation80_spill] sm:$0xff] }
 0x623   : > { %5397 = vrot.lane.b32.xlu2 %v11876_v1, %s8197_s14  ;;  %v3176_v18 = vpack.c.bf16 %v3144_v4, %v3144_v4  ;;  %v11912_v31 = vld [vmem:[#allocation88_spill] sm:$0xff] }
 0x624   : > { %v3532_v42 = vpack.c.b16 %v3531_v45, %v3530_v7  ;;  %v3556_v44 = vunpack.c.l.b16 %v3177_v12  ;;  %v4101_v45 = vsel %vm1057_vm0, %v11890_v22, 0  ;;  %v11891_v7 = vld [vmem:[#allocation70_spill] sm:$0xff]  ;;  %v11897_v12 = vld [vmem:[#allocation77_spill] sm:$0xff] }
 0x625   : > { %v3555_v26 = vunpack.c.l.b16 %v3176_v18  ;;  %v11913_v22 = vld [vmem:[#allocation62_spill] sm:$0xff] }
 0x626   : > { %7124 = vmatmul.msk.bf16.vlgmr.msrb.gmra.mxu0 %vm1528_vm1, %v3532_v42  ;;  %7121 = vmatmul.msk.bf16.vlgmr.msrb.gmra.mxu1 %vm1528_vm1, %v3457_v63  ;;  %v9908_v48 = vpop.permute.xlu1 %4823 }
 0x627   : > { %3942 = vmatpush.bf16.xpose.msrb.mxu0 %v3933_v9  ;;  %3966 = vmatpush.bf16.xpose.msrb.mxu1 %v3957_v33  ;;  %v3557_v10 = vpack.c.b16 %v3556_v44, %v3555_v26  ;;  %v11895_v9 = vld [vmem:[#allocation105_spill] sm:$0xff]  ;;  %v11896_v33 = vld [vmem:[#allocation42_spill] sm:$0xff]  ;;  %v11900_v26 = vld [vmem:[#allocation119_spill] sm:$0xff] }
 0x628   : > { %v2364_v34 = vpack.c.bf16 %v11895_v9, %v11894_v57  ;;  %v4149_v0 = vsel %vm1057_vm0, %v11896_v33, 0  ;;  %v9948_v18 = vpop.permute.xlu2 %4873  ;;  %v11920_v57 = vld [vmem:[#allocation101_spill] sm:$0xff] }
 0x62b   : > { %5073 = vrot.lane.b32.xlu2 %v11778_v43, %s8195_s27 }
 0x62e   : > { %7162 = vmatmul.msk.bf16.vlgmr.msra.gmra.mxu3 %vm1057_vm0, %v2365_v13 }
 0x632   : > { %5325 = vrot.lane.b32.xlu0 %v11879_v52, %s8197_s14 }
 0x636   : > { %7158 = vmatmul.msk.bf16.vlgmr.msra.gmra.mxu0 %vm1057_vm0, %v2361_v35  ;;  %7125 = vmatmul.msk.bf16.vlgmr.msra.gmra.mxu1 %vm1528_vm1, %v3557_v10  ;;  %v9959_v10 = vpop.permute.xlu2 %4898 }
 0x637   : > { %3990 = vmatpush.bf16.xpose.msra.mxu0 %v3981_v41  ;;  %4014 = vmatpush.bf16.xpose.msra.mxu1 %v4005_v37  ;;  %v11901_v41 = vld [vmem:[#allocation76_spill] sm:$0xff]  ;;  %v11902_v37 = vld [vmem:[#allocation61_spill] sm:$0xff] }
 0x638   : > { %v4029_v53 = vsel %vm1057_vm0, %v11901_v41, 0  ;;  %v11926_v41 = vld [vmem:[#allocation78_spill] sm:$0xff] }
 0x63a   : > { %3283 = vrot.lane.b32.xlu1 %v11868_v61, %s8196_s8  ;;  %5349 = vrot.lane.b32.xlu0 %v11882_v30, %s8197_s14 }
 0x63e   : > { %7163 = vmatmul.msk.bf16.gmra.mxu3 %vm1057_vm0, %v2366_v49 }
 0x63f   : > { %v9950_v13 = vpop.f32.mrf.mxu3 }
 0x642   : > { %4998 = vrot.lane.b32.xlu1 %v9172_v51, %s8195_s27  ;;  %5395 = vrot.lane.b32.xlu0 %v11883_v14, %s8197_s14  ;;  %v11904_v14 = vld [vmem:[#allocation33_spill] sm:$0xff] }
 0x646   : > { %7159 = vmatmul.msk.bf16.gmra.mxu0 %vm1057_vm0, %v2362_v62  ;;  %7175 = vmatmul.msk.bf16.vlgmr.msrb.gmra.mxu1 %vm1057_vm0, %v11885_v2  ;;  %v11905_v62 = vld [vmem:[#allocation120_spill] sm:$0xff] }
 0x647   : > { %4062 = vmatpush.bf16.xpose.msrb.mxu1 %v4053_v20  ;;  %v9967_v30 = vpop.f32.mrf.mxu3  ;;  %v4197_v17 = vsel %vm1057_vm0, %v11905_v62, 0  ;;  %v11906_v20 = vld [vmem:[#allocation92_spill] sm:$0xff] }
 0x648   : > { %v11928_v62 = vld [vmem:[#allocation64_spill] sm:$0xff] }
 0x64a   : > { %5048 = vrot.lane.b32.xlu1 %v8906_v21, %s8195_s27  ;;  %5347 = vrot.lane.b32.xlu0 %v11886_v3, %s8197_s14  ;;  %v9952_v44 = vpop.f32.mrf.mxu0  ;;  %v11907_v3 = vld [vmem:[#allocation75_spill] sm:$0xff]  ;;  %s8125_s27 = scalar_lea.hbm %s8124_s30, 256 }
 0x64b   : > { %v2847_v63 = vpop.xlane.xlu0 %2846  ;;  %11898 = vst [vmem:[#allocation102_spill] sm:$0xff] %v9952_v44  ;;  %p8126_p1 = scmp.ne.s32.totalorder %s8124_s30, %s8125_s27  ;;  %p8131_p9 = scmp.lt.s32.totalorder %s8129_s15, %s8125_s27 }
 0x64c   : > { %v2907_v38 = vsub.f32 %v9802_v55, %v2847_v63  ;;  %v11899_v55 = vld [vmem:[#allocation118_spill] sm:$0xff] }
 0x64d   : > { %v2369_v52 = vpack.c.bf16 %v11900_v26, %v11899_v55  ;;  %p8127_p4 = pnand %p8126_p1, %p8325_p5  ;;  %p8132_p2 = por %p8131_p9, %p8130_p11 }
 0x64e   : > { %7164 = vmatmul.msk.bf16.gmra.mxu3 %vm1057_vm0, %v2367_v32  ;;  %v2956_v4 = vmul.f32 1.442695, %v2907_v38  ;;  %v11908_v32 = vld [vmem:[#allocation106_spill] sm:$0xff]  ;;  %v11919_v38 = vld [vmem:[#allocation109_spill] sm:$0xff] }
 0x64f   : > { %v2371_v9 = vpack.c.bf16 %v11920_v57, %v11919_v38  ;;  %p8128_p8 = pneg %p8127_p4 }
 0x651   : > { %v2844_v23 = vpop.xlane.xlu1 %2843  ;;  %p8133_p10 = pnand %p8132_p2, %p8128_p8 }
 0x652   : > { %v2906_v56 = vsub.f32 %v9808_v28, %v2844_v23  ;;  %5373 = vrot.lane.b32.xlu0 %v11887_v39, %s8197_s14  ;;  %v11892_v28 = vld [vmem:[#allocation90_spill] sm:$0xff]  ;;  %v9969_v49 = vpop.f32.mrf.mxu0  ;;  %v2370_v23 = vpack.c.bf16 %v11908_v32, %v11907_v3 }
 0x653   : > { %v2368_v42 = vpack.c.bf16 %v11893_v24, %v11892_v28  ;;  %11903 = vst [vmem:[#allocation117_spill] sm:$0xff] %v9969_v49  ;;  %v11915_v28 = vld [vmem:[#allocation82_spill] sm:$0xff]  ;;  %v3012_v63 = vpop.xlane.xlu0 %3011 }
 0x654   : > { %v2954_v5 = vmul.f32 1.442695, %v2906_v56 }
 0x656   : > { %7160 = vmatmul.msk.bf16.gmra.mxu0 %vm1057_vm0, %v2363_v29  ;;  %7683 = vpow2.f32 %v2954_v5  ;;  %7177 = vmatmul.msk.bf16.vlgmr.msra.gmra.mxu1 %vm1057_vm0, %v11891_v7  ;;  %v4077_v29 = vsel %vm1057_vm0, %v11912_v31, 0  ;;  %v11932_v31 = vld [vmem:[#allocation107_spill] sm:$0xff] }
 0x657   : > { %4110 = vmatpush.bf16.xpose.msra.mxu1 %v4101_v45  ;;  %7685 = vpow2.f32 %v2956_v4  ;;  %v11914_v45 = vld [vmem:[#allocation98_spill] sm:$0xff] }
 0x658   : > { %v9981_v56 = vpop.f32.mrf.mxu3  ;;  %v4245_v7 = vsel %vm1057_vm0, %v11914_v45, 0 }
 0x659   : > { %11909 = vst [vmem:[#allocation108_spill] sm:$0xff] %v9981_v56 }
 0x65a   : > { %3383 = vrot.lane.b32.xlu0 %v11870_v46, %s8196_s8  ;;  %v11963_v46 = vld [vmem:[#allocation110_spill] sm:$0xff] }
 0x65c   : > { %v9931_v11 = vpop.eup %7683 }
 0x65d   : > { %v3034_v1 = vsel %vm1528_vm1, %v9931_v11, 0.0  ;;  %v9957_v35 = vpop.eup %7685 }
 0x65e   : > { %3035 = vadd.xlane.f32.xlu2 %v3034_v1  ;;  %7165 = vmatmul.msk.bf16.gmra.mxu3 %vm1057_vm0, %v2368_v42  ;;  %v3037_v27 = vsel %vm1528_vm1, %v9957_v35, 0.0 }
 0x660   : > { %v9998_v24 = vpop.f32.mrf.mxu3 }
 0x661   : > { %11916 = vst [vmem:[#allocation26_spill] sm:$0xff] %v9998_v24 }
 0x666   : > { %7161 = vmatmul.msk.bf16.gmra.mxu0 %vm1057_vm0, %v2364_v34  ;;  %7179 = vmatmul.msk.bf16.vlgmr.msrb.gmra.mxu1 %vm1057_vm0, %v11897_v12  ;;  %v9977_v2 = vpop.xlane.xlu2 %2867  ;;  %v11921_v34 = vld [vmem:[#allocation28_spill] sm:$0xff]  ;;  %v10019_v26 = vpop.permute.xlu0 %4948 }
 0x667   : > { %4158 = vmatpush.bf16.xpose.msrb.mxu1 %v4149_v0 }
 0x669   : > { %v10008_v33 = vpop.permute.xlu1 %4923 }
 0x66e   : > { %7166 = vmatmul.msk.bf16.gmra.mxu3 %vm1057_vm0, %v2369_v52  ;;  %v9990_v5 = vpop.permute.xlu2 %4973  ;;  %v11925_v52 = vld [vmem:[#allocation83_spill] sm:$0xff] }
 0x672   : > { %v9983_v39 = vpop.f32.mrf.mxu0 }
 0x673   : > { %11910 = vst [vmem:[#allocation115_spill] sm:$0xff] %v9983_v39  ;;  %v9986_v25 = vpop.f32.mrf.mxu1 }
 0x674   : > { %3038 = vadd.xlane.f32.xlu1 %v3037_v27  ;;  %11911 = vst [vmem:[#allocation16_spill] sm:$0xff] %v9986_v25  ;;  %v4125_v27 = vsel %vm1057_vm0, %v11925_v52, 0 }
 0x676   : > { %7174 = vmatmul.msk.bf16.vlgmr.msrb.gmra.mxu0 %vm1057_vm0, %v11902_v37  ;;  %5469 = vrot.lane.b32.xlu2 %v11904_v14, %s8197_s14  ;;  %v10010_v0 = vpop.permute.xlu2 %5023  ;;  %v11927_v37 = vld [vmem:[#allocation68_spill] sm:$0xff] }
 0x677   : > { %4038 = vmatpush.bf16.xpose.msrb.mxu0 %v4029_v53  ;;  %7181 = vmatmul.msk.bf16.vlgmr.msra.gmra.mxu1 %vm1057_vm0, %v11906_v20  ;;  %v4293_v14 = vsel %vm1057_vm0, %v11927_v37, 0  ;;  %v11938_v37 = vld [vmem:[#allocation99_spill] sm:$0xff] }
 0x678   : > { %4206 = vmatpush.bf16.xpose.msra.mxu1 %v4197_v17 }
 0x67a   : > { %v10000_v42 = vpop.f32.mrf.mxu0 }
 0x67b   : > { %11917 = vst [vmem:[#allocation79_spill] sm:$0xff] %v10000_v42  ;;  %v10002_v1 = vpop.f32.mrf.mxu1 }
 0x67c   : > { %11918 = vst [vmem:[#allocation54_spill] sm:$0xff] %v10002_v1 }
 0x67e   : > { %7167 = vmatmul.msk.bf16.gmra.mxu3 %vm1057_vm0, %v2370_v23  ;;  %v10029_v17 = vpop.permute.xlu2 %5323 }
 0x680   : > { %v10013_v4 = vpop.f32.mrf.mxu3 }
 0x681   : > { %11922 = vst [vmem:[#allocation17_spill] sm:$0xff] %v10013_v4 }
 0x686   : > { %7176 = vmatmul.msk.bf16.vlgmr.msra.gmra.mxu0 %vm1057_vm0, %v11913_v22 }
 0x687   : > { %4086 = vmatpush.bf16.xpose.msra.mxu0 %v4077_v29  ;;  %7183 = vmatmul.msk.bf16.vlgmr.msrb.gmra.mxu1 %vm1057_vm0, %v11915_v28  ;;  %v11933_v29 = vld [vmem:[#allocation74_spill] sm:$0xff] }
 0x688   : > { %4254 = vmatpush.bf16.xpose.msrb.mxu1 %v4245_v7  ;;  %v10031_v20 = vpop.f32.mrf.mxu3  ;;  %v2372_v22 = vpack.c.bf16 %v11933_v29, %v11932_v31 }
 0x689   : > { %11929 = vst [vmem:[#allocation20_spill] sm:$0xff] %v10031_v20 }
 0x68b   : > { %v10015_v12 = vpop.f32.mrf.mxu0 }
 0x68c   : > { %11923 = vst [vmem:[#allocation84_spill] sm:$0xff] %v10015_v12 }
 0x68d   : > { %5421 = vrot.lane.b32.xlu1 %v11921_v34, %s8197_s14 }
 0x68e   : > { %7168 = vmatmul.msk.bf16.gmra.mxu3 %vm1057_vm0, %v2371_v9  ;;  %v5398_v9 = vpop.permute.xlu2 %5397 }
 0x691   : > { %v10037_v23 = vpop.xlane.xlu0 %2870 }
 0x693   : > { %v10017_v55 = vpop.f32.mrf.mxu1  ;;  %v10033_v3 = vpop.f32.mrf.mxu0 }
 0x694   : > { %11924 = vst [vmem:[#allocation91_spill] sm:$0xff] %v10017_v55  ;;  %v3015_v53 = vpop.xlane.xlu1 %3014 }
 0x695   : > { %7687 = vrcp.f32 %v3015_v53  ;;  %11930 = vst [vmem:[#allocation25_spill] sm:$0xff] %v10033_v3 }
 0x696   : > { %7178 = vmatmul.msk.bf16.vlgmr.msrb.gmra.mxu0 %vm1057_vm0, %v11926_v41  ;;  %7689 = vrcp.f32 %v3012_v63 }
 0x697   : > { %4134 = vmatpush.bf16.xpose.msrb.mxu0 %v4125_v27  ;;  %7185 = vmatmul.msk.bf16.vlgmr.msra.gmra.mxu1 %vm1057_vm0, %v11928_v62  ;;  %v11937_v27 = vld [vmem:[#allocation113_spill] sm:$0xff]  ;;  %v11939_v62 = vld [vmem:[#allocation114_spill] sm:$0xff] }
 0x698   : > { %4302 = vmatpush.bf16.xpose.msra.mxu1 %v4293_v14  ;;  %v4173_v41 = vsel %vm1057_vm0, %v11937_v27, 0 }
 0x69b   : > { %v10035_v32 = vpop.f32.mrf.mxu1  ;;  %v7688_v45 = vpop.eup %7687 }
 0x69c   : > { %11931 = vst [vmem:[#allocation81_spill] sm:$0xff] %v10035_v32  ;;  %v7690_v7 = vpop.eup %7689  ;;  %v3123_v28 = vmul.f32 %v7688_v45, %v9857_v19  ;;  %v5403_v19 = vsel %vm1057_vm0, %v5398_v9, 0 }
 0x69d   : > { %v3122_v63 = vmul.f32 %v7690_v7, %v9810_v40  ;;  %v11940_v40 = vld [vmem:[#allocation85_spill] sm:$0xff]  ;;  %v11950_v7 = vld [vmem:[#allocation96_spill] sm:$0xff] }
 0x69e   : > { %7169 = vmatmul.msk.bf16.gmra.mxu3 %vm1057_vm0, %v2372_v22  ;;  %v3155_v14 = vpack.c.bf16 %v3123_v28, %v3123_v28  ;;  %v11949_v28 = vld [vmem:[#allocation112_spill] sm:$0xff] }
 0x69f   : > { %v3154_v31 = vpack.c.bf16 %v3122_v63, %v3122_v63  ;;  %v11945_v63 = vld [vmem:[#allocation67_spill] sm:$0xff] }
 0x6a0   : > { %v3281_v29 = vunpack.c.l.b16 %v3155_v14 }
 0x6a1   : > { %v10043_v38 = vpop.f32.mrf.mxu3  ;;  %v3280_v9 = vunpack.c.l.b16 %v3154_v31  ;;  %v4221_v31 = vsel %vm1057_vm0, %v11949_v28, 0  ;;  %v3895_v28 = vld [vmem:[#allocation8 + $0x210] sm:$0xff] }
 0x6a2   : > { %11934 = vst [vmem:[#allocation57_spill] sm:$0xff] %v10043_v38 }
 0x6a3   : > { %v10045_v57 = vpop.f32.mrf.mxu0  ;;  %v10047_v34 = vpop.f32.mrf.mxu1 }
 0x6a4   : > { %11935 = vst [vmem:[#allocation19_spill] sm:$0xff] %v10045_v57  ;;  %v5326_v52 = vpop.permute.xlu0 %5325 }
 0x6a5   : > { %11936 = vst [vmem:[#allocation22_spill] sm:$0xff] %v10047_v34  ;;  %v5331_v53 = vsel %vm1057_vm0, %v5326_v52, 0 }
 0x6a6   : > { %7180 = vmatmul.msk.bf16.vlgmr.msra.gmra.mxu0 %vm1057_vm0, %v11938_v37  ;;  %5340 = vmatpush.bf16.xpose.msrb.mxu3 %v5331_v53  ;;  %v11946_v53 = vld [vmem:[#allocation71_spill] sm:$0xff] }
 0x6a7   : > { %4182 = vmatpush.bf16.xpose.msra.mxu0 %v4173_v41  ;;  %7187 = vmatmul.msk.bf16.vlgmr.msrb.gmra.mxu1 %vm1057_vm0, %v11939_v62  ;;  %v2373_v37 = vpack.c.bf16 %v11946_v53, %v11945_v63  ;;  %v11951_v63 = vld [vmem:[#allocation59_spill] sm:$0xff] }
 0x6a8   : > { %4736 = vmatpush.bf16.msrb.mxu1 %v11940_v40 }
 0x6a9   : > { %v10059_v22 = vpop.f32.mrf.mxu3 }
 0x6aa   : > { %11941 = vst [vmem:[#allocation93_spill] sm:$0xff] %v10059_v22 }
 0x6ab   : > { %v10061_v45 = vpop.f32.mrf.mxu0  ;;  %v10065_v52 = vpop.f32.mrf.mxu1 }
 0x6ac   : > { %11942 = vst [vmem:[#allocation100_spill] sm:$0xff] %v10061_v45  ;;  %v3284_v27 = vpop.permute.xlu1 %3283  ;;  %v10069_v41 = vpop.permute.xlu0 %5349 }
 0x6ad   : > { %11943 = vst [vmem:[#allocation80_spill] sm:$0xff] %v10065_v52  ;;  %3296 = vmatpush.bf16.msrb.mxu2 %v3284_v27 }
 0x6ae   : > { %5412 = vmatpush.bf16.xpose.msra.mxu3 %v5403_v19  ;;  %11944 = vst [vmem:[#allocation70_spill] sm:$0xff] %v10069_v41  ;;  %v3282_v19 = vpack.c.b16 %v3281_v29, %v3280_v9  ;;  %v11952_v29 = vld [vmem:[#allocation124_spill] sm:$0xff] }
 0x6af   : > { %7170 = vmatmul.msk.bf16.gmra.mxu3 %vm1057_vm0, %v2373_v37  ;;  %v11956_v37 = vld [vmem:[#allocation87_spill] sm:$0xff] }
 0x6b0   : > { %7114 = vmatmul.msk.bf16.vlgmr.msrb.gmra.mxu2 %vm1528_vm1, %v3282_v19  ;;  %v11957_v19 = vld [vmem:[#allocation73_spill] sm:$0xff] }
 0x6b1   : > { %v2374_v47 = vpack.c.bf16 %v11957_v19, %v11956_v37  ;;  %v10142_v36 = vpop.f32.mrf.mxu3 }
 0x6b2   : > { %11971 = vst [vmem:[#allocation33_spill] sm:$0xff] %v10142_v36 }
 0x6b3   : > { %v10075_v14 = vpop.f32.mrf.mxu0  ;;  %v10077_v62 = vpop.f32.mrf.mxu1 }
 0x6b4   : > { %11947 = vst [vmem:[#allocation90_spill] sm:$0xff] %v10075_v14  ;;  %v10079_v40 = vpop.permute.xlu0 %5395 }
 0x6b5   : > { %11948 = vst [vmem:[#allocation103_spill] sm:$0xff] %v10077_v62 }
 0x6b6   : > { %7182 = vmatmul.msk.bf16.vlgmr.msrb.gmra.mxu0 %vm1057_vm0, %v11950_v7 }
 0x6b7   : > { %4230 = vmatpush.bf16.xpose.msrb.mxu0 %v4221_v31  ;;  %7189 = vmatmul.msk.bf16.vlgmr.msra.gmra.mxu1 %vm1057_vm0, %v11951_v63 }
 0x6b8   : > { %4786 = vmatpush.bf16.msra.mxu1 %v11952_v29  ;;  %v11959_v29 = vld [vmem:[#allocation52_spill] sm:$0xff] }
 0x6b9   : > { %v4269_v21 = vsel %vm1057_vm0, %v11959_v29, 0 }
 0x6bb   : > { %v10088_v9 = vpop.f32.mrf.mxu0  ;;  %v10090_v27 = vpop.f32.mrf.mxu1 }
 0x6bc   : > { %11953 = vst [vmem:[#allocation95_spill] sm:$0xff] %v10088_v9  ;;  %v10092_v53 = vpop.permute.xlu0 %5347 }
 0x6bd   : > { %11954 = vst [vmem:[#allocation105_spill] sm:$0xff] %v10090_v27 }
 0x6be   : > { %11955 = vst [vmem:[#allocation42_spill] sm:$0xff] %v10092_v53 }
 0x6bf   : > { %7171 = vmatmul.msk.bf16.gmra.mxu3 %vm1057_vm0, %v2374_v47  ;;  %v3896_v47 = vld [vmem:[#allocation8 + $0x218] sm:$0xff] }
 0x6c3   : > { %v10097_v43 = vpop.f32.mrf.mxu0  ;;  %v3968_v7 = vpop.f32.mrf.mxu1 }
 0x6c4   : > { %11958 = vst [vmem:[#allocation77_spill] sm:$0xff] %v10097_v43  ;;  %v10099_v31 = vadd.f32 %v3968_v7, %v3895_v28  ;;  %v10101_v63 = vpop.permute.xlu0 %5373  ;;  %v11962_v7 = vld [vmem:[#allocation116_spill] sm:$0xff] }
 0x6c5   : > { %v2375_v43 = vpack.c.bf16 %v11963_v46, %v11962_v7 }
 0x6c6   : > { %7184 = vmatmul.msk.bf16.vlgmr.msra.gmra.mxu0 %vm1057_vm0, %v11960_v16  ;;  %v4315_v37 = vsel %vm1528_vm1, %v10099_v31, -inf  ;;  %v3899_v16 = vld [vmem:[#allocation8 + $0x230] sm:$0xff] }
 0x6c7   : > { %4278 = vmatpush.bf16.xpose.msra.mxu0 %v4269_v21  ;;  %4316 = vmax.xlane.f32.xlu2 %v4315_v37 }
 0x6cb   : > { %v10109_v19 = vpop.f32.mrf.mxu0  ;;  %v3970_v54 = vpop.f32.mrf.mxu1 }
 0x6cc   : > { %11961 = vst [vmem:[#allocation118_spill] sm:$0xff] %v10109_v19  ;;  %v10111_v8 = vadd.f32 %v3970_v54, %v3896_v47  ;;  %v3384_v28 = vpop.permute.xlu0 %3383  ;;  %v10122_v19 = vpop.permute.xlu1 %4998  ;;  %v11965_v54 = vld [vmem:[#allocation66_spill] sm:$0xff]  ;;  %v11966_v47 = vld [vmem:[#allocation123_spill] sm:$0xff] }
 0x6cd   : > { %3396 = vmatpush.bf16.msra.mxu2 %v3384_v28  ;;  %v10129_v28 = vpop.permute.xlu2 %5073 }
 0x6ce   : > { %v4318_v29 = vsel %vm1528_vm1, %v10111_v8, -inf }
 0x6cf   : > { %7172 = vmatmul.msk.bf16.gmra.mxu3 %vm1057_vm0, %v2375_v43  ;;  %4319 = vmax.xlane.f32.xlu2 %v4318_v29  ;;  %v3900_v43 = vld [vmem:[#allocation8 + $0x238] sm:$0xff] }
 0x6d3   : > { %v10118_v21 = vpop.f32.mrf.mxu0  ;;  %v4016_v37 = vpop.f32.mrf.mxu1 }
 0x6d4   : > { %11964 = vst [vmem:[#allocation119_spill] sm:$0xff] %v10118_v21  ;;  %v10120_v9 = vadd.f32 %v4016_v37, %v3899_v16  ;;  %v11968_v16 = vld [vmem:[#allocation111_spill] sm:$0xff]  ;;  %v11969_v37 = vld [vmem:[#allocation104_spill] sm:$0xff]  ;;  %v10139_v61 = vpop.permute.xlu1 %5048 }
 0x6d5   : > { %v2376_v14 = vpack.c.bf16 %v11969_v37, %v11968_v16  ;;  %11970 = vst [vmem:[#allocation61_spill] sm:$0xff] %v10139_v61  ;;  %v11974_v16 = vld [vmem:[#allocation125_spill] sm:$0xff] }
 0x6d6   : > { %7186 = vmatmul.msk.bf16.vlgmr.msrb.gmra.mxu0 %vm1057_vm0, %v11965_v54  ;;  %v4327_v46 = vsel %vm1528_vm1, %v10120_v9, -inf }
 0x6d7   : > { %4711 = vmatpush.bf16.msrb.mxu0 %v11966_v47  ;;  %4328 = vmax.xlane.f32.xlu2 %v4327_v46  ;;  %v3036_v47 = vpop.xlane.xlu2 %3035  ;;  %v3903_v46 = vld [vmem:[#allocation8 + $0x250] sm:$0xff] }
 0x6d8   : > { %7691 = vrcp.f32 %v3036_v47  ;;  %v10155_v47 = vpop.f32.mrf.mxu3 }
 0x6d9   : > { %11976 = vst [vmem:[#allocation75_spill] sm:$0xff] %v10155_v47  ;;  %v3893_v47 = vld [vmem:[#allocation8 + $0x200] sm:$0xff] }
 0x6db   : > { %v10131_v7 = vpop.f32.mrf.mxu0  ;;  %v4018_v29 = vpop.f32.mrf.mxu1 }
 0x6dc   : > { %11967 = vst [vmem:[#allocation76_spill] sm:$0xff] %v10131_v7  ;;  %v10133_v21 = vadd.f32 %v4018_v29, %v3900_v43 }
 0x6de   : > { %v4330_v54 = vsel %vm1528_vm1, %v10133_v21, -inf }
 0x6df   : > { %7173 = vmatmul.msk.bf16.gmra.mxu3 %vm1057_vm0, %v2376_v14  ;;  %4331 = vmax.xlane.f32.xlu2 %v4330_v54  ;;  %v7692_v14 = vpop.eup %7691  ;;  %v3904_v54 = vld [vmem:[#allocation8 + $0x258] sm:$0xff] }
 0x6e0   : > { %v10168_v22 = vpop.f32.mrf.mxu3 }
 0x6e1   : > { %11977 = vst [vmem:[#allocation106_spill] sm:$0xff] %v10168_v22 }
 0x6e3   : > { %v10144_v7 = vpop.f32.mrf.mxu0  ;;  %v4064_v43 = vpop.f32.mrf.mxu1 }
 0x6e4   : > { %11972 = vst [vmem:[#allocation120_spill] sm:$0xff] %v10144_v7  ;;  %v10146_v29 = vadd.f32 %v4064_v43, %v3903_v46  ;;  %v3130_v46 = vmul.f32 %v7692_v14, %v9931_v11  ;;  %v5470_v7 = vpop.permute.xlu2 %5469 }
 0x6e6   : > { %7188 = vmatmul.msk.bf16.vlgmr.msra.gmra.mxu0 %vm1057_vm0, %v11973_v6  ;;  %v4339_v37 = vsel %vm1528_vm1, %v10146_v29, -inf  ;;  %v3162_v57 = vpack.c.bf16 %v3130_v46, %v3130_v46 }
 0x6e7   : > { %4761 = vmatpush.bf16.msra.mxu0 %v11974_v16  ;;  %v3039_v27 = vpop.xlane.xlu1 %3038  ;;  %4340 = vmax.xlane.f32.xlu1 %v4339_v37  ;;  %v5475_v37 = vsel %vm1057_vm0, %v5470_v7, 0 }
 0x6e8   : > { %7693 = vrcp.f32 %v3039_v27 }
 0x6eb   : > { %v10153_v36 = vpop.f32.mrf.mxu0  ;;  %v4066_v43 = vpop.f32.mrf.mxu1 }
 0x6ec   : > { %11975 = vst [vmem:[#allocation92_spill] sm:$0xff] %v10153_v36  ;;  %v10158_v62 = vadd.f32 %v4066_v43, %v3904_v54  ;;  %v3907_v36 = vld [vmem:[#allocation8 + $0x270] sm:$0xff]  ;;  %v3380_v54 = vunpack.c.l.b16 %v3162_v57  ;;  %v3894_v57 = vld [vmem:[#allocation8 + $0x208] sm:$0xff] }
 0x6ee   : > { %v7694_v6 = vpop.eup %7693  ;;  %v4342_v16 = vsel %vm1528_vm1, %v10158_v62, -inf }
 0x6ef   : > { %v3131_v27 = vmul.f32 %v7694_v6, %v9957_v35  ;;  %7230 = vmatmul.msk.bf16.vlgmr.msrb.gmra.mxu3 %vm1057_vm0, %v10029_v17  ;;  %4343 = vmax.xlane.f32.xlu0 %v4342_v16 }
 0x6f0   : > { %5484 = vmatpush.bf16.xpose.msrb.mxu3 %v5475_v37 }
 0x6f1   : > { %v3163_v11 = vpack.c.bf16 %v3131_v27, %v3131_v27 }
 0x6f3   : > { %v3944_v14 = vpop.f32.mrf.mxu0  ;;  %v3381_v43 = vunpack.c.l.b16 %v3163_v11 }
 0x6f4   : > { %v10166_v45 = vadd.f32 %v3944_v14, %v3893_v47  ;;  %v4112_v38 = vpop.f32.mrf.mxu1  ;;  %v3908_v47 = vld [vmem:[#allocation8 + $0x278] sm:$0xff]  ;;  %v3897_v14 = vld [vmem:[#allocation8 + $0x220] sm:$0xff] }
 0x6f5   : > { %v3382_v46 = vpack.c.b16 %v3381_v43, %v3380_v54  ;;  %v10170_v7 = vadd.f32 %v4112_v38, %v3907_v36  ;;  %v10183_v38 = vpop.f32.mrf.mxu3 }
 0x6f6   : > { %v4309_v35 = vsel %vm1528_vm1, %v10166_v45, -inf  ;;  %11978 = vst [vmem:[#allocation88_spill] sm:$0xff] %v10183_v38 }
 0x6f7   : > { %4310 = vmax.xlane.f32.xlu2 %v4309_v35  ;;  %v4351_v17 = vsel %vm1528_vm1, %v10170_v7, -inf  ;;  %7118 = vmatmul.msk.bf16.vlgmr.msra.gmra.mxu2 %vm1528_vm1, %v3382_v46 }
 0x6f8   : > { %4352 = vmax.xlane.f32.xlu1 %v4351_v17  ;;  %v3911_v17 = vld [vmem:[#allocation8 + $0x290] sm:$0xff] }
 0x6fb   : > { %v3946_v6 = vpop.f32.mrf.mxu0 }
 0x6fc   : > { %v10177_v16 = vadd.f32 %v3946_v6, %v3894_v57  ;;  %v4114_v37 = vpop.f32.mrf.mxu1  ;;  %v3898_v57 = vld [vmem:[#allocation8 + $0x228] sm:$0xff] }
 0x6fd   : > { %v10179_v27 = vadd.f32 %v4114_v37, %v3908_v47 }
 0x6fe   : > { %v4312_v36 = vsel %vm1528_vm1, %v10177_v16, -inf }
 0x6ff   : > { %7233 = vmatmul.msk.bf16.vlgmr.msra.gmra.mxu3 %vm1057_vm0, %v10079_v40  ;;  %v4354_v11 = vsel %vm1528_vm1, %v10179_v27, -inf }
 0x700   : > { %4355 = vmax.xlane.f32.xlu0 %v4354_v11  ;;  %4313 = vmax.xlane.f32.xlu1 %v4312_v36  ;;  %v3912_v11 = vld [vmem:[#allocation8 + $0x298] sm:$0xff] }
 0x703   : > { %v3992_v54 = vpop.f32.mrf.mxu0 }
 0x704   : > { %v10189_v43 = vadd.f32 %v3992_v54, %v3897_v14  ;;  %v4160_v46 = vpop.f32.mrf.mxu1  ;;  %v3901_v54 = vld [vmem:[#allocation8 + $0x240] sm:$0xff] }
 0x705   : > { %v10193_v47 = vadd.f32 %v4160_v46, %v3911_v17 }
 0x706   : > { %v4321_v35 = vsel %vm1528_vm1, %v10189_v43, -inf }
 0x707   : > { %v4363_v14 = vsel %vm1528_vm1, %v10193_v47, -inf }
 0x708   : > { %4322 = vmax.xlane.f32.xlu0 %v4321_v35 }
 0x70b   : > { %v3994_v6 = vpop.f32.mrf.mxu0 }
 0x70c   : > { %v10195_v40 = vadd.f32 %v3994_v6, %v3898_v57  ;;  %v4162_v37 = vpop.f32.mrf.mxu1  ;;  %v3915_v6 = vld [vmem:[#allocation8 + $0x2b0] sm:$0xff] }
 0x70d   : > { %v10201_v38 = vadd.f32 %v4162_v37, %v3912_v11 }
 0x70e   : > { %v4324_v36 = vsel %vm1528_vm1, %v10195_v40, -inf }
 0x70f   : > { %4325 = vmax.xlane.f32.xlu2 %v4324_v36  ;;  %v4366_v57 = vsel %vm1528_vm1, %v10201_v38, -inf }
 0x710   : > { %4364 = vmax.xlane.f32.xlu0 %v4363_v14  ;;  %v3916_v14 = vld [vmem:[#allocation8 + $0x2b8] sm:$0xff] }
 0x713   : > { %v4040_v35 = vpop.f32.mrf.mxu0 }
 0x714   : > { %v10203_v22 = vadd.f32 %v4040_v35, %v3901_v54  ;;  %v4208_v46 = vpop.f32.mrf.mxu1  ;;  %v3902_v54 = vld [vmem:[#allocation8 + $0x248] sm:$0xff] }
 0x715   : > { %v10209_v36 = vadd.f32 %v4208_v46, %v3915_v6 }
 0x716   : > { %v4333_v17 = vsel %vm1528_vm1, %v10203_v22, -inf }
 0x717   : > { %4334 = vmax.xlane.f32.xlu1 %v4333_v17  ;;  %4367 = vmax.xlane.f32.xlu2 %v4366_v57  ;;  %v4375_v11 = vsel %vm1528_vm1, %v10209_v36, -inf  ;;  %v3919_v57 = vld [vmem:[#allocation8 + $0x2d0] sm:$0xff] }
 0x71b   : > { %v4042_v52 = vpop.f32.mrf.mxu0 }
 0x71c   : > { %v4210_v34 = vpop.f32.mrf.mxu1  ;;  %v10217_v3 = vadd.f32 %v4042_v52, %v3902_v54  ;;  %v3920_v52 = vld [vmem:[#allocation8 + $0x2d8] sm:$0xff] }
 0x71d   : > { %v10211_v37 = vadd.f32 %v4210_v34, %v3916_v14  ;;  %v3905_v14 = vld [vmem:[#allocation8 + $0x260] sm:$0xff] }
 0x71e   : > { %v4336_v34 = vsel %vm1528_vm1, %v10217_v3, -inf }
 0x71f   : > { %4376 = vmax.xlane.f32.xlu2 %v4375_v11  ;;  %v4378_v35 = vsel %vm1528_vm1, %v10211_v37, -inf  ;;  %v3906_v11 = vld [vmem:[#allocation8 + $0x268] sm:$0xff] }
 0x720   : > { %4379 = vmax.xlane.f32.xlu0 %v4378_v35 }
 0x723   : > { %v4088_v17 = vpop.f32.mrf.mxu0 }
 0x724   : > { %v4256_v46 = vpop.f32.mrf.mxu1  ;;  %v10225_v60 = vadd.f32 %v4088_v17, %v3905_v14  ;;  %v3909_v17 = vld [vmem:[#allocation8 + $0x280] sm:$0xff]  ;;  %v3923_v14 = vld [vmem:[#allocation8 + $0x2f0] sm:$0xff] }
 0x725   : > { %v10219_v6 = vadd.f32 %v4256_v46, %v3919_v57 }
 0x726   : > { %v4345_v46 = vsel %vm1528_vm1, %v10225_v60, -inf }
 0x727   : > { %4337 = vmax.xlane.f32.xlu2 %v4336_v34  ;;  %v4387_v12 = vsel %vm1528_vm1, %v10219_v6, -inf }
 0x728   : > { %4388 = vmax.xlane.f32.xlu1 %v4387_v12 }
 0x72b   : > { %v4090_v35 = vpop.f32.mrf.mxu0 }
 0x72c   : > { %v10227_v54 = vadd.f32 %v4090_v35, %v3906_v11  ;;  %v4258_v53 = vpop.f32.mrf.mxu1 }
 0x72d   : > { %v10229_v20 = vadd.f32 %v4258_v53, %v3920_v52 }
 0x72e   : > { %v4348_v57 = vsel %vm1528_vm1, %v10227_v54, -inf }
 0x72f   : > { %4346 = vmax.xlane.f32.xlu2 %v4345_v46  ;;  %v4390_v12 = vsel %vm1528_vm1, %v10229_v20, -inf  ;;  %v3910_v46 = vld [vmem:[#allocation8 + $0x288] sm:$0xff] }
 0x730   : > { %4391 = vmax.xlane.f32.xlu0 %v4390_v12  ;;  %4349 = vmax.xlane.f32.xlu1 %v4348_v57  ;;  %v3924_v12 = vld [vmem:[#allocation8 + $0x2f8] sm:$0xff] }
 0x733   : > { %v4136_v34 = vpop.f32.mrf.mxu0 }
 0x734   : > { %v10237_v11 = vadd.f32 %v4136_v34, %v3909_v17  ;;  %v4304_v35 = vpop.f32.mrf.mxu1 }
 0x735   : > { %v10239_v53 = vadd.f32 %v4304_v35, %v3923_v14 }
 0x736   : > { %v4357_v52 = vsel %vm1528_vm1, %v10237_v11, -inf }
 0x737   : > { %v4399_v4 = vsel %vm1528_vm1, %v10239_v53, -inf }
 0x738   : > { %4358 = vmax.xlane.f32.xlu0 %v4357_v52  ;;  %4400 = vmax.xlane.f32.xlu2 %v4399_v4  ;;  %v3913_v4 = vld [vmem:[#allocation8 + $0x2a0] sm:$0xff] }
 0x73a   : > { %v4317_v32 = vpop.xlane.xlu2 %4316 }
 0x73b   : > { %v4407_v57 = vsub.f32 %v10099_v31, %v4317_v32  ;;  %v4138_v55 = vpop.f32.mrf.mxu0 }
 0x73c   : > { %v10246_v42 = vadd.f32 %v4138_v55, %v3910_v46  ;;  %v4306_v17 = vpop.f32.mrf.mxu1 }
 0x73d   : > { %v4441_v34 = vmul.f32 1.442695, %v4407_v57  ;;  %v10248_v14 = vadd.f32 %v4306_v17, %v3924_v12 }
 0x73e   : > { %v4360_v35 = vsel %vm1528_vm1, %v10246_v42, -inf }
 0x73f   : > { %7695 = vpow2.f32 %v4441_v34  ;;  %v4402_v52 = vsel %vm1528_vm1, %v10248_v14, -inf  ;;  %v3914_v34 = vld [vmem:[#allocation8 + $0x2a8] sm:$0xff] }
 0x740   : > { %4403 = vmax.xlane.f32.xlu0 %v4402_v52  ;;  %4361 = vmax.xlane.f32.xlu2 %v4360_v35 }
 0x742   : > { %v4320_v39 = vpop.xlane.xlu2 %4319 }
 0x743   : > { %v4408_v32 = vsub.f32 %v10111_v8, %v4320_v39  ;;  %v4184_v31 = vpop.f32.mrf.mxu0 }
 0x744   : > { %v10255_v55 = vadd.f32 %v4184_v31, %v3913_v4 }
 0x745   : > { %v10257_v46 = vpop.eup %7695  ;;  %v4443_v12 = vmul.f32 1.442695, %v4408_v32 }
 0x746   : > { %v4369_v57 = vsel %vm1528_vm1, %v10255_v55, -inf  ;;  %v4507_v17 = vsel %vm1528_vm1, %v10257_v46, 0.0 }
 0x747   : > { %7697 = vpow2.f32 %v4443_v12  ;;  %v3917_v12 = vld [vmem:[#allocation8 + $0x2c0] sm:$0xff] }
 0x748   : > { %4370 = vmax.xlane.f32.xlu0 %v4369_v57  ;;  %4508 = vadd.xlane.f32.xlu2 %v4507_v17  ;;  %v10272_v57 = vpop.permute.xlu1 %5421 }
 0x749   : > { %11979 = vst [vmem:[#allocation62_spill] sm:$0xff] %v10272_v57 }
 0x74a   : > { %v4329_v35 = vpop.xlane.xlu2 %4328 }
 0x74b   : > { %v4411_v52 = vsub.f32 %v10120_v9, %v4329_v35  ;;  %v4186_v8 = vpop.f32.mrf.mxu0 }
 0x74c   : > { %v10264_v39 = vadd.f32 %v4186_v8, %v3914_v34 }
 0x74d   : > { %v10266_v4 = vpop.eup %7697  ;;  %v4449_v31 = vmul.f32 1.442695, %v4411_v52 }
 0x74e   : > { %v4372_v32 = vsel %vm1528_vm1, %v10264_v39, -inf  ;;  %v4510_v24 = vsel %vm1528_vm1, %v10266_v4, 0.0 }
 0x74f   : > { %7699 = vpow2.f32 %v4449_v31  ;;  %4511 = vadd.xlane.f32.xlu1 %v4510_v24  ;;  %v3918_v24 = vld [vmem:[#allocation8 + $0x2c8] sm:$0xff] }
 0x750   : > { %4373 = vmax.xlane.f32.xlu2 %v4372_v32 }
 0x752   : > { %v4332_v17 = vpop.xlane.xlu2 %4331 }
 0x753   : > { %v4412_v9 = vsub.f32 %v10133_v21, %v4332_v17  ;;  %v4232_v34 = vpop.f32.mrf.mxu0  ;;  %v10284_v17 = vpop.f32.mrf.mxu3 }
 0x754   : > { %v10275_v35 = vadd.f32 %v4232_v34, %v3917_v12  ;;  %11980 = vst [vmem:[#allocation98_spill] sm:$0xff] %v10284_v17 }
 0x755   : > { %v10277_v8 = vpop.eup %7699  ;;  %v4451_v52 = vmul.f32 1.442695, %v4412_v9 }
 0x756   : > { %v4381_v56 = vsel %vm1528_vm1, %v10275_v35, -inf  ;;  %v4519_v31 = vsel %vm1528_vm1, %v10277_v8, 0.0 }
 0x757   : > { %7701 = vpow2.f32 %v4451_v52  ;;  %4382 = vmax.xlane.f32.xlu0 %v4381_v56  ;;  %v3921_v56 = vld [vmem:[#allocation8 + $0x2e0] sm:$0xff] }
 0x758   : > { %4520 = vadd.xlane.f32.xlu2 %v4519_v31 }
 0x75a   : > { %v4341_v32 = vpop.xlane.xlu1 %4340 }
 0x75b   : > { %v4415_v57 = vsub.f32 %v10146_v29, %v4341_v32  ;;  %v4234_v21 = vpop.f32.mrf.mxu0 }
 0x75c   : > { %v10286_v12 = vadd.f32 %v4234_v21, %v3918_v24 }
 0x75d   : > { %v10288_v34 = vpop.eup %7701  ;;  %v4457_v9 = vmul.f32 1.442695, %v4415_v57  ;;  %v10299_v57 = vpop.f32.mrf.mxu3 }
 0x75e   : > { %v4384_v41 = vsel %vm1528_vm1, %v10286_v12, -inf  ;;  %v4522_v52 = vsel %vm1528_vm1, %v10288_v34, 0.0  ;;  %11981 = vst [vmem:[#allocation82_spill] sm:$0xff] %v10299_v57 }
 0x75f   : > { %7703 = vpow2.f32 %v4457_v9  ;;  %4523 = vadd.xlane.f32.xlu1 %v4522_v52  ;;  %v3922_v52 = vld [vmem:[#allocation8 + $0x2e8] sm:$0xff] }
 0x760   : > { %4385 = vmax.xlane.f32.xlu2 %v4384_v41 }
 0x762   : > { %v4344_v31 = vpop.xlane.xlu0 %4343 }
 0x763   : > { %v4416_v29 = vsub.f32 %v10158_v62, %v4344_v31  ;;  %v4280_v32 = vpop.f32.mrf.mxu0 }
 0x764   : > { %v10295_v17 = vadd.f32 %v4280_v32, %v3921_v56 }
 0x765   : > { %v10297_v24 = vpop.eup %7703  ;;  %v4459_v21 = vmul.f32 1.442695, %v4416_v29 }
 0x766   : > { %v4393_v61 = vsel %vm1528_vm1, %v10295_v17, -inf  ;;  %v4531_v9 = vsel %vm1528_vm1, %v10297_v24, 0.0 }
 0x767   : > { %7705 = vpow2.f32 %v4459_v21  ;;  %4394 = vmax.xlane.f32.xlu0 %v4393_v61  ;;  %4532 = vadd.xlane.f32.xlu1 %v4531_v9  ;;  %v10315_v21 = vpop.f32.mrf.mxu3 }
 0x768   : > { %11982 = vst [vmem:[#allocation109_spill] sm:$0xff] %v10315_v21 }
 0x76a   : > { %v4311_v41 = vpop.xlane.xlu2 %4310 }
 0x76b   : > { %v4405_v62 = vsub.f32 %v10166_v45, %v4311_v41  ;;  %v4353_v56 = vpop.xlane.xlu1 %4352  ;;  %v4282_v31 = vpop.f32.mrf.mxu0 }
 0x76c   : > { %v4419_v32 = vsub.f32 %v10170_v7, %v4353_v56  ;;  %v10307_v1 = vadd.f32 %v4282_v31, %v3922_v52 }
 0x76d   : > { %v4437_v29 = vmul.f32 1.442695, %v4405_v62  ;;  %v10309_v57 = vpop.eup %7705 }
 0x76e   : > { %v4534_v25 = vsel %vm1528_vm1, %v10309_v57, 0.0  ;;  %v4396_v61 = vsel %vm1528_vm1, %v10307_v1, -inf  ;;  %v4465_v45 = vmul.f32 1.442695, %v4419_v32 }
 0x76f   : > { %7707 = vpow2.f32 %v4437_v29  ;;  %4535 = vadd.xlane.f32.xlu2 %v4534_v25  ;;  %4397 = vmax.xlane.f32.xlu1 %v4396_v61  ;;  %v10325_v61 = vpop.f32.mrf.mxu3 }
 0x770   : > { %7709 = vpow2.f32 %v4465_v45  ;;  %11983 = vst [vmem:[#allocation101_spill] sm:$0xff] %v10325_v61 }
 0x773   : > { %v4356_v9 = vpop.xlane.xlu0 %4355  ;;  %v4314_v41 = vpop.xlane.xlu1 %4313 }
 0x774   : > { %v4420_v52 = vsub.f32 %v10179_v27, %v4356_v9  ;;  %v4406_v62 = vsub.f32 %v10177_v16, %v4314_v41 }
 0x775   : > { %v10317_v7 = vpop.eup %7707 }
 0x776   : > { %v4501_v56 = vsel %vm1528_vm1, %v10317_v7, 0.0  ;;  %v4439_v31 = vmul.f32 1.442695, %v4406_v62  ;;  %v4467_v29 = vmul.f32 1.442695, %v4420_v52  ;;  %v10323_v25 = vpop.eup %7709 }
 0x777   : > { %4502 = vadd.xlane.f32.xlu0 %v4501_v56  ;;  %v4543_v27 = vsel %vm1528_vm1, %v10323_v25, 0.0 }
 0x778   : > { %7711 = vpow2.f32 %v4439_v31  ;;  %v10337_v31 = vpop.f32.mrf.mxu3 }
 0x779   : > { %7713 = vpow2.f32 %v4467_v29  ;;  %11984 = vst [vmem:[#allocation28_spill] sm:$0xff] %v10337_v31 }
 0x77b   : > { %v4323_v32 = vpop.xlane.xlu0 %4322 }
 0x77c   : > { %v4409_v21 = vsub.f32 %v10189_v43, %v4323_v32 }
 0x77e   : > { %v10330_v16 = vpop.eup %7711  ;;  %v4445_v45 = vmul.f32 1.442695, %v4409_v21 }
 0x77f   : > { %4544 = vadd.xlane.f32.xlu0 %v4543_v27  ;;  %v4504_v9 = vsel %vm1528_vm1, %v10330_v16, 0.0  ;;  %v10334_v52 = vpop.eup %7713 }
 0x780   : > { %4505 = vadd.xlane.f32.xlu2 %v4504_v9  ;;  %7715 = vpow2.f32 %v4445_v45  ;;  %v4546_v32 = vsel %vm1528_vm1, %v10334_v52, 0.0 }
 0x782   : > { %v4326_v41 = vpop.xlane.xlu2 %4325 }
 0x783   : > { %v4410_v62 = vsub.f32 %v10195_v40, %v4326_v41  ;;  %v4365_v56 = vpop.xlane.xlu0 %4364 }
 0x784   : > { %v4423_v43 = vsub.f32 %v10193_v47, %v4365_v56 }
 0x785   : > { %v4447_v29 = vmul.f32 1.442695, %v4410_v62 }
 0x786   : > { %v4473_v21 = vmul.f32 1.442695, %v4423_v43  ;;  %v10342_v9 = vpop.eup %7715  ;;  %v10354_v43 = vpop.f32.mrf.mxu3 }
 0x787   : > { %7717 = vpow2.f32 %v4447_v29  ;;  %4547 = vadd.xlane.f32.xlu0 %v4546_v32  ;;  %v4513_v47 = vsel %vm1528_vm1, %v10342_v9, 0.0  ;;  %11985 = vst [vmem:[#allocation83_spill] sm:$0xff] %v10354_v43 }
 0x788   : > { %7719 = vpow2.f32 %v4473_v21 }
 0x78a   : > { %v4368_v27 = vpop.xlane.xlu2 %4367  ;;  %v4335_v61 = vpop.xlane.xlu1 %4334 }
 0x78b   : > { %v4424_v40 = vsub.f32 %v10201_v38, %v4368_v27  ;;  %v4413_v45 = vsub.f32 %v10203_v22, %v4335_v61 }
 0x78d   : > { %v10345_v41 = vpop.eup %7717  ;;  %v4475_v31 = vmul.f32 1.442695, %v4424_v40  ;;  %v4453_v29 = vmul.f32 1.442695, %v4413_v45 }
 0x78e   : > { %v4516_v62 = vsel %vm1528_vm1, %v10345_v41, 0.0  ;;  %v10352_v56 = vpop.eup %7719 }
 0x78f   : > { %4514 = vadd.xlane.f32.xlu0 %v4513_v47  ;;  %4517 = vadd.xlane.f32.xlu2 %v4516_v62  ;;  %7721 = vpow2.f32 %v4475_v31  ;;  %v4555_v38 = vsel %vm1528_vm1, %v10352_v56, 0.0  ;;  %v10364_v31 = vpop.f32.mrf.mxu3 }
 0x790   : > { %4556 = vadd.xlane.f32.xlu1 %v4555_v38  ;;  %7723 = vpow2.f32 %v4453_v29  ;;  %11986 = vst [vmem:[#allocation78_spill] sm:$0xff] %v10364_v31 }
 0x792   : > { %v4377_v32 = vpop.xlane.xlu2 %4376 }
 0x793   : > { %v4427_v22 = vsub.f32 %v10209_v36, %v4377_v32  ;;  %v4380_v61 = vpop.xlane.xlu0 %4379 }
 0x794   : > { %v4428_v21 = vsub.f32 %v10211_v37, %v4380_v61 }
 0x795   : > { %v4481_v27 = vmul.f32 1.442695, %v4427_v22  ;;  %v10360_v40 = vpop.eup %7721 }
 0x796   : > { %v4558_v47 = vsel %vm1528_vm1, %v10360_v40, 0.0  ;;  %v4483_v62 = vmul.f32 1.442695, %v4428_v21  ;;  %v10367_v43 = vpop.eup %7723 }
 0x797   : > { %7725 = vpow2.f32 %v4481_v27  ;;  %v4525_v21 = vsel %vm1528_vm1, %v10367_v43, 0.0 }
 0x798   : > { %4559 = vadd.xlane.f32.xlu1 %v4558_v47  ;;  %7727 = vpow2.f32 %v4483_v62  ;;  %v10378_v47 = vpop.f32.mrf.mxu3 }
 0x799   : > { %11987 = vst [vmem:[#allocation68_spill] sm:$0xff] %v10378_v47 }
 0x79a   : > { %v4338_v38 = vpop.xlane.xlu2 %4337 }
 0x79b   : > { %v4414_v45 = vsub.f32 %v10217_v3, %v4338_v38  ;;  %v4389_v36 = vpop.xlane.xlu1 %4388 }
 0x79c   : > { %v4431_v37 = vsub.f32 %v10219_v6, %v4389_v36 }
 0x79d   : > { %v10369_v32 = vpop.eup %7725  ;;  %v4455_v29 = vmul.f32 1.442695, %v4414_v45 }
 0x79e   : > { %v4567_v22 = vsel %vm1528_vm1, %v10369_v32, 0.0  ;;  %v4489_v61 = vmul.f32 1.442695, %v4431_v37  ;;  %v10376_v27 = vpop.eup %7727 }
 0x79f   : > { %7729 = vpow2.f32 %v4455_v29  ;;  %4568 = vadd.xlane.f32.xlu0 %v4567_v22  ;;  %v4570_v22 = vsel %vm1528_vm1, %v10376_v27, 0.0 }
 0x7a0   : > { %7731 = vpow2.f32 %v4489_v61  ;;  %4526 = vadd.xlane.f32.xlu1 %v4525_v21 }
 0x7a2   : > { %v4347_v3 = vpop.xlane.xlu2 %4346 }
 0x7a3   : > { %v4417_v62 = vsub.f32 %v10225_v60, %v4347_v3  ;;  %v4392_v6 = vpop.xlane.xlu0 %4391  ;;  %v4350_v38 = vpop.xlane.xlu1 %4349 }
 0x7a4   : > { %v4432_v36 = vsub.f32 %v10229_v20, %v4392_v6  ;;  %v4418_v37 = vsub.f32 %v10227_v54, %v4350_v38 }
 0x7a5   : > { %v10381_v45 = vpop.eup %7729  ;;  %v4461_v29 = vmul.f32 1.442695, %v4417_v62  ;;  %v10395_v62 = vpop.f32.mrf.mxu3 }
 0x7a6   : > { %v4528_v61 = vsel %vm1528_vm1, %v10381_v45, 0.0  ;;  %v10389_v21 = vpop.eup %7731  ;;  %v4491_v47 = vmul.f32 1.442695, %v4432_v36  ;;  %v4463_v31 = vmul.f32 1.442695, %v4418_v37  ;;  %11988 = vst [vmem:[#allocation64_spill] sm:$0xff] %v10395_v62 }
 0x7a7   : > { %7733 = vpow2.f32 %v4461_v29  ;;  %4571 = vadd.xlane.f32.xlu0 %v4570_v22  ;;  %v4579_v60 = vsel %vm1528_vm1, %v10389_v21, 0.0 }
 0x7a8   : > { %7735 = vpow2.f32 %v4491_v47  ;;  %4580 = vadd.xlane.f32.xlu2 %v4579_v60  ;;  %4529 = vadd.xlane.f32.xlu1 %v4528_v61  ;;  %v2914_v47 = vsub.f32 %v9819_v58, %v9977_v2  ;;  %v2915_v61 = vsub.f32 %v9851_v59, %v10037_v23 }
 0x7a9   : > { %7737 = vpow2.f32 %v4463_v31 }
 0x7aa   : > { %v2970_v60 = vmul.f32 1.442695, %v2914_v47  ;;  %v2972_v58 = vmul.f32 1.442695, %v2915_v61 }
 0x7ab   : > { %v4359_v20 = vpop.xlane.xlu0 %4358  ;;  %v4401_v54 = vpop.xlane.xlu2 %4400 }
 0x7ac   : > { %v4421_v6 = vsub.f32 %v10237_v11, %v4359_v20  ;;  %v4435_v38 = vsub.f32 %v10239_v53, %v4401_v54 }
 0x7ad   : > { %v10393_v3 = vpop.eup %7733  ;;  %v10415_v54 = vpop.f32.mrf.mxu3 }
 0x7ae   : > { %v4537_v36 = vsel %vm1528_vm1, %v10393_v3, 0.0  ;;  %v10401_v37 = vpop.eup %7735  ;;  %v4469_v29 = vmul.f32 1.442695, %v4421_v6  ;;  %v4497_v31 = vmul.f32 1.442695, %v4435_v38  ;;  %11989 = vst [vmem:[#allocation107_spill] sm:$0xff] %v10415_v54 }
 0x7af   : > { %v10405_v22 = vpop.eup %7737  ;;  %v4582_v11 = vsel %vm1528_vm1, %v10401_v37, 0.0 }
 0x7b0   : > { %7739 = vpow2.f32 %v4469_v29  ;;  %v4540_v53 = vsel %vm1528_vm1, %v10405_v22, 0.0  ;;  %4583 = vadd.xlane.f32.xlu0 %v4582_v11  ;;  %4538 = vadd.xlane.f32.xlu1 %v4537_v36 }
 0x7b1   : > { %7741 = vpow2.f32 %v4497_v31  ;;  %4541 = vadd.xlane.f32.xlu2 %v4540_v53 }
 0x7b2   : > { %7743 = vpow2.f32 %v2970_v60 }
 0x7b3   : > { %v4362_v2 = vpop.xlane.xlu2 %4361  ;;  %7745 = vpow2.f32 %v2972_v58  ;;  %v10422_v38 = vpop.xlane.xlu0 %4403 }
 0x7b4   : > { %v4422_v23 = vsub.f32 %v10246_v42, %v4362_v2 }
 0x7b5   : > { %v10430_v11 = vpop.f32.mrf.mxu3 }
 0x7b6   : > { %v10413_v20 = vpop.eup %7739  ;;  %v4471_v47 = vmul.f32 1.442695, %v4422_v23  ;;  %11990 = vst [vmem:[#allocation74_spill] sm:$0xff] %v10430_v11 }
 0x7b7   : > { %v10417_v59 = vpop.eup %7741  ;;  %v4549_v6 = vsel %vm1528_vm1, %v10413_v20, 0.0 }
 0x7b8   : > { %v4591_v36 = vsel %vm1528_vm1, %v10417_v59, 0.0  ;;  %v10426_v31 = vpop.eup %7743 }
 0x7b9   : > { %4550 = vadd.xlane.f32.xlu2 %v4549_v6  ;;  %4592 = vadd.xlane.f32.xlu0 %v4591_v36  ;;  %v10428_v61 = vpop.eup %7745  ;;  %v3058_v53 = vsel %vm1528_vm1, %v10426_v31, 0.0 }
 0x7ba   : > { %v3061_v42 = vsel %vm1528_vm1, %v10428_v61, 0.0 }
 0x7bb   : > { %v4509_v29 = vpop.xlane.xlu2 %4508  ;;  %v10436_v60 = vpop.xlane.xlu0 %4370 }
 0x7bc   : > { %7747 = vrcp.f32 %v4509_v29 }
 0x7bd   : > { %7749 = vpow2.f32 %v4471_v47 }
 0x7c1   : > { %3062 = vadd.xlane.f32.xlu2 %v3061_v42  ;;  %3059 = vadd.xlane.f32.xlu0 %v3058_v53  ;;  %v11991_v42 = vld [vmem:[#allocation23_spill] sm:$0xff]  ;;  %v10446_v53 = vpop.f32.mrf.mxu3 }
 0x7c2   : > { %v4512_v58 = vpop.xlane.xlu1 %4511  ;;  %v7748_v2 = vpop.eup %7747  ;;  %11992 = vst [vmem:[#allocation113_spill] sm:$0xff] %v10446_v53 }
 0x7c3   : > { %7751 = vrcp.f32 %v4512_v58  ;;  %v4374_v23 = vpop.xlane.xlu2 %4373  ;;  %v10439_v36 = vpop.eup %7749  ;;  %v4631_v47 = vmul.f32 %v7748_v2, %v10257_v46 }
 0x7c4   : > { %v4426_v6 = vsub.f32 %v10264_v39, %v4374_v23  ;;  %v4552_v11 = vsel %vm1528_vm1, %v10439_v36, 0.0 }
 0x7c5   : > { %v4663_v58 = vpack.c.bf16 %v4631_v47, %v4631_v47  ;;  %v11993_v47 = vld [vmem:[#allocation34_spill] sm:$0xff] }
 0x7c6   : > { %v4479_v29 = vmul.f32 1.442695, %v4426_v6 }
 0x7c8   : > { %7753 = vpow2.f32 %v4479_v29  ;;  %v4720_v29 = vunpack.c.l.b16 %v4663_v58 }
 0x7c9   : > { %v7752_v54 = vpop.eup %7751  ;;  %4553 = vadd.xlane.f32.xlu2 %v4552_v11  ;;  %5371 = vrot.lane.b32.xlu1 %v11991_v42, %s8197_s14 }
 0x7ca   : > { %v4632_v62 = vmul.f32 %v7752_v54, %v10266_v4  ;;  %v4383_v39 = vpop.xlane.xlu0 %4382 }
 0x7cb   : > { %v4429_v23 = vsub.f32 %v10275_v35, %v4383_v39  ;;  %v4521_v49 = vpop.xlane.xlu2 %4520 }
 0x7cc   : > { %v4664_v46 = vpack.c.bf16 %v4632_v62, %v4632_v62  ;;  %7755 = vrcp.f32 %v4521_v49  ;;  %v10458_v62 = vpop.f32.mrf.mxu3 }
 0x7cd   : > { %v4485_v2 = vmul.f32 1.442695, %v4429_v23  ;;  %11994 = vst [vmem:[#allocation99_spill] sm:$0xff] %v10458_v62 }
 0x7ce   : > { %v10450_v6 = vpop.eup %7753  ;;  %v4721_v44 = vunpack.c.l.b16 %v4664_v46 }
 0x7cf   : > { %7757 = vpow2.f32 %v4485_v2  ;;  %v4564_v11 = vsel %vm1528_vm1, %v10450_v6, 0.0 }
 0x7d0   : > { %v4722_v42 = vpack.c.b16 %v4721_v44, %v4720_v29  ;;  %v11995_v44 = vld [vmem:[#allocation32_spill] sm:$0xff] }
 0x7d1   : > { %4565 = vadd.xlane.f32.xlu2 %v4564_v11  ;;  %5467 = vrot.lane.b32.xlu1 %v11993_v47, %s8197_s14  ;;  %v11997_v47 = vld [vmem:[#allocation37_spill] sm:$0xff] }
 0x7d2   : > { %v4524_v4 = vpop.xlane.xlu1 %4523  ;;  %7191 = vmatmul.msk.bf16.vlgmr.msrb.gmra.mxu1 %vm1528_vm1, %v4722_v42  ;;  %v7756_v35 = vpop.eup %7755 }
 0x7d3   : > { %7759 = vrcp.f32 %v4524_v4  ;;  %4836 = vmatpush.bf16.msrb.mxu1 %v9908_v48  ;;  %v4386_v49 = vpop.xlane.xlu2 %4385  ;;  %v4635_v39 = vmul.f32 %v7756_v35, %v10277_v8  ;;  %v11996_v48 = vld [vmem:[#allocation29_spill] sm:$0xff] }
 0x7d4   : > { %v4430_v54 = vsub.f32 %v10286_v12, %v4386_v49  ;;  %v10475_v4 = vpop.f32.mrf.mxu3 }
 0x7d5   : > { %v10461_v58 = vpop.eup %7757  ;;  %5445 = vrot.lane.b32.xlu0 %v11995_v44, %s8197_s14  ;;  %v4667_v29 = vpack.c.bf16 %v4635_v39, %v4635_v39  ;;  %11998 = vst [vmem:[#allocation114_spill] sm:$0xff] %v10475_v4 }
 0x7d6   : > { %v4487_v23 = vmul.f32 1.442695, %v4430_v54  ;;  %v4573_v46 = vsel %vm1528_vm1, %v10461_v58, 0.0 }
 0x7d7   : > { %v4770_v35 = vunpack.c.l.b16 %v4667_v29 }
 0x7d8   : > { %7761 = vpow2.f32 %v4487_v23 }
 0x7d9   : > { %v7760_v2 = vpop.eup %7759  ;;  %4574 = vadd.xlane.f32.xlu2 %v4573_v46  ;;  %5419 = vrot.lane.b32.xlu1 %v11996_v48, %s8197_s14 }
 0x7da   : > { %v4636_v12 = vmul.f32 %v7760_v2, %v10288_v34  ;;  %v4533_v11 = vpop.xlane.xlu1 %4532  ;;  %v4395_v23 = vpop.xlane.xlu0 %4394 }
 0x7db   : > { %7763 = vrcp.f32 %v4533_v11 }
 0x7dc   : > { %v4668_v42 = vpack.c.bf16 %v4636_v12, %v4636_v12  ;;  %v10484_v2 = vpop.f32.mrf.mxu3 }
 0x7dd   : > { %5491 = vrot.lane.b32.xlu0 %v11997_v47, %s8197_s14  ;;  %11999 = vst [vmem:[#allocation85_spill] sm:$0xff] %v10484_v2  ;;  %v12054_v2 = vld [vmem:[#allocation19_spill] sm:$0xff] }
 0x7de   : > { %v10473_v8 = vpop.eup %7761  ;;  %v4771_v49 = vunpack.c.l.b16 %v4668_v42 }
 0x7df   : > { %v4576_v54 = vsel %vm1528_vm1, %v10473_v8, 0.0 }
 0x7e0   : > { %v4772_v44 = vpack.c.b16 %v4771_v49, %v4770_v35 }
 0x7e1   : > { %4577 = vadd.xlane.f32.xlu2 %v4576_v54  ;;  %3483 = vrot.lane.b32.xlu1 %v9172_v51, %s8196_s8  ;;  %v7764_v39 = vpop.eup %7763 }
 0x7e2   : > { %7193 = vmatmul.msk.bf16.vlgmr.msra.gmra.mxu1 %vm1528_vm1, %v4772_v44  ;;  %v4536_v34 = vpop.xlane.xlu2 %4535  ;;  %v4639_v46 = vmul.f32 %v7764_v39, %v10297_v24  ;;  %v4436_v39 = vsub.f32 %v10248_v14, %v10422_v38 }
 0x7e3   : > { %4886 = vmatpush.bf16.msra.mxu1 %v9948_v18  ;;  %7765 = vrcp.f32 %v4536_v34  ;;  %v4433_v34 = vsub.f32 %v10295_v17, %v4395_v23 }
 0x7e4   : > { %v4671_v12 = vpack.c.bf16 %v4639_v46, %v4639_v46  ;;  %v10487_v44 = vpop.f32.mrf.mxu3  ;;  %v4499_v23 = vmul.f32 1.442695, %v4436_v39 }
 0x7e5   : > { %12000 = vst [vmem:[#allocation67_spill] sm:$0xff] %v10487_v44  ;;  %v4493_v46 = vmul.f32 1.442695, %v4433_v34  ;;  %v12003_v34 = vld [vmem:[#allocation46_spill] sm:$0xff] }
 0x7e6   : > { %v4820_v47 = vunpack.c.l.b16 %v4671_v12 }
 0x7e9   : > { %v7766_v48 = vpop.eup %7765 }
 0x7ea   : > { %v4503_v29 = vpop.xlane.xlu0 %4502  ;;  %v4640_v11 = vmul.f32 %v7766_v48, %v10309_v57  ;;  %v12001_v48 = vld [vmem:[#allocation35_spill] sm:$0xff] }
 0x7eb   : > { %7767 = vrcp.f32 %v4503_v29 }
 0x7ec   : > { %v4672_v42 = vpack.c.bf16 %v4640_v11, %v4640_v11 }
 0x7ee   : > { %v4821_v35 = vunpack.c.l.b16 %v4672_v42  ;;  %v10499_v42 = vpop.f32.mrf.mxu3 }
 0x7ef   : > { %12002 = vst [vmem:[#allocation71_spill] sm:$0xff] %v10499_v42 }
 0x7f0   : > { %v4822_v49 = vpack.c.b16 %v4821_v35, %v4820_v47 }
 0x7f1   : > { %v7768_v24 = vpop.eup %7767 }
 0x7f2   : > { %v4545_v54 = vpop.xlane.xlu0 %4544  ;;  %7195 = vmatmul.msk.bf16.vlgmr.msrb.gmra.mxu1 %vm1528_vm1, %v4822_v49  ;;  %v4629_v57 = vmul.f32 %v7768_v24, %v10317_v7 }
 0x7f3   : > { %4936 = vmatpush.bf16.msrb.mxu1 %v10008_v33  ;;  %7769 = vrcp.f32 %v4545_v54  ;;  %v4506_v18 = vpop.xlane.xlu2 %4505  ;;  %v10497_v33 = vpop.xlane.xlu1 %4397  ;;  %v4425_v54 = vsub.f32 %v10255_v55, %v10436_v60 }
 0x7f4   : > { %7771 = vrcp.f32 %v4506_v18  ;;  %v4661_v47 = vpack.c.bf16 %v4629_v57, %v4629_v57 }
 0x7f6   : > { %v4695_v35 = vunpack.c.l.b16 %v4661_v47 }
 0x7f9   : > { %5493 = vrot.lane.b32.xlu2 %v12001_v48, %s8197_s14  ;;  %v7770_v12 = vpop.eup %7769 }
 0x7fa   : > { %v4548_v29 = vpop.xlane.xlu0 %4547  ;;  %v7772_v11 = vpop.eup %7771  ;;  %v4643_v7 = vmul.f32 %v7770_v12, %v10323_v25 }
 0x7fb   : > { %7773 = vrcp.f32 %v4548_v29  ;;  %v4630_v17 = vmul.f32 %v7772_v11, %v10330_v16  ;;  %v4477_v29 = vmul.f32 1.442695, %v4425_v54 }
 0x7fc   : > { %7775 = vpow2.f32 %v4493_v46  ;;  %v4675_v18 = vpack.c.bf16 %v4643_v7, %v4643_v7 }
 0x7fd   : > { %v4662_v14 = vpack.c.bf16 %v4630_v17, %v4630_v17  ;;  %7777 = vpow2.f32 %v4499_v23 }
 0x7fe   : > { %v4870_v12 = vunpack.c.l.b16 %v4675_v18 }
 0x7ff   : > { %v4696_v49 = vunpack.c.l.b16 %v4662_v14  ;;  %v12005_v14 = vld [vmem:[#allocation50_spill] sm:$0xff] }
 0x801   : > { %v7774_v38 = vpop.eup %7773  ;;  %5565 = vrot.lane.b32.xlu2 %v12003_v34, %s8197_s14  ;;  %v4697_v39 = vpack.c.b16 %v4696_v49, %v4695_v35 }
 0x802   : > { %v4644_v24 = vmul.f32 %v7774_v38, %v10334_v52  ;;  %v4515_v57 = vpop.xlane.xlu0 %4514  ;;  %v4518_v16 = vpop.xlane.xlu2 %4517 }
 0x803   : > { %7779 = vrcp.f32 %v4515_v57  ;;  %v10508_v46 = vpop.eup %7775  ;;  %v4557_v48 = vpop.xlane.xlu1 %4556  ;;  %7190 = vmatmul.msk.bf16.vlgmr.msrb.gmra.mxu0 %vm1528_vm1, %v4697_v39  ;;  %v12007_v39 = vld [vmem:[#allocation55_spill] sm:$0xff] }
 0x804   : > { %v4676_v25 = vpack.c.bf16 %v4644_v24, %v4644_v24  ;;  %7781 = vrcp.f32 %v4518_v16  ;;  %4811 = vmatpush.bf16.msrb.mxu0 %v9937_v15  ;;  %v10512_v52 = vpop.f32.mrf.mxu3  ;;  %v4585_v60 = vsel %vm1528_vm1, %v10508_v46, 0.0  ;;  %v10516_v11 = vpop.eup %7777 }
 0x805   : > { %12004 = vst [vmem:[#allocation112_spill] sm:$0xff] %v10512_v52  ;;  %7783 = vrcp.f32 %v4557_v48  ;;  %v4594_v38 = vsel %vm1528_vm1, %v10516_v11, 0.0 }
 0x806   : > { %v4871_v55 = vunpack.c.l.b16 %v4676_v25  ;;  %7785 = vpow2.f32 %v4477_v29 }
 0x807   : > { %4586 = vadd.xlane.f32.xlu0 %v4585_v60 }
 0x808   : > { %v4872_v47 = vpack.c.b16 %v4871_v55, %v4870_v12 }
 0x809   : > { %v7780_v17 = vpop.eup %7779  ;;  %5587 = vrot.lane.b32.xlu2 %v12005_v14, %s8197_s14 }
 0x80a   : > { %v7782_v23 = vpop.eup %7781  ;;  %v4633_v7 = vmul.f32 %v7780_v17, %v10342_v9  ;;  %7197 = vmatmul.msk.bf16.vlgmr.msra.gmra.mxu1 %vm1528_vm1, %v4872_v47 }
 0x80b   : > { %v4634_v15 = vmul.f32 %v7782_v23, %v10345_v41  ;;  %4986 = vmatpush.bf16.msra.mxu1 %v9990_v5  ;;  %v4560_v49 = vpop.xlane.xlu1 %4559  ;;  %4595 = vadd.xlane.f32.xlu1 %v4594_v38  ;;  %v7784_v54 = vpop.eup %7783  ;;  %v12008_v23 = vld [vmem:[#allocation60_spill] sm:$0xff] }
 0x80c   : > { %v4665_v35 = vpack.c.bf16 %v4633_v7, %v4633_v7  ;;  %7787 = vrcp.f32 %v4560_v49  ;;  %v10526_v34 = vpop.eup %7785  ;;  %v4647_v57 = vmul.f32 %v7784_v54, %v10352_v56  ;;  %v10529_v16 = vpop.f32.mrf.mxu3 }
 0x80d   : > { %v4666_v18 = vpack.c.bf16 %v4634_v15, %v4634_v15  ;;  %12006 = vst [vmem:[#allocation96_spill] sm:$0xff] %v10529_v16  ;;  %v4561_v48 = vsel %vm1528_vm1, %v10526_v34, 0.0  ;;  %v12010_v15 = vld [vmem:[#allocation40_spill] sm:$0xff] }
 0x80e   : > { %v4745_v24 = vunpack.c.l.b16 %v4665_v35  ;;  %v4679_v29 = vpack.c.bf16 %v4647_v57, %v4647_v57 }
 0x80f   : > { %v4746_v9 = vunpack.c.l.b16 %v4666_v18 }
 0x810   : > { %v4920_v56 = vunpack.c.l.b16 %v4679_v29 }
 0x811   : > { %v4747_v41 = vpack.c.b16 %v4746_v9, %v4745_v24  ;;  %5637 = vrot.lane.b32.xlu2 %v12007_v39, %s8197_s14 }
 0x812   : > { %v4569_v25 = vpop.xlane.xlu0 %4568  ;;  %v7788_v5 = vpop.eup %7787 }
 0x813   : > { %v4648_v12 = vmul.f32 %v7788_v5, %v10360_v40  ;;  %v4527_v55 = vpop.xlane.xlu1 %4526  ;;  %4562 = vadd.xlane.f32.xlu1 %v4561_v48  ;;  %7192 = vmatmul.msk.bf16.vlgmr.msra.gmra.mxu0 %vm1528_vm1, %v4747_v41  ;;  %7789 = vrcp.f32 %v4569_v25  ;;  %v12011_v5 = vld [vmem:[#allocation43_spill] sm:$0xff] }
 0x814   : > { %4861 = vmatpush.bf16.msra.mxu0 %v9927_v50  ;;  %7791 = vrcp.f32 %v4527_v55  ;;  %v10540_v14 = vpop.f32.mrf.mxu3 }
 0x815   : > { %v4680_v60 = vpack.c.bf16 %v4648_v12, %v4648_v12  ;;  %12009 = vst [vmem:[#allocation59_spill] sm:$0xff] %v10540_v14 }
 0x817   : > { %v4921_v47 = vunpack.c.l.b16 %v4680_v60 }
 0x819   : > { %v4922_v17 = vpack.c.b16 %v4921_v47, %v4920_v56  ;;  %5659 = vrot.lane.b32.xlu2 %v12008_v23, %s8197_s14  ;;  %v7790_v40 = vpop.eup %7789  ;;  %v12012_v23 = vld [vmem:[#allocation49_spill] sm:$0xff] }
 0x81a   : > { %v4572_v7 = vpop.xlane.xlu0 %4571  ;;  %v7792_v50 = vpop.eup %7791  ;;  %v4651_v49 = vmul.f32 %v7790_v40, %v10369_v32 }
 0x81b   : > { %7793 = vrcp.f32 %v4572_v7  ;;  %5515 = vrot.lane.b32.xlu0 %v12010_v15, %s8197_s14  ;;  %v4530_v38 = vpop.xlane.xlu1 %4529  ;;  %7199 = vmatmul.msk.bf16.vlgmr.msrb.gmra.mxu1 %vm1528_vm1, %v4922_v17  ;;  %v4581_v35 = vpop.xlane.xlu2 %4580  ;;  %v4637_v54 = vmul.f32 %v7792_v50, %v10367_v43  ;;  %v12013_v50 = vld [vmem:[#allocation31_spill] sm:$0xff] }
 0x81c   : > { %7795 = vrcp.f32 %v4530_v38  ;;  %5036 = vmatpush.bf16.msrb.mxu1 %v10010_v0  ;;  %v4683_v57 = vpack.c.bf16 %v4651_v49, %v4651_v49  ;;  %v5342_v12 = vpop.f32.mrf.mxu3 }
 0x81d   : > { %v4669_v41 = vpack.c.bf16 %v4637_v54, %v4637_v54 }
 0x81e   : > { %v4970_v43 = vunpack.c.l.b16 %v4683_v57 }
 0x821   : > { %v7794_v18 = vpop.eup %7793 }
 0x822   : > { %v4652_v24 = vmul.f32 %v7794_v18, %v10376_v27  ;;  %v7796_v9 = vpop.eup %7795  ;;  %v4795_v27 = vunpack.c.l.b16 %v4669_v41 }
 0x823   : > { %v4638_v25 = vmul.f32 %v7796_v9, %v10381_v45  ;;  %5539 = vrot.lane.b32.xlu0 %v12011_v5, %s8197_s14  ;;  %v4584_v48 = vpop.xlane.xlu0 %4583  ;;  %v4539_v29 = vpop.xlane.xlu1 %4538 }
 0x824   : > { %v4684_v39 = vpack.c.bf16 %v4652_v24, %v4652_v24  ;;  %7797 = vrcp.f32 %v4584_v48  ;;  %v4542_v0 = vpop.xlane.xlu2 %4541  ;;  %v10562_v49 = vpop.f32.mrf.mxu3 }
 0x825   : > { %v4670_v55 = vpack.c.bf16 %v4638_v25, %v4638_v25  ;;  %7799 = vrcp.f32 %v4539_v29  ;;  %v12015_v25 = vld [vmem:[#allocation39_spill] sm:$0xff]  ;;  %v5291_v29 = vld [vmem:[#allocation8 + $0x300] sm:$0xff] }
 0x826   : > { %v4971_v32 = vunpack.c.l.b16 %v4684_v39  ;;  %7801 = vrcp.f32 %v4542_v0 }
 0x827   : > { %v4796_v60 = vunpack.c.l.b16 %v4670_v55  ;;  %7803 = vrcp.f32 %v4581_v35 }
 0x828   : > { %v4972_v56 = vpack.c.b16 %v4971_v32, %v4970_v43  ;;  %v12016_v32 = vld [vmem:[#allocation58_spill] sm:$0xff]  ;;  %v5379_v43 = vsel %vm1057_vm0, %v10101_v63, 0 }
 0x829   : > { %v4797_v47 = vpack.c.b16 %v4796_v60, %v4795_v27 }
 0x82a   : > { %v7798_v17 = vpop.eup %7797 }
 0x82b   : > { %v7800_v45 = vpop.eup %7799  ;;  %5589 = vrot.lane.b32.xlu0 %v12012_v23, %s8197_s14  ;;  %7194 = vmatmul.msk.bf16.vlgmr.msrb.gmra.mxu0 %vm1528_vm1, %v4797_v47  ;;  %v4656_v54 = vmul.f32 %v7798_v17, %v10401_v37  ;;  %v10583_v47 = vadd.f32 %v5342_v12, %v5291_v29  ;;  %v12017_v17 = vld [vmem:[#allocation44_spill] sm:$0xff]  ;;  %v5298_v23 = vld [vmem:[#allocation8 + $0x338] sm:$0xff]  ;;  %v3198_v29 = vpop.f32.mrf.mxu2 }
 0x82c   : > { %v7802_v7 = vpop.eup %7801  ;;  %4911 = vmatpush.bf16.msrb.mxu0 %v9959_v10  ;;  %7201 = vmatmul.msk.bf16.vlgmr.msra.gmra.mxu1 %vm1528_vm1, %v4972_v56  ;;  %v4551_v40 = vpop.xlane.xlu2 %4550  ;;  %v4641_v38 = vmul.f32 %v7800_v45, %v10393_v3  ;;  %v12014_v3 = vld [vmem:[#allocation53_spill] sm:$0xff] }
 0x82d   : > { %v7804_v15 = vpop.eup %7803  ;;  %v4642_v35 = vmul.f32 %v7802_v7, %v10405_v22  ;;  %5086 = vmatpush.bf16.msra.mxu1 %v10129_v28  ;;  %5443 = vrot.lane.b32.xlu1 %v12013_v50, %s8197_s14  ;;  %v4688_v9 = vpack.c.bf16 %v4656_v54, %v4656_v54  ;;  %v10566_v57 = vpop.xlane.xlu0 %4592  ;;  %7805 = vrcp.f32 %v4551_v40  ;;  %v5707_v63 = vsel %vm1528_vm1, %v10583_v47, -inf  ;;  %v12018_v40 = vld [vmem:[#allocation65_spill] sm:$0xff] }
 0x82e   : > { %v4655_v18 = vmul.f32 %v7804_v15, %v10389_v21  ;;  %v4673_v10 = vpack.c.bf16 %v4641_v38, %v4641_v38  ;;  %v10572_v37 = vpop.f32.mrf.mxu3 }
 0x82f   : > { %v4674_v24 = vpack.c.bf16 %v4642_v35, %v4642_v35  ;;  %v5021_v5 = vunpack.c.l.b16 %v4688_v9 }
 0x830   : > { %v4687_v22 = vpack.c.bf16 %v4655_v18, %v4655_v18  ;;  %v4845_v28 = vunpack.c.l.b16 %v4673_v10 }
 0x831   : > { %v4846_v39 = vunpack.c.l.b16 %v4674_v24 }
 0x832   : > { %v5020_v21 = vunpack.c.l.b16 %v4687_v22 }
 0x833   : > { %5611 = vrot.lane.b32.xlu0 %v12014_v3, %s8197_s14  ;;  %v4847_v48 = vpack.c.b16 %v4846_v39, %v4845_v28  ;;  %v7806_v56 = vpop.eup %7805 }
 0x834   : > { %v3063_v41 = vpop.xlane.xlu2 %3062  ;;  %v5022_v0 = vpack.c.b16 %v5021_v5, %v5020_v21  ;;  %v4645_v45 = vmul.f32 %v7806_v56, %v10413_v20  ;;  %v7337_v5 = vld [vmem:[#allocation10 + $0x18] sm:$0xff] }
 0x835   : > { %5517 = vrot.lane.b32.xlu1 %v12015_v25, %s8197_s14  ;;  %v3060_v27 = vpop.xlane.xlu0 %3059 }
 0x836   : > { %v4677_v15 = vpack.c.bf16 %v4645_v45, %v4645_v45 }
 0x838   : > { %v4895_v18 = vunpack.c.l.b16 %v4677_v15 }
 0x83b   : > { %5661 = vrot.lane.b32.xlu0 %v12016_v32, %s8197_s14  ;;  %v10576_v55 = vpop.permute.xlu1 %5371  ;;  %7196 = vmatmul.msk.bf16.vlgmr.msra.gmra.mxu0 %vm1528_vm1, %v4847_v48  ;;  %v7336_v48 = vld [vmem:[#allocation10 + $0x10] sm:$0xff]  ;;  %v3200_v32 = vpop.f32.mrf.mxu2 }
 0x83c   : > { %4961 = vmatpush.bf16.msra.mxu0 %v10019_v26  ;;  %7203 = vmatmul.msk.bf16.vlgmr.msrb.gmra.mxu1 %vm1528_vm1, %v5022_v0  ;;  %v4554_v60 = vpop.xlane.xlu2 %4553  ;;  %v5416_v26 = vpop.f32.mrf.mxu3 }
 0x83d   : > { %5388 = vmatpush.bf16.xpose.msrb.mxu1 %v5379_v43  ;;  %7807 = vrcp.f32 %v4554_v60  ;;  %5541 = vrot.lane.b32.xlu1 %v12017_v17, %s8197_s14  ;;  %v10594_v50 = vadd.f32 %v5416_v26, %v5298_v23 }
 0x83e   : > { %7809 = vrcp.f32 %v3060_v27 }
 0x83f   : > { %7811 = vrcp.f32 %v3063_v41  ;;  %v5728_v3 = vsel %vm1528_vm1, %v10594_v50, -inf }
 0x842   : > { %5708 = vmax.xlane.f32.xlu2 %v5707_v63  ;;  %v12019_v63 = vld [vmem:[#allocation47_spill] sm:$0xff] }
 0x843   : > { %v7808_v7 = vpop.eup %7807  ;;  %5683 = vrot.lane.b32.xlu0 %v12018_v40, %s8197_s14  ;;  %v5468_v12 = vpop.permute.xlu1 %5467  ;;  %v12021_v40 = vld [vmem:[#allocation117_spill] sm:$0xff] }
 0x844   : > { %v4646_v38 = vmul.f32 %v7808_v7, %v10439_v36  ;;  %7236 = vmatmul.msk.bf16.vlgmr.msrb.gmra.mxu3 %vm1057_vm0, %v5468_v12  ;;  %v7810_v35 = vpop.eup %7809 }
 0x845   : > { %v7812_v20 = vpop.eup %7811  ;;  %v3138_v24 = vmul.f32 %v7810_v35, %v10426_v31  ;;  %v4434_v31 = vsub.f32 %v10307_v1, %v10497_v33  ;;  %v4566_v1 = vpop.xlane.xlu2 %4565  ;;  %v3579_v33 = vpack.c.bf16 %v9967_v30, %v9950_v13  ;;  %v12020_v30 = vld [vmem:[#allocation102_spill] sm:$0xff] }
 0x846   : > { %v4678_v54 = vpack.c.bf16 %v4646_v38, %v4646_v38  ;;  %v3139_v9 = vmul.f32 %v7812_v20, %v10428_v61  ;;  %v3580_v12 = vpack.c.bf16 %v12021_v40, %v12020_v30 }
 0x847   : > { %v3170_v36 = vpack.c.bf16 %v3138_v24, %v3138_v24  ;;  %v4495_v0 = vmul.f32 1.442695, %v4434_v31  ;;  %v5446_v60 = vpop.permute.xlu0 %5445 }
 0x848   : > { %v4896_v10 = vunpack.c.l.b16 %v4678_v54  ;;  %v3171_v28 = vpack.c.bf16 %v3139_v9, %v3139_v9 }
 0x849   : > { %v3480_v39 = vunpack.c.l.b16 %v3170_v36  ;;  %7813 = vpow2.f32 %v4495_v0  ;;  %v12024_v0 = vld [vmem:[#allocation16_spill] sm:$0xff] }
 0x84a   : > { %v4897_v22 = vpack.c.b16 %v4896_v10, %v4895_v18  ;;  %5729 = vmax.xlane.f32.xlu2 %v5728_v3  ;;  %v3481_v25 = vunpack.c.l.b16 %v3171_v28  ;;  %7815 = vrcp.f32 %v10566_v57  ;;  %v5451_v28 = vsel %vm1057_vm0, %v5446_v60, 0 }
 0x84b   : > { %v10600_v41 = vpop.permute.xlu1 %5419 }
 0x84c   : > { %7198 = vmatmul.msk.bf16.vlgmr.msrb.gmra.mxu0 %vm1528_vm1, %v4897_v22  ;;  %v3482_v61 = vpack.c.b16 %v3481_v25, %v3480_v39 }
 0x84d   : > { %5011 = vmatpush.bf16.msrb.mxu0 %v10122_v19  ;;  %v3578_v19 = vpack.c.bf16 %v3200_v32, %v3198_v29  ;;  %v4575_v56 = vpop.xlane.xlu2 %4574  ;;  %v12025_v32 = vld [vmem:[#allocation54_spill] sm:$0xff] }
 0x84f   : > { %v10607_v43 = vpop.eup %7813  ;;  %v10619_v26 = vpop.permute.xlu0 %5491 }
 0x850   : > { %v4588_v27 = vsel %vm1528_vm1, %v10607_v43, 0.0  ;;  %v7816_v45 = vpop.eup %7815  ;;  %v10621_v7 = vpop.f32.mrf.mxu1 }
 0x851   : > { %v4659_v23 = vmul.f32 %v7816_v45, %v10417_v59  ;;  %v12022_v59 = vld [vmem:[#allocation51_spill] sm:$0xff] }
 0x853   : > { %v3484_v21 = vpop.permute.xlu1 %3483  ;;  %v4691_v57 = vpack.c.bf16 %v4659_v23, %v4659_v23 }
 0x854   : > { %3496 = vmatpush.bf16.msrb.mxu2 %v3484_v21 }
 0x855   : > { %v4578_v20 = vpop.xlane.xlu2 %4577  ;;  %v5070_v18 = vunpack.c.l.b16 %v4691_v57 }
 0x857   : > { %7122 = vmatmul.msk.bf16.vlgmr.msrb.gmra.mxu2 %vm1528_vm1, %v3482_v61 }
 0x858   : > { %3660 = vmatpush.bf16.msra.mxu2 %v7337_v5  ;;  %v10632_v36 = vpop.f32.mrf.mxu1  ;;  %v12023_v5 = vld [vmem:[#allocation56_spill] sm:$0xff] }
 0x85c   : > { %3661 = vmatpush.bf16.msra.mxu2 %v7336_v48 }
 0x85d   : > { %v10639_v21 = vpop.permute.xlu2 %5493 }
 0x867   : > { %4589 = vadd.xlane.f32.xlu1 %v4588_v27  ;;  %7134 = vmatmul.msk.bf16.vlgmr.msra.gmra.mxu2 %vm1057_vm0, %v3578_v19  ;;  %v3581_v19 = vpack.c.bf16 %v12025_v32, %v12024_v0  ;;  %v10644_v27 = vpop.f32.mrf.mxu1 }
 0x877   : > { %7135 = vmatmul.msk.bf16.gmra.mxu2 %vm1057_vm0, %v3579_v33  ;;  %v3298_v33 = vpop.f32.mrf.mxu2 }
 0x87a   : > { %v10630_v9 = vpop.xlane.xlu0 %4586 }
 0x87e   : > { %v4596_v17 = vpop.xlane.xlu1 %4595 }
 0x87f   : > { %7817 = vrcp.f32 %v4596_v17  ;;  %v3300_v57 = vpop.f32.mrf.mxu2 }
 0x880   : > { %5563 = vrot.lane.b32.xlu1 %v12019_v63, %s8197_s14  ;;  %7819 = vrcp.f32 %v4566_v1  ;;  %v12026_v1 = vld [vmem:[#allocation61_spill] sm:$0xff]  ;;  %v10652_v63 = vpop.permute.xlu2 %5565 }
 0x885   : > { %v7818_v13 = vpop.eup %7817 }
 0x886   : > { %v4660_v15 = vmul.f32 %v7818_v13, %v10516_v11  ;;  %v4563_v38 = vpop.xlane.xlu1 %4562  ;;  %v7820_v35 = vpop.eup %7819 }
 0x887   : > { %7821 = vrcp.f32 %v4563_v38  ;;  %7136 = vmatmul.msk.bf16.gmra.mxu2 %vm1057_vm0, %v3580_v12  ;;  %v4650_v10 = vmul.f32 %v7820_v35, %v10450_v6  ;;  %v10656_v12 = vpop.f32.mrf.mxu1  ;;  %v3582_v38 = vpack.c.bf16 %v3300_v57, %v3298_v33  ;;  %v12028_v35 = vld [vmem:[#allocation70_spill] sm:$0xff]  ;;  %v12031_v33 = vld [vmem:[#allocation115_spill] sm:$0xff] }
 0x888   : > { %v4692_v54 = vpack.c.bf16 %v4660_v15, %v4660_v15  ;;  %5613 = vrot.lane.b32.xlu1 %v12022_v59, %s8197_s14  ;;  %7823 = vrcp.f32 %v4578_v20  ;;  %v5355_v20 = vsel %vm1057_vm0, %v12028_v35, 0 }
 0x889   : > { %v4682_v11 = vpack.c.bf16 %v4650_v10, %v4650_v10  ;;  %7825 = vrcp.f32 %v4575_v56  ;;  %v12027_v56 = vld [vmem:[#allocation63_spill] sm:$0xff] }
 0x88a   : > { %v5071_v24 = vunpack.c.l.b16 %v4692_v54 }
 0x88b   : > { %v4946_v6 = vunpack.c.l.b16 %v4682_v11 }
 0x88c   : > { %v5072_v3 = vpack.c.b16 %v5071_v24, %v5070_v18 }
 0x88d   : > { %v7822_v22 = vpop.eup %7821  ;;  %v5516_v61 = vpop.permute.xlu0 %5515 }
 0x88e   : > { %v4649_v39 = vmul.f32 %v7822_v22, %v10526_v34  ;;  %7205 = vmatmul.msk.bf16.vlgmr.msra.gmra.mxu1 %vm1528_vm1, %v5072_v3  ;;  %v7824_v29 = vpop.eup %7823 }
 0x88f   : > { %5460 = vmatpush.bf16.xpose.msra.mxu1 %v5451_v28  ;;  %v7826_v34 = vpop.eup %7825  ;;  %v4654_v60 = vmul.f32 %v7824_v29, %v10473_v8  ;;  %v10663_v18 = vpop.f32.mrf.mxu1  ;;  %v12029_v28 = vld [vmem:[#allocation108_spill] sm:$0xff] }
 0x890   : > { %v4681_v25 = vpack.c.bf16 %v4649_v39, %v4649_v39  ;;  %5635 = vrot.lane.b32.xlu1 %v12023_v5, %s8197_s14  ;;  %v4653_v17 = vmul.f32 %v7826_v34, %v10461_v58  ;;  %v5588_v58 = vpop.permute.xlu2 %5587  ;;  %v12030_v39 = vld [vmem:[#allocation26_spill] sm:$0xff] }
 0x891   : > { %v4686_v45 = vpack.c.bf16 %v4654_v60, %v4654_v60  ;;  %v5297_v34 = vld [vmem:[#allocation8 + $0x330] sm:$0xff]  ;;  %v12032_v60 = vld [vmem:[#allocation79_spill] sm:$0xff] }
 0x892   : > { %v4945_v31 = vunpack.c.l.b16 %v4681_v25  ;;  %v4685_v13 = vpack.c.bf16 %v4653_v17, %v4653_v17  ;;  %v3583_v25 = vpack.c.bf16 %v12030_v39, %v12029_v28  ;;  %v10690_v17 = vadd.f32 %v10572_v37, %v5297_v34 }
 0x893   : > { %v4996_v40 = vunpack.c.l.b16 %v4686_v45 }
 0x894   : > { %v4947_v48 = vpack.c.b16 %v4946_v6, %v4945_v31  ;;  %v4995_v15 = vunpack.c.l.b16 %v4685_v13  ;;  %v5292_v6 = vld [vmem:[#allocation8 + $0x308] sm:$0xff]  ;;  %v5725_v13 = vsel %vm1528_vm1, %v10690_v17, -inf }
 0x895   : > { %v5540_v23 = vpop.permute.xlu0 %5539  ;;  %v10679_v29 = vadd.f32 %v10562_v49, %v5292_v6 }
 0x896   : > { %7200 = vmatmul.msk.bf16.vlgmr.msra.gmra.mxu0 %vm1528_vm1, %v4947_v48  ;;  %v4997_v8 = vpack.c.b16 %v4996_v40, %v4995_v15 }
 0x897   : > { %5061 = vmatpush.bf16.msra.mxu0 %v12026_v1  ;;  %7137 = vmatmul.msk.bf16.gmra.mxu2 %vm1057_vm0, %v3581_v19  ;;  %v10674_v5 = vpop.f32.mrf.mxu1  ;;  %v5710_v19 = vsel %vm1528_vm1, %v10679_v29, -inf }
 0x898   : > { %5685 = vrot.lane.b32.xlu1 %v12027_v56, %s8197_s14  ;;  %v10668_v22 = vpop.permute.xlu2 %5637  ;;  %v3584_v56 = vpack.c.bf16 %v12032_v60, %v12031_v33 }
 0x89d   : > { %v5590_v54 = vpop.permute.xlu0 %5589 }
 0x89e   : > { %7232 = vmatmul.msk.bf16.vlgmr.msrb.gmra.mxu1 %vm1057_vm0, %v10576_v55  ;;  %v5595_v10 = vsel %vm1057_vm0, %v5590_v54, 0 }
 0x89f   : > { %v5444_v30 = vpop.permute.xlu1 %5443  ;;  %v10681_v0 = vpop.f32.mrf.mxu1 }
 0x8a0   : > { %v5660_v31 = vpop.permute.xlu2 %5659 }
 0x8a5   : > { %v10670_v11 = vpop.permute.xlu0 %5611 }
 0x8a6   : > { %7202 = vmatmul.msk.bf16.vlgmr.msrb.gmra.mxu0 %vm1528_vm1, %v4997_v8  ;;  %v5304_v8 = vld [vmem:[#allocation8 + $0x368] sm:$0xff] }
 0x8a7   : > { %v5518_v59 = vpop.permute.xlu1 %5517  ;;  %5364 = vmatpush.bf16.xpose.msrb.mxu0 %v5355_v20  ;;  %7138 = vmatmul.msk.bf16.gmra.mxu2 %vm1057_vm0, %v3582_v38  ;;  %v10692_v49 = vpop.f32.mrf.mxu1 }
 0x8a8   : > { %v5523_v55 = vsel %vm1057_vm0, %v5518_v59, 0 }
 0x8a9   : > { %5532 = vmatpush.bf16.xpose.msrb.mxu1 %v5523_v55 }
 0x8ad   : > { %v5662_v48 = vpop.permute.xlu0 %5661 }
 0x8ae   : > { %7235 = vmatmul.msk.bf16.vlgmr.msra.gmra.mxu1 %vm1057_vm0, %v5444_v30  ;;  %v5667_v32 = vsel %vm1057_vm0, %v5662_v48, 0  ;;  %v5303_v30 = vld [vmem:[#allocation8 + $0x360] sm:$0xff] }
 0x8af   : > { %v5542_v24 = vpop.permute.xlu1 %5541  ;;  %v10704_v20 = vpop.f32.mrf.mxu1 }
 0x8b0   : > { %v5547_v3 = vsel %vm1057_vm0, %v5542_v24, 0 }
 0x8b1   : > { %5604 = vmatpush.bf16.xpose.msra.mxu1 %v5595_v10  ;;  %5556 = vmatpush.bf16.xpose.msra.mxu3 %v5547_v3  ;;  %v12033_v10 = vld [vmem:[#allocation91_spill] sm:$0xff] }
 0x8b5   : > { %v5709_v1 = vpop.xlane.xlu2 %5708 }
 0x8b7   : > { %7139 = vmatmul.msk.bf16.gmra.mxu2 %vm1057_vm0, %v3583_v25  ;;  %v10720_v6 = vpop.f32.mrf.mxu1 }
 0x8b8   : > { %7239 = vmatmul.msk.bf16.vlgmr.msra.gmra.mxu3 %vm1057_vm0, %v5540_v23  ;;  %v3398_v23 = vpop.f32.mrf.mxu2 }
 0x8bd   : > { %v5730_v57 = vpop.xlane.xlu2 %5729 }
 0x8be   : > { %7238 = vmatmul.msk.bf16.vlgmr.msrb.gmra.mxu1 %vm1057_vm0, %v5516_v61  ;;  %v5803_v61 = vsub.f32 %v10583_v47, %v5709_v1  ;;  %v5810_v38 = vsub.f32 %v10594_v50, %v5730_v57 }
 0x8bf   : > { %5676 = vmatpush.bf16.xpose.msrb.mxu1 %v5667_v32 }
 0x8c0   : > { %v5835_v40 = vmul.f32 1.442695, %v5803_v61  ;;  %v3400_v54 = vpop.f32.mrf.mxu2  ;;  %v5849_v55 = vmul.f32 1.442695, %v5810_v38  ;;  %v10733_v61 = vpop.f32.mrf.mxu1  ;;  %v12036_v38 = vld [vmem:[#allocation17_spill] sm:$0xff] }
 0x8c2   : > { %5711 = vmax.xlane.f32.xlu1 %v5710_v19  ;;  %7827 = vpow2.f32 %v5835_v40  ;;  %v10726_v19 = vpop.f32.mrf.mxu0 }
 0x8c3   : > { %7829 = vrcp.f32 %v10630_v9 }
 0x8c4   : > { %7831 = vpow2.f32 %v5849_v55 }
 0x8c7   : > { %7140 = vmatmul.msk.bf16.gmra.mxu2 %vm1057_vm0, %v3584_v56  ;;  %v5486_v45 = vpop.f32.mrf.mxu3 }
 0x8c8   : > { %v10698_v15 = vadd.f32 %v5486_v45, %v5303_v30  ;;  %v10713_v50 = vpop.eup %7827  ;;  %v3586_v45 = vpack.c.bf16 %v3400_v54, %v3398_v23  ;;  %v12035_v30 = vld [vmem:[#allocation62_spill] sm:$0xff] }
 0x8c9   : > { %v5899_v3 = vsel %vm1528_vm1, %v10713_v50, 0.0  ;;  %v7830_v25 = vpop.eup %7829  ;;  %v5427_v40 = vsel %vm1057_vm0, %v12035_v30, 0 }
 0x8ca   : > { %5726 = vmax.xlane.f32.xlu1 %v5725_v13  ;;  %v5743_v47 = vsel %vm1528_vm1, %v10698_v15, -inf  ;;  %v10722_v48 = vpop.eup %7831  ;;  %v4657_v9 = vmul.f32 %v7830_v25, %v10508_v46  ;;  %v12039_v25 = vld [vmem:[#allocation21_spill] sm:$0xff] }
 0x8cb   : > { %v5920_v34 = vsel %vm1528_vm1, %v10722_v48, 0.0 }
 0x8cc   : > { %v4689_v1 = vpack.c.bf16 %v4657_v9, %v4657_v9 }
 0x8ce   : > { %7241 = vmatmul.msk.bf16.vlgmr.msra.gmra.mxu1 %vm1057_vm0, %v5588_v58  ;;  %v12034_v58 = vld [vmem:[#allocation81_spill] sm:$0xff]  ;;  %v5045_v13 = vunpack.c.l.b16 %v4689_v1 }
 0x8cf   : > { %v5488_v37 = vpop.f32.mrf.mxu3  ;;  %v3585_v24 = vpack.c.bf16 %v12034_v58, %v12033_v10  ;;  %v5499_v10 = vsel %vm1057_vm0, %v10639_v21, 0  ;;  %v12041_v21 = vld [vmem:[#allocation36_spill] sm:$0xff] }
 0x8d0   : > { %v10702_v35 = vadd.f32 %v5488_v37, %v5304_v8  ;;  %v10743_v8 = vpop.f32.mrf.mxu1 }
 0x8d2   : > { %5744 = vmax.xlane.f32.xlu1 %v5743_v47  ;;  %v5746_v59 = vsel %vm1528_vm1, %v10702_v35, -inf  ;;  %v12037_v47 = vld [vmem:[#allocation20_spill] sm:$0xff] }
 0x8d3   : > { %5747 = vmax.xlane.f32.xlu2 %v5746_v59  ;;  %v3587_v54 = vpack.c.bf16 %v12037_v47, %v12036_v38  ;;  %v5684_v47 = vpop.permute.xlu0 %5683 }
 0x8d7   : > { %7141 = vmatmul.msk.bf16.gmra.mxu2 %vm1057_vm0, %v3585_v24  ;;  %v12038_v24 = vld [vmem:[#allocation42_spill] sm:$0xff] }
 0x8d8   : > { %v10752_v55 = vpop.f32.mrf.mxu1 }
 0x8da   : > { %v4590_v28 = vpop.xlane.xlu1 %4589  ;;  %5900 = vadd.xlane.f32.xlu1 %v5899_v3  ;;  %v10718_v39 = vpop.f32.mrf.mxu2 }
 0x8db   : > { %7833 = vrcp.f32 %v4590_v28 }
 0x8de   : > { %7244 = vmatmul.msk.bf16.vlgmr.msrb.gmra.mxu1 %vm1057_vm0, %v5660_v31 }
 0x8e0   : > { %v10767_v1 = vpop.f32.mrf.mxu1 }
 0x8e1   : > { %v7834_v32 = vpop.eup %7833  ;;  %12040 = vst [vmem:[#allocation124_spill] sm:$0xff] %v10767_v1 }
 0x8e2   : > { %v4658_v33 = vmul.f32 %v7834_v32, %v10607_v43  ;;  %5921 = vadd.xlane.f32.xlu1 %v5920_v34  ;;  %v10731_v60 = vpop.f32.mrf.mxu2  ;;  %v10741_v43 = vpop.f32.mrf.mxu0 }
 0x8e4   : > { %v4690_v56 = vpack.c.bf16 %v4658_v33, %v4658_v33  ;;  %v12042_v33 = vld [vmem:[#allocation84_spill] sm:$0xff] }
 0x8e6   : > { %v5046_v46 = vunpack.c.l.b16 %v4690_v56  ;;  %v12043_v56 = vld [vmem:[#allocation25_spill] sm:$0xff] }
 0x8e7   : > { %7142 = vmatmul.msk.bf16.gmra.mxu2 %vm1057_vm0, %v3586_v45  ;;  %v3588_v45 = vpack.c.bf16 %v12043_v56, %v12042_v33 }
 0x8e8   : > { %v5047_v31 = vpack.c.b16 %v5046_v46, %v5045_v13  ;;  %v5571_v46 = vsel %vm1057_vm0, %v10652_v63, 0 }
 0x8ea   : > { %7204 = vmatmul.msk.bf16.vlgmr.msra.gmra.mxu0 %vm1528_vm1, %v5047_v31  ;;  %v10739_v57 = vpop.f32.mrf.mxu2  ;;  %v10749_v59 = vpop.f32.mrf.mxu0 }
 0x8eb   : > { %5436 = vmatpush.bf16.xpose.msra.mxu0 %v5427_v40 }
 0x8f2   : > { %v5564_v23 = vpop.permute.xlu1 %5563  ;;  %v10745_v37 = vpop.f32.mrf.mxu2 }
 0x8f3   : > { %v10763_v9 = vpop.f32.mrf.mxu0 }
 0x8f7   : > { %7143 = vmatmul.msk.bf16.gmra.mxu2 %vm1057_vm0, %v3587_v54 }
 0x8fa   : > { %v5614_v58 = vpop.permute.xlu1 %5613  ;;  %7231 = vmatmul.msk.bf16.vlgmr.msrb.gmra.mxu0 %vm1057_vm0, %v12038_v24  ;;  %v10758_v3 = vpop.f32.mrf.mxu2  ;;  %v5643_v24 = vsel %vm1057_vm0, %v10668_v22, 0 }
 0x8fb   : > { %v5619_v28 = vsel %vm1057_vm0, %v5614_v58, 0  ;;  %5508 = vmatpush.bf16.xpose.msrb.mxu0 %v5499_v10  ;;  %6121 = vrot.lane.b32.xlu1 %v12039_v25, %s8197_s14  ;;  %v10775_v13 = vpop.f32.mrf.mxu0  ;;  %v12046_v10 = vld [vmem:[#allocation22_spill] sm:$0xff]  ;;  %v12047_v58 = vld [vmem:[#allocation80_spill] sm:$0xff] }
 0x8fc   : > { %5628 = vmatpush.bf16.xpose.msrb.mxu3 %v5619_v28 }
 0x902   : > { %v5636_v32 = vpop.permute.xlu1 %5635  ;;  %v10765_v34 = vpop.f32.mrf.mxu2 }
 0x903   : > { %7242 = vmatmul.msk.bf16.vlgmr.msrb.gmra.mxu3 %vm1057_vm0, %v10670_v11  ;;  %6246 = vrot.lane.b32.xlu1 %v12041_v21, %s8197_s14  ;;  %v10787_v38 = vpop.f32.mrf.mxu0 }
 0x907   : > { %7144 = vmatmul.msk.bf16.gmra.mxu2 %vm1057_vm0, %v3588_v45 }
 0x90a   : > { %v5686_v31 = vpop.permute.xlu1 %5685  ;;  %7234 = vmatmul.msk.bf16.vlgmr.msra.gmra.mxu0 %vm1057_vm0, %v10600_v41  ;;  %v10782_v30 = vpop.f32.mrf.mxu2  ;;  %v3589_v41 = vpack.c.bf16 %v12047_v58, %v12046_v10  ;;  %v5302_v58 = vld [vmem:[#allocation8 + $0x358] sm:$0xff] }
 0x90b   : > { %v5691_v11 = vsel %vm1057_vm0, %v5686_v31, 0  ;;  %5580 = vmatpush.bf16.xpose.msra.mxu0 %v5571_v46  ;;  %v10785_v40 = vpop.f32.mrf.mxu1  ;;  %v10803_v25 = vpop.f32.mrf.mxu0  ;;  %v3590_v46 = vpack.c.bf16 %v10731_v60, %v10718_v39  ;;  %v5296_v31 = vld [vmem:[#allocation8 + $0x328] sm:$0xff] }
 0x90c   : > { %12044 = vst [vmem:[#allocation87_spill] sm:$0xff] %v10785_v40  ;;  %5700 = vmatpush.bf16.xpose.msra.mxu3 %v5691_v11 }
 0x912   : > { %v10789_v54 = vpop.f32.mrf.mxu2 }
 0x913   : > { %7245 = vmatmul.msk.bf16.vlgmr.msra.gmra.mxu3 %vm1057_vm0, %v5684_v47  ;;  %v10792_v63 = vpop.f32.mrf.mxu1  ;;  %v10809_v45 = vpop.f32.mrf.mxu0 }
 0x914   : > { %12045 = vst [vmem:[#allocation73_spill] sm:$0xff] %v10792_v63 }
 0x917   : > { %7145 = vmatmul.msk.bf16.gmra.mxu2 %vm1057_vm0, %v3589_v41 }
 0x91a   : > { %7237 = vmatmul.msk.bf16.vlgmr.msrb.gmra.mxu0 %vm1057_vm0, %v10619_v26  ;;  %v10801_v28 = vpop.f32.mrf.mxu2 }
 0x91b   : > { %5652 = vmatpush.bf16.xpose.msrb.mxu0 %v5643_v24  ;;  %v10805_v21 = vpop.f32.mrf.mxu1  ;;  %v10823_v10 = vpop.f32.mrf.mxu0 }
 0x922   : > { %v10807_v33 = vpop.f32.mrf.mxu2 }
 0x923   : > { %v5392_v56 = vpop.f32.mrf.mxu1  ;;  %v10836_v16 = vpop.f32.mrf.mxu0 }
 0x924   : > { %v10814_v22 = vadd.f32 %v5392_v56, %v5296_v31  ;;  %v12049_v31 = vld [vmem:[#allocation57_spill] sm:$0xff] }
 0x926   : > { %v5722_v47 = vsel %vm1528_vm1, %v10814_v22, -inf }
 0x927   : > { %7146 = vmatmul.msk.bf16.gmra.mxu2 %vm1057_vm0, %v3590_v46  ;;  %v12048_v46 = vld [vmem:[#allocation93_spill] sm:$0xff] }
 0x928   : > { %v12050_v14 = vpack.c.bf16 %v12048_v46, %v12049_v31  ;;  %v7339_v31 = vld [vmem:[#allocation10 + $0x28] sm:$0xff] }
 0x929   : > { %5175 = vmatpush.bf16.msrb.mxu2 %v7339_v31  ;;  %v5310_v31 = vld [vmem:[#allocation8 + $0x398] sm:$0xff] }
 0x92a   : > { %7240 = vmatmul.msk.bf16.vlgmr.msra.gmra.mxu0 %vm1057_vm0, %v5564_v23  ;;  %v10817_v26 = vpop.f32.mrf.mxu2 }
 0x92b   : > { %v10819_v11 = vpop.f32.mrf.mxu1 }
 0x92d   : > { %5723 = vmax.xlane.f32.xlu1 %v5722_v47 }
 0x932   : > { %v10825_v41 = vpop.f32.mrf.mxu2 }
 0x933   : > { %v5464_v39 = vpop.f32.mrf.mxu1 }
 0x934   : > { %v10827_v60 = vadd.f32 %v5464_v39, %v5302_v58 }
 0x935   : > { %v5712_v24 = vpop.xlane.xlu1 %5711 }
 0x936   : > { %v5804_v56 = vsub.f32 %v10679_v29, %v5712_v24  ;;  %v5740_v23 = vsel %vm1528_vm1, %v10827_v60, -inf }
 0x937   : > { %7147 = vmatmul.msk.bf16.gmra.mxu2 %vm1057_vm0, %v12050_v14  ;;  %5741 = vmax.xlane.f32.xlu1 %v5740_v23  ;;  %v10846_v14 = vpop.f32.mrf.mxu0  ;;  %v5308_v23 = vld [vmem:[#allocation8 + $0x388] sm:$0xff] }
 0x938   : > { %v5837_v47 = vmul.f32 1.442695, %v5804_v56 }
 0x93a   : > { %7835 = vpow2.f32 %v5837_v47  ;;  %7243 = vmatmul.msk.bf16.vlgmr.msrb.gmra.mxu0 %vm1057_vm0, %v5636_v32  ;;  %v10839_v58 = vpop.f32.mrf.mxu2 }
 0x93b   : > { %12051 = vst [vmem:[#allocation52_spill] sm:$0xff] %v10839_v58  ;;  %v10841_v39 = vpop.f32.mrf.mxu1  ;;  %v5558_v42 = vpop.f32.mrf.mxu3 }
 0x93d   : > { %v5727_v29 = vpop.xlane.xlu1 %5726 }
 0x93e   : > { %v5809_v24 = vsub.f32 %v10690_v17, %v5727_v29  ;;  %v7338_v17 = vld [vmem:[#allocation10 + $0x20] sm:$0xff] }
 0x93f   : > { %5176 = vmatpush.bf16.msrb.mxu2 %v7338_v17 }
 0x940   : > { %v10844_v52 = vpop.eup %7835  ;;  %v5847_v46 = vmul.f32 1.442695, %v5809_v24  ;;  %v12053_v24 = vld [vmem:[#allocation100_spill] sm:$0xff] }
 0x941   : > { %v5902_v56 = vsel %vm1528_vm1, %v10844_v52, 0.0  ;;  %v12055_v4 = vpack.c.bf16 %v12053_v24, %v12054_v2  ;;  %v12059_v24 = vld [vmem:[#allocation105_spill] sm:$0xff] }
 0x942   : > { %7837 = vpow2.f32 %v5847_v46  ;;  %5903 = vadd.xlane.f32.xlu2 %v5902_v56  ;;  %v10850_v32 = vpop.f32.mrf.mxu2 }
 0x943   : > { %12052 = vst [vmem:[#allocation72_spill] sm:$0xff] %v10850_v32  ;;  %v5536_v47 = vpop.f32.mrf.mxu1  ;;  %v5560_v56 = vpop.f32.mrf.mxu3  ;;  %v12067_v32 = vld [vmem:[#allocation38_spill] sm:$0xff] }
 0x944   : > { %v10852_v44 = vadd.f32 %v5536_v47, %v5308_v23  ;;  %v10866_v47 = vpop.f32.mrf.mxu0  ;;  %v10868_v53 = vadd.f32 %v5560_v56, %v5310_v31 }
 0x945   : > { %v5745_v17 = vpop.xlane.xlu1 %5744 }
 0x946   : > { %v5758_v29 = vsel %vm1528_vm1, %v10852_v44, -inf  ;;  %v5764_v2 = vsel %vm1528_vm1, %v10868_v53, -inf  ;;  %v5748_v1 = vpop.xlane.xlu2 %5747 }
 0x947   : > { %7148 = vmatmul.msk.bf16.gmra.mxu2 %vm1057_vm0, %v12055_v4  ;;  %5759 = vmax.xlane.f32.xlu1 %v5758_v29  ;;  %v12058_v29 = vld [vmem:[#allocation103_spill] sm:$0xff] }
 0x948   : > { %v10860_v62 = vpop.eup %7837  ;;  %v3593_v51 = vpack.c.bf16 %v12059_v24, %v12058_v29  ;;  %v12063_v29 = vld [vmem:[#allocation27_spill] sm:$0xff] }
 0x949   : > { %v5917_v46 = vsel %vm1528_vm1, %v10860_v62, 0.0 }
 0x94a   : > { %5918 = vadd.xlane.f32.xlu0 %v5917_v46  ;;  %v10864_v23 = vpop.f32.mrf.mxu2  ;;  %v12060_v46 = vld [vmem:[#allocation18_spill] sm:$0xff] }
 0x94b   : > { %12056 = vst [vmem:[#allocation116_spill] sm:$0xff] %v10864_v23 }
 0x94c   : > { %v10876_v63 = vpop.f32.mrf.mxu0 }
 0x94d   : > { %v10883_v31 = vpop.xlane.xlu1 %5900 }
 0x952   : > { %5765 = vmax.xlane.f32.xlu0 %v5764_v2  ;;  %v10872_v4 = vpop.f32.mrf.mxu2  ;;  %v5093_v2 = vpack.c.bf16 %v10741_v43, %v10726_v19  ;;  %v5816_v19 = vsub.f32 %v10702_v35, %v5748_v1  ;;  %v5316_v1 = vld [vmem:[#allocation8 + $0x3c8] sm:$0xff] }
 0x953   : > { %12057 = vst [vmem:[#allocation110_spill] sm:$0xff] %v10872_v4 }
 0x954   : > { %v10885_v56 = vpop.f32.mrf.mxu0 }
 0x955   : > { %v10891_v4 = vpop.xlane.xlu1 %5921 }
 0x957   : > { %7149 = vmatmul.msk.bf16.gmra.mxu2 %vm1057_vm0, %v3593_v51 }
 0x95a   : > { %6096 = vrot.lane.b32.xlu2 %v12060_v46, %s8197_s14  ;;  %v10881_v23 = vpop.f32.mrf.mxu2 }
 0x95b   : > { %12061 = vst [vmem:[#allocation66_spill] sm:$0xff] %v10881_v23  ;;  %v12065_v23 = vld [vmem:[#allocation122_spill] sm:$0xff] }
 0x962   : > { %v10887_v40 = vpop.f32.mrf.mxu2 }
 0x963   : > { %12062 = vst [vmem:[#allocation123_spill] sm:$0xff] %v10887_v40 }
 0x966   : > { %6171 = vrot.lane.b32.xlu0 %v12063_v29, %s8197_s14  ;;  %v5094_v29 = vpack.c.bf16 %v10632_v36, %v10621_v7 }
 0x967   : > { %v10895_v51 = vpop.f32.mrf.mxu0  ;;  %7214 = vmatmul.msk.bf16.vlgmr.msrb.gmra.mxu2 %vm1057_vm0, %v5093_v2  ;;  %v5815_v2 = vsub.f32 %v10698_v15, %v5745_v17  ;;  %v5861_v15 = vmul.f32 1.442695, %v5816_v19 }
 0x96a   : > { %v10898_v24 = vpop.f32.mrf.mxu2 }
 0x96b   : > { %12064 = vst [vmem:[#allocation111_spill] sm:$0xff] %v10898_v24 }
 0x96d   : > { %v6122_v46 = vpop.permute.xlu1 %6121 }
 0x96e   : > { %6221 = vrot.lane.b32.xlu0 %v12065_v23, %s8197_s14  ;;  %6134 = vmatpush.bf16.msra.mxu1 %v6122_v46  ;;  %v5309_v23 = vld [vmem:[#allocation8 + $0x390] sm:$0xff]  ;;  %v5859_v46 = vmul.f32 1.442695, %v5815_v2 }
 0x96f   : > { %v10902_v40 = vpop.f32.mrf.mxu0  ;;  %v10916_v58 = vadd.f32 %v5558_v42, %v5309_v23 }
 0x970   : > { %7839 = vpow2.f32 %v5859_v46 }
 0x971   : > { %v5761_v7 = vsel %vm1528_vm1, %v10916_v58, -inf  ;;  %7841 = vpow2.f32 %v5861_v15 }
 0x972   : > { %v10906_v43 = vpop.f32.mrf.mxu2  ;;  %7843 = vrcp.f32 %v10883_v31 }
 0x973   : > { %12066 = vst [vmem:[#allocation104_spill] sm:$0xff] %v10906_v43 }
 0x976   : > { %6271 = vrot.lane.b32.xlu0 %v12067_v32, %s8197_s14  ;;  %v5095_v32 = vpack.c.bf16 %v10763_v9, %v10749_v59 }
 0x977   : > { %7215 = vmatmul.msk.bf16.gmra.mxu2 %vm1057_vm0, %v5094_v29  ;;  %v10927_v29 = vpop.eup %7839  ;;  %v5366_v15 = vpop.f32.mrf.mxu0 }
 0x978   : > { %v5935_v42 = vsel %vm1528_vm1, %v10927_v29, 0.0  ;;  %v10934_v23 = vpop.eup %7841 }
 0x979   : > { %v5938_v19 = vsel %vm1528_vm1, %v10934_v23, 0.0 }
 0x97a   : > { %v10914_v24 = vpop.f32.mrf.mxu2 }
 0x97b   : > { %12068 = vst [vmem:[#allocation97_spill] sm:$0xff] %v10914_v24 }
 0x982   : > { %v10921_v36 = vpop.f32.mrf.mxu2 }
 0x983   : > { %12069 = vst [vmem:[#allocation125_spill] sm:$0xff] %v10921_v36  ;;  %5762 = vmax.xlane.f32.xlu2 %v5761_v7  ;;  %v5096_v7 = vpack.c.bf16 %v10656_v12, %v10644_v27  ;;  %v10959_v27 = vpop.f32.mrf.mxu0  ;;  %v5097_v12 = vpack.c.bf16 %v10787_v38, %v10775_v13  ;;  %v5293_v38 = vld [vmem:[#allocation8 + $0x310] sm:$0xff]  ;;  %v5314_v36 = vld [vmem:[#allocation8 + $0x3b8] sm:$0xff] }
 0x986   : > { %v10925_v17 = vpop.f32.mrf.mxu3 }
 0x987   : > { %7216 = vmatmul.msk.bf16.gmra.mxu2 %vm1057_vm0, %v5095_v32  ;;  %v5295_v32 = vld [vmem:[#allocation8 + $0x320] sm:$0xff] }
 0x98a   : > { %v10932_v35 = vpop.f32.mrf.mxu2 }
 0x98b   : > { %12070 = vst [vmem:[#allocation23_spill] sm:$0xff] %v10932_v35  ;;  %5936 = vadd.xlane.f32.xlu2 %v5935_v42 }
 0x98e   : > { %v5632_v2 = vpop.f32.mrf.mxu3 }
 0x98f   : > { %v10936_v46 = vadd.f32 %v5632_v2, %v5316_v1  ;;  %v10950_v1 = vadd.f32 %v10805_v21, %v5295_v32  ;;  %v5307_v21 = vld [vmem:[#allocation8 + $0x380] sm:$0xff] }
 0x991   : > { %v5782_v59 = vsel %vm1528_vm1, %v10936_v46, -inf  ;;  %v5719_v2 = vsel %vm1528_vm1, %v10950_v1, -inf }
 0x992   : > { %5783 = vmax.xlane.f32.xlu1 %v5782_v59  ;;  %v10940_v9 = vpop.f32.mrf.mxu2  ;;  %v5301_v59 = vld [vmem:[#allocation8 + $0x350] sm:$0xff] }
 0x993   : > { %12071 = vst [vmem:[#allocation34_spill] sm:$0xff] %v10940_v9  ;;  %5939 = vadd.xlane.f32.xlu2 %v5938_v19  ;;  %v10957_v19 = vadd.f32 %v10819_v11, %v5301_v59  ;;  %v12075_v11 = vld [vmem:[#allocation24_spill] sm:$0xff]  ;;  %v10973_v59 = vpop.f32.mrf.mxu0 }
 0x997   : > { %7217 = vmatmul.msk.bf16.gmra.mxu2 %vm1057_vm0, %v5096_v7  ;;  %v5737_v7 = vsel %vm1528_vm1, %v10957_v19, -inf }
 0x99a   : > { %v10947_v42 = vpop.f32.mrf.mxu2 }
 0x99b   : > { %12072 = vst [vmem:[#allocation32_spill] sm:$0xff] %v10947_v42  ;;  %v5440_v42 = vpop.f32.mrf.mxu0 }
 0x9a0   : > { %5720 = vmax.xlane.f32.xlu0 %v5719_v2  ;;  %v10969_v2 = vadd.f32 %v10841_v39, %v5307_v21  ;;  %v5098_v39 = vpack.c.bf16 %v10674_v5, %v10663_v18 }
 0x9a2   : > { %v10954_v9 = vpop.f32.mrf.mxu2  ;;  %v5755_v13 = vsel %vm1528_vm1, %v10969_v2, -inf }
 0x9a3   : > { %12073 = vst [vmem:[#allocation29_spill] sm:$0xff] %v10954_v9  ;;  %v5606_v9 = vpop.f32.mrf.mxu1  ;;  %v5510_v43 = vpop.f32.mrf.mxu0 }
 0x9a7   : > { %7218 = vmatmul.msk.bf16.gmra.mxu2 %vm1057_vm0, %v5097_v12 }
 0x9a8   : > { %5738 = vmax.xlane.f32.xlu0 %v5737_v7  ;;  %v10980_v7 = vadd.f32 %v5366_v15, %v5293_v38 }
 0x9aa   : > { %v10966_v32 = vpop.f32.mrf.mxu2  ;;  %v5713_v31 = vsel %vm1528_vm1, %v10980_v7, -inf }
 0x9ab   : > { %12074 = vst [vmem:[#allocation37_spill] sm:$0xff] %v10966_v32  ;;  %6146 = vrot.lane.b32.xlu2 %v12075_v11, %s8197_s14  ;;  %v12077_v32 = vld [vmem:[#allocation30_spill] sm:$0xff]  ;;  %v7844_v11 = vpop.eup %7843  ;;  %v5608_v24 = vpop.f32.mrf.mxu1 }
 0x9ac   : > { %v6027_v15 = vmul.f32 %v7844_v11, %v10713_v50 }
 0x9ae   : > { %v6059_v18 = vpack.c.bf16 %v6027_v15, %v6027_v15 }
 0x9b0   : > { %5756 = vmax.xlane.f32.xlu0 %v5755_v13  ;;  %v5313_v13 = vld [vmem:[#allocation8 + $0x3b0] sm:$0xff] }
 0x9b2   : > { %v10978_v12 = vpop.f32.mrf.mxu2 }
 0x9b3   : > { %12076 = vst [vmem:[#allocation35_spill] sm:$0xff] %v10978_v12  ;;  %6196 = vrot.lane.b32.xlu2 %v12077_v32, %s8197_s14  ;;  %v10992_v32 = vadd.f32 %v5606_v9, %v5313_v13  ;;  %v10999_v9 = vadd.f32 %v5608_v24, %v5314_v36 }
 0x9b5   : > { %v5904_v21 = vpop.xlane.xlu2 %5903 }
 0x9b6   : > { %7845 = vrcp.f32 %v5904_v21 }
 0x9b7   : > { %7219 = vmatmul.msk.bf16.gmra.mxu2 %vm1057_vm0, %v5098_v39  ;;  %v5773_v39 = vsel %vm1528_vm1, %v10992_v32, -inf }
 0x9b8   : > { %5714 = vmax.xlane.f32.xlu0 %v5713_v31  ;;  %v6093_v31 = vunpack.c.l.b16 %v6059_v18  ;;  %v5512_v18 = vpop.f32.mrf.mxu0 }
 0x9ba   : > { %v10990_v38 = vpop.f32.mrf.mxu2 }
 0x9bb   : > { %12078 = vst [vmem:[#allocation46_spill] sm:$0xff] %v10990_v38 }
 0x9bc   : > { %v7846_v12 = vpop.eup %7845 }
 0x9bd   : > { %v6028_v5 = vmul.f32 %v7846_v12, %v10844_v52  ;;  %v6097_v35 = vpop.permute.xlu2 %6096  ;;  %v5919_v11 = vpop.xlane.xlu0 %5918  ;;  %v5099_v52 = vpack.c.bf16 %v10809_v45, %v10803_v25  ;;  %v5300_v12 = vld [vmem:[#allocation8 + $0x348] sm:$0xff] }
 0x9be   : > { %6109 = vmatpush.bf16.msra.mxu0 %v6097_v35  ;;  %7847 = vrcp.f32 %v5919_v11  ;;  %v5776_v35 = vsel %vm1528_vm1, %v10999_v9, -inf  ;;  %v11010_v36 = vadd.f32 %v5440_v42, %v5300_v12 }
 0x9bf   : > { %v6060_v21 = vpack.c.bf16 %v6028_v5, %v6028_v5  ;;  %7849 = vrcp.f32 %v10891_v4 }
 0x9c0   : > { %5774 = vmax.xlane.f32.xlu0 %v5773_v39  ;;  %v5734_v45 = vsel %vm1528_vm1, %v11010_v36, -inf }
 0x9c1   : > { %v6094_v50 = vunpack.c.l.b16 %v6060_v21  ;;  %v5315_v21 = vld [vmem:[#allocation8 + $0x3c0] sm:$0xff] }
 0x9c2   : > { %v10997_v38 = vpop.f32.mrf.mxu2  ;;  %v11021_v11 = vadd.f32 %v10925_v17, %v5315_v21 }
 0x9c3   : > { %v6095_v13 = vpack.c.b16 %v6094_v50, %v6093_v31 }
 0x9c4   : > { %v7848_v24 = vpop.eup %7847  ;;  %v5779_v12 = vsel %vm1528_vm1, %v11021_v11, -inf }
 0x9c5   : > { %7246 = vmatmul.msk.bf16.vlgmr.msra.gmra.mxu0 %vm1528_vm1, %v6095_v13  ;;  %v7850_v5 = vpop.eup %7849  ;;  %v6033_v25 = vmul.f32 %v7848_v24, %v10860_v62  ;;  %v11016_v39 = vpop.xlane.xlu0 %5765  ;;  %v5294_v13 = vld [vmem:[#allocation8 + $0x318] sm:$0xff]  ;;  %v5100_v62 = vpack.c.bf16 %v10692_v49, %v10681_v0 }
 0x9c6   : > { %v6034_v4 = vmul.f32 %v7850_v5, %v10722_v48  ;;  %v11028_v48 = vadd.f32 %v10959_v27, %v5294_v13  ;;  %v5306_v5 = vld [vmem:[#allocation8 + $0x378] sm:$0xff] }
 0x9c7   : > { %7220 = vmatmul.msk.bf16.gmra.mxu2 %vm1057_vm0, %v5099_v52  ;;  %v6065_v31 = vpack.c.bf16 %v6033_v25, %v6033_v25  ;;  %v11025_v52 = vpop.f32.mrf.mxu0  ;;  %v6247_v25 = vpop.permute.xlu1 %6246  ;;  %v11035_v49 = vadd.f32 %v5512_v18, %v5306_v5 }
 0x9c8   : > { %5777 = vmax.xlane.f32.xlu0 %v5776_v35  ;;  %v6066_v42 = vpack.c.bf16 %v6034_v4, %v6034_v4  ;;  %v5716_v27 = vsel %vm1528_vm1, %v11028_v48, -inf  ;;  %v5299_v4 = vld [vmem:[#allocation8 + $0x340] sm:$0xff] }
 0x9c9   : > { %v6168_v35 = vunpack.c.l.b16 %v6065_v31  ;;  %v11041_v21 = vadd.f32 %v10973_v59, %v5299_v4  ;;  %v5752_v31 = vsel %vm1528_vm1, %v11035_v49, -inf }
 0x9ca   : > { %v11008_v15 = vpop.f32.mrf.mxu2  ;;  %v6169_v24 = vunpack.c.l.b16 %v6066_v42  ;;  %v5312_v42 = vld [vmem:[#allocation8 + $0x3a8] sm:$0xff] }
 0x9cf   : > { %v5584_v13 = vpop.f32.mrf.mxu0 }
 0x9d0   : > { %5735 = vmax.xlane.f32.xlu0 %v5734_v45  ;;  %v6170_v45 = vpack.c.b16 %v6169_v24, %v6168_v35  ;;  %v11047_v18 = vadd.f32 %v5584_v13, %v5312_v42  ;;  %v5731_v35 = vsel %vm1528_vm1, %v11041_v21, -inf  ;;  %v5101_v24 = vpack.c.bf16 %v10836_v16, %v10823_v10  ;;  %v12083_v16 = vld [vmem:[#allocation95_spill] sm:$0xff] }
 0x9d1   : > { %v3815_v10 = vadd.f32 %v12083_v16, %v10745_v37  ;;  %v5102_v42 = vpack.c.bf16 %v10720_v6, %v10704_v20  ;;  %v5311_v16 = vld [vmem:[#allocation8 + $0x3a0] sm:$0xff] }
 0x9d2   : > { %v11018_v50 = vpop.f32.mrf.mxu2  ;;  %v5770_v5 = vsel %vm1528_vm1, %v11047_v18, -inf }
 0x9d3   : > { %12079 = vst [vmem:[#allocation50_spill] sm:$0xff] %v11018_v50 }
 0x9d7   : > { %7221 = vmatmul.msk.bf16.gmra.mxu2 %vm1057_vm0, %v5100_v62 }
 0x9d8   : > { %v6172_v17 = vpop.permute.xlu0 %6171  ;;  %5780 = vmax.xlane.f32.xlu0 %v5779_v12  ;;  %v5305_v12 = vld [vmem:[#allocation8 + $0x370] sm:$0xff] }
 0x9d9   : > { %6184 = vmatpush.bf16.msrb.mxu0 %v6172_v17  ;;  %v11053_v59 = vadd.f32 %v5510_v43, %v5305_v12  ;;  %v12082_v17 = vld [vmem:[#allocation90_spill] sm:$0xff] }
 0x9da   : > { %v11033_v0 = vpop.f32.mrf.mxu2 }
 0x9db   : > { %12080 = vst [vmem:[#allocation55_spill] sm:$0xff] %v11033_v0  ;;  %v5749_v4 = vsel %vm1528_vm1, %v11053_v59, -inf }
 0x9dc   : > { %5717 = vmax.xlane.f32.xlu2 %v5716_v27  ;;  %7249 = vmatmul.msk.bf16.vlgmr.msrb.gmra.mxu0 %vm1528_vm1, %v6170_v45 }
 0x9dd   : > { %6259 = vmatpush.bf16.msra.mxu0 %v6247_v25  ;;  %v3813_v25 = vadd.f32 %v12082_v17, %v10739_v57  ;;  %v12084_v57 = vld [vmem:[#allocation77_spill] sm:$0xff] }
 0x9de   : > { %v3818_v12 = vadd.f32 %v12084_v57, %v10758_v3  ;;  %v12086_v3 = vld [vmem:[#allocation41_spill] sm:$0xff] }
 0x9e0   : > { %5753 = vmax.xlane.f32.xlu0 %v5752_v31  ;;  %v6222_v20 = vpop.permute.xlu0 %6221 }
 0x9e2   : > { %v11045_v62 = vpop.f32.mrf.mxu2 }
 0x9e3   : > { %12081 = vst [vmem:[#allocation60_spill] sm:$0xff] %v11045_v62 }
 0x9e4   : > { %5732 = vmax.xlane.f32.xlu2 %v5731_v35 }
 0x9e7   : > { %7222 = vmatmul.msk.bf16.gmra.mxu2 %vm1057_vm0, %v5101_v24 }
 0x9e8   : > { %5771 = vmax.xlane.f32.xlu0 %v5770_v5 }
 0x9ea   : > { %v5178_v45 = vpop.f32.mrf.mxu2 }
 0x9eb   : > { %v11060_v27 = vadd.f32 %v5178_v45, %v3813_v25  ;;  %v12085_v45 = vld [vmem:[#allocation118_spill] sm:$0xff] }
 0x9ec   : > { %5750 = vmax.xlane.f32.xlu2 %v5749_v4  ;;  %v3820_v4 = vadd.f32 %v12085_v45, %v10765_v34 }
 0x9f2   : > { %v5180_v43 = vpop.f32.mrf.mxu2 }
 0x9f3   : > { %v11066_v31 = vadd.f32 %v5180_v43, %v3815_v10  ;;  %v5103_v43 = vpack.c.bf16 %v10866_v47, %v10846_v14  ;;  %v5317_v14 = vld [vmem:[#allocation8 + $0x3d0] sm:$0xff]  ;;  %v11097_v47 = vpop.permute.xlu0 %6271 }
 0x9f6   : > { %v5763_v13 = vpop.xlane.xlu2 %5762 }
 0x9f7   : > { %v5821_v35 = vsub.f32 %v10916_v58, %v5763_v13  ;;  %7223 = vmatmul.msk.bf16.gmra.mxu2 %vm1057_vm0, %v5102_v42  ;;  %v11089_v42 = vadd.f32 %v11025_v52, %v5311_v16 }
 0x9f9   : > { %v5871_v24 = vmul.f32 1.442695, %v5821_v35  ;;  %v12087_v35 = vld [vmem:[#allocation119_spill] sm:$0xff]  ;;  %v5767_v45 = vsel %vm1528_vm1, %v11089_v42, -inf }
 0x9fa   : > { %v5183_v5 = vpop.f32.mrf.mxu2  ;;  %v3823_v57 = vadd.f32 %v12087_v35, %v10782_v30 }
 0x9fb   : > { %7851 = vpow2.f32 %v5871_v24  ;;  %v11074_v17 = vadd.f32 %v5183_v5, %v3818_v12  ;;  %v5654_v12 = vpop.f32.mrf.mxu0  ;;  %v5724_v24 = vpop.xlane.xlu1 %5723 }
 0x9fe   : > { %v5937_v37 = vpop.xlane.xlu2 %5936 }
 0x9ff   : > { %7853 = vrcp.f32 %v5937_v37 }
 0xa01   : > { %v11076_v25 = vpop.eup %7851 }
 0xa02   : > { %v5185_v6 = vpop.f32.mrf.mxu2  ;;  %v5953_v58 = vsel %vm1528_vm1, %v11076_v25, 0.0 }
 0xa03   : > { %v11082_v10 = vadd.f32 %v5185_v6, %v3820_v4  ;;  %5954 = vadd.xlane.f32.xlu1 %v5953_v58  ;;  %v11101_v6 = vadd.f32 %v5654_v12, %v5317_v14 }
 0xa04   : > { %6296 = vrot.lane.b32.xlu2 %v12086_v3, %s8197_s14 }
 0xa05   : > { %v7854_v13 = vpop.eup %7853  ;;  %v5785_v12 = vsel %vm1528_vm1, %v11101_v6, -inf }
 0xa06   : > { %v5940_v34 = vpop.xlane.xlu2 %5939  ;;  %v6039_v5 = vmul.f32 %v7854_v13, %v10927_v29  ;;  %v12088_v29 = vld [vmem:[#allocation76_spill] sm:$0xff]  ;;  %v5742_v13 = vpop.xlane.xlu1 %5741 }
 0xa07   : > { %7855 = vrcp.f32 %v5940_v34  ;;  %7224 = vmatmul.msk.bf16.gmra.mxu2 %vm1057_vm0, %v5103_v43  ;;  %v3825_v43 = vadd.f32 %v12088_v29, %v10789_v54  ;;  %v5808_v34 = vsub.f32 %v10814_v22, %v5724_v24  ;;  %v5104_v54 = vpack.c.bf16 %v10743_v8, %v10733_v61 }
 0xa08   : > { %v6071_v58 = vpack.c.bf16 %v6039_v5, %v6039_v5  ;;  %v5656_v5 = vpop.f32.mrf.mxu0  ;;  %v5814_v24 = vsub.f32 %v10827_v60, %v5742_v13  ;;  %v5822_v8 = vsub.f32 %v10868_v53, %v11016_v39  ;;  %v12090_v53 = vld [vmem:[#allocation92_spill] sm:$0xff] }
 0xa09   : > { %v5845_v22 = vmul.f32 1.442695, %v5808_v34  ;;  %v3830_v39 = vadd.f32 %v12090_v53, %v10807_v33 }
 0xa0a   : > { %v5188_v37 = vpop.f32.mrf.mxu2  ;;  %v6243_v35 = vunpack.c.l.b16 %v6071_v58 }
 0xa0b   : > { %v11099_v52 = vadd.f32 %v5188_v37, %v3823_v57  ;;  %5768 = vmax.xlane.f32.xlu1 %v5767_v45  ;;  %v5318_v45 = vld [vmem:[#allocation8 + $0x3d8] sm:$0xff] }
 0xa0c   : > { %v11115_v58 = vadd.f32 %v5656_v5, %v5318_v45 }
 0xa0d   : > { %v7856_v4 = vpop.eup %7855 }
 0xa0e   : > { %v6040_v30 = vmul.f32 %v7856_v4, %v10934_v23  ;;  %v6147_v16 = vpop.permute.xlu2 %6146  ;;  %v5788_v61 = vsel %vm1528_vm1, %v11115_v58, -inf  ;;  %v5760_v45 = vpop.xlane.xlu1 %5759 }
 0xa0f   : > { %6159 = vmatpush.bf16.msrb.mxu3 %v6147_v16 }
 0xa10   : > { %v6072_v3 = vpack.c.bf16 %v6040_v30, %v6040_v30 }
 0xa12   : > { %v6244_v57 = vunpack.c.l.b16 %v6072_v3  ;;  %v5190_v37 = vpop.f32.mrf.mxu2  ;;  %v12089_v3 = vld [vmem:[#allocation120_spill] sm:$0xff] }
 0xa13   : > { %6234 = vmatpush.bf16.msra.mxu3 %v6222_v20  ;;  %v5721_v14 = vpop.xlane.xlu0 %5720  ;;  %v11109_v23 = vadd.f32 %v5190_v37, %v3825_v43  ;;  %5786 = vmax.xlane.f32.xlu1 %v5785_v12  ;;  %v3828_v29 = vadd.f32 %v12089_v3, %v10801_v28  ;;  %v5873_v37 = vmul.f32 1.442695, %v5822_v8 }
 0xa14   : > { %v6245_v4 = vpack.c.b16 %v6244_v57, %v6243_v35  ;;  %v5807_v20 = vsub.f32 %v10950_v1, %v5721_v14  ;;  %v5857_v1 = vmul.f32 1.442695, %v5814_v24  ;;  %v5820_v14 = vsub.f32 %v10852_v44, %v5760_v45 }
 0xa15   : > { %v5105_v24 = vpack.c.bf16 %v10885_v56, %v10876_v63 }
 0xa16   : > { %v5843_v30 = vmul.f32 1.442695, %v5807_v20  ;;  %7252 = vmatmul.msk.bf16.vlgmr.msra.gmra.mxu0 %vm1528_vm1, %v6245_v4  ;;  %v6197_v16 = vpop.permute.xlu2 %6196 }
 0xa17   : > { %6209 = vmatpush.bf16.msrb.mxu1 %v6197_v16  ;;  %7225 = vmatmul.msk.bf16.gmra.mxu2 %vm1057_vm0, %v5104_v54  ;;  %v5869_v16 = vmul.f32 1.442695, %v5820_v14 }
 0xa18   : > { %7857 = vpow2.f32 %v5843_v30 }
 0xa19   : > { %7859 = vpow2.f32 %v5845_v22 }
 0xa1a   : > { %v5193_v43 = vpop.f32.mrf.mxu2  ;;  %7861 = vpow2.f32 %v5857_v1 }
 0xa1b   : > { %v5739_v60 = vpop.xlane.xlu0 %5738  ;;  %v11125_v34 = vadd.f32 %v5193_v43, %v3828_v29  ;;  %5789 = vmax.xlane.f32.xlu1 %v5788_v61  ;;  %v12091_v29 = vld [vmem:[#allocation33_spill] sm:$0xff] }
 0xa1c   : > { %v5813_v13 = vsub.f32 %v10957_v19, %v5739_v60  ;;  %v3833_v1 = vadd.f32 %v12091_v29, %v10817_v26 }
 0xa1e   : > { %v11128_v35 = vpop.eup %7857  ;;  %v5855_v57 = vmul.f32 1.442695, %v5813_v13 }
 0xa1f   : > { %v11130_v28 = vpop.eup %7859  ;;  %v5911_v12 = vsel %vm1528_vm1, %v11128_v35, 0.0 }
 0xa20   : > { %5912 = vadd.xlane.f32.xlu0 %v5911_v12  ;;  %7863 = vpow2.f32 %v5855_v57  ;;  %v5914_v19 = vsel %vm1528_vm1, %v11130_v28, 0.0  ;;  %v11141_v54 = vpop.eup %7861  ;;  %v12092_v57 = vld [vmem:[#allocation75_spill] sm:$0xff] }
 0xa21   : > { %7865 = vpow2.f32 %v5873_v37  ;;  %v5932_v44 = vsel %vm1528_vm1, %v11141_v54, 0.0  ;;  %v3835_v37 = vadd.f32 %v12092_v57, %v10825_v41 }
 0xa22   : > { %v5195_v5 = vpop.f32.mrf.mxu2 }
 0xa23   : > { %v5757_v4 = vpop.xlane.xlu0 %5756  ;;  %v11139_v20 = vadd.f32 %v5195_v5, %v3830_v39  ;;  %5915 = vadd.xlane.f32.xlu1 %v5914_v19  ;;  %v12093_v19 = vld [vmem:[#allocation124_spill] sm:$0xff] }
 0xa24   : > { %v5819_v22 = vsub.f32 %v10969_v2, %v5757_v4  ;;  %v5106_v14 = vpack.c.bf16 %v12093_v19, %v10752_v55 }
 0xa26   : > { %v5867_v33 = vmul.f32 1.442695, %v5819_v22  ;;  %v11146_v30 = vpop.eup %7863 }
 0xa27   : > { %7226 = vmatmul.msk.bf16.gmra.mxu2 %vm1057_vm0, %v5105_v24  ;;  %v11151_v3 = vpop.eup %7865  ;;  %v5929_v63 = vsel %vm1528_vm1, %v11146_v30, 0.0  ;;  %v12094_v24 = vld [vmem:[#allocation52_spill] sm:$0xff] }
 0xa28   : > { %5933 = vadd.xlane.f32.xlu0 %v5932_v44  ;;  %7867 = vpow2.f32 %v5867_v33  ;;  %v5956_v8 = vsel %vm1528_vm1, %v11151_v3, 0.0  ;;  %v12095_v33 = vld [vmem:[#allocation106_spill] sm:$0xff] }
 0xa29   : > { %7869 = vpow2.f32 %v5869_v16 }
 0xa2a   : > { %v5198_v2 = vpop.f32.mrf.mxu2 }
 0xa2b   : > { %v11157_v56 = vadd.f32 %v5198_v2, %v3833_v1  ;;  %v5715_v43 = vpop.xlane.xlu0 %5714  ;;  %5930 = vadd.xlane.f32.xlu1 %v5929_v63  ;;  %v12096_v2 = vld [vmem:[#allocation72_spill] sm:$0xff] }
 0xa2c   : > { %v5805_v61 = vsub.f32 %v10980_v7, %v5715_v43  ;;  %v12097_v63 = vld [vmem:[#allocation88_spill] sm:$0xff] }
 0xa2d   : > { %5957 = vadd.xlane.f32.xlu2 %v5956_v8  ;;  %v3840_v43 = vadd.f32 %v12097_v63, %v12096_v2  ;;  %v11219_v63 = vpop.f32.mrf.mxu1 }
 0xa2e   : > { %v5839_v60 = vmul.f32 1.442695, %v5805_v61  ;;  %v11162_v13 = vpop.eup %7867 }
 0xa2f   : > { %v11164_v26 = vpop.eup %7869  ;;  %v5947_v45 = vsel %vm1528_vm1, %v11162_v13, 0.0 }
 0xa30   : > { %7871 = vpow2.f32 %v5839_v60  ;;  %v5950_v5 = vsel %vm1528_vm1, %v11164_v26, 0.0 }
 0xa32   : > { %v5200_v12 = vpop.f32.mrf.mxu2 }
 0xa33   : > { %v11170_v53 = vadd.f32 %v5200_v12, %v3835_v37  ;;  %v5775_v7 = vpop.xlane.xlu0 %5774  ;;  %5948 = vadd.xlane.f32.xlu1 %v5947_v45  ;;  %v12098_v45 = vpack.c.bf16 %v10902_v40, %v10895_v51  ;;  %v12099_v51 = vld [vmem:[#allocation87_spill] sm:$0xff] }
 0xa34   : > { %v5825_v39 = vsub.f32 %v10992_v32, %v5775_v7  ;;  %v3838_v32 = vadd.f32 %v12095_v33, %v12094_v24  ;;  %v12100_v24 = vld [vmem:[#allocation73_spill] sm:$0xff] }
 0xa35   : > { %5951 = vadd.xlane.f32.xlu2 %v5950_v5  ;;  %v5108_v33 = vpack.c.bf16 %v12100_v24, %v12099_v51 }
 0xa36   : > { %v11177_v4 = vpop.eup %7871  ;;  %v5879_v41 = vmul.f32 1.442695, %v5825_v39 }
 0xa37   : > { %7227 = vmatmul.msk.bf16.gmra.mxu2 %vm1057_vm0, %v5106_v14  ;;  %v5905_v22 = vsel %vm1528_vm1, %v11177_v4, 0.0 }
 0xa38   : > { %7873 = vpow2.f32 %v5879_v41  ;;  %5906 = vadd.xlane.f32.xlu0 %v5905_v22 }
 0xa3a   : > { %v5203_v16 = vpop.f32.mrf.mxu2 }
 0xa3b   : > { %v11184_v44 = vadd.f32 %v5203_v16, %v3838_v32  ;;  %v5778_v29 = vpop.xlane.xlu0 %5777 }
 0xa3e   : > { %v11186_v1 = vpop.eup %7873 }
 0xa3f   : > { %v5965_v55 = vsel %vm1528_vm1, %v11186_v1, 0.0 }
 0xa40   : > { %5966 = vadd.xlane.f32.xlu2 %v5965_v55 }
 0xa42   : > { %v5205_v61 = vpop.f32.mrf.mxu2  ;;  %v11195_v12 = vpop.f32.mrf.mxu0 }
 0xa43   : > { %v11192_v8 = vadd.f32 %v5205_v61, %v3840_v43  ;;  %v5736_v60 = vpop.xlane.xlu0 %5735 }
 0xa44   : > { %v5812_v57 = vsub.f32 %v11010_v36, %v5736_v60 }
 0xa46   : > { %v5853_v37 = vmul.f32 1.442695, %v5812_v57 }
 0xa47   : > { %7228 = vmatmul.msk.bf16.gmra.mxu2 %vm1057_vm0, %v12098_v45 }
 0xa48   : > { %7875 = vpow2.f32 %v5853_v37 }
 0xa4a   : > { %v11208_v36 = vpop.f32.mrf.mxu0 }
 0xa4b   : > { %v11201_v7 = vpop.xlane.xlu0 %5780 }
 0xa4e   : > { %v11203_v39 = vpop.eup %7875 }
 0xa4f   : > { %v5718_v5 = vpop.xlane.xlu2 %5717  ;;  %v5926_v19 = vsel %vm1528_vm1, %v11203_v39, 0.0 }
 0xa50   : > { %v5806_v14 = vsub.f32 %v11028_v48, %v5718_v5  ;;  %5927 = vadd.xlane.f32.xlu0 %v5926_v19  ;;  %v5826_v5 = vsub.f32 %v10999_v9, %v5778_v29 }
 0xa52   : > { %v5841_v41 = vmul.f32 1.442695, %v5806_v14  ;;  %v5881_v51 = vmul.f32 1.442695, %v5826_v5  ;;  %v12103_v5 = vld [vmem:[#allocation69_spill] sm:$0xff] }
 0xa53   : > { %v5754_v22 = vpop.xlane.xlu0 %5753 }
 0xa54   : > { %7877 = vpow2.f32 %v5841_v41  ;;  %v5818_v40 = vsub.f32 %v11035_v49, %v5754_v22  ;;  %v5320_v22 = vld [vmem:[#allocation8 + $0x3e8] sm:$0xff] }
 0xa56   : > { %v5865_v32 = vmul.f32 1.442695, %v5818_v40  ;;  %v5680_v40 = vpop.f32.mrf.mxu1 }
 0xa57   : > { %v5733_v16 = vpop.xlane.xlu2 %5732  ;;  %7229 = vmatmul.msk.bf16.gmra.mxu2 %vm1057_vm0, %v5108_v33  ;;  %v5784_v33 = vpop.xlane.xlu1 %5783 }
 0xa58   : > { %7879 = vpow2.f32 %v5865_v32  ;;  %v5811_v55 = vsub.f32 %v11041_v21, %v5733_v16 }
 0xa59   : > { %v11215_v2 = vpop.f32.mrf.mxu0 }
 0xa5a   : > { %v11217_v48 = vpop.eup %7877  ;;  %v5851_v43 = vmul.f32 1.442695, %v5811_v55 }
 0xa5b   : > { %v5908_v49 = vsel %vm1528_vm1, %v11217_v48, 0.0 }
 0xa5c   : > { %7881 = vpow2.f32 %v5851_v43  ;;  %5909 = vadd.xlane.f32.xlu1 %v5908_v49  ;;  %v12101_v43 = vld [vmem:[#allocation48_spill] sm:$0xff] }
 0xa5e   : > { %v11223_v61 = vpop.eup %7879 }
 0xa5f   : > { %v5751_v60 = vpop.xlane.xlu2 %5750  ;;  %v5944_v57 = vsel %vm1528_vm1, %v11223_v61, 0.0 }
 0xa60   : > { %v5817_v21 = vsub.f32 %v11053_v59, %v5751_v60  ;;  %5945 = vadd.xlane.f32.xlu2 %v5944_v57  ;;  %v11237_v59 = vadd.f32 %v5680_v40, %v5320_v22  ;;  %v12102_v60 = vld [vmem:[#allocation45_spill] sm:$0xff] }
 0xa61   : > { %v11228_v37 = vpop.f32.mrf.mxu0 }
 0xa62   : > { %v11230_v45 = vpop.eup %7881  ;;  %v5863_v19 = vmul.f32 1.442695, %v5817_v21  ;;  %v5794_v9 = vsel %vm1528_vm1, %v11237_v59, -inf  ;;  %v5772_v21 = vpop.xlane.xlu0 %5771 }
 0xa63   : > { %v5923_v41 = vsel %vm1528_vm1, %v11230_v45, 0.0 }
 0xa64   : > { %7883 = vpow2.f32 %v5863_v19  ;;  %5924 = vadd.xlane.f32.xlu1 %v5923_v41 }
 0xa65   : > { %7885 = vpow2.f32 %v5881_v51  ;;  %v5321_v51 = vld [vmem:[#allocation8 + $0x3f0] sm:$0xff] }
 0xa6a   : > { %v11239_v24 = vpop.eup %7883 }
 0xa6b   : > { %v5941_v29 = vsel %vm1528_vm1, %v11239_v24, 0.0  ;;  %v11245_v32 = vpop.eup %7885 }
 0xa6c   : > { %5795 = vmax.xlane.f32.xlu1 %v5794_v9  ;;  %5942 = vadd.xlane.f32.xlu0 %v5941_v29  ;;  %v5968_v16 = vsel %vm1528_vm1, %v11245_v32, 0.0  ;;  %v5702_v9 = vpop.f32.mrf.mxu3 }
 0xa6d   : > { %v11261_v14 = vadd.f32 %v5702_v9, %v5321_v51 }
 0xa74   : > { %5969 = vadd.xlane.f32.xlu1 %v5968_v16  ;;  %v6297_v16 = vpop.permute.xlu2 %6296 }
 0xa76   : > { %v11249_v55 = vpop.xlane.xlu1 %5954 }
 0xa78   : > { %6346 = vrot.lane.b32.xlu2 %v12101_v43, %s8197_s14 }
 0xa7e   : > { %v5769_v49 = vpop.xlane.xlu1 %5768 }
 0xa80   : > { %6321 = vrot.lane.b32.xlu0 %v12102_v60, %s8197_s14 }
 0xa86   : > { %v5787_v57 = vpop.xlane.xlu1 %5786 }
 0xa87   : > { %v5829_v22 = vsub.f32 %v11101_v6, %v5787_v57  ;;  %v5827_v6 = vsub.f32 %v11021_v11, %v11201_v7  ;;  %v5823_v11 = vsub.f32 %v11089_v42, %v5769_v49 }
 0xa89   : > { %v5887_v43 = vmul.f32 1.442695, %v5829_v22 }
 0xa8d   : > { %6371 = vrot.lane.b32.xlu1 %v12103_v5, %s8197_s14 }
 0xa8e   : > { %v11257_v19 = vpop.xlane.xlu1 %5789 }
 0xa93   : > { %v5913_v41 = vpop.xlane.xlu0 %5912 }
 0xa94   : > { %7887 = vrcp.f32 %v5913_v41 }
 0xa96   : > { %v5916_v40 = vpop.xlane.xlu1 %5915 }
 0xa97   : > { %7889 = vrcp.f32 %v5916_v40  ;;  %v5797_v40 = vsel %vm1528_vm1, %v11261_v14, -inf }
 0xa98   : > { %7891 = vpow2.f32 %v5887_v43 }
 0xa9a   : > { %v7888_v29 = vpop.eup %7887 }
 0xa9b   : > { %v6031_v60 = vmul.f32 %v7888_v29, %v11128_v35  ;;  %v5934_v50 = vpop.xlane.xlu0 %5933  ;;  %v5319_v35 = vld [vmem:[#allocation8 + $0x3e0] sm:$0xff] }
 0xa9d   : > { %v7890_v62 = vpop.eup %7889  ;;  %v6063_v5 = vpack.c.bf16 %v6031_v60, %v6031_v60  ;;  %v11273_v60 = vadd.f32 %v11219_v63, %v5319_v35 }
 0xa9e   : > { %v6032_v0 = vmul.f32 %v7890_v62, %v11130_v28  ;;  %v5931_v41 = vpop.xlane.xlu1 %5930  ;;  %v11270_v29 = vpop.eup %7891  ;;  %v5883_v62 = vmul.f32 1.442695, %v5827_v6 }
 0xa9f   : > { %7893 = vrcp.f32 %v5931_v41  ;;  %v6143_v22 = vunpack.c.l.b16 %v6063_v5  ;;  %v5977_v5 = vsel %vm1528_vm1, %v11270_v29, 0.0  ;;  %v5875_v41 = vmul.f32 1.442695, %v5823_v11 }
 0xaa0   : > { %v6064_v57 = vpack.c.bf16 %v6032_v0, %v6032_v0  ;;  %7895 = vrcp.f32 %v5934_v50  ;;  %v11268_v9 = vpop.xlane.xlu2 %5957  ;;  %v5828_v50 = vsub.f32 %v10936_v46, %v5784_v33  ;;  %v5791_v63 = vsel %vm1528_vm1, %v11273_v60, -inf }
 0xaa1   : > { %5798 = vmax.xlane.f32.xlu2 %v5797_v40  ;;  %7897 = vpow2.f32 %v5883_v62 }
 0xaa2   : > { %v6144_v51 = vunpack.c.l.b16 %v6064_v57  ;;  %v5885_v42 = vmul.f32 1.442695, %v5828_v50  ;;  %7899 = vpow2.f32 %v5875_v41 }
 0xaa4   : > { %v6145_v28 = vpack.c.b16 %v6144_v51, %v6143_v22 }
 0xaa5   : > { %v7894_v43 = vpop.eup %7893 }
 0xaa6   : > { %7248 = vmatmul.msk.bf16.vlgmr.msrb.gmra.mxu3 %vm1528_vm1, %v6145_v28  ;;  %v7896_v0 = vpop.eup %7895  ;;  %v6037_v7 = vmul.f32 %v7894_v43, %v11146_v30  ;;  %v5949_v33 = vpop.xlane.xlu1 %5948 }
 0xaa7   : > { %6309 = vmatpush.bf16.msrb.mxu3 %v6297_v16  ;;  %v6038_v6 = vmul.f32 %v7896_v0, %v11141_v54  ;;  %v5824_v16 = vsub.f32 %v11047_v18, %v5772_v21  ;;  %v11285_v46 = vpop.eup %7897 }
 0xaa8   : > { %v6069_v49 = vpack.c.bf16 %v6037_v7, %v6037_v7  ;;  %v5952_v57 = vpop.xlane.xlu2 %5951  ;;  %v5971_v22 = vsel %vm1528_vm1, %v11285_v46, 0.0  ;;  %v11289_v51 = vpop.eup %7899 }
 0xaa9   : > { %5978 = vadd.xlane.f32.xlu2 %v5977_v5  ;;  %v6070_v30 = vpack.c.bf16 %v6038_v6, %v6038_v6  ;;  %7901 = vrcp.f32 %v5952_v57  ;;  %v5877_v35 = vmul.f32 1.442695, %v5824_v16  ;;  %v5959_v21 = vsel %vm1528_vm1, %v11289_v51, 0.0  ;;  %v5322_v6 = vld [vmem:[#allocation8 + $0x3f8] sm:$0xff] }
 0xaaa   : > { %5792 = vmax.xlane.f32.xlu0 %v5791_v63  ;;  %7903 = vpow2.f32 %v5885_v42  ;;  %v6218_v40 = vunpack.c.l.b16 %v6069_v49  ;;  %v5704_v42 = vpop.f32.mrf.mxu3 }
 0xaab   : > { %7905 = vrcp.f32 %v5949_v33  ;;  %v6219_v54 = vunpack.c.l.b16 %v6070_v30  ;;  %v11304_v57 = vadd.f32 %v5704_v42, %v5322_v6  ;;  %v5907_v30 = vpop.xlane.xlu0 %5906  ;;  %v12104_v33 = vld [vmem:[#allocation121_spill] sm:$0xff] }
 0xaac   : > { %7907 = vpow2.f32 %v5877_v35 }
 0xaad   : > { %v6220_v62 = vpack.c.b16 %v6219_v54, %v6218_v40  ;;  %7909 = vrcp.f32 %v5907_v30 }
 0xaaf   : > { %v7902_v28 = vpop.eup %7901 }
 0xab0   : > { %v11291_v18 = vpop.eup %7903  ;;  %v6044_v11 = vmul.f32 %v7902_v28, %v11164_v26 }
 0xab1   : > { %v7906_v43 = vpop.eup %7905  ;;  %v5974_v0 = vsel %vm1528_vm1, %v11291_v18, 0.0 }
 0xab2   : > { %5972 = vadd.xlane.f32.xlu0 %v5971_v22  ;;  %v6043_v50 = vmul.f32 %v7906_v43, %v11162_v13  ;;  %v11300_v7 = vpop.eup %7907  ;;  %v6076_v5 = vpack.c.bf16 %v6044_v11, %v6044_v11  ;;  %v5800_v13 = vsel %vm1528_vm1, %v11304_v57, -inf }
 0xab3   : > { %v5962_v63 = vsel %vm1528_vm1, %v11300_v7, 0.0  ;;  %v7910_v35 = vpop.eup %7909 }
 0xab4   : > { %v6075_v41 = vpack.c.bf16 %v6043_v50, %v6043_v50  ;;  %v6294_v49 = vunpack.c.l.b16 %v6076_v5  ;;  %v6029_v22 = vmul.f32 %v7910_v35, %v11177_v4  ;;  %v5967_v5 = vpop.xlane.xlu2 %5966 }
 0xab6   : > { %7251 = vmatmul.msk.bf16.vlgmr.msra.gmra.mxu3 %vm1528_vm1, %v6220_v62  ;;  %v6293_v26 = vunpack.c.l.b16 %v6075_v41  ;;  %v6061_v62 = vpack.c.bf16 %v6029_v22, %v6029_v22 }
 0xab7   : > { %5960 = vadd.xlane.f32.xlu1 %v5959_v21 }
 0xab8   : > { %v6295_v16 = vpack.c.b16 %v6294_v49, %v6293_v26 }
 0xaba   : > { %5975 = vadd.xlane.f32.xlu0 %v5974_v0  ;;  %v6118_v0 = vunpack.c.l.b16 %v6061_v62 }
 0xabf   : > { %5963 = vadd.xlane.f32.xlu1 %v5962_v63 }
 0xac3   : > { %v5928_v28 = vpop.xlane.xlu0 %5927 }
 0xac6   : > { %7254 = vmatmul.msk.bf16.vlgmr.msrb.gmra.mxu3 %vm1528_vm1, %v6295_v16 }
 0xac7   : > { %5801 = vmax.xlane.f32.xlu1 %v5800_v13 }
 0xace   : > { %6396 = vrot.lane.b32.xlu0 %v12104_v33, %s8197_s14 }
 0xacf   : > { %v5910_v40 = vpop.xlane.xlu1 %5909 }
 0xad0   : > { %7911 = vrcp.f32 %v5910_v40 }
 0xad3   : > { %v5946_v13 = vpop.xlane.xlu2 %5945 }
 0xad6   : > { %v7912_v54 = vpop.eup %7911 }
 0xad7   : > { %v6030_v21 = vmul.f32 %v7912_v54, %v11217_v48  ;;  %v5925_v43 = vpop.xlane.xlu1 %5924 }
 0xad8   : > { %7913 = vrcp.f32 %v5925_v43 }
 0xad9   : > { %v6062_v11 = vpack.c.bf16 %v6030_v21, %v6030_v21  ;;  %7915 = vrcp.f32 %v5928_v28 }
 0xada   : > { %7917 = vrcp.f32 %v11268_v9  ;;  %v5830_v9 = vsub.f32 %v11115_v58, %v11257_v19 }
 0xadb   : > { %v6119_v50 = vunpack.c.l.b16 %v6062_v11  ;;  %7919 = vrcp.f32 %v11249_v55  ;;  %v6347_v21 = vpop.permute.xlu2 %6346 }
 0xadd   : > { %v6120_v41 = vpack.c.b16 %v6119_v50, %v6118_v0 }
 0xade   : > { %v7914_v63 = vpop.eup %7913 }
 0xadf   : > { %7247 = vmatmul.msk.bf16.vlgmr.msra.gmra.mxu1 %vm1528_vm1, %v6120_v41  ;;  %v5796_v6 = vpop.xlane.xlu1 %5795  ;;  %v7916_v4 = vpop.eup %7915  ;;  %v6035_v48 = vmul.f32 %v7914_v63, %v11230_v45 }
 0xae0   : > { %6284 = vmatpush.bf16.msra.mxu1 %v11097_v47  ;;  %v5832_v42 = vsub.f32 %v11237_v59, %v5796_v6  ;;  %v6036_v26 = vmul.f32 %v7916_v4, %v11203_v39  ;;  %v7918_v16 = vpop.eup %7917  ;;  %v5943_v33 = vpop.xlane.xlu0 %5942  ;;  %v5889_v59 = vmul.f32 1.442695, %v5830_v9 }
 0xae1   : > { %v6067_v30 = vpack.c.bf16 %v6035_v48, %v6035_v48  ;;  %v7920_v40 = vpop.eup %7919  ;;  %v6046_v47 = vmul.f32 %v7918_v16, %v11151_v3 }
 0xae2   : > { %v5893_v49 = vmul.f32 1.442695, %v5832_v42  ;;  %v6068_v35 = vpack.c.bf16 %v6036_v26, %v6036_v26  ;;  %v6045_v39 = vmul.f32 %v7920_v40, %v11076_v25 }
 0xae3   : > { %v6193_v55 = vunpack.c.l.b16 %v6067_v30  ;;  %v6078_v19 = vpack.c.bf16 %v6046_v47, %v6046_v47  ;;  %v12106_v47 = vld [vmem:[#allocation86_spill] sm:$0xff] }
 0xae4   : > { %7921 = vpow2.f32 %v5893_v49  ;;  %v6194_v54 = vunpack.c.l.b16 %v6068_v35  ;;  %v6077_v3 = vpack.c.bf16 %v6045_v39, %v6045_v39 }
 0xae5   : > { %7923 = vrcp.f32 %v5943_v33  ;;  %v6319_v11 = vunpack.c.l.b16 %v6078_v19 }
 0xae6   : > { %7925 = vrcp.f32 %v5946_v13  ;;  %v6195_v62 = vpack.c.b16 %v6194_v54, %v6193_v55  ;;  %v6318_v50 = vunpack.c.l.b16 %v6077_v3 }
 0xae7   : > { %v5970_v22 = vpop.xlane.xlu1 %5969 }
 0xae8   : > { %7927 = vrcp.f32 %v5970_v22  ;;  %v6320_v42 = vpack.c.b16 %v6319_v11, %v6318_v50 }
 0xae9   : > { %7929 = vpow2.f32 %v5889_v59 }
 0xaea   : > { %v11323_v45 = vpop.eup %7921  ;;  %7931 = vrcp.f32 %v5967_v5 }
 0xaeb   : > { %v5986_v58 = vsel %vm1528_vm1, %v11323_v45, 0.0  ;;  %v7924_v28 = vpop.eup %7923 }
 0xaec   : > { %5987 = vadd.xlane.f32.xlu2 %v5986_v58  ;;  %v7926_v43 = vpop.eup %7925  ;;  %v6041_v25 = vmul.f32 %v7924_v28, %v11239_v24 }
 0xaed   : > { %v6042_v6 = vmul.f32 %v7926_v43, %v11223_v61 }
 0xaee   : > { %v7928_v0 = vpop.eup %7927  ;;  %v6073_v48 = vpack.c.bf16 %v6041_v25, %v6041_v25 }
 0xaef   : > { %7250 = vmatmul.msk.bf16.vlgmr.msrb.gmra.mxu1 %vm1528_vm1, %v6195_v62  ;;  %v11330_v63 = vpop.eup %7929  ;;  %v6050_v5 = vmul.f32 %v7928_v0, %v11245_v32  ;;  %v6074_v26 = vpack.c.bf16 %v6042_v6, %v6042_v6 }
 0xaf0   : > { %6359 = vmatpush.bf16.msrb.mxu1 %v6347_v21  ;;  %v7932_v4 = vpop.eup %7931  ;;  %v5980_v24 = vsel %vm1528_vm1, %v11330_v63, 0.0  ;;  %v6268_v16 = vunpack.c.l.b16 %v6073_v48 }
 0xaf1   : > { %v6049_v49 = vmul.f32 %v7932_v4, %v11186_v1  ;;  %v6082_v9 = vpack.c.bf16 %v6050_v5, %v6050_v5  ;;  %v6269_v30 = vunpack.c.l.b16 %v6074_v26  ;;  %v12105_v1 = vld [vmem:[#allocation94_spill] sm:$0xff] }
 0xaf2   : > { %v6322_v41 = vpop.permute.xlu0 %6321 }
 0xaf3   : > { %6334 = vmatpush.bf16.msrb.mxu0 %v6322_v41  ;;  %v6081_v13 = vpack.c.bf16 %v6049_v49, %v6049_v49  ;;  %v6270_v61 = vpack.c.b16 %v6269_v30, %v6268_v16  ;;  %v6369_v33 = vunpack.c.l.b16 %v6082_v9 }
 0xaf5   : > { %v6368_v40 = vunpack.c.l.b16 %v6081_v13 }
 0xaf6   : > { %7255 = vmatmul.msk.bf16.vlgmr.msrb.gmra.mxu0 %vm1528_vm1, %v6320_v42 }
 0xaf7   : > { %v6370_v32 = vpack.c.b16 %v6369_v33, %v6368_v40 }
 0xaf8   : > { %5981 = vadd.xlane.f32.xlu0 %v5980_v24 }
 0xaff   : > { %v6372_v35 = vpop.permute.xlu1 %6371  ;;  %7253 = vmatmul.msk.bf16.vlgmr.msra.gmra.mxu1 %vm1528_vm1, %v6270_v61 }
 0xb00   : > { %6384 = vmatpush.bf16.msra.mxu3 %v6372_v35 }
 0xb03   : > { %7257 = vmatmul.msk.bf16.vlgmr.msra.gmra.mxu3 %vm1528_vm1, %v6370_v32 }
 0xb04   : > { %6446 = vrot.lane.b32.xlu2 %v12105_v1, %s8197_s14 }
 0xb0c   : > { %6471 = vrot.lane.b32.xlu0 %v12106_v47, %s8197_s14 }
 0xb14   : > { %v5799_v59 = vpop.xlane.xlu2 %5798 }
 0xb15   : > { %v5833_v55 = vsub.f32 %v11261_v14, %v5799_v59 }
 0xb17   : > { %v5895_v54 = vmul.f32 1.442695, %v5833_v55 }
 0xb1d   : > { %v5793_v22 = vpop.xlane.xlu0 %5792 }
 0xb1e   : > { %v5831_v39 = vsub.f32 %v11273_v60, %v5793_v22 }
 0xb20   : > { %v5891_v58 = vmul.f32 1.442695, %v5831_v39 }
 0xb22   : > { %7933 = vpow2.f32 %v5891_v58 }
 0xb23   : > { %7935 = vpow2.f32 %v5895_v54 }
 0xb25   : > { %v5973_v19 = vpop.xlane.xlu0 %5972 }
 0xb28   : > { %v11346_v62 = vpop.eup %7933 }
 0xb29   : > { %v11348_v28 = vpop.eup %7935  ;;  %v5983_v3 = vsel %vm1528_vm1, %v11346_v62, 0.0 }
 0xb2a   : > { %v5961_v21 = vpop.xlane.xlu1 %5960  ;;  %5984 = vadd.xlane.f32.xlu1 %v5983_v3  ;;  %v5989_v14 = vsel %vm1528_vm1, %v11348_v28, 0.0  ;;  %v7340_v3 = vld [vmem:[#allocation10 + $0x30] sm:$0xff] }
 0xb2b   : > { %7937 = vrcp.f32 %v5961_v21 }
 0xb2d   : > { %v5976_v43 = vpop.xlane.xlu0 %5975  ;;  %5990 = vadd.xlane.f32.xlu2 %v5989_v14 }
 0xb2e   : > { %7939 = vrcp.f32 %v5976_v43 }
 0xb2f   : > { %7941 = vrcp.f32 %v5973_v19  ;;  %v7341_v19 = vld [vmem:[#allocation10 + $0x38] sm:$0xff] }
 0xb31   : > { %v7938_v11 = vpop.eup %7937 }
 0xb32   : > { %v5964_v60 = vpop.xlane.xlu1 %5963  ;;  %v6047_v50 = vmul.f32 %v7938_v11, %v11289_v51  ;;  %v12107_v51 = vld [vmem:[#allocation89_spill] sm:$0xff] }
 0xb33   : > { %7943 = vrcp.f32 %v5964_v60 }
 0xb34   : > { %v7940_v25 = vpop.eup %7939  ;;  %v6079_v42 = vpack.c.bf16 %v6047_v50, %v6047_v50 }
 0xb35   : > { %v7942_v0 = vpop.eup %7941  ;;  %v6052_v41 = vmul.f32 %v7940_v25, %v11291_v18 }
 0xb36   : > { %v6051_v6 = vmul.f32 %v7942_v0, %v11285_v46  ;;  %v6343_v24 = vunpack.c.l.b16 %v6079_v42  ;;  %v5979_v46 = vpop.xlane.xlu2 %5978  ;;  %v6161_v0 = vpop.f32.mrf.mxu3 }
 0xb37   : > { %v6084_v48 = vpack.c.bf16 %v6052_v41, %v6052_v41 }
 0xb38   : > { %v6083_v49 = vpack.c.bf16 %v6051_v6, %v6051_v6 }
 0xb39   : > { %v7944_v4 = vpop.eup %7943  ;;  %v6394_v16 = vunpack.c.l.b16 %v6084_v48 }
 0xb3a   : > { %v6048_v5 = vmul.f32 %v7944_v4, %v11300_v7  ;;  %v6393_v13 = vunpack.c.l.b16 %v6083_v49  ;;  %v5802_v18 = vpop.xlane.xlu1 %5801 }
 0xb3b   : > { %v5834_v7 = vsub.f32 %v11304_v57, %v5802_v18 }
 0xb3c   : > { %v6080_v26 = vpack.c.bf16 %v6048_v5, %v6048_v5  ;;  %v6395_v33 = vpack.c.b16 %v6394_v16, %v6393_v13 }
 0xb3d   : > { %v5897_v35 = vmul.f32 1.442695, %v5834_v7 }
 0xb3e   : > { %v6344_v9 = vunpack.c.l.b16 %v6080_v26 }
 0xb3f   : > { %7945 = vpow2.f32 %v5897_v35 }
 0xb40   : > { %v6345_v30 = vpack.c.b16 %v6344_v9, %v6343_v24  ;;  %v6397_v61 = vpop.permute.xlu0 %6396  ;;  %v6163_v24 = vpop.f32.mrf.mxu3 }
 0xb41   : > { %6409 = vmatpush.bf16.msra.mxu0 %v6397_v61 }
 0xb42   : > { %7256 = vmatmul.msk.bf16.vlgmr.msrb.gmra.mxu1 %vm1528_vm1, %v6345_v30 }
 0xb43   : > { %6421 = vrot.lane.b32.xlu1 %v12107_v51, %s8197_s14 }
 0xb44   : > { %7258 = vmatmul.msk.bf16.vlgmr.msra.gmra.mxu0 %vm1528_vm1, %v6395_v33 }
 0xb45   : > { %v11367_v59 = vpop.eup %7945 }
 0xb46   : > { %v5992_v22 = vsel %vm1528_vm1, %v11367_v59, 0.0 }
 0xb48   : > { %v6236_v33 = vpop.f32.mrf.mxu3 }
 0xb50   : > { %v6238_v51 = vpop.f32.mrf.mxu3 }
 0xb58   : > { %v6311_v35 = vpop.f32.mrf.mxu3 }
 0xb5c   : > { %v11363_v40 = vpop.f32.mrf.mxu1 }
 0xb5f   : > { %v5988_v32 = vpop.xlane.xlu2 %5987 }
 0xb60   : > { %7947 = vrcp.f32 %v5988_v32 }
 0xb64   : > { %v11365_v1 = vpop.f32.mrf.mxu1 }
 0xb65   : > { %v6492_v32 = vpack.c.bf16 %v11365_v1, %v11363_v40 }
 0xb66   : > { %v7948_v14 = vpop.eup %7947 }
 0xb67   : > { %v6447_v47 = vpop.permute.xlu2 %6446  ;;  %v6056_v43 = vmul.f32 %v7948_v14, %v11323_v45  ;;  %v6261_v45 = vpop.f32.mrf.mxu0 }
 0xb68   : > { %6459 = vmatpush.bf16.msrb.mxu3 %v6447_v47  ;;  %v6313_v47 = vpop.f32.mrf.mxu3 }
 0xb69   : > { %v6088_v11 = vpack.c.bf16 %v6056_v43, %v6056_v43 }
 0xb6b   : > { %v5982_v54 = vpop.xlane.xlu0 %5981  ;;  %v6444_v6 = vunpack.c.l.b16 %v6088_v11 }
 0xb6c   : > { %v11369_v55 = vpop.f32.mrf.mxu1  ;;  %7346 = vmatpush.bf16.msra.mxu3 %v7341_v19 }
 0xb6d   : > { %5993 = vadd.xlane.f32.xlu1 %v5992_v22 }
 0xb6f   : > { %v6263_v61 = vpop.f32.mrf.mxu0 }
 0xb70   : > { %7347 = vmatpush.bf16.msra.mxu3 %v7340_v3 }
 0xb74   : > { %v11373_v39 = vpop.f32.mrf.mxu1 }
 0xb75   : > { %v6495_v57 = vpack.c.bf16 %v11373_v39, %v11369_v55  ;;  %v12109_v39 = vld [vmem:[#allocation116_spill] sm:$0xff] }
 0xb7e   : > { %v6472_v58 = vpop.permute.xlu0 %6471 }
 0xb7f   : > { %6484 = vmatpush.bf16.msrb.mxu0 %v6472_v58  ;;  %v6336_v58 = vpop.f32.mrf.mxu0 }
 0xb87   : > { %v6338_v14 = vpop.f32.mrf.mxu0 }
 0xb9d   : > { %v5985_v21 = vpop.xlane.xlu1 %5984 }
 0xb9e   : > { %7949 = vrcp.f32 %v5985_v21  ;;  %v6493_v21 = vpack.c.bf16 %v6163_v24, %v6161_v0 }
 0xb9f   : > { %7951 = vrcp.f32 %v5982_v54  ;;  %v6499_v54 = vpack.c.bf16 %v6313_v47, %v6311_v35 }
 0xba0   : > { %7953 = vrcp.f32 %v5979_v46  ;;  %v6491_v46 = vpack.c.bf16 %v11208_v36, %v11195_v12  ;;  %v5991_v22 = vpop.xlane.xlu2 %5990 }
 0xba1   : > { %7955 = vrcp.f32 %v5991_v22 }
 0xba4   : > { %v7950_v60 = vpop.eup %7949 }
 0xba5   : > { %v6055_v25 = vmul.f32 %v7950_v60, %v11346_v62  ;;  %v7952_v41 = vpop.eup %7951  ;;  %v6500_v60 = vpack.c.bf16 %v6338_v14, %v6336_v58 }
 0xba6   : > { %v7954_v42 = vpop.eup %7953  ;;  %v6054_v48 = vmul.f32 %v7952_v41, %v11330_v63  ;;  %v6497_v63 = vpack.c.bf16 %v6263_v61, %v6261_v45  ;;  %v11415_v61 = vld [vmem:[%s11575_s5] ss:$0 sm:$0xff] }
 0xba7   : > { %v6087_v50 = vpack.c.bf16 %v6055_v25, %v6055_v25  ;;  %v6053_v49 = vmul.f32 %v7954_v42, %v11270_v29  ;;  %v6286_v29 = vpop.f32.mrf.mxu1  ;;  %v7956_v36 = vpop.eup %7955 }
 0xba8   : > { %v6086_v26 = vpack.c.bf16 %v6054_v48, %v6054_v48 }
 0xba9   : > { %v6443_v4 = vunpack.c.l.b16 %v6087_v50  ;;  %v6085_v16 = vpack.c.bf16 %v6053_v49, %v6053_v49 }
 0xbaa   : > { %v6419_v9 = vunpack.c.l.b16 %v6086_v26 }
 0xbab   : > { %v6445_v5 = vpack.c.b16 %v6444_v6, %v6443_v4  ;;  %v6418_v13 = vunpack.c.l.b16 %v6085_v16 }
 0xbad   : > { %7260 = vmatmul.msk.bf16.vlgmr.msrb.gmra.mxu3 %vm1528_vm1, %v6445_v5  ;;  %v6420_v30 = vpack.c.b16 %v6419_v9, %v6418_v13  ;;  %v6496_v5 = vpack.c.bf16 %v6238_v51, %v6236_v33 }
 0xbaf   : > { %v6288_v18 = vpop.f32.mrf.mxu1 }
 0xbb0   : > { %v6498_v7 = vpack.c.bf16 %v6288_v18, %v6286_v29  ;;  %v12112_v18 = vld [vmem:[#allocation82_spill] sm:$0xff] }
 0xbb5   : > { %v6422_v62 = vpop.permute.xlu1 %6421 }
 0xbb6   : > { %6434 = vmatpush.bf16.msra.mxu1 %v6422_v62 }
 0xbb9   : > { %7259 = vmatmul.msk.bf16.vlgmr.msra.gmra.mxu1 %vm1528_vm1, %v6420_v30 }
 0xbba   : > { %6573 = vmatpush.bf16.msrb.mxu1 %v7341_v19  ;;  %v6057_v19 = vmul.f32 %v7956_v36, %v11348_v28  ;;  %v12108_v28 = vpack.c.bf16 %v11228_v37, %v11215_v2  ;;  %v5208_v37 = vpop.f32.mrf.mxu2 }
 0xbbc   : > { %v6089_v43 = vpack.c.bf16 %v6057_v19, %v6057_v19  ;;  %v12113_v19 = vld [vmem:[#allocation66_spill] sm:$0xff] }
 0xbbd   : > { %7276 = vmatmul.msk.bf16.vlgmr.msra.gmra.mxu3 %vm1057_vm0, %v6497_v63 }
 0xbbe   : > { %6574 = vmatpush.bf16.msrb.mxu1 %v7340_v3  ;;  %v6468_v11 = vunpack.c.l.b16 %v6089_v43 }
 0xbbf   : > { %v6361_v50 = vpop.f32.mrf.mxu1 }
 0xbc1   : > { %v6411_v48 = vpop.f32.mrf.mxu0 }
 0xbc2   : > { %v5210_v45 = vpop.f32.mrf.mxu2 }
 0xbc7   : > { %v6363_v6 = vpop.f32.mrf.mxu1 }
 0xbc8   : > { %v6501_v0 = vpack.c.bf16 %v6363_v6, %v6361_v50  ;;  %v12116_v6 = vld [vmem:[#allocation101_spill] sm:$0xff] }
 0xbc9   : > { %7270 = vmatmul.msk.bf16.vlgmr.msrb.gmra.mxu1 %vm1057_vm0, %v6491_v46  ;;  %v6413_v49 = vpop.f32.mrf.mxu0  ;;  %v12111_v46 = vld [vmem:[#allocation110_spill] sm:$0xff] }
 0xbca   : > { %v6503_v2 = vpack.c.bf16 %v6413_v49, %v6411_v48  ;;  %v5213_v24 = vpop.f32.mrf.mxu2  ;;  %v12117_v49 = vld [vmem:[#allocation111_spill] sm:$0xff] }
 0xbcd   : > { %7277 = vmatmul.msk.bf16.gmra.mxu3 %vm1057_vm0, %v6498_v7  ;;  %v3845_v7 = vadd.f32 %v12112_v18, %v12111_v46 }
 0xbd2   : > { %v5215_v33 = vpop.f32.mrf.mxu2 }
 0xbd9   : > { %7271 = vmatmul.msk.bf16.gmra.mxu1 %vm1057_vm0, %v6492_v32  ;;  %v5271_v32 = vadd.f32 %v5210_v45, %v3845_v7  ;;  %v12121_v7 = vld [vmem:[#allocation97_spill] sm:$0xff] }
 0xbdd   : > { %7278 = vmatmul.msk.bf16.gmra.mxu3 %vm1057_vm0, %v6499_v54 }
 0xbe0   : > { %v5994_v12 = vpop.xlane.xlu1 %5993 }
 0xbe1   : > { %7957 = vrcp.f32 %v5994_v12  ;;  %v5218_v12 = vpop.f32.mrf.mxu2 }
 0xbe7   : > { %v7958_v3 = vpop.eup %7957 }
 0xbe8   : > { %v6058_v40 = vmul.f32 %v7958_v3, %v11367_v59  ;;  %v6386_v59 = vpop.f32.mrf.mxu3  ;;  %v12114_v3 = vld [vmem:[#allocation109_spill] sm:$0xff] }
 0xbe9   : > { %7272 = vmatmul.msk.bf16.gmra.mxu1 %vm1057_vm0, %v6493_v21  ;;  %v3848_v21 = vadd.f32 %v12114_v3, %v12113_v19  ;;  %v5220_v50 = vpop.f32.mrf.mxu2 }
 0xbea   : > { %v6090_v1 = vpack.c.bf16 %v6058_v40, %v6058_v40 }
 0xbeb   : > { %v5272_v43 = vadd.f32 %v5213_v24, %v3848_v21  ;;  %v12123_v21 = vld [vmem:[#allocation125_spill] sm:$0xff] }
 0xbec   : > { %v6469_v25 = vunpack.c.l.b16 %v6090_v1 }
 0xbed   : > { %7279 = vmatmul.msk.bf16.gmra.mxu3 %vm1057_vm0, %v6500_v60 }
 0xbee   : > { %v6470_v41 = vpack.c.b16 %v6469_v25, %v6468_v11 }
 0xbf0   : > { %7261 = vmatmul.msk.bf16.vlgmr.msrb.gmra.mxu0 %vm1528_vm1, %v6470_v41  ;;  %v6388_v4 = vpop.f32.mrf.mxu3  ;;  %v12115_v41 = vld [vmem:[#allocation123_spill] sm:$0xff] }
 0xbf1   : > { %v6502_v42 = vpack.c.bf16 %v6388_v4, %v6386_v59  ;;  %v5223_v45 = vpop.f32.mrf.mxu2 }
 0xbf9   : > { %7273 = vmatmul.msk.bf16.gmra.mxu1 %vm1057_vm0, %v12108_v28  ;;  %v3850_v28 = vadd.f32 %v12116_v6, %v12115_v41 }
 0xbfb   : > { %v5273_v59 = vadd.f32 %v5215_v33, %v3850_v28  ;;  %v12125_v28 = vld [vmem:[#allocation23_spill] sm:$0xff] }
 0xbfd   : > { %7280 = vmatmul.msk.bf16.gmra.mxu3 %vm1057_vm0, %v6501_v0 }
 0xc09   : > { %7274 = vmatmul.msk.bf16.gmra.mxu1 %vm1057_vm0, %v6495_v57  ;;  %v12110_v57 = vld [vmem:[#allocation98_spill] sm:$0xff] }
 0xc0a   : > { %v3843_v9 = vadd.f32 %v12110_v57, %v12109_v39 }
 0xc0c   : > { %v5270_v62 = vadd.f32 %v5208_v37, %v3843_v9  ;;  %v12119_v9 = vld [vmem:[#allocation104_spill] sm:$0xff] }
 0xc0d   : > { %7281 = vmatmul.msk.bf16.gmra.mxu3 %vm1057_vm0, %v6502_v42 }
 0xc19   : > { %7275 = vmatmul.msk.bf16.gmra.mxu1 %vm1057_vm0, %v6496_v5 }
 0xc1d   : > { %7282 = vmatmul.msk.bf16.gmra.mxu3 %vm1057_vm0, %v6503_v2  ;;  %v12118_v2 = vld [vmem:[#allocation28_spill] sm:$0xff] }
 0xc1e   : > { %v3853_v37 = vadd.f32 %v12118_v2, %v12117_v49  ;;  %v12127_v2 = vld [vmem:[#allocation34_spill] sm:$0xff] }
 0xc20   : > { %v5274_v24 = vadd.f32 %v5218_v12, %v3853_v37  ;;  %v12128_v37 = vld [vmem:[#allocation107_spill] sm:$0xff] }
 0xc30   : > { %v6461_v26 = vpop.f32.mrf.mxu3 }
 0xc36   : > { %v6436_v16 = vpop.f32.mrf.mxu1 }
 0xc38   : > { %v6463_v55 = vpop.f32.mrf.mxu3 }
 0xc39   : > { %v6505_v40 = vpack.c.bf16 %v6463_v55, %v6461_v26 }
 0xc3e   : > { %v6438_v13 = vpop.f32.mrf.mxu1 }
 0xc3f   : > { %v6504_v30 = vpack.c.bf16 %v6438_v13, %v6436_v16  ;;  %v12120_v13 = vld [vmem:[#allocation83_spill] sm:$0xff] }
 0xc40   : > { %v6606_v63 = vpop.f32.mrf.mxu3 }
 0xc41   : > { %v6668_v29 = vadd.f32 %v6606_v63, %v5270_v62  ;;  %7283 = vmatmul.msk.bf16.gmra.mxu3 %vm1057_vm0, %v6504_v30  ;;  %v3855_v62 = vadd.f32 %v12120_v13, %v12119_v9  ;;  %v12129_v9 = vld [vmem:[#allocation32_spill] sm:$0xff]  ;;  %v12130_v13 = vld [vmem:[#allocation74_spill] sm:$0xff] }
 0xc43   : > { %v6704_v51 = vadd.f32 %v11415_v61, %v6668_v29  ;;  %v5275_v33 = vadd.f32 %v5220_v50, %v3855_v62  ;;  %v5225_v29 = vpop.f32.mrf.mxu2  ;;  %v3868_v62 = vadd.f32 %v12130_v13, %v12129_v9 }
 0xc45   : > { %6736 = vst [vmem:[%s11421_s7 + $0x60] sm:$0xff] %v6704_v51 }
 0xc46   : > { %v6576_v35 = vpop.f32.mrf.mxu1 }
 0xc47   : > { %v6656_v47 = vadd.f32 %v6576_v35, %v11060_v27  ;;  %v12122_v35 = vld [vmem:[#allocation78_spill] sm:$0xff] }
 0xc48   : > { %v6608_v22 = vpop.f32.mrf.mxu3 }
 0xc49   : > { %v6692_v54 = vadd.f32 %v11415_v61, %v6656_v47  ;;  %v6669_v58 = vadd.f32 %v6608_v22, %v5271_v32  ;;  %v3858_v32 = vadd.f32 %v12122_v35, %v12121_v7  ;;  %v12132_v7 = vld [vmem:[#allocation113_spill] sm:$0xff] }
 0xc4b   : > { %6724 = vst [vmem:[%s11421_s7] sm:$0xff] %v6692_v54  ;;  %v6705_v36 = vadd.f32 %v11415_v61, %v6669_v58  ;;  %v5276_v54 = vadd.f32 %v5223_v45, %v3858_v32  ;;  %v5228_v19 = vpop.f32.mrf.mxu2  ;;  %v3865_v45 = vadd.f32 %v12128_v37, %v12127_v2 }
 0xc4d   : > { %6737 = vst [vmem:[%s11421_s7 + $0x68] sm:$0xff] %v6705_v36 }
 0xc4e   : > { %v6578_v14 = vpop.f32.mrf.mxu1 }
 0xc4f   : > { %v6657_v1 = vadd.f32 %v6578_v14, %v11066_v31  ;;  %v12124_v14 = vld [vmem:[#allocation68_spill] sm:$0xff] }
 0xc50   : > { %v6611_v27 = vpop.f32.mrf.mxu3 }
 0xc51   : > { %v6693_v60 = vadd.f32 %v11415_v61, %v6657_v1  ;;  %v6670_v11 = vadd.f32 %v6611_v27, %v5272_v43  ;;  %7284 = vmatmul.msk.bf16.gmra.mxu3 %vm1057_vm0, %v6505_v40  ;;  %v3860_v43 = vadd.f32 %v12124_v14, %v12123_v21 }
 0xc53   : > { %6725 = vst [vmem:[%s11421_s7 + $0x8] sm:$0xff] %v6693_v60  ;;  %v6706_v25 = vadd.f32 %v11415_v61, %v6670_v11  ;;  %v5277_v60 = vadd.f32 %v5225_v29, %v3860_v43  ;;  %v5230_v6 = vpop.f32.mrf.mxu2 }
 0xc55   : > { %6738 = vst [vmem:[%s11421_s7 + $0x70] sm:$0xff] %v6706_v25 }
 0xc56   : > { %v6581_v0 = vpop.f32.mrf.mxu1 }
 0xc57   : > { %v6658_v31 = vadd.f32 %v6581_v0, %v11074_v17  ;;  %v12126_v0 = vld [vmem:[#allocation64_spill] sm:$0xff] }
 0xc58   : > { %v6613_v4 = vpop.f32.mrf.mxu3 }
 0xc59   : > { %v6694_v42 = vadd.f32 %v11415_v61, %v6658_v31  ;;  %v6671_v48 = vadd.f32 %v6613_v4, %v5273_v59  ;;  %v3863_v59 = vadd.f32 %v12126_v0, %v12125_v28  ;;  %v12137_v0 = vld [vmem:[#allocation46_spill] sm:$0xff] }
 0xc5b   : > { %6726 = vst [vmem:[%s11421_s7 + $0x10] sm:$0xff] %v6694_v42  ;;  %v6707_v5 = vadd.f32 %v11415_v61, %v6671_v48  ;;  %v5278_v4 = vadd.f32 %v5228_v19, %v3863_v59  ;;  %v12134_v19 = vld [vmem:[#allocation99_spill] sm:$0xff]  ;;  %v12138_v59 = vld [vmem:[#allocation85_spill] sm:$0xff] }
 0xc5d   : > { %6739 = vst [vmem:[%s11421_s7 + $0x78] sm:$0xff] %v6707_v5 }
 0xc5e   : > { %v6583_v26 = vpop.f32.mrf.mxu1 }
 0xc5f   : > { %v6659_v16 = vadd.f32 %v6583_v26, %v11082_v10  ;;  %v5233_v26 = vpop.f32.mrf.mxu2 }
 0xc60   : > { %v6616_v55 = vpop.f32.mrf.mxu3 }
 0xc61   : > { %v6695_v17 = vadd.f32 %v11415_v61, %v6659_v16  ;;  %v6672_v39 = vadd.f32 %v6616_v55, %v5274_v24  ;;  %v5279_v16 = vadd.f32 %v5230_v6, %v3865_v45 }
 0xc63   : > { %6727 = vst [vmem:[%s11421_s7 + $0x18] sm:$0xff] %v6695_v17  ;;  %v6708_v57 = vadd.f32 %v11415_v61, %v6672_v39 }
 0xc65   : > { %6740 = vst [vmem:[%s11421_s7 + $0x80] sm:$0xff] %v6708_v57 }
 0xc66   : > { %v6586_v30 = vpop.f32.mrf.mxu1 }
 0xc67   : > { %v6660_v63 = vadd.f32 %v6586_v30, %v11099_v52  ;;  %v5235_v29 = vpop.f32.mrf.mxu2 }
 0xc68   : > { %v6618_v51 = vpop.f32.mrf.mxu3 }
 0xc69   : > { %v6696_v10 = vadd.f32 %v11415_v61, %v6660_v63  ;;  %v6673_v46 = vadd.f32 %v6618_v51, %v5275_v33  ;;  %v5280_v33 = vadd.f32 %v5233_v26, %v3868_v62  ;;  %v12142_v62 = vld [vmem:[#allocation112_spill] sm:$0xff] }
 0xc6b   : > { %6728 = vst [vmem:[%s11421_s7 + $0x20] sm:$0xff] %v6696_v10  ;;  %v6709_v18 = vadd.f32 %v11415_v61, %v6673_v46 }
 0xc6d   : > { %6741 = vst [vmem:[%s11421_s7 + $0x88] sm:$0xff] %v6709_v18  ;;  %v6486_v47 = vpop.f32.mrf.mxu0  ;;  %v12131_v18 = vld [vmem:[#allocation29_spill] sm:$0xff] }
 0xc6e   : > { %v6588_v22 = vpop.f32.mrf.mxu1  ;;  %v3870_v35 = vadd.f32 %v12132_v7, %v12131_v18 }
 0xc6f   : > { %v6661_v58 = vadd.f32 %v6588_v22, %v11109_v23 }
 0xc70   : > { %v6621_v52 = vpop.f32.mrf.mxu3 }
 0xc71   : > { %v6697_v12 = vadd.f32 %v11415_v61, %v6661_v58  ;;  %v6674_v36 = vadd.f32 %v6621_v52, %v5276_v54  ;;  %v5238_v52 = vpop.f32.mrf.mxu2 }
 0xc73   : > { %6729 = vst [vmem:[%s11421_s7 + $0x28] sm:$0xff] %v6697_v12  ;;  %v6710_v3 = vadd.f32 %v11415_v61, %v6674_v36  ;;  %v12133_v36 = vld [vmem:[#allocation37_spill] sm:$0xff] }
 0xc75   : > { %6742 = vst [vmem:[%s11421_s7 + $0x90] sm:$0xff] %v6710_v3  ;;  %v6488_v40 = vpop.f32.mrf.mxu0  ;;  %v3873_v3 = vadd.f32 %v12134_v19, %v12133_v36 }
 0xc76   : > { %v6506_v1 = vpack.c.bf16 %v6488_v40, %v6486_v47  ;;  %v6591_v27 = vpop.f32.mrf.mxu1  ;;  %v5281_v47 = vadd.f32 %v5235_v29, %v3870_v35 }
 0xc77   : > { %v6662_v23 = vadd.f32 %v6591_v27, %v11125_v34  ;;  %v5282_v14 = vadd.f32 %v5238_v52, %v3873_v3 }
 0xc78   : > { %v6623_v11 = vpop.f32.mrf.mxu3  ;;  %7285 = vmatmul.msk.bf16.gmra.mxu3 %vm1057_vm0, %v6506_v1 }
 0xc79   : > { %v6698_v25 = vadd.f32 %v11415_v61, %v6662_v23  ;;  %v6675_v50 = vadd.f32 %v6623_v11, %v5277_v60  ;;  %v5240_v60 = vpop.f32.mrf.mxu2  ;;  %v12135_v23 = vld [vmem:[#allocation35_spill] sm:$0xff]  ;;  %v12136_v11 = vld [vmem:[#allocation114_spill] sm:$0xff] }
 0xc7b   : > { %6730 = vst [vmem:[%s11421_s7 + $0x30] sm:$0xff] %v6698_v25  ;;  %v6711_v41 = vadd.f32 %v11415_v61, %v6675_v50  ;;  %v3875_v25 = vadd.f32 %v12136_v11, %v12135_v23 }
 0xc7d   : > { %6743 = vst [vmem:[%s11421_s7 + $0x98] sm:$0xff] %v6711_v41  ;;  %v5283_v50 = vadd.f32 %v5240_v60, %v3875_v25 }
 0xc7e   : > { %v6593_v31 = vpop.f32.mrf.mxu1 }
 0xc7f   : > { %v6663_v34 = vadd.f32 %v6593_v31, %v11139_v20  ;;  %v3878_v31 = vadd.f32 %v12138_v59, %v12137_v0 }
 0xc80   : > { %v6626_v42 = vpop.f32.mrf.mxu3 }
 0xc81   : > { %v6699_v48 = vadd.f32 %v11415_v61, %v6663_v34  ;;  %v6676_v5 = vadd.f32 %v6626_v42, %v5278_v4 }
 0xc83   : > { %6731 = vst [vmem:[%s11421_s7 + $0x38] sm:$0xff] %v6699_v48  ;;  %v6712_v49 = vadd.f32 %v11415_v61, %v6676_v5 }
 0xc85   : > { %6744 = vst [vmem:[%s11421_s7 + $0xa0] sm:$0xff] %v6712_v49  ;;  %v12139_v49 = vld [vmem:[#allocation67_spill] sm:$0xff] }
 0xc86   : > { %v6596_v24 = vpop.f32.mrf.mxu1  ;;  %v3880_v2 = vadd.f32 %v12139_v49, %v10997_v38  ;;  %v12141_v38 = vld [vmem:[#allocation50_spill] sm:$0xff] }
 0xc87   : > { %v6664_v55 = vadd.f32 %v6596_v24, %v11157_v56 }
 0xc88   : > { %v6628_v17 = vpop.f32.mrf.mxu3 }
 0xc89   : > { %v6700_v20 = vadd.f32 %v11415_v61, %v6664_v55  ;;  %v6677_v39 = vadd.f32 %v6628_v17, %v5279_v16  ;;  %v12140_v55 = vld [vmem:[#allocation71_spill] sm:$0xff] }
 0xc8a   : > { %v3883_v17 = vadd.f32 %v12140_v55, %v11008_v15 }
 0xc8b   : > { %6732 = vst [vmem:[%s11421_s7 + $0x40] sm:$0xff] %v6700_v20  ;;  %v6713_v57 = vadd.f32 %v11415_v61, %v6677_v39 }
 0xc8d   : > { %6745 = vst [vmem:[%s11421_s7 + $0xa8] sm:$0xff] %v6713_v57 }
 0xc8e   : > { %v6598_v30 = vpop.f32.mrf.mxu1 }
 0xc8f   : > { %v6665_v63 = vadd.f32 %v6598_v30, %v11170_v53  ;;  %v3885_v30 = vadd.f32 %v12142_v62, %v12141_v38 }
 0xc90   : > { %v6631_v51 = vpop.f32.mrf.mxu3 }
 0xc91   : > { %v6701_v56 = vadd.f32 %v11415_v61, %v6665_v63  ;;  %v6678_v10 = vadd.f32 %v6631_v51, %v5280_v33 }
 0xc93   : > { %6733 = vst [vmem:[%s11421_s7 + $0x48] sm:$0xff] %v6701_v56  ;;  %v6714_v46 = vadd.f32 %v11415_v61, %v6678_v10  ;;  %v12143_v56 = vld [vmem:[#allocation55_spill] sm:$0xff]  ;;  %v12144_v10 = vld [vmem:[#allocation96_spill] sm:$0xff] }
 0xc95   : > { %6746 = vst [vmem:[%s11421_s7 + $0xb0] sm:$0xff] %v6714_v46  ;;  %v3888_v46 = vadd.f32 %v12144_v10, %v12143_v56 }
 0xc96   : > { %v6601_v32 = vpop.f32.mrf.mxu1 }
 0xc97   : > { %v6666_v22 = vadd.f32 %v6601_v32, %v11184_v44 }
 0xc98   : > { %v6633_v53 = vpop.f32.mrf.mxu3 }
 0xc99   : > { %v6702_v54 = vadd.f32 %v11415_v61, %v6666_v22  ;;  %v6679_v58 = vadd.f32 %v6633_v53, %v5281_v47  ;;  %v12145_v22 = vld [vmem:[#allocation60_spill] sm:$0xff]  ;;  %v12146_v53 = vld [vmem:[#allocation59_spill] sm:$0xff] }
 0xc9b   : > { %6734 = vst [vmem:[%s11421_s7 + $0x50] sm:$0xff] %v6702_v54  ;;  %v6715_v12 = vadd.f32 %v11415_v61, %v6679_v58  ;;  %v3890_v54 = vadd.f32 %v12146_v53, %v12145_v22 }
 0xc9d   : > { %6747 = vst [vmem:[%s11421_s7 + $0xb8] sm:$0xff] %v6715_v12 }
 0xc9e   : > { %v6603_v21 = vpop.f32.mrf.mxu1 }
 0xc9f   : > { %v6667_v43 = vadd.f32 %v6603_v21, %v11192_v8  ;;  %v5243_v8 = vpop.f32.mrf.mxu2 }
 0xca0   : > { %v6636_v40 = vpop.f32.mrf.mxu3  ;;  %v5284_v4 = vadd.f32 %v5243_v8, %v3878_v31 }
 0xca1   : > { %v6703_v44 = vadd.f32 %v11415_v61, %v6667_v43  ;;  %v6680_v1 = vadd.f32 %v6636_v40, %v5282_v14 }
 0xca3   : > { %6735 = vst [vmem:[%s11421_s7 + $0x58] sm:$0xff] %v6703_v44  ;;  %v6716_v27 = vadd.f32 %v11415_v61, %v6680_v1 }
 0xca5   : > { %6748 = vst [vmem:[%s11421_s7 + $0xc0] sm:$0xff] %v6716_v27 }
 0xca7   : > { %v5245_v34 = vpop.f32.mrf.mxu2 }
 0xca8   : > { %v6638_v41 = vpop.f32.mrf.mxu3  ;;  %v5285_v37 = vadd.f32 %v5245_v34, %v3880_v2 }
 0xca9   : > { %v6681_v6 = vadd.f32 %v6638_v41, %v5283_v50 }
 0xcab   : > { %v6717_v28 = vadd.f32 %v11415_v61, %v6681_v6 }
 0xcad   : > { %6749 = vst [vmem:[%s11421_s7 + $0xc8] sm:$0xff] %v6717_v28 }
 0xcaf   : > { %v5248_v24 = vpop.f32.mrf.mxu2 }
 0xcb0   : > { %v5286_v20 = vadd.f32 %v5248_v24, %v3883_v17 }
 0xcb7   : > { %v5250_v13 = vpop.f32.mrf.mxu2 }
 0xcb8   : > { %v5287_v33 = vadd.f32 %v5250_v13, %v3885_v30 }
 0xcbf   : > { %v5253_v15 = vpop.f32.mrf.mxu2 }
 0xcc0   : > { %v5288_v18 = vadd.f32 %v5253_v15, %v3888_v46 }
 0xcc4   : > { %v6641_v42 = vpop.f32.mrf.mxu3 }
 0xcc5   : > { %v6682_v48 = vadd.f32 %v6641_v42, %v5284_v4 }
 0xcc7   : > { %v6718_v5 = vadd.f32 %v11415_v61, %v6682_v48  ;;  %v5255_v47 = vpop.f32.mrf.mxu2 }
 0xcc8   : > { %v5289_v58 = vadd.f32 %v5255_v47, %v3890_v54 }
 0xcc9   : > { %6750 = vst [vmem:[%s11421_s7 + $0xd0] sm:$0xff] %v6718_v5 }
 0xccc   : > { %v6643_v45 = vpop.f32.mrf.mxu3 }
 0xccd   : > { %v6683_v26 = vadd.f32 %v6643_v45, %v5285_v37 }
 0xccf   : > { %v6719_v16 = vadd.f32 %v11415_v61, %v6683_v26 }
 0xcd1   : > { %6751 = vst [vmem:[%s11421_s7 + $0xd8] sm:$0xff] %v6719_v16 }
 0xcd4   : > { %v6646_v39 = vpop.f32.mrf.mxu3 }
 0xcd5   : > { %v6684_v57 = vadd.f32 %v6646_v39, %v5286_v20 }
 0xcd7   : > { %v6720_v9 = vadd.f32 %v11415_v61, %v6684_v57 }
 0xcd9   : > { %6752 = vst [vmem:[%s11421_s7 + $0xe0] sm:$0xff] %v6720_v9 }
 0xcdc   : > { %v6648_v63 = vpop.f32.mrf.mxu3 }
 0xcdd   : > { %v6685_v29 = vadd.f32 %v6648_v63, %v5287_v33 }
 0xcdf   : > { %v6721_v51 = vadd.f32 %v11415_v61, %v6685_v29 }
 0xce1   : > { %6753 = vst [vmem:[%s11421_s7 + $0xe8] sm:$0xff] %v6721_v51 }
 0xcfb   : > { %v6651_v7 = vpop.f32.mrf.mxu3 }
 0xcfc   : > { %v6686_v35 = vadd.f32 %v6651_v7, %v5288_v18 }
 0xcfe   : > { %v6722_v32 = vadd.f32 %v11415_v61, %v6686_v35 }
 0xd00   : > { %6754 = vst [vmem:[%s11421_s7 + $0xf0] sm:$0xff] %v6722_v32 }
 0xd03   : > { %v6653_v52 = vpop.f32.mrf.mxu3 }
 0xd04   : > { %v6687_v12 = vadd.f32 %v6653_v52, %v5289_v58 }
 0xd06   : > { %v6723_v36 = vadd.f32 %v11415_v61, %v6687_v12 }
 0xd08   : > { %6755 = vst [vmem:[%s11421_s7 + $0xf8] sm:$0xff] %v6723_v36 }
 0xd09   : > { %8136 = shalt.err (!%p8133_p10)
}
 0xd0a   : > { %s8198_s9 = smov 128   ;;  %s8199_s7 = smov 8  }
 0xd0b   : > { %7366 = dma.vmem_to_hbm [thread:$0]  (%p8325_p5), %s6771_s16, 4096, %s6773_s17, %s6757_s25, %s8198_s9, %s8198_s9, %s8199_s7  }
 0xd0c PF: > { %s6787_s10 = sand.u32 1, %s8171_s21   ;;  %p12147_p12 = scmp.ge.s32.totalorder %s8183_s24, 2 }
 0xd0d   : > { %s6788_s12 = scalar_lea.sflag [#allocation4], %s6787_s10 }
 0xd0e   : > { %p7386_p13 = pnand %p12147_p12, %p8270_p6 }
 0xd10   : > { %p7387_p0 = pneg %p7386_p13 }
 0xd12   : > { %8166 = dma.done.wait (%p7387_p0), %s6788_s12, 4096  }
 0xd13   : > { %8168 = vsyncadd (%p7387_p0), %s6788_s12, 4294963200  ;;  %p21_p3 = scmp.ge.s32.totalorder %s8312_s18, 4   ;;  %s12148_s21 = smov %s8175_s22 }
 0xd14   : > { %s12149_s22 = smov %s8179_s23  ;;  %s12150_s23 = smov %s8321_s26 }
 0xd15   : > { %s12151_s24 = smov %s8312_s18  ;;  %23 = sbr.rel (!%p21_p3) target bundleno = 7 (0x7), region = 108 }
 0xd1a   :  { %6794 = vsyncpa [#allocation3], 1 }
 0xd1b   :  { %6796 = vsyncpa [#allocation3 + $0x1], 1 }
 0xd1c   :  { %6797 = vsyncpa [#allocation6], 1 }
 0xd1d   :  { %6798 = vsyncpa [#allocation9], 1 }
 0xd1e   :  { %6799 = vsyncpa [#allocation4], 1 }
 0xd1f   :  { %6801 = vsyncpa [#allocation4 + $0x1], 1 }

</bundles_post_ra>
